<compile_context>
chip_gen: v5e
topology: v5e:2x2
jax: 0.10.0
libtpu: 0.0.40
codegen_flags: <defaults>
</compile_context>

<pallas_src>
import functools

import jax
import jax.numpy as jnp
from jax.experimental import pallas as pl
from jax.experimental.pallas import tpu as pltpu


# ----------------------------------------------------------------------------
# Pallas kernel: one (batch-block, packed-row-block) tile of the KGCN 'sum'
# aggregator.  All hops of one iteration are fused along the row axis.
# ----------------------------------------------------------------------------
def _aggregator_kernel(use_tanh, self_ref, nbr_ref, rel_ref, usr_ref,
                       w4_ref, wk4_ref, b4_ref, sel_ref, grp_ref, spr_ref,
                       out_ref):
    """Block shapes (P = rows packed along the lane axis, PK = P*K):
       self_ref: (bb, TMP, P*D)     bf16  self entity vectors (P rows / vreg-row)
       nbr_ref : (bb, TMP, P*K*D)   bf16  neighbor entity vectors
       rel_ref : (bb, TMP, P*K*D)   bf16  neighbor relation vectors
       usr_ref : (bb, 1,   P*K*D)   bf16  user embedding tiled P*K times
       w4_ref  : (P*D, P*D)         bf16  blockdiag(W, ..., W)
       wk4_ref : (P*K*D, P*D)       bf16  blockdiag(vstack_K(W), ...)
       b4_ref  : (1, P*D)           f32   bias tiled P times
       sel_ref : (P*K*D, P*K)       bf16  sum-over-D selector
       grp_ref : (P*K, P*K)         f32   per-group all-ones blocks
       spr_ref : (P*K, P*K*D)       bf16  spread-over-D selector
       out_ref : (bb, TMP, P*D)     bf16
    """
    w4 = w4_ref[...]
    wk4 = wk4_ref[...]
    b4 = b4_ref[...]
    sel = sel_ref[...]
    grp = grp_ref[...]
    spr = spr_ref[...]

    bb = self_ref.shape[0]
    for bi in range(bb):                      # static unrolled loop over batch
        rel = rel_ref[bi]                     # (TMP, PKD) bf16
        nbr = nbr_ref[bi]                     # (TMP, PKD) bf16
        slf = self_ref[bi]                    # (TMP, PD)  bf16
        usr = usr_ref[bi]                     # (1, PKD)   bf16

        # user-relation attention logits: per (packed row, k) sum over D on MXU
        logits = jnp.dot(rel * usr, sel,
                         preferred_element_type=jnp.float32)      # (TMP, PK) f32

        # softmax over each group's K neighbors.  Subtracting the row max
        # (constant within every group of K lanes) leaves softmax unchanged.
        logits = logits - jnp.max(logits, axis=-1, keepdims=True)
        p = jnp.exp(logits)
        denom = jnp.dot(p, grp, preferred_element_type=jnp.float32)  # group sums
        p = p * pl.reciprocal(denom, approx=True)                    # normalized

        # spread each weight across its group's D lanes (MXU), weight neighbors (VPU)
        p_spread = jnp.dot(p.astype(jnp.bfloat16), spr,
                           preferred_element_type=jnp.float32).astype(jnp.bfloat16)
        weighted = nbr * p_spread                                    # (TMP, PKD) bf16

        # 'sum' aggregator: act((self + agg) @ W + b) == act(self@W + agg@W + b)
        h = (jnp.dot(slf, w4, preferred_element_type=jnp.float32)
             + jnp.dot(weighted, wk4, preferred_element_type=jnp.float32)
             + b4)
        h = jnp.tanh(h) if use_tanh else jax.nn.sigmoid(h)
        out_ref[bi] = h.astype(out_ref.dtype)


# ----------------------------------------------------------------------------
# Static selector / block-diagonal matrices for the lane-packed kernel
# ----------------------------------------------------------------------------
def _make_packed_mats(W, b, K, D, P):
    eye_p = jnp.eye(P, dtype=jnp.float32)
    eye_pk = jnp.eye(P * K, dtype=jnp.float32)
    W4 = jnp.kron(eye_p, W).astype(jnp.bfloat16)                        # (PD, PD)
    WK4 = jnp.kron(eye_p, jnp.tile(W, (K, 1))).astype(jnp.bfloat16)     # (PKD, PD)
    b4 = jnp.tile(b, (1, P)).astype(jnp.float32)                        # (1, PD)
    SEL = jnp.kron(eye_pk, jnp.ones((D, 1), jnp.float32)).astype(jnp.bfloat16)  # (PKD, PK)
    GRP = jnp.kron(eye_p, jnp.ones((K, K), jnp.float32))                # (PK, PK)
    SPR = jnp.kron(eye_pk, jnp.ones((1, D), jnp.float32)).astype(jnp.bfloat16)  # (PK, PKD)
    return W4, WK4, b4, SEL, GRP, SPR


# ----------------------------------------------------------------------------
# Pallas wrapper: one full aggregation iteration (all hops fused along M)
# ----------------------------------------------------------------------------
def aggregate_iteration(self_v, nbr_v, rel_v, usr_kd, mats, *, use_tanh,
                        K, D, P=4, tmp_target=128):
    """self_v: [B, M, D]; nbr_v/rel_v: [B, M, K*D]; usr_kd: [B, 1, P*K*D] -> [B, M, D]."""
    B, M, _ = self_v.shape
    PD, PK, PKD = P * D, P * K, P * K * D

    # pad the row axis so it packs into groups of P rows (and tiles cleanly)
    mpp_need = (M + P - 1) // P
    if mpp_need <= tmp_target:
        tmp = mpp_need                      # single full-extent row block
        MpP = mpp_need
    else:
        tmp = tmp_target                    # multiple of 8 (sublane friendly)
        MpP = ((mpp_need + tmp - 1) // tmp) * tmp
    Mp = MpP * P
    pad = Mp - M
    if pad:
        self_v = jnp.pad(self_v, ((0, 0), (0, pad), (0, 0)))
        nbr_v = jnp.pad(nbr_v, ((0, 0), (0, pad), (0, 0)))
        rel_v = jnp.pad(rel_v, ((0, 0), (0, pad), (0, 0)))

    # lane-pack P consecutive rows (free reshape: HBM layout is unchanged)
    self_p = self_v.reshape(B, MpP, PD)
    nbr_p = nbr_v.reshape(B, MpP, PKD)
    rel_p = rel_v.reshape(B, MpP, PKD)

    # >= 2 parallel grid steps keeps both v7x TensorCores busy; negligible
    # step overhead on v5e/v6e.
    nbb = 2 if (B % 2 == 0 and B >= 2) else 1
    bb = B // nbb

    W4, WK4, b4, SEL, GRP, SPR = mats
    kernel = functools.partial(_aggregator_kernel, use_tanh)

    out = pl.pallas_call(
        kernel,
        out_shape=jax.ShapeDtypeStruct((B, MpP, PD), self_p.dtype),
        grid_spec=pltpu.PrefetchScalarGridSpec(
            num_scalar_prefetch=0,
            grid=(nbb, MpP // tmp),
            in_specs=[
                pl.BlockSpec((bb, tmp, PD), lambda bi, mi: (bi, mi, 0)),
                pl.BlockSpec((bb, tmp, PKD), lambda bi, mi: (bi, mi, 0)),
                pl.BlockSpec((bb, tmp, PKD), lambda bi, mi: (bi, mi, 0)),
                pl.BlockSpec((bb, 1, PKD), lambda bi, mi: (bi, 0, 0)),
                pl.BlockSpec((PD, PD), lambda bi, mi: (0, 0)),
                pl.BlockSpec((PKD, PD), lambda bi, mi: (0, 0)),
                pl.BlockSpec((1, PD), lambda bi, mi: (0, 0)),
                pl.BlockSpec((PKD, PK), lambda bi, mi: (0, 0)),
                pl.BlockSpec((PK, PK), lambda bi, mi: (0, 0)),
                pl.BlockSpec((PK, PKD), lambda bi, mi: (0, 0)),
            ],
            out_specs=pl.BlockSpec((bb, tmp, PD), lambda bi, mi: (bi, mi, 0)),
        ),
        compiler_params=pltpu.CompilerParams(
            dimension_semantics=("parallel", "parallel")),
    )(self_p, nbr_p, rel_p, usr_kd, W4, WK4, b4, SEL, GRP, SPR)

    out = out.reshape(B, Mp, D)
    return out[:, :M, :] if pad else out


# ----------------------------------------------------------------------------
# KGCN forward (glue in plain JAX, aggregation in Pallas)
# ----------------------------------------------------------------------------
@functools.partial(jax.jit, static_argnames=("n_iter",))
def kgcn_forward(params, u_idx, v_idx, n_iter):
    usr_emb = params["usr_emb"]    # [num_user, D]  bf16
    rel_emb = params["rel_emb"]    # [num_rel,  D]  bf16
    # TODO(synk): ent_feat stands in for the DGL NodeFlow per-layer
    # 'vfeatures' dedup-dict lookup (no clean Pallas equivalent).
    ent_feat = params["ent_feat"]  # [num_ent,  D]  bf16
    adj_ent = params["adj_ent"]    # [num_ent,  K]
    adj_rel = params["adj_rel"]    # [num_ent,  K]
    W, b = params["agg_w"], params["agg_b"]

    B = u_idx.shape[0]
    D = usr_emb.shape[1]
    K = adj_ent.shape[1]
    P = 4                                            # rows packed per vreg-row

    user_embeddings = jnp.take(usr_emb, u_idx, axis=0)            # [B, D]

    # _get_neighbors: multi-hop index expansion (tiny int32 arrays)
    entities = [v_idx.reshape(B, 1)]
    relations = []
    for h in range(n_iter):
        ent_h = entities[h]
        relations.append(jnp.take(adj_rel, ent_h, axis=0).reshape(B, -1))
        entities.append(jnp.take(adj_ent, ent_h, axis=0).reshape(B, -1))

    # ONE embedding gather each, directly into the fused hop-concatenated layout
    ent_idx_all = jnp.concatenate(entities, axis=1)                # [B, 1+K+..+K^n]
    rel_idx_all = jnp.concatenate(relations, axis=1)               # [B, K+..+K^n]
    cur = jnp.take(ent_feat, ent_idx_all, axis=0)                  # [B, 1+K*M0, D]
    rel_all = jnp.take(rel_emb, rel_idx_all, axis=0)               # [B, K*M0, D]

    usr_kd = jnp.tile(user_embeddings, (1, P * K)).reshape(B, 1, P * K * D)
    mats = _make_packed_mats(W, b, K, D, P)

    # _aggregate: iterative KGCN 'sum' aggregation; all hops of one iteration
    # share W, b and the activation -> one fused kernel launch per iteration.
    m_sizes = [K ** h for h in range(n_iter + 1)]
    for i in range(n_iter):
        hops = n_iter - i
        M_i = sum(m_sizes[:hops])
        self_cat = cur[:, :M_i, :]                                       # [B, M_i, D]
        nbr_cat = cur[:, 1:1 + K * M_i, :].reshape(B, M_i, K * D)        # [B, M_i, K*D]
        rel_cat = rel_all[:, :K * M_i, :].reshape(B, M_i, K * D)
        cur = aggregate_iteration(self_cat, nbr_cat, rel_cat, usr_kd, mats,
                                  use_tanh=(i == n_iter - 1), K=K, D=D, P=P)

    item_embeddings = cur[:, 0, :]                                       # [B, D]

    # final scoring: sigmoid(sum(user * item, dim=-1)) — trivial, XLA fuses it.
    s = jnp.sum(user_embeddings.astype(jnp.float32)
                * item_embeddings.astype(jnp.float32), axis=-1)
    return jax.nn.sigmoid(s)                                             # [B]


# ----------------------------------------------------------------------------
# Deterministic parameter construction
# ----------------------------------------------------------------------------
def make_params(key, num_user, num_ent, num_rel, dim, n_neighbor,
                emb_dtype=jnp.bfloat16):
    ks = jax.random.split(key, 7)
    return {
        "usr_emb": (jax.random.normal(ks[0], (num_user, dim), jnp.float32)
                    * 0.1).astype(emb_dtype),
        "rel_emb": (jax.random.normal(ks[1], (num_rel, dim), jnp.float32)
                    * 0.1).astype(emb_dtype),
        "ent_feat": (jax.random.normal(ks[2], (num_ent, dim), jnp.float32)
                     * 0.1).astype(emb_dtype),
        # deterministic fixed-size neighbor sampling (stands in for _gen_adj)
        "adj_ent": jax.random.randint(ks[3], (num_ent, n_neighbor), 0, num_ent,
                                      dtype=jnp.int32),
        "adj_rel": jax.random.randint(ks[4], (num_ent, n_neighbor), 0, num_rel,
                                      dtype=jnp.int32),
        # Aggregator 'sum': Linear(dim, dim) — applied here as x @ W + b
        "agg_w": jax.random.normal(ks[5], (dim, dim), jnp.float32)
                 * (1.0 / jnp.sqrt(dim)),
        "agg_b": jax.random.normal(ks[6], (1, dim), jnp.float32) * 0.01,
    }


if __name__ == "__main__":
    # small, demo-friendly sizes
    batch_size = 8
    dim = 32
    n_neighbor = 8
    n_iter = 2
    num_user, num_ent, num_rel = 16, 64, 12

    key = jax.random.PRNGKey(0)
    kp, ku, kv = jax.random.split(key, 3)
    params = make_params(kp, num_user, num_ent, num_rel, dim, n_neighbor)

    u = jax.random.randint(ku, (batch_size,), 0, num_user, dtype=jnp.int32)
    train_nids = jax.random.randint(kv, (batch_size,), 0, num_ent, dtype=jnp.int32)

    scores = kgcn_forward(params, u, train_nids, n_iter=n_iter)
    scores = jax.block_until_ready(scores)
    assert scores.shape == (batch_size,)
    assert bool(jnp.all(jnp.isfinite(scores)))
    print("KERNEL_OK")
</pallas_src>

<mosaic_0001>
module attributes {stable_mosaic.version = 11 : i64} {
  func.func @_aggregator_kernel(%arg0: i32, %arg1: i32, %arg2: memref<4x3x128xbf16, #tpu.memory_space<vmem>>, %arg3: memref<4x3x1024xbf16, #tpu.memory_space<vmem>>, %arg4: memref<4x3x1024xbf16, #tpu.memory_space<vmem>>, %arg5: memref<4x1x1024xbf16, #tpu.memory_space<vmem>>, %arg6: memref<128x128xbf16, #tpu.memory_space<vmem>>, %arg7: memref<1024x128xbf16, #tpu.memory_space<vmem>>, %arg8: memref<1x128xf32, #tpu.memory_space<vmem>>, %arg9: memref<1024x32xbf16, #tpu.memory_space<vmem>>, %arg10: memref<32x32xf32, #tpu.memory_space<vmem>>, %arg11: memref<32x1024xbf16, #tpu.memory_space<vmem>>, %arg12: memref<4x3x128xbf16, #tpu.memory_space<vmem>>) attributes {dimension_semantics = [#tpu.dimension_semantics<parallel>, #tpu.dimension_semantics<parallel>], iteration_bounds = array<i64: 2, 1>, scalar_prefetch = 0 : i64, scratch_operands = 0 : i64, tpu.core_type = #tpu.core_type<tc>, window_params = [{transform_indices = @transform_0, window_bounds = array<i64: 4, 3, 128>}, {transform_indices = @transform_1, window_bounds = array<i64: 4, 3, 1024>}, {transform_indices = @transform_2, window_bounds = array<i64: 4, 3, 1024>}, {transform_indices = @transform_3, window_bounds = array<i64: 4, 1, 1024>}, {pipeline_mode = #tpu.pipeline_mode<synchronous>, transform_indices = @transform_4, window_bounds = array<i64: 128, 128>}, {pipeline_mode = #tpu.pipeline_mode<synchronous>, transform_indices = @transform_5, window_bounds = array<i64: 1024, 128>}, {pipeline_mode = #tpu.pipeline_mode<synchronous>, transform_indices = @transform_6, window_bounds = array<i64: 1, 128>}, {pipeline_mode = #tpu.pipeline_mode<synchronous>, transform_indices = @transform_7, window_bounds = array<i64: 1024, 32>}, {pipeline_mode = #tpu.pipeline_mode<synchronous>, transform_indices = @transform_8, window_bounds = array<i64: 32, 32>}, {pipeline_mode = #tpu.pipeline_mode<synchronous>, transform_indices = @transform_9, window_bounds = array<i64: 32, 1024>}, {transform_indices = @transform_10, window_bounds = array<i64: 4, 3, 128>}]} {
    %c0 = arith.constant 0 : index
    %c0_0 = arith.constant 0 : index
    %0 = vector.load %arg6[%c0, %c0_0] : memref<128x128xbf16, #tpu.memory_space<vmem>>, vector<128x128xbf16>
    %c0_1 = arith.constant 0 : index
    %c0_2 = arith.constant 0 : index
    %1 = vector.load %arg7[%c0_1, %c0_2] : memref<1024x128xbf16, #tpu.memory_space<vmem>>, vector<1024x128xbf16>
    %c0_3 = arith.constant 0 : index
    %c0_4 = arith.constant 0 : index
    %2 = vector.load %arg8[%c0_3, %c0_4] : memref<1x128xf32, #tpu.memory_space<vmem>>, vector<1x128xf32>
    %c0_5 = arith.constant 0 : index
    %c0_6 = arith.constant 0 : index
    %3 = vector.load %arg9[%c0_5, %c0_6] : memref<1024x32xbf16, #tpu.memory_space<vmem>>, vector<1024x32xbf16>
    %c0_7 = arith.constant 0 : index
    %c0_8 = arith.constant 0 : index
    %4 = vector.load %arg10[%c0_7, %c0_8] : memref<32x32xf32, #tpu.memory_space<vmem>>, vector<32x32xf32>
    %c0_9 = arith.constant 0 : index
    %c0_10 = arith.constant 0 : index
    %5 = vector.load %arg11[%c0_9, %c0_10] : memref<32x1024xbf16, #tpu.memory_space<vmem>>, vector<32x1024xbf16>
    %c0_11 = arith.constant 0 : index
    %c0_12 = arith.constant 0 : index
    %c0_13 = arith.constant 0 : index
    %6 = vector.load %arg4[%c0_11, %c0_12, %c0_13] : memref<4x3x1024xbf16, #tpu.memory_space<vmem>>, vector<1x3x1024xbf16>
    %7 = vector.shape_cast %6 : vector<1x3x1024xbf16> to vector<3x1024xbf16>
    %c0_14 = arith.constant 0 : index
    %c0_15 = arith.constant 0 : index
    %c0_16 = arith.constant 0 : index
    %8 = vector.load %arg3[%c0_14, %c0_15, %c0_16] : memref<4x3x1024xbf16, #tpu.memory_space<vmem>>, vector<1x3x1024xbf16>
    %9 = vector.shape_cast %8 : vector<1x3x1024xbf16> to vector<3x1024xbf16>
    %c0_17 = arith.constant 0 : index
    %c0_18 = arith.constant 0 : index
    %c0_19 = arith.constant 0 : index
    %10 = vector.load %arg2[%c0_17, %c0_18, %c0_19] : memref<4x3x128xbf16, #tpu.memory_space<vmem>>, vector<1x3x128xbf16>
    %11 = vector.shape_cast %10 : vector<1x3x128xbf16> to vector<3x128xbf16>
    %c0_20 = arith.constant 0 : index
    %c0_21 = arith.constant 0 : index
    %c0_22 = arith.constant 0 : index
    %12 = vector.load %arg5[%c0_20, %c0_21, %c0_22] : memref<4x1x1024xbf16, #tpu.memory_space<vmem>>, vector<1x1x1024xbf16>
    %13 = vector.shape_cast %12 : vector<1x1x1024xbf16> to vector<1x1024xbf16>
    %14 = vector.broadcast %13 : vector<1x1024xbf16> to vector<3x1024xbf16>
    %15 = arith.mulf %7, %14 : vector<3x1024xbf16>
    %cst = arith.constant dense<0.000000e+00> : vector<3x32xf32>
    %16 = tpu.matmul %15, %3, %cst {dimension_numbers = #tpu.dot_dimension_numbers<[1], [0], [0], [1], [0, 0, 1, 1], [], []>} : vector<3x1024xbf16>, vector<1024x32xbf16>, vector<3x32xf32> -> vector<3x32xf32>
    %cst_23 = arith.constant dense<0xFF800000> : vector<3xf32>
    %17 = vector.multi_reduction <maximumf>, %16, %cst_23 [1] : vector<3x32xf32> to vector<3xf32>
    %18 = vector.shape_cast %17 : vector<3xf32> to vector<3x1xf32>
    %19 = vector.broadcast %18 : vector<3x1xf32> to vector<3x32xf32>
    %20 = arith.subf %16, %19 : vector<3x32xf32>
    %21 = math.exp %20 : vector<3x32xf32>
    %cst_24 = arith.constant dense<0.000000e+00> : vector<3x32xf32>
    %22 = tpu.matmul %21, %4, %cst_24 {dimension_numbers = #tpu.dot_dimension_numbers<[1], [0], [0], [1], [0, 0, 1, 1], [], []>} : vector<3x32xf32>, vector<32x32xf32>, vector<3x32xf32> -> vector<3x32xf32>
    %23 = tpu.reciprocal %22 {approx = true} : vector<3x32xf32> -> vector<3x32xf32>
    %24 = arith.mulf %21, %23 : vector<3x32xf32>
    %25 = arith.truncf %24 : vector<3x32xf32> to vector<3x32xbf16>
    %cst_25 = arith.constant dense<0.000000e+00> : vector<3x1024xf32>
    %26 = tpu.matmul %25, %5, %cst_25 {dimension_numbers = #tpu.dot_dimension_numbers<[1], [0], [0], [1], [0, 0, 1, 1], [], []>} : vector<3x32xbf16>, vector<32x1024xbf16>, vector<3x1024xf32> -> vector<3x1024xf32>
    %27 = arith.truncf %26 : vector<3x1024xf32> to vector<3x1024xbf16>
    %28 = arith.mulf %9, %27 : vector<3x1024xbf16>
    %cst_26 = arith.constant dense<0.000000e+00> : vector<3x128xf32>
    %29 = tpu.matmul %11, %0, %cst_26 {dimension_numbers = #tpu.dot_dimension_numbers<[1], [0], [0], [1], [0, 0, 1, 1], [], []>} : vector<3x128xbf16>, vector<128x128xbf16>, vector<3x128xf32> -> vector<3x128xf32>
    %cst_27 = arith.constant dense<0.000000e+00> : vector<3x128xf32>
    %30 = tpu.matmul %28, %1, %cst_27 {dimension_numbers = #tpu.dot_dimension_numbers<[1], [0], [0], [1], [0, 0, 1, 1], [], []>} : vector<3x1024xbf16>, vector<1024x128xbf16>, vector<3x128xf32> -> vector<3x128xf32>
    %31 = arith.addf %29, %30 : vector<3x128xf32>
    %32 = vector.broadcast %2 : vector<1x128xf32> to vector<3x128xf32>
    %33 = arith.addf %31, %32 : vector<3x128xf32>
    %34 = arith.negf %33 : vector<3x128xf32>
    %35 = math.exp %34 : vector<3x128xf32>
    %cst_28 = arith.constant 1.000000e+00 : f32
    %36 = vector.broadcast %cst_28 : f32 to vector<3x128xf32>
    %37 = arith.addf %36, %35 : vector<3x128xf32>
    %38 = arith.divf %36, %37 : vector<3x128xf32>
    %39 = arith.truncf %38 : vector<3x128xf32> to vector<3x128xbf16>
    %c0_29 = arith.constant 0 : index
    %c0_30 = arith.constant 0 : index
    %c0_31 = arith.constant 0 : index
    %40 = vector.load %arg12[%c0_29, %c0_30, %c0_31] : memref<4x3x128xbf16, #tpu.memory_space<vmem>>, vector<1x3x128xbf16>
    %41 = vector.shape_cast %40 : vector<1x3x128xbf16> to vector<3x128xbf16>
    %42 = vector.shape_cast %39 : vector<3x128xbf16> to vector<1x3x128xbf16>
    tpu.vector_store %arg12[%c0_29, %c0_30, %c0_31], %42 {strides = array<i32>} : memref<4x3x128xbf16, #tpu.memory_space<vmem>>, vector<1x3x128xbf16>,
    %c1 = arith.constant 1 : index
    %c0_32 = arith.constant 0 : index
    %c0_33 = arith.constant 0 : index
    %43 = vector.load %arg4[%c1, %c0_32, %c0_33] : memref<4x3x1024xbf16, #tpu.memory_space<vmem>>, vector<1x3x1024xbf16>
    %44 = vector.shape_cast %43 : vector<1x3x1024xbf16> to vector<3x1024xbf16>
    %c1_34 = arith.constant 1 : index
    %c0_35 = arith.constant 0 : index
    %c0_36 = arith.constant 0 : index
    %45 = vector.load %arg3[%c1_34, %c0_35, %c0_36] : memref<4x3x1024xbf16, #tpu.memory_space<vmem>>, vector<1x3x1024xbf16>
    %46 = vector.shape_cast %45 : vector<1x3x1024xbf16> to vector<3x1024xbf16>
    %c1_37 = arith.constant 1 : index
    %c0_38 = arith.constant 0 : index
    %c0_39 = arith.constant 0 : index
    %47 = vector.load %arg2[%c1_37, %c0_38, %c0_39] : memref<4x3x128xbf16, #tpu.memory_space<vmem>>, vector<1x3x128xbf16>
    %48 = vector.shape_cast %47 : vector<1x3x128xbf16> to vector<3x128xbf16>
    %c1_40 = arith.constant 1 : index
    %c0_41 = arith.constant 0 : index
    %c0_42 = arith.constant 0 : index
    %49 = vector.load %arg5[%c1_40, %c0_41, %c0_42] : memref<4x1x1024xbf16, #tpu.memory_space<vmem>>, vector<1x1x1024xbf16>
    %50 = vector.shape_cast %49 : vector<1x1x1024xbf16> to vector<1x1024xbf16>
    %51 = vector.broadcast %50 : vector<1x1024xbf16> to vector<3x1024xbf16>
    %52 = arith.mulf %44, %51 : vector<3x1024xbf16>
    %cst_43 = arith.constant dense<0.000000e+00> : vector<3x32xf32>
    %53 = tpu.matmul %52, %3, %cst_43 {dimension_numbers = #tpu.dot_dimension_numbers<[1], [0], [0], [1], [0, 0, 1, 1], [], []>} : vector<3x1024xbf16>, vector<1024x32xbf16>, vector<3x32xf32> -> vector<3x32xf32>
    %cst_44 = arith.constant dense<0xFF800000> : vector<3xf32>
    %54 = vector.multi_reduction <maximumf>, %53, %cst_44 [1] : vector<3x32xf32> to vector<3xf32>
    %55 = vector.shape_cast %54 : vector<3xf32> to vector<3x1xf32>
    %56 = vector.broadcast %55 : vector<3x1xf32> to vector<3x32xf32>
    %57 = arith.subf %53, %56 : vector<3x32xf32>
    %58 = math.exp %57 : vector<3x32xf32>
    %cst_45 = arith.constant dense<0.000000e+00> : vector<3x32xf32>
    %59 = tpu.matmul %58, %4, %cst_45 {dimension_numbers = #tpu.dot_dimension_numbers<[1], [0], [0], [1], [0, 0, 1, 1], [], []>} : vector<3x32xf32>, vector<32x32xf32>, vector<3x32xf32> -> vector<3x32xf32>
    %60 = tpu.reciprocal %59 {approx = true} : vector<3x32xf32> -> vector<3x32xf32>
    %61 = arith.mulf %58, %60 : vector<3x32xf32>
    %62 = arith.truncf %61 : vector<3x32xf32> to vector<3x32xbf16>
    %cst_46 = arith.constant dense<0.000000e+00> : vector<3x1024xf32>
    %63 = tpu.matmul %62, %5, %cst_46 {dimension_numbers = #tpu.dot_dimension_numbers<[1], [0], [0], [1], [0, 0, 1, 1], [], []>} : vector<3x32xbf16>, vector<32x1024xbf16>, vector<3x1024xf32> -> vector<3x1024xf32>
    %64 = arith.truncf %63 : vector<3x1024xf32> to vector<3x1024xbf16>
    %65 = arith.mulf %46, %64 : vector<3x1024xbf16>
    %cst_47 = arith.constant dense<0.000000e+00> : vector<3x128xf32>
    %66 = tpu.matmul %48, %0, %cst_47 {dimension_numbers = #tpu.dot_dimension_numbers<[1], [0], [0], [1], [0, 0, 1, 1], [], []>} : vector<3x128xbf16>, vector<128x128xbf16>, vector<3x128xf32> -> vector<3x128xf32>
    %cst_48 = arith.constant dense<0.000000e+00> : vector<3x128xf32>
    %67 = tpu.matmul %65, %1, %cst_48 {dimension_numbers = #tpu.dot_dimension_numbers<[1], [0], [0], [1], [0, 0, 1, 1], [], []>} : vector<3x1024xbf16>, vector<1024x128xbf16>, vector<3x128xf32> -> vector<3x128xf32>
    %68 = arith.addf %66, %67 : vector<3x128xf32>
    %69 = vector.broadcast %2 : vector<1x128xf32> to vector<3x128xf32>
    %70 = arith.addf %68, %69 : vector<3x128xf32>
    %71 = arith.negf %70 : vector<3x128xf32>
    %72 = math.exp %71 : vector<3x128xf32>
    %cst_49 = arith.constant 1.000000e+00 : f32
    %73 = vector.broadcast %cst_49 : f32 to vector<3x128xf32>
    %74 = arith.addf %73, %72 : vector<3x128xf32>
    %75 = arith.divf %73, %74 : vector<3x128xf32>
    %76 = arith.truncf %75 : vector<3x128xf32> to vector<3x128xbf16>
    %c1_50 = arith.constant 1 : index
    %c0_51 = arith.constant 0 : index
    %c0_52 = arith.constant 0 : index
    %77 = vector.load %arg12[%c1_50, %c0_51, %c0_52] : memref<4x3x128xbf16, #tpu.memory_space<vmem>>, vector<1x3x128xbf16>
    %78 = vector.shape_cast %77 : vector<1x3x128xbf16> to vector<3x128xbf16>
    %79 = vector.shape_cast %76 : vector<3x128xbf16> to vector<1x3x128xbf16>
    tpu.vector_store %arg12[%c1_50, %c0_51, %c0_52], %79 {strides = array<i32>} : memref<4x3x128xbf16, #tpu.memory_space<vmem>>, vector<1x3x128xbf16>,
    %c2 = arith.constant 2 : index
    %c0_53 = arith.constant 0 : index
    %c0_54 = arith.constant 0 : index
    %80 = vector.load %arg4[%c2, %c0_53, %c0_54] : memref<4x3x1024xbf16, #tpu.memory_space<vmem>>, vector<1x3x1024xbf16>
    %81 = vector.shape_cast %80 : vector<1x3x1024xbf16> to vector<3x1024xbf16>
    %c2_55 = arith.constant 2 : index
    %c0_56 = arith.constant 0 : index
    %c0_57 = arith.constant 0 : index
    %82 = vector.load %arg3[%c2_55, %c0_56, %c0_57] : memref<4x3x1024xbf16, #tpu.memory_space<vmem>>, vector<1x3x1024xbf16>
    %83 = vector.shape_cast %82 : vector<1x3x1024xbf16> to vector<3x1024xbf16>
    %c2_58 = arith.constant 2 : index
    %c0_59 = arith.constant 0 : index
    %c0_60 = arith.constant 0 : index
    %84 = vector.load %arg2[%c2_58, %c0_59, %c0_60] : memref<4x3x128xbf16, #tpu.memory_space<vmem>>, vector<1x3x128xbf16>
    %85 = vector.shape_cast %84 : vector<1x3x128xbf16> to vector<3x128xbf16>
    %c2_61 = arith.constant 2 : index
    %c0_62 = arith.constant 0 : index
    %c0_63 = arith.constant 0 : index
    %86 = vector.load %arg5[%c2_61, %c0_62, %c0_63] : memref<4x1x1024xbf16, #tpu.memory_space<vmem>>, vector<1x1x1024xbf16>
    %87 = vector.shape_cast %86 : vector<1x1x1024xbf16> to vector<1x1024xbf16>
    %88 = vector.broadcast %87 : vector<1x1024xbf16> to vector<3x1024xbf16>
    %89 = arith.mulf %81, %88 : vector<3x1024xbf16>
    %cst_64 = arith.constant dense<0.000000e+00> : vector<3x32xf32>
    %90 = tpu.matmul %89, %3, %cst_64 {dimension_numbers = #tpu.dot_dimension_numbers<[1], [0], [0], [1], [0, 0, 1, 1], [], []>} : vector<3x1024xbf16>, vector<1024x32xbf16>, vector<3x32xf32> -> vector<3x32xf32>
    %cst_65 = arith.constant dense<0xFF800000> : vector<3xf32>
    %91 = vector.multi_reduction <maximumf>, %90, %cst_65 [1] : vector<3x32xf32> to vector<3xf32>
    %92 = vector.shape_cast %91 : vector<3xf32> to vector<3x1xf32>
    %93 = vector.broadcast %92 : vector<3x1xf32> to vector<3x32xf32>
    %94 = arith.subf %90, %93 : vector<3x32xf32>
    %95 = math.exp %94 : vector<3x32xf32>
    %cst_66 = arith.constant dense<0.000000e+00> : vector<3x32xf32>
    %96 = tpu.matmul %95, %4, %cst_66 {dimension_numbers = #tpu.dot_dimension_numbers<[1], [0], [0], [1], [0, 0, 1, 1], [], []>} : vector<3x32xf32>, vector<32x32xf32>, vector<3x32xf32> -> vector<3x32xf32>
    %97 = tpu.reciprocal %96 {approx = true} : vector<3x32xf32> -> vector<3x32xf32>
    %98 = arith.mulf %95, %97 : vector<3x32xf32>
    %99 = arith.truncf %98 : vector<3x32xf32> to vector<3x32xbf16>
    %cst_67 = arith.constant dense<0.000000e+00> : vector<3x1024xf32>
    %100 = tpu.matmul %99, %5, %cst_67 {dimension_numbers = #tpu.dot_dimension_numbers<[1], [0], [0], [1], [0, 0, 1, 1], [], []>} : vector<3x32xbf16>, vector<32x1024xbf16>, vector<3x1024xf32> -> vector<3x1024xf32>
    %101 = arith.truncf %100 : vector<3x1024xf32> to vector<3x1024xbf16>
    %102 = arith.mulf %83, %101 : vector<3x1024xbf16>
    %cst_68 = arith.constant dense<0.000000e+00> : vector<3x128xf32>
    %103 = tpu.matmul %85, %0, %cst_68 {dimension_numbers = #tpu.dot_dimension_numbers<[1], [0], [0], [1], [0, 0, 1, 1], [], []>} : vector<3x128xbf16>, vector<128x128xbf16>, vector<3x128xf32> -> vector<3x128xf32>
    %cst_69 = arith.constant dense<0.000000e+00> : vector<3x128xf32>
    %104 = tpu.matmul %102, %1, %cst_69 {dimension_numbers = #tpu.dot_dimension_numbers<[1], [0], [0], [1], [0, 0, 1, 1], [], []>} : vector<3x1024xbf16>, vector<1024x128xbf16>, vector<3x128xf32> -> vector<3x128xf32>
    %105 = arith.addf %103, %104 : vector<3x128xf32>
    %106 = vector.broadcast %2 : vector<1x128xf32> to vector<3x128xf32>
    %107 = arith.addf %105, %106 : vector<3x128xf32>
    %108 = arith.negf %107 : vector<3x128xf32>
    %109 = math.exp %108 : vector<3x128xf32>
    %cst_70 = arith.constant 1.000000e+00 : f32
    %110 = vector.broadcast %cst_70 : f32 to vector<3x128xf32>
    %111 = arith.addf %110, %109 : vector<3x128xf32>
    %112 = arith.divf %110, %111 : vector<3x128xf32>
    %113 = arith.truncf %112 : vector<3x128xf32> to vector<3x128xbf16>
    %c2_71 = arith.constant 2 : index
    %c0_72 = arith.constant 0 : index
    %c0_73 = arith.constant 0 : index
    %114 = vector.load %arg12[%c2_71, %c0_72, %c0_73] : memref<4x3x128xbf16, #tpu.memory_space<vmem>>, vector<1x3x128xbf16>
    %115 = vector.shape_cast %114 : vector<1x3x128xbf16> to vector<3x128xbf16>
    %116 = vector.shape_cast %113 : vector<3x128xbf16> to vector<1x3x128xbf16>
    tpu.vector_store %arg12[%c2_71, %c0_72, %c0_73], %116 {strides = array<i32>} : memref<4x3x128xbf16, #tpu.memory_space<vmem>>, vector<1x3x128xbf16>,
    %c3 = arith.constant 3 : index
    %c0_74 = arith.constant 0 : index
    %c0_75 = arith.constant 0 : index
    %117 = vector.load %arg4[%c3, %c0_74, %c0_75] : memref<4x3x1024xbf16, #tpu.memory_space<vmem>>, vector<1x3x1024xbf16>
    %118 = vector.shape_cast %117 : vector<1x3x1024xbf16> to vector<3x1024xbf16>
    %c3_76 = arith.constant 3 : index
    %c0_77 = arith.constant 0 : index
    %c0_78 = arith.constant 0 : index
    %119 = vector.load %arg3[%c3_76, %c0_77, %c0_78] : memref<4x3x1024xbf16, #tpu.memory_space<vmem>>, vector<1x3x1024xbf16>
    %120 = vector.shape_cast %119 : vector<1x3x1024xbf16> to vector<3x1024xbf16>
    %c3_79 = arith.constant 3 : index
    %c0_80 = arith.constant 0 : index
    %c0_81 = arith.constant 0 : index
    %121 = vector.load %arg2[%c3_79, %c0_80, %c0_81] : memref<4x3x128xbf16, #tpu.memory_space<vmem>>, vector<1x3x128xbf16>
    %122 = vector.shape_cast %121 : vector<1x3x128xbf16> to vector<3x128xbf16>
    %c3_82 = arith.constant 3 : index
    %c0_83 = arith.constant 0 : index
    %c0_84 = arith.constant 0 : index
    %123 = vector.load %arg5[%c3_82, %c0_83, %c0_84] : memref<4x1x1024xbf16, #tpu.memory_space<vmem>>, vector<1x1x1024xbf16>
    %124 = vector.shape_cast %123 : vector<1x1x1024xbf16> to vector<1x1024xbf16>
    %125 = vector.broadcast %124 : vector<1x1024xbf16> to vector<3x1024xbf16>
    %126 = arith.mulf %118, %125 : vector<3x1024xbf16>
    %cst_85 = arith.constant dense<0.000000e+00> : vector<3x32xf32>
    %127 = tpu.matmul %126, %3, %cst_85 {dimension_numbers = #tpu.dot_dimension_numbers<[1], [0], [0], [1], [0, 0, 1, 1], [], []>} : vector<3x1024xbf16>, vector<1024x32xbf16>, vector<3x32xf32> -> vector<3x32xf32>
    %cst_86 = arith.constant dense<0xFF800000> : vector<3xf32>
    %128 = vector.multi_reduction <maximumf>, %127, %cst_86 [1] : vector<3x32xf32> to vector<3xf32>
    %129 = vector.shape_cast %128 : vector<3xf32> to vector<3x1xf32>
    %130 = vector.broadcast %129 : vector<3x1xf32> to vector<3x32xf32>
    %131 = arith.subf %127, %130 : vector<3x32xf32>
    %132 = math.exp %131 : vector<3x32xf32>
    %cst_87 = arith.constant dense<0.000000e+00> : vector<3x32xf32>
    %133 = tpu.matmul %132, %4, %cst_87 {dimension_numbers = #tpu.dot_dimension_numbers<[1], [0], [0], [1], [0, 0, 1, 1], [], []>} : vector<3x32xf32>, vector<32x32xf32>, vector<3x32xf32> -> vector<3x32xf32>
    %134 = tpu.reciprocal %133 {approx = true} : vector<3x32xf32> -> vector<3x32xf32>
    %135 = arith.mulf %132, %134 : vector<3x32xf32>
    %136 = arith.truncf %135 : vector<3x32xf32> to vector<3x32xbf16>
    %cst_88 = arith.constant dense<0.000000e+00> : vector<3x1024xf32>
    %137 = tpu.matmul %136, %5, %cst_88 {dimension_numbers = #tpu.dot_dimension_numbers<[1], [0], [0], [1], [0, 0, 1, 1], [], []>} : vector<3x32xbf16>, vector<32x1024xbf16>, vector<3x1024xf32> -> vector<3x1024xf32>
    %138 = arith.truncf %137 : vector<3x1024xf32> to vector<3x1024xbf16>
    %139 = arith.mulf %120, %138 : vector<3x1024xbf16>
    %cst_89 = arith.constant dense<0.000000e+00> : vector<3x128xf32>
    %140 = tpu.matmul %122, %0, %cst_89 {dimension_numbers = #tpu.dot_dimension_numbers<[1], [0], [0], [1], [0, 0, 1, 1], [], []>} : vector<3x128xbf16>, vector<128x128xbf16>, vector<3x128xf32> -> vector<3x128xf32>
    %cst_90 = arith.constant dense<0.000000e+00> : vector<3x128xf32>
    %141 = tpu.matmul %139, %1, %cst_90 {dimension_numbers = #tpu.dot_dimension_numbers<[1], [0], [0], [1], [0, 0, 1, 1], [], []>} : vector<3x1024xbf16>, vector<1024x128xbf16>, vector<3x128xf32> -> vector<3x128xf32>
    %142 = arith.addf %140, %141 : vector<3x128xf32>
    %143 = vector.broadcast %2 : vector<1x128xf32> to vector<3x128xf32>
    %144 = arith.addf %142, %143 : vector<3x128xf32>
    %145 = arith.negf %144 : vector<3x128xf32>
    %146 = math.exp %145 : vector<3x128xf32>
    %cst_91 = arith.constant 1.000000e+00 : f32
    %147 = vector.broadcast %cst_91 : f32 to vector<3x128xf32>
    %148 = arith.addf %147, %146 : vector<3x128xf32>
    %149 = arith.divf %147, %148 : vector<3x128xf32>
    %150 = arith.truncf %149 : vector<3x128xf32> to vector<3x128xbf16>
    %c3_92 = arith.constant 3 : index
    %c0_93 = arith.constant 0 : index
    %c0_94 = arith.constant 0 : index
    %151 = vector.load %arg12[%c3_92, %c0_93, %c0_94] : memref<4x3x128xbf16, #tpu.memory_space<vmem>>, vector<1x3x128xbf16>
    %152 = vector.shape_cast %151 : vector<1x3x128xbf16> to vector<3x128xbf16>
    %153 = vector.shape_cast %150 : vector<3x128xbf16> to vector<1x3x128xbf16>
    tpu.vector_store %arg12[%c3_92, %c0_93, %c0_94], %153 {strides = array<i32>} : memref<4x3x128xbf16, #tpu.memory_space<vmem>>, vector<1x3x128xbf16>,
    return
  }
  func.func @transform_0(%arg0: i32, %arg1: i32) -> (i32, i32, i32) {
    %c0_i32 = arith.constant 0 : i32
    %c0_i32_0 = arith.constant 0 : i32
    return %arg0, %arg1, %c0_i32 : i32, i32, i32
  }
  func.func @transform_1(%arg0: i32, %arg1: i32) -> (i32, i32, i32) {
    %c0_i32 = arith.constant 0 : i32
    %c0_i32_0 = arith.constant 0 : i32
    return %arg0, %arg1, %c0_i32 : i32, i32, i32
  }
  func.func @transform_2(%arg0: i32, %arg1: i32) -> (i32, i32, i32) {
    %c0_i32 = arith.constant 0 : i32
    %c0_i32_0 = arith.constant 0 : i32
    return %arg0, %arg1, %c0_i32 : i32, i32, i32
  }
  func.func @transform_3(%arg0: i32, %arg1: i32) -> (i32, i32, i32) {
    %c0_i32 = arith.constant 0 : i32
    %c0_i32_0 = arith.constant 0 : i32
    %c0_i32_1 = arith.constant 0 : i32
    return %arg0, %c0_i32, %c0_i32_0 : i32, i32, i32
  }
  func.func @transform_4(%arg0: i32, %arg1: i32) -> (i32, i32) {
    %c0_i32 = arith.constant 0 : i32
    %c0_i32_0 = arith.constant 0 : i32
    %c0_i32_1 = arith.constant 0 : i32
    return %c0_i32, %c0_i32_0 : i32, i32
  }
  func.func @transform_5(%arg0: i32, %arg1: i32) -> (i32, i32) {
    %c0_i32 = arith.constant 0 : i32
    %c0_i32_0 = arith.constant 0 : i32
    %c0_i32_1 = arith.constant 0 : i32
    return %c0_i32, %c0_i32_0 : i32, i32
  }
  func.func @transform_6(%arg0: i32, %arg1: i32) -> (i32, i32) {
    %c0_i32 = arith.constant 0 : i32
    %c0_i32_0 = arith.constant 0 : i32
    %c0_i32_1 = arith.constant 0 : i32
    return %c0_i32, %c0_i32_0 : i32, i32
  }
  func.func @transform_7(%arg0: i32, %arg1: i32) -> (i32, i32) {
    %c0_i32 = arith.constant 0 : i32
    %c0_i32_0 = arith.constant 0 : i32
    %c0_i32_1 = arith.constant 0 : i32
    return %c0_i32, %c0_i32_0 : i32, i32
  }
  func.func @transform_8(%arg0: i32, %arg1: i32) -> (i32, i32) {
    %c0_i32 = arith.constant 0 : i32
    %c0_i32_0 = arith.constant 0 : i32
    %c0_i32_1 = arith.constant 0 : i32
    return %c0_i32, %c0_i32_0 : i32, i32
  }
  func.func @transform_9(%arg0: i32, %arg1: i32) -> (i32, i32) {
    %c0_i32 = arith.constant 0 : i32
    %c0_i32_0 = arith.constant 0 : i32
    %c0_i32_1 = arith.constant 0 : i32
    return %c0_i32, %c0_i32_0 : i32, i32
  }
  func.func @transform_10(%arg0: i32, %arg1: i32) -> (i32, i32, i32) {
    %c0_i32 = arith.constant 0 : i32
    %c0_i32_0 = arith.constant 0 : i32
    return %arg0, %arg1, %c0_i32 : i32, i32, i32
  }
}

module attributes {stable_mosaic.version = 11 : i64} {
  func.func @_aggregator_kernel(%arg0: i32, %arg1: i32, %arg2: memref<4x1x128xbf16, #tpu.memory_space<vmem>>, %arg3: memref<4x1x1024xbf16, #tpu.memory_space<vmem>>, %arg4: memref<4x1x1024xbf16, #tpu.memory_space<vmem>>, %arg5: memref<4x1x1024xbf16, #tpu.memory_space<vmem>>, %arg6: memref<128x128xbf16, #tpu.memory_space<vmem>>, %arg7: memref<1024x128xbf16, #tpu.memory_space<vmem>>, %arg8: memref<1x128xf32, #tpu.memory_space<vmem>>, %arg9: memref<1024x32xbf16, #tpu.memory_space<vmem>>, %arg10: memref<32x32xf32, #tpu.memory_space<vmem>>, %arg11: memref<32x1024xbf16, #tpu.memory_space<vmem>>, %arg12: memref<4x1x128xbf16, #tpu.memory_space<vmem>>) attributes {dimension_semantics = [#tpu.dimension_semantics<parallel>, #tpu.dimension_semantics<parallel>], iteration_bounds = array<i64: 2, 1>, scalar_prefetch = 0 : i64, scratch_operands = 0 : i64, tpu.core_type = #tpu.core_type<tc>, window_params = [{transform_indices = @transform_0, window_bounds = array<i64: 4, 1, 128>}, {transform_indices = @transform_1, window_bounds = array<i64: 4, 1, 1024>}, {transform_indices = @transform_2, window_bounds = array<i64: 4, 1, 1024>}, {transform_indices = @transform_3, window_bounds = array<i64: 4, 1, 1024>}, {pipeline_mode = #tpu.pipeline_mode<synchronous>, transform_indices = @transform_4, window_bounds = array<i64: 128, 128>}, {pipeline_mode = #tpu.pipeline_mode<synchronous>, transform_indices = @transform_5, window_bounds = array<i64: 1024, 128>}, {pipeline_mode = #tpu.pipeline_mode<synchronous>, transform_indices = @transform_6, window_bounds = array<i64: 1, 128>}, {pipeline_mode = #tpu.pipeline_mode<synchronous>, transform_indices = @transform_7, window_bounds = array<i64: 1024, 32>}, {pipeline_mode = #tpu.pipeline_mode<synchronous>, transform_indices = @transform_8, window_bounds = array<i64: 32, 32>}, {pipeline_mode = #tpu.pipeline_mode<synchronous>, transform_indices = @transform_9, window_bounds = array<i64: 32, 1024>}, {transform_indices = @transform_10, window_bounds = array<i64: 4, 1, 128>}]} {
    %c0 = arith.constant 0 : index
    %c0_0 = arith.constant 0 : index
    %0 = vector.load %arg6[%c0, %c0_0] : memref<128x128xbf16, #tpu.memory_space<vmem>>, vector<128x128xbf16>
    %c0_1 = arith.constant 0 : index
    %c0_2 = arith.constant 0 : index
    %1 = vector.load %arg7[%c0_1, %c0_2] : memref<1024x128xbf16, #tpu.memory_space<vmem>>, vector<1024x128xbf16>
    %c0_3 = arith.constant 0 : index
    %c0_4 = arith.constant 0 : index
    %2 = vector.load %arg8[%c0_3, %c0_4] : memref<1x128xf32, #tpu.memory_space<vmem>>, vector<1x128xf32>
    %c0_5 = arith.constant 0 : index
    %c0_6 = arith.constant 0 : index
    %3 = vector.load %arg9[%c0_5, %c0_6] : memref<1024x32xbf16, #tpu.memory_space<vmem>>, vector<1024x32xbf16>
    %c0_7 = arith.constant 0 : index
    %c0_8 = arith.constant 0 : index
    %4 = vector.load %arg10[%c0_7, %c0_8] : memref<32x32xf32, #tpu.memory_space<vmem>>, vector<32x32xf32>
    %c0_9 = arith.constant 0 : index
    %c0_10 = arith.constant 0 : index
    %5 = vector.load %arg11[%c0_9, %c0_10] : memref<32x1024xbf16, #tpu.memory_space<vmem>>, vector<32x1024xbf16>
    %c0_11 = arith.constant 0 : index
    %c0_12 = arith.constant 0 : index
    %c0_13 = arith.constant 0 : index
    %6 = vector.load %arg4[%c0_11, %c0_12, %c0_13] : memref<4x1x1024xbf16, #tpu.memory_space<vmem>>, vector<1x1x1024xbf16>
    %7 = vector.shape_cast %6 : vector<1x1x1024xbf16> to vector<1x1024xbf16>
    %c0_14 = arith.constant 0 : index
    %c0_15 = arith.constant 0 : index
    %c0_16 = arith.constant 0 : index
    %8 = vector.load %arg3[%c0_14, %c0_15, %c0_16] : memref<4x1x1024xbf16, #tpu.memory_space<vmem>>, vector<1x1x1024xbf16>
    %9 = vector.shape_cast %8 : vector<1x1x1024xbf16> to vector<1x1024xbf16>
    %c0_17 = arith.constant 0 : index
    %c0_18 = arith.constant 0 : index
    %c0_19 = arith.constant 0 : index
    %10 = vector.load %arg2[%c0_17, %c0_18, %c0_19] : memref<4x1x128xbf16, #tpu.memory_space<vmem>>, vector<1x1x128xbf16>
    %11 = vector.shape_cast %10 : vector<1x1x128xbf16> to vector<1x128xbf16>
    %c0_20 = arith.constant 0 : index
    %c0_21 = arith.constant 0 : index
    %c0_22 = arith.constant 0 : index
    %12 = vector.load %arg5[%c0_20, %c0_21, %c0_22] : memref<4x1x1024xbf16, #tpu.memory_space<vmem>>, vector<1x1x1024xbf16>
    %13 = vector.shape_cast %12 : vector<1x1x1024xbf16> to vector<1x1024xbf16>
    %14 = arith.mulf %7, %13 : vector<1x1024xbf16>
    %cst = arith.constant dense<0.000000e+00> : vector<1x32xf32>
    %15 = tpu.matmul %14, %3, %cst {dimension_numbers = #tpu.dot_dimension_numbers<[1], [0], [0], [1], [0, 0, 1, 1], [], []>} : vector<1x1024xbf16>, vector<1024x32xbf16>, vector<1x32xf32> -> vector<1x32xf32>
    %cst_23 = arith.constant dense<0xFF800000> : vector<1xf32>
    %16 = vector.multi_reduction <maximumf>, %15, %cst_23 [1] : vector<1x32xf32> to vector<1xf32>
    %17 = vector.shape_cast %16 : vector<1xf32> to vector<1x1xf32>
    %18 = vector.broadcast %17 : vector<1x1xf32> to vector<1x32xf32>
    %19 = arith.subf %15, %18 : vector<1x32xf32>
    %20 = math.exp %19 : vector<1x32xf32>
    %cst_24 = arith.constant dense<0.000000e+00> : vector<1x32xf32>
    %21 = tpu.matmul %20, %4, %cst_24 {dimension_numbers = #tpu.dot_dimension_numbers<[1], [0], [0], [1], [0, 0, 1, 1], [], []>} : vector<1x32xf32>, vector<32x32xf32>, vector<1x32xf32> -> vector<1x32xf32>
    %22 = tpu.reciprocal %21 {approx = true} : vector<1x32xf32> -> vector<1x32xf32>
    %23 = arith.mulf %20, %22 : vector<1x32xf32>
    %24 = arith.truncf %23 : vector<1x32xf32> to vector<1x32xbf16>
    %cst_25 = arith.constant dense<0.000000e+00> : vector<1x1024xf32>
    %25 = tpu.matmul %24, %5, %cst_25 {dimension_numbers = #tpu.dot_dimension_numbers<[1], [0], [0], [1], [0, 0, 1, 1], [], []>} : vector<1x32xbf16>, vector<32x1024xbf16>, vector<1x1024xf32> -> vector<1x1024xf32>
    %26 = arith.truncf %25 : vector<1x1024xf32> to vector<1x1024xbf16>
    %27 = arith.mulf %9, %26 : vector<1x1024xbf16>
    %cst_26 = arith.constant dense<0.000000e+00> : vector<1x128xf32>
    %28 = tpu.matmul %11, %0, %cst_26 {dimension_numbers = #tpu.dot_dimension_numbers<[1], [0], [0], [1], [0, 0, 1, 1], [], []>} : vector<1x128xbf16>, vector<128x128xbf16>, vector<1x128xf32> -> vector<1x128xf32>
    %cst_27 = arith.constant dense<0.000000e+00> : vector<1x128xf32>
    %29 = tpu.matmul %27, %1, %cst_27 {dimension_numbers = #tpu.dot_dimension_numbers<[1], [0], [0], [1], [0, 0, 1, 1], [], []>} : vector<1x1024xbf16>, vector<1024x128xbf16>, vector<1x128xf32> -> vector<1x128xf32>
    %30 = arith.addf %28, %29 : vector<1x128xf32>
    %31 = arith.addf %30, %2 : vector<1x128xf32>
    %32 = math.tanh %31 : vector<1x128xf32>
    %33 = arith.truncf %32 : vector<1x128xf32> to vector<1x128xbf16>
    %c0_28 = arith.constant 0 : index
    %c0_29 = arith.constant 0 : index
    %c0_30 = arith.constant 0 : index
    %34 = vector.load %arg12[%c0_28, %c0_29, %c0_30] : memref<4x1x128xbf16, #tpu.memory_space<vmem>>, vector<1x1x128xbf16>
    %35 = vector.shape_cast %34 : vector<1x1x128xbf16> to vector<1x128xbf16>
    %36 = vector.shape_cast %33 : vector<1x128xbf16> to vector<1x1x128xbf16>
    tpu.vector_store %arg12[%c0_28, %c0_29, %c0_30], %36 {strides = array<i32>} : memref<4x1x128xbf16, #tpu.memory_space<vmem>>, vector<1x1x128xbf16>,
    %c1 = arith.constant 1 : index
    %c0_31 = arith.constant 0 : index
    %c0_32 = arith.constant 0 : index
    %37 = vector.load %arg4[%c1, %c0_31, %c0_32] : memref<4x1x1024xbf16, #tpu.memory_space<vmem>>, vector<1x1x1024xbf16>
    %38 = vector.shape_cast %37 : vector<1x1x1024xbf16> to vector<1x1024xbf16>
    %c1_33 = arith.constant 1 : index
    %c0_34 = arith.constant 0 : index
    %c0_35 = arith.constant 0 : index
    %39 = vector.load %arg3[%c1_33, %c0_34, %c0_35] : memref<4x1x1024xbf16, #tpu.memory_space<vmem>>, vector<1x1x1024xbf16>
    %40 = vector.shape_cast %39 : vector<1x1x1024xbf16> to vector<1x1024xbf16>
    %c1_36 = arith.constant 1 : index
    %c0_37 = arith.constant 0 : index
    %c0_38 = arith.constant 0 : index
    %41 = vector.load %arg2[%c1_36, %c0_37, %c0_38] : memref<4x1x128xbf16, #tpu.memory_space<vmem>>, vector<1x1x128xbf16>
    %42 = vector.shape_cast %41 : vector<1x1x128xbf16> to vector<1x128xbf16>
    %c1_39 = arith.constant 1 : index
    %c0_40 = arith.constant 0 : index
    %c0_41 = arith.constant 0 : index
    %43 = vector.load %arg5[%c1_39, %c0_40, %c0_41] : memref<4x1x1024xbf16, #tpu.memory_space<vmem>>, vector<1x1x1024xbf16>
    %44 = vector.shape_cast %43 : vector<1x1x1024xbf16> to vector<1x1024xbf16>
    %45 = arith.mulf %38, %44 : vector<1x1024xbf16>
    %cst_42 = arith.constant dense<0.000000e+00> : vector<1x32xf32>
    %46 = tpu.matmul %45, %3, %cst_42 {dimension_numbers = #tpu.dot_dimension_numbers<[1], [0], [0], [1], [0, 0, 1, 1], [], []>} : vector<1x1024xbf16>, vector<1024x32xbf16>, vector<1x32xf32> -> vector<1x32xf32>
    %cst_43 = arith.constant dense<0xFF800000> : vector<1xf32>
    %47 = vector.multi_reduction <maximumf>, %46, %cst_43 [1] : vector<1x32xf32> to vector<1xf32>
    %48 = vector.shape_cast %47 : vector<1xf32> to vector<1x1xf32>
    %49 = vector.broadcast %48 : vector<1x1xf32> to vector<1x32xf32>
    %50 = arith.subf %46, %49 : vector<1x32xf32>
    %51 = math.exp %50 : vector<1x32xf32>
    %cst_44 = arith.constant dense<0.000000e+00> : vector<1x32xf32>
    %52 = tpu.matmul %51, %4, %cst_44 {dimension_numbers = #tpu.dot_dimension_numbers<[1], [0], [0], [1], [0, 0, 1, 1], [], []>} : vector<1x32xf32>, vector<32x32xf32>, vector<1x32xf32> -> vector<1x32xf32>
    %53 = tpu.reciprocal %52 {approx = true} : vector<1x32xf32> -> vector<1x32xf32>
    %54 = arith.mulf %51, %53 : vector<1x32xf32>
    %55 = arith.truncf %54 : vector<1x32xf32> to vector<1x32xbf16>
    %cst_45 = arith.constant dense<0.000000e+00> : vector<1x1024xf32>
    %56 = tpu.matmul %55, %5, %cst_45 {dimension_numbers = #tpu.dot_dimension_numbers<[1], [0], [0], [1], [0, 0, 1, 1], [], []>} : vector<1x32xbf16>, vector<32x1024xbf16>, vector<1x1024xf32> -> vector<1x1024xf32>
    %57 = arith.truncf %56 : vector<1x1024xf32> to vector<1x1024xbf16>
    %58 = arith.mulf %40, %57 : vector<1x1024xbf16>
    %cst_46 = arith.constant dense<0.000000e+00> : vector<1x128xf32>
    %59 = tpu.matmul %42, %0, %cst_46 {dimension_numbers = #tpu.dot_dimension_numbers<[1], [0], [0], [1], [0, 0, 1, 1], [], []>} : vector<1x128xbf16>, vector<128x128xbf16>, vector<1x128xf32> -> vector<1x128xf32>
    %cst_47 = arith.constant dense<0.000000e+00> : vector<1x128xf32>
    %60 = tpu.matmul %58, %1, %cst_47 {dimension_numbers = #tpu.dot_dimension_numbers<[1], [0], [0], [1], [0, 0, 1, 1], [], []>} : vector<1x1024xbf16>, vector<1024x128xbf16>, vector<1x128xf32> -> vector<1x128xf32>
    %61 = arith.addf %59, %60 : vector<1x128xf32>
    %62 = arith.addf %61, %2 : vector<1x128xf32>
    %63 = math.tanh %62 : vector<1x128xf32>
    %64 = arith.truncf %63 : vector<1x128xf32> to vector<1x128xbf16>
    %c1_48 = arith.constant 1 : index
    %c0_49 = arith.constant 0 : index
    %c0_50 = arith.constant 0 : index
    %65 = vector.load %arg12[%c1_48, %c0_49, %c0_50] : memref<4x1x128xbf16, #tpu.memory_space<vmem>>, vector<1x1x128xbf16>
    %66 = vector.shape_cast %65 : vector<1x1x128xbf16> to vector<1x128xbf16>
    %67 = vector.shape_cast %64 : vector<1x128xbf16> to vector<1x1x128xbf16>
    tpu.vector_store %arg12[%c1_48, %c0_49, %c0_50], %67 {strides = array<i32>} : memref<4x1x128xbf16, #tpu.memory_space<vmem>>, vector<1x1x128xbf16>,
    %c2 = arith.constant 2 : index
    %c0_51 = arith.constant 0 : index
    %c0_52 = arith.constant 0 : index
    %68 = vector.load %arg4[%c2, %c0_51, %c0_52] : memref<4x1x1024xbf16, #tpu.memory_space<vmem>>, vector<1x1x1024xbf16>
    %69 = vector.shape_cast %68 : vector<1x1x1024xbf16> to vector<1x1024xbf16>
    %c2_53 = arith.constant 2 : index
    %c0_54 = arith.constant 0 : index
    %c0_55 = arith.constant 0 : index
    %70 = vector.load %arg3[%c2_53, %c0_54, %c0_55] : memref<4x1x1024xbf16, #tpu.memory_space<vmem>>, vector<1x1x1024xbf16>
    %71 = vector.shape_cast %70 : vector<1x1x1024xbf16> to vector<1x1024xbf16>
    %c2_56 = arith.constant 2 : index
    %c0_57 = arith.constant 0 : index
    %c0_58 = arith.constant 0 : index
    %72 = vector.load %arg2[%c2_56, %c0_57, %c0_58] : memref<4x1x128xbf16, #tpu.memory_space<vmem>>, vector<1x1x128xbf16>
    %73 = vector.shape_cast %72 : vector<1x1x128xbf16> to vector<1x128xbf16>
    %c2_59 = arith.constant 2 : index
    %c0_60 = arith.constant 0 : index
    %c0_61 = arith.constant 0 : index
    %74 = vector.load %arg5[%c2_59, %c0_60, %c0_61] : memref<4x1x1024xbf16, #tpu.memory_space<vmem>>, vector<1x1x1024xbf16>
    %75 = vector.shape_cast %74 : vector<1x1x1024xbf16> to vector<1x1024xbf16>
    %76 = arith.mulf %69, %75 : vector<1x1024xbf16>
    %cst_62 = arith.constant dense<0.000000e+00> : vector<1x32xf32>
    %77 = tpu.matmul %76, %3, %cst_62 {dimension_numbers = #tpu.dot_dimension_numbers<[1], [0], [0], [1], [0, 0, 1, 1], [], []>} : vector<1x1024xbf16>, vector<1024x32xbf16>, vector<1x32xf32> -> vector<1x32xf32>
    %cst_63 = arith.constant dense<0xFF800000> : vector<1xf32>
    %78 = vector.multi_reduction <maximumf>, %77, %cst_63 [1] : vector<1x32xf32> to vector<1xf32>
    %79 = vector.shape_cast %78 : vector<1xf32> to vector<1x1xf32>
    %80 = vector.broadcast %79 : vector<1x1xf32> to vector<1x32xf32>
    %81 = arith.subf %77, %80 : vector<1x32xf32>
    %82 = math.exp %81 : vector<1x32xf32>
    %cst_64 = arith.constant dense<0.000000e+00> : vector<1x32xf32>
    %83 = tpu.matmul %82, %4, %cst_64 {dimension_numbers = #tpu.dot_dimension_numbers<[1], [0], [0], [1], [0, 0, 1, 1], [], []>} : vector<1x32xf32>, vector<32x32xf32>, vector<1x32xf32> -> vector<1x32xf32>
    %84 = tpu.reciprocal %83 {approx = true} : vector<1x32xf32> -> vector<1x32xf32>
    %85 = arith.mulf %82, %84 : vector<1x32xf32>
    %86 = arith.truncf %85 : vector<1x32xf32> to vector<1x32xbf16>
    %cst_65 = arith.constant dense<0.000000e+00> : vector<1x1024xf32>
    %87 = tpu.matmul %86, %5, %cst_65 {dimension_numbers = #tpu.dot_dimension_numbers<[1], [0], [0], [1], [0, 0, 1, 1], [], []>} : vector<1x32xbf16>, vector<32x1024xbf16>, vector<1x1024xf32> -> vector<1x1024xf32>
    %88 = arith.truncf %87 : vector<1x1024xf32> to vector<1x1024xbf16>
    %89 = arith.mulf %71, %88 : vector<1x1024xbf16>
    %cst_66 = arith.constant dense<0.000000e+00> : vector<1x128xf32>
    %90 = tpu.matmul %73, %0, %cst_66 {dimension_numbers = #tpu.dot_dimension_numbers<[1], [0], [0], [1], [0, 0, 1, 1], [], []>} : vector<1x128xbf16>, vector<128x128xbf16>, vector<1x128xf32> -> vector<1x128xf32>
    %cst_67 = arith.constant dense<0.000000e+00> : vector<1x128xf32>
    %91 = tpu.matmul %89, %1, %cst_67 {dimension_numbers = #tpu.dot_dimension_numbers<[1], [0], [0], [1], [0, 0, 1, 1], [], []>} : vector<1x1024xbf16>, vector<1024x128xbf16>, vector<1x128xf32> -> vector<1x128xf32>
    %92 = arith.addf %90, %91 : vector<1x128xf32>
    %93 = arith.addf %92, %2 : vector<1x128xf32>
    %94 = math.tanh %93 : vector<1x128xf32>
    %95 = arith.truncf %94 : vector<1x128xf32> to vector<1x128xbf16>
    %c2_68 = arith.constant 2 : index
    %c0_69 = arith.constant 0 : index
    %c0_70 = arith.constant 0 : index
    %96 = vector.load %arg12[%c2_68, %c0_69, %c0_70] : memref<4x1x128xbf16, #tpu.memory_space<vmem>>, vector<1x1x128xbf16>
    %97 = vector.shape_cast %96 : vector<1x1x128xbf16> to vector<1x128xbf16>
    %98 = vector.shape_cast %95 : vector<1x128xbf16> to vector<1x1x128xbf16>
    tpu.vector_store %arg12[%c2_68, %c0_69, %c0_70], %98 {strides = array<i32>} : memref<4x1x128xbf16, #tpu.memory_space<vmem>>, vector<1x1x128xbf16>,
    %c3 = arith.constant 3 : index
    %c0_71 = arith.constant 0 : index
    %c0_72 = arith.constant 0 : index
    %99 = vector.load %arg4[%c3, %c0_71, %c0_72] : memref<4x1x1024xbf16, #tpu.memory_space<vmem>>, vector<1x1x1024xbf16>
    %100 = vector.shape_cast %99 : vector<1x1x1024xbf16> to vector<1x1024xbf16>
    %c3_73 = arith.constant 3 : index
    %c0_74 = arith.constant 0 : index
    %c0_75 = arith.constant 0 : index
    %101 = vector.load %arg3[%c3_73, %c0_74, %c0_75] : memref<4x1x1024xbf16, #tpu.memory_space<vmem>>, vector<1x1x1024xbf16>
    %102 = vector.shape_cast %101 : vector<1x1x1024xbf16> to vector<1x1024xbf16>
    %c3_76 = arith.constant 3 : index
    %c0_77 = arith.constant 0 : index
    %c0_78 = arith.constant 0 : index
    %103 = vector.load %arg2[%c3_76, %c0_77, %c0_78] : memref<4x1x128xbf16, #tpu.memory_space<vmem>>, vector<1x1x128xbf16>
    %104 = vector.shape_cast %103 : vector<1x1x128xbf16> to vector<1x128xbf16>
    %c3_79 = arith.constant 3 : index
    %c0_80 = arith.constant 0 : index
    %c0_81 = arith.constant 0 : index
    %105 = vector.load %arg5[%c3_79, %c0_80, %c0_81] : memref<4x1x1024xbf16, #tpu.memory_space<vmem>>, vector<1x1x1024xbf16>
    %106 = vector.shape_cast %105 : vector<1x1x1024xbf16> to vector<1x1024xbf16>
    %107 = arith.mulf %100, %106 : vector<1x1024xbf16>
    %cst_82 = arith.constant dense<0.000000e+00> : vector<1x32xf32>
    %108 = tpu.matmul %107, %3, %cst_82 {dimension_numbers = #tpu.dot_dimension_numbers<[1], [0], [0], [1], [0, 0, 1, 1], [], []>} : vector<1x1024xbf16>, vector<1024x32xbf16>, vector<1x32xf32> -> vector<1x32xf32>
    %cst_83 = arith.constant dense<0xFF800000> : vector<1xf32>
    %109 = vector.multi_reduction <maximumf>, %108, %cst_83 [1] : vector<1x32xf32> to vector<1xf32>
    %110 = vector.shape_cast %109 : vector<1xf32> to vector<1x1xf32>
    %111 = vector.broadcast %110 : vector<1x1xf32> to vector<1x32xf32>
    %112 = arith.subf %108, %111 : vector<1x32xf32>
    %113 = math.exp %112 : vector<1x32xf32>
    %cst_84 = arith.constant dense<0.000000e+00> : vector<1x32xf32>
    %114 = tpu.matmul %113, %4, %cst_84 {dimension_numbers = #tpu.dot_dimension_numbers<[1], [0], [0], [1], [0, 0, 1, 1], [], []>} : vector<1x32xf32>, vector<32x32xf32>, vector<1x32xf32> -> vector<1x32xf32>
    %115 = tpu.reciprocal %114 {approx = true} : vector<1x32xf32> -> vector<1x32xf32>
    %116 = arith.mulf %113, %115 : vector<1x32xf32>
    %117 = arith.truncf %116 : vector<1x32xf32> to vector<1x32xbf16>
    %cst_85 = arith.constant dense<0.000000e+00> : vector<1x1024xf32>
    %118 = tpu.matmul %117, %5, %cst_85 {dimension_numbers = #tpu.dot_dimension_numbers<[1], [0], [0], [1], [0, 0, 1, 1], [], []>} : vector<1x32xbf16>, vector<32x1024xbf16>, vector<1x1024xf32> -> vector<1x1024xf32>
    %119 = arith.truncf %118 : vector<1x1024xf32> to vector<1x1024xbf16>
    %120 = arith.mulf %102, %119 : vector<1x1024xbf16>
    %cst_86 = arith.constant dense<0.000000e+00> : vector<1x128xf32>
    %121 = tpu.matmul %104, %0, %cst_86 {dimension_numbers = #tpu.dot_dimension_numbers<[1], [0], [0], [1], [0, 0, 1, 1], [], []>} : vector<1x128xbf16>, vector<128x128xbf16>, vector<1x128xf32> -> vector<1x128xf32>
    %cst_87 = arith.constant dense<0.000000e+00> : vector<1x128xf32>
    %122 = tpu.matmul %120, %1, %cst_87 {dimension_numbers = #tpu.dot_dimension_numbers<[1], [0], [0], [1], [0, 0, 1, 1], [], []>} : vector<1x1024xbf16>, vector<1024x128xbf16>, vector<1x128xf32> -> vector<1x128xf32>
    %123 = arith.addf %121, %122 : vector<1x128xf32>
    %124 = arith.addf %123, %2 : vector<1x128xf32>
    %125 = math.tanh %124 : vector<1x128xf32>
    %126 = arith.truncf %125 : vector<1x128xf32> to vector<1x128xbf16>
    %c3_88 = arith.constant 3 : index
    %c0_89 = arith.constant 0 : index
    %c0_90 = arith.constant 0 : index
    %127 = vector.load %arg12[%c3_88, %c0_89, %c0_90] : memref<4x1x128xbf16, #tpu.memory_space<vmem>>, vector<1x1x128xbf16>
    %128 = vector.shape_cast %127 : vector<1x1x128xbf16> to vector<1x128xbf16>
    %129 = vector.shape_cast %126 : vector<1x128xbf16> to vector<1x1x128xbf16>
    tpu.vector_store %arg12[%c3_88, %c0_89, %c0_90], %129 {strides = array<i32>} : memref<4x1x128xbf16, #tpu.memory_space<vmem>>, vector<1x1x128xbf16>,
    return
  }
  func.func @transform_0(%arg0: i32, %arg1: i32) -> (i32, i32, i32) {
    %c0_i32 = arith.constant 0 : i32
    %c0_i32_0 = arith.constant 0 : i32
    return %arg0, %arg1, %c0_i32 : i32, i32, i32
  }
  func.func @transform_1(%arg0: i32, %arg1: i32) -> (i32, i32, i32) {
    %c0_i32 = arith.constant 0 : i32
    %c0_i32_0 = arith.constant 0 : i32
    return %arg0, %arg1, %c0_i32 : i32, i32, i32
  }
  func.func @transform_2(%arg0: i32, %arg1: i32) -> (i32, i32, i32) {
    %c0_i32 = arith.constant 0 : i32
    %c0_i32_0 = arith.constant 0 : i32
    return %arg0, %arg1, %c0_i32 : i32, i32, i32
  }
  func.func @transform_3(%arg0: i32, %arg1: i32) -> (i32, i32, i32) {
    %c0_i32 = arith.constant 0 : i32
    %c0_i32_0 = arith.constant 0 : i32
    %c0_i32_1 = arith.constant 0 : i32
    return %arg0, %c0_i32, %c0_i32_0 : i32, i32, i32
  }
  func.func @transform_4(%arg0: i32, %arg1: i32) -> (i32, i32) {
    %c0_i32 = arith.constant 0 : i32
    %c0_i32_0 = arith.constant 0 : i32
    %c0_i32_1 = arith.constant 0 : i32
    return %c0_i32, %c0_i32_0 : i32, i32
  }
  func.func @transform_5(%arg0: i32, %arg1: i32) -> (i32, i32) {
    %c0_i32 = arith.constant 0 : i32
    %c0_i32_0 = arith.constant 0 : i32
    %c0_i32_1 = arith.constant 0 : i32
    return %c0_i32, %c0_i32_0 : i32, i32
  }
  func.func @transform_6(%arg0: i32, %arg1: i32) -> (i32, i32) {
    %c0_i32 = arith.constant 0 : i32
    %c0_i32_0 = arith.constant 0 : i32
    %c0_i32_1 = arith.constant 0 : i32
    return %c0_i32, %c0_i32_0 : i32, i32
  }
  func.func @transform_7(%arg0: i32, %arg1: i32) -> (i32, i32) {
    %c0_i32 = arith.constant 0 : i32
    %c0_i32_0 = arith.constant 0 : i32
    %c0_i32_1 = arith.constant 0 : i32
    return %c0_i32, %c0_i32_0 : i32, i32
  }
  func.func @transform_8(%arg0: i32, %arg1: i32) -> (i32, i32) {
    %c0_i32 = arith.constant 0 : i32
    %c0_i32_0 = arith.constant 0 : i32
    %c0_i32_1 = arith.constant 0 : i32
    return %c0_i32, %c0_i32_0 : i32, i32
  }
  func.func @transform_9(%arg0: i32, %arg1: i32) -> (i32, i32) {
    %c0_i32 = arith.constant 0 : i32
    %c0_i32_0 = arith.constant 0 : i32
    %c0_i32_1 = arith.constant 0 : i32
    return %c0_i32, %c0_i32_0 : i32, i32
  }
  func.func @transform_10(%arg0: i32, %arg1: i32) -> (i32, i32, i32) {
    %c0_i32 = arith.constant 0 : i32
    %c0_i32_0 = arith.constant 0 : i32
    return %arg0, %arg1, %c0_i32 : i32, i32, i32
  }
}

</mosaic_0001>

<bundles_post_ra>
// kernel: kgcn_forward.3
= control target key start
LH: loop header
LB: loop body
LE: loop exit
PB: predicated region body
PF: predicated region fallthrough
CT: control target
= control target key end

     0   :  { %s4779_s13 = smov 0   ;;  %s4781_s14 = smov 0   ;;  %s7172_s0 = inlined_call_operand.vmem [shape: bf16[8,1,128], index: 0, kind: input, shape index: {}]   ;;  %s7173_s1 = inlined_call_operand.vmem [shape: bf16[8,1,1024], index: 1, kind: input, shape index: {}]   ;;  %s7174_s2 = inlined_call_operand.vmem [shape: bf16[8,1,1024], index: 2, kind: input, shape index: {}]   ;;  %s7175_s3 = inlined_call_operand.vmem [shape: bf16[8,1,1024], index: 3, kind: input, shape index: {}]   ;;  %s7176_s4 = inlined_call_operand.vmem [shape: bf16[128,128], index: 4, kind: input, shape index: {}]   ;;  %s7177_s5 = inlined_call_operand.vmem [shape: bf16[1024,128], index: 5, kind: input, shape index: {}]   ;;  %s7178_s6 = inlined_call_operand.vmem [shape: f32[1,128], index: 6, kind: input, shape index: {}]   ;;  %s7179_s7 = inlined_call_operand.vmem [shape: bf16[1024,32], index: 7, kind: input, shape index: {}]   ;;  %s7180_s8 = inlined_call_operand.vmem [shape: f32[32,32], index: 8, kind: input, shape index: {}]   ;;  %s7181_s9 = inlined_call_operand.vmem [shape: bf16[32,1024], index: 9, kind: input, shape index: {}]   ;;  %s7182_s10 = inlined_call_operand.vmem [shape: bf16[8,1,128], index: 10, kind: output, shape index: {}]  }
   0x1   :  { %s4783_s15 = smov 0  }
   0x2 LB: > { %s32_s16 = sadd.s32 1, %s4718_s14  ;;  %p3681_p0 = scmp.ge.s32.totalorder %s4722_s15, 1  ;;  %s4722_s15 = sphi %s4783_s15, %s20_s15   ;;  %s4718_s14 = sphi %s4781_s14, %s7816_s14   ;;  %s4714_s13 = sphi %s4779_s13, %s7815_s13  }
   0x3   : > { %p34_p1 = scmp.ge.s32.totalorder %s32_s16, 2  ;;  %p376_p2 = scmp.lt.s32.totalorder %s4722_s15, 3 }
   0x5   : > { %s7818_s16 = smov (%p34_p1, %s32_s16), 0  ;;  %p377_p3 = pnand %p3681_p0, %p376_p2 }
   0x7   : > { %380 = sbr.rel (%p377_p3) target bundleno = 2783 (0xadf), region = 60 }
   0xc   : > { %v4800_v0 = vld [vmem:[%s7179_s7 + $0x38] sm:$0xff]  ;;  %s3682_s23 = sshll.u32 %s4714_s13, 2  ;;  %v4820_v4 = vld [vmem:[%s7179_s7 + $0x30] sm:$0xff]  ;;  %v4843_v8 = vld [vmem:[%s7179_s7 + $0x28] sm:$0xff]  ;;  %vm1301_vm0 = vcmask 253952   ;;  %vm1308_vm1 = vcmask 261120  }
   0xd   : > { %v4805_v1 = vld [vmem:[%s7179_s7 + $0x78] sm:$0xff]  ;;  %p442_p4 = scmp.lt.s32.totalorder %s3682_s23, 7  ;;  %1197 = vmatpush.bf16.msra.mxu0 %v4800_v0  ;;  %v4825_v5 = vld [vmem:[%s7179_s7 + $0x70] sm:$0xff]  ;;  %v4848_v9 = vld [vmem:[%s7179_s7 + $0x68] sm:$0xff]  ;;  %vm1550_vm2 = vcmask 1041408   ;;  %vm1552_vm3 = vcmask 1045508  }
   0xe   : > { %v4810_v2 = vld [vmem:[%s7179_s7 + $0xb8] sm:$0xff]  ;;  %1210 = vmatpush.bf16.msra.mxu1 %v4805_v1  ;;  %v4831_v6 = vld [vmem:[%s7179_s7 + $0xb0] sm:$0xff]  ;;  %v4854_v10 = vld [vmem:[%s7179_s7 + $0xa8] sm:$0xff]  ;;  %vm1554_vm4 = vcmask 1043456   ;;  %vm2141_vm5 = vcmask 1040384  }
   0xf   : > { %v4457_v3 = vld [vmem:[%s7179_s7 + $0xf8] sm:$0xff]  ;;  %1223 = vmatpush.bf16.msra.mxu2 %v4810_v2  ;;  %v4456_v7 = vld [vmem:[%s7179_s7 + $0xf0] sm:$0xff]  ;;  %s7820_s23 = smov (!%p442_p4, %s3682_s23), 7  ;;  %v4455_v11 = vld [vmem:[%s7179_s7 + $0xe8] sm:$0xff]  ;;  %vm2142_vm6 = vsmask.f32 256 }
  0x10   : > { %1236 = vmatpush.bf16.msra.mxu3 %v4457_v3  ;;  %s4860_s26 = sshll.u32 %s7820_s23, 3  ;;  %v4867_v12 = vld [vmem:[%s7179_s7 + $0x20] sm:$0xff]  ;;  %v4900_v16 = vld [vmem:[%s7179_s7 + $0x18] sm:$0xff]  ;;  %v4927_v22 = vld [vmem:[%s7179_s7 + $0x10] sm:$0xff]  ;;  %s5853_s30 = scalar_lea.vmem %s7172_s0, %s7820_s23 }
  0x11   : > { %1198 = vmatpush.bf16.msra.mxu0 %v4820_v4  ;;  %v4872_v13 = vld [vmem:[%s7179_s7 + $0x60] sm:$0xff]  ;;  %s4887_s20 = scalar_lea.vmem %s7174_s2, %s4860_s26  ;;  %s4893_s24 = scalar_lea.vmem %s7175_s3, %s4860_s26  ;;  %v4905_v17 = vld [vmem:[%s7179_s7 + $0x58] sm:$0xff]  ;;  %v4932_v23 = vld [vmem:[%s7179_s7 + $0x50] sm:$0xff] }
  0x12   : > { %1211 = vmatpush.bf16.msra.mxu1 %v4825_v5  ;;  %v4878_v14 = vld [vmem:[%s7179_s7 + $0xa0] sm:$0xff]  ;;  %v4910_v18 = vld [vmem:[%s7179_s7 + $0x98] sm:$0xff]  ;;  %v4940_v26 = vld [vmem:[%s7179_s7 + $0x90] sm:$0xff]  ;;  %s5762_s22 = scalar_lea.vmem %s7173_s1, %s4860_s26  ;;  %s5966_s13 = scalar_lea.vmem %s7182_s10, %s7820_s23 }
  0x13   : > { %1224 = vmatpush.bf16.msra.mxu2 %v4831_v6  ;;  %v4454_v15 = vld [vmem:[%s7179_s7 + $0xe0] sm:$0xff]  ;;  %v4453_v19 = vld [vmem:[%s7179_s7 + $0xd8] sm:$0xff]  ;;  %v4945_v27 = vld [vmem:[%s7179_s7 + $0xd0] sm:$0xff] }
  0x14   : > { %1237 = vmatpush.bf16.msra.mxu3 %v4456_v7  ;;  %v4917_v20 = vld [vmem:[%s4887_s20] sm:$0xff]  ;;  %v4952_v28 = vld [vmem:[%s7179_s7 + $0x8] sm:$0xff]  ;;  %v4998_v41 = vld [vmem:[%s7179_s7 + $0x138] sm:$0xff] }
  0x15   : > { %1199 = vmatpush.bf16.msra.mxu0 %v4843_v8  ;;  %v4920_v21 = vld [vmem:[%s4893_s24] sm:$0xff]  ;;  %v781_v24 = vunpack.c.l.bf16 %v4917_v20  ;;  %v4957_v29 = vld [vmem:[%s7179_s7 + $0x48] sm:$0xff]  ;;  %v5003_v42 = vld [vmem:[%s7179_s7 + $0x178] sm:$0xff]  ;;  %v782_v7 = vunpack.c.h.bf16 %v4917_v20 }
  0x16   : > { %1212 = vmatpush.bf16.msra.mxu1 %v4848_v9  ;;  %v783_v25 = vunpack.c.l.bf16 %v4920_v21  ;;  %v4964_v31 = vld [vmem:[%s7179_s7 + $0x88] sm:$0xff]  ;;  %v4976_v33 = vld [vmem:[%s7179_s7] sm:$0xff]  ;;  %v5008_v43 = vld [vmem:[%s7179_s7 + $0x1b8] sm:$0xff] }
  0x17   : > { %1225 = vmatpush.bf16.msra.mxu2 %v4854_v10  ;;  %v4969_v32 = vld [vmem:[%s7179_s7 + $0xc8] sm:$0xff]  ;;  %v4981_v34 = vld [vmem:[%s7179_s7 + $0x40] sm:$0xff]  ;;  %v5013_v44 = vld [vmem:[%s7179_s7 + $0x1f8] sm:$0xff] }
  0x18   : > { %1238 = vmatpush.bf16.msra.mxu3 %v4455_v11  ;;  %v785_v30 = vmul.f32 %v783_v25, %v781_v24  ;;  %7409 = vst [vmem:[#allocation2_spill] sm:$0xff] %v4969_v32  ;;  %v4988_v37 = vld [vmem:[%s7179_s7 + $0x80] sm:$0xff]  ;;  %v5024_v49 = vld [vmem:[%s7179_s7 + $0x130] sm:$0xff]  ;;  %v5048_v53 = vld [vmem:[%s7179_s7 + $0x128] sm:$0xff]  ;;  %v784_v11 = vunpack.c.h.bf16 %v4920_v21 }
  0x19   : > { %1200 = vmatpush.bf16.msra.mxu0 %v4867_v12  ;;  %v4993_v38 = vld [vmem:[%s7179_s7 + $0xc0] sm:$0xff]  ;;  %7411 = vst [vmem:[#allocation4_spill] sm:$0xff] %v5013_v44  ;;  %v5029_v50 = vld [vmem:[%s7179_s7 + $0x170] sm:$0xff]  ;;  %v5053_v54 = vld [vmem:[%s7179_s7 + $0x168] sm:$0xff] }
  0x1a   : > { %1213 = vmatpush.bf16.msra.mxu1 %v4872_v13  ;;  %v791_v35 = vperm.slane %v785_v30, 4  ;;  %v789_v36 = vperm.slane %v785_v30, 0  ;;  %7410 = vst [vmem:[#allocation3_spill] sm:$0xff] %v4993_v38  ;;  %v792_v39 = vperm.slane %v785_v30, 6  ;;  %v790_v40 = vperm.slane %v785_v30, 2  ;;  %v5036_v51 = vld [vmem:[%s7179_s7 + $0x1b0] sm:$0xff]  ;;  %vm5968_vm7 = vmand %vm2141_vm5, %vm2142_vm6 }
  0x1b   : > { %1226 = vmatpush.bf16.msra.mxu2 %v4878_v14  ;;  %v5041_v52 = vld [vmem:[%s7179_s7 + $0x1f0] sm:$0xff]  ;;  %v5060_v55 = vld [vmem:[%s7179_s7 + $0x1a8] sm:$0xff]  ;;  %v5072_v57 = vld [vmem:[%s7179_s7 + $0x120] sm:$0xff]  ;;  %v786_v24 = vmul.f32 %v784_v11, %v782_v7 }
  0x1c   : > { %1239 = vmatpush.bf16.msra.mxu3 %v4454_v15  ;;  %v807_v45 = vpack.c.bf16 %v791_v35, %v791_v35  ;;  %v805_v46 = vpack.c.bf16 %v789_v36, %v789_v36  ;;  %v808_v47 = vpack.c.bf16 %v792_v39, %v792_v39  ;;  %v806_v48 = vpack.c.bf16 %v790_v40, %v790_v40  ;;  %v5065_v56 = vld [vmem:[%s7179_s7 + $0x1e8] sm:$0xff]  ;;  %v5077_v58 = vld [vmem:[%s7179_s7 + $0x160] sm:$0xff]  ;;  %v5096_v61 = vld [vmem:[%s7179_s7 + $0x118] sm:$0xff] }
  0x1d   : > { %1201 = vmatpush.bf16.msra.mxu0 %v4900_v16  ;;  %7412 = vst [vmem:[#allocation5_spill] sm:$0xff] %v5041_v52  ;;  %v5084_v59 = vld [vmem:[%s7179_s7 + $0x1a0] sm:$0xff]  ;;  %v5101_v62 = vld [vmem:[%s7179_s7 + $0x158] sm:$0xff]  ;;  %v5122_v15 = vld [vmem:[%s7179_s7 + $0x110] sm:$0xff]  ;;  %v793_v39 = vperm.slane %v786_v24, 0  ;;  %v794_v40 = vperm.slane %v786_v24, 2 }
  0x1e   : > { %1214 = vmatpush.bf16.msra.mxu1 %v4905_v17  ;;  %7413 = vst [vmem:[#allocation6_spill] sm:$0xff] %v5065_v56  ;;  %v5089_v60 = vld [vmem:[%s7179_s7 + $0x1e0] sm:$0xff]  ;;  %v5108_v63 = vld [vmem:[%s7179_s7 + $0x198] sm:$0xff]  ;;  %v5134_v20 = vld [vmem:[%s7179_s7 + $0x190] sm:$0xff] }
  0x1f   : > { %1227 = vmatpush.bf16.msra.mxu2 %v4910_v18  ;;  %7414 = vst [vmem:[#allocation7_spill] sm:$0xff] %v5089_v60  ;;  %v5113_v3 = vld [vmem:[%s7179_s7 + $0x1d8] sm:$0xff]  ;;  %v5139_v21 = vld [vmem:[%s7179_s7 + $0x1d0] sm:$0xff]  ;;  %v5146_v25 = vld [vmem:[%s7179_s7 + $0x108] sm:$0xff] }
  0x20   : > { %1240 = vmatpush.bf16.msra.mxu3 %v4453_v19  ;;  %7415 = vst [vmem:[#allocation8_spill] sm:$0xff] %v5113_v3  ;;  %v5127_v19 = vld [vmem:[%s7179_s7 + $0x150] sm:$0xff]  ;;  %v5151_v30 = vld [vmem:[%s7179_s7 + $0x148] sm:$0xff]  ;;  %v5182_v7 = vld [vmem:[%s7179_s7 + $0x180] sm:$0xff] }
  0x21   : > { %1202 = vmatpush.bf16.msra.mxu0 %v4927_v22  ;;  %7416 = vst [vmem:[#allocation9_spill] sm:$0xff] %v5122_v15  ;;  %v5158_v35 = vld [vmem:[%s7179_s7 + $0x188] sm:$0xff]  ;;  %v5187_v11 = vld [vmem:[%s7179_s7 + $0x1c0] sm:$0xff] }
  0x22   : > { %1215 = vmatpush.bf16.msra.mxu1 %v4932_v23  ;;  %7417 = vst [vmem:[#allocation10_spill] sm:$0xff] %v5127_v19  ;;  %v5163_v36 = vld [vmem:[%s7179_s7 + $0x1c8] sm:$0xff] }
  0x23   : > { %1228 = vmatpush.bf16.msra.mxu2 %v4940_v26  ;;  %7418 = vst [vmem:[#allocation11_spill] sm:$0xff] %v5134_v20 }
  0x24   : > { %1241 = vmatpush.bf16.msra.mxu3 %v4945_v27  ;;  %7419 = vst [vmem:[#allocation12_spill] sm:$0xff] %v5139_v21 }
  0x25   : > { %1203 = vmatpush.bf16.msra.mxu0 %v4952_v28  ;;  %7420 = vst [vmem:[#allocation13_spill] sm:$0xff] %v5146_v25 }
  0x26   : > { %1216 = vmatpush.bf16.msra.mxu1 %v4957_v29  ;;  %7421 = vst [vmem:[#allocation14_spill] sm:$0xff] %v5151_v30 }
  0x27   : > { %1229 = vmatpush.bf16.msra.mxu2 %v4964_v31  ;;  %7422 = vst [vmem:[#allocation15_spill] sm:$0xff] %v5158_v35 }
  0x28   : > { %1242 = vmatpush.bf16.msra.mxu3 %v4969_v32  ;;  %7423 = vst [vmem:[#allocation16_spill] sm:$0xff] %v5163_v36 }
  0x29   : > { %1204 = vmatpush.bf16.msra.mxu0 %v4976_v33  ;;  %7426 = vst [vmem:[#allocation19_spill] sm:$0xff] %v5182_v7 }
  0x2a   : > { %1217 = vmatpush.bf16.msra.mxu1 %v4981_v34  ;;  %7427 = vst [vmem:[#allocation20_spill] sm:$0xff] %v5187_v11 }
  0x2b   : > { %1230 = vmatpush.bf16.msra.mxu2 %v4988_v37 }
  0x2c   : > { %1243 = vmatpush.bf16.msra.mxu3 %v4993_v38  ;;  %1205 = vmatmul.bf16.vlgmr.msra.gmra.mxu0 %v805_v46  ;;  %v5175_v46 = vld [vmem:[%s7179_s7 + $0x140] sm:$0xff] }
  0x2d   : > { %1249 = vmatpush.bf16.msrb.mxu0 %v4998_v41  ;;  %1218 = vmatmul.bf16.vlgmr.msra.gmra.mxu1 %v806_v48  ;;  %7425 = vst [vmem:[#allocation18_spill] sm:$0xff] %v5175_v46  ;;  %v796_v48 = vperm.slane %v786_v24, 6 }
  0x2e   : > { %1262 = vmatpush.bf16.msrb.mxu1 %v5003_v42  ;;  %1231 = vmatmul.bf16.vlgmr.msra.gmra.mxu2 %v807_v45  ;;  %v5170_v45 = vld [vmem:[%s7179_s7 + $0x100] sm:$0xff] }
  0x2f   : > { %1275 = vmatpush.bf16.msrb.mxu2 %v5008_v43  ;;  %1244 = vmatmul.bf16.vlgmr.msra.gmra.mxu3 %v808_v47  ;;  %7424 = vst [vmem:[#allocation17_spill] sm:$0xff] %v5170_v45  ;;  %v795_v47 = vperm.slane %v786_v24, 4 }
  0x30   : > { %1288 = vmatpush.bf16.msrb.mxu3 %v5013_v44 }
  0x31   : > { %1250 = vmatpush.bf16.msrb.mxu0 %v5024_v49  ;;  %v811_v24 = vpack.c.bf16 %v795_v47, %v795_v47 }
  0x32   : > { %1263 = vmatpush.bf16.msrb.mxu1 %v5029_v50 }
  0x33   : > { %1276 = vmatpush.bf16.msrb.mxu2 %v5036_v51 }
  0x34   : > { %1289 = vmatpush.bf16.msrb.mxu3 %v5041_v52 }
  0x35   : > { %1251 = vmatpush.bf16.msrb.mxu0 %v5048_v53 }
  0x36   : > { %1264 = vmatpush.bf16.msrb.mxu1 %v5053_v54 }
  0x37   : > { %1277 = vmatpush.bf16.msrb.mxu2 %v5060_v55 }
  0x38   : > { %1290 = vmatpush.bf16.msrb.mxu3 %v5065_v56 }
  0x39   : > { %1252 = vmatpush.bf16.msrb.mxu0 %v5072_v57 }
  0x3a   : > { %1265 = vmatpush.bf16.msrb.mxu1 %v5077_v58 }
  0x3b   : > { %1278 = vmatpush.bf16.msrb.mxu2 %v5084_v59 }
  0x3c   : > { %1291 = vmatpush.bf16.msrb.mxu3 %v5089_v60  ;;  %v812_v60 = vpack.c.bf16 %v796_v48, %v796_v48 }
  0x3d   : > { %1253 = vmatpush.bf16.msrb.mxu0 %v5096_v61 }
  0x3e   : > { %1266 = vmatpush.bf16.msrb.mxu1 %v5101_v62 }
  0x3f   : > { %1279 = vmatpush.bf16.msrb.mxu2 %v5108_v63 }
  0x40   : > { %1292 = vmatpush.bf16.msrb.mxu3 %v5113_v3  ;;  %v810_v3 = vpack.c.bf16 %v794_v40, %v794_v40 }
  0x41   : > { %1254 = vmatpush.bf16.msrb.mxu0 %v5122_v15 }
  0x42   : > { %1267 = vmatpush.bf16.msrb.mxu1 %v5127_v19 }
  0x43   : > { %1280 = vmatpush.bf16.msrb.mxu2 %v5134_v20 }
  0x44   : > { %1293 = vmatpush.bf16.msrb.mxu3 %v5139_v21  ;;  %v809_v21 = vpack.c.bf16 %v793_v39, %v793_v39 }
  0x45   : > { %1255 = vmatpush.bf16.msrb.mxu0 %v5146_v25 }
  0x46   : > { %1268 = vmatpush.bf16.msrb.mxu1 %v5151_v30 }
  0x47   : > { %1281 = vmatpush.bf16.msrb.mxu2 %v5158_v35 }
  0x48   : > { %1294 = vmatpush.bf16.msrb.mxu3 %v5163_v36 }
  0x49   : > { %1256 = vmatpush.bf16.msrb.mxu0 %v5170_v45 }
  0x4a   : > { %1269 = vmatpush.bf16.msrb.mxu1 %v5175_v46 }
  0x4b   : > { %1282 = vmatpush.bf16.msrb.mxu2 %v5182_v7 }
  0x4c   : > { %1295 = vmatpush.bf16.msrb.mxu3 %v5187_v11  ;;  %1257 = vmatmul.bf16.vlgmr.msrb.gmra.mxu0 %v809_v21 }
  0x4d   : > { %1270 = vmatmul.bf16.vlgmr.msrb.gmra.mxu1 %v810_v3 }
  0x4e   : > { %1283 = vmatmul.bf16.vlgmr.msrb.gmra.mxu2 %v811_v24 }
  0x4f   : > { %1296 = vmatmul.bf16.vlgmr.msrb.gmra.mxu3 %v812_v60 }
  0xa9   : > { %v1206_v36 = vpop.f32.mrf.mxu0 }
  0xaa   : > { %v1219_v56 = vpop.f32.mrf.mxu1 }
  0xab   : > { %v1220_v38 = vadd.f32 %v1219_v56, %v1206_v36 }
  0xb1   : > { %v1232_v52 = vpop.f32.mrf.mxu2  ;;  %v1208_v39 = vpop.f32.mrf.mxu0 }
  0xb2   : > { %v1245_v44 = vpop.f32.mrf.mxu3  ;;  %v1221_v40 = vpop.f32.mrf.mxu1  ;;  %v1233_v46 = vadd.f32 %v1232_v52, %v1220_v38  ;;  %v5197_v38 = vld [vmem:[%s7180_s8 + $0x18] sm:$0xff]  ;;  %v5208_v52 = vld [vmem:[%s7180_s8 + $0x8] sm:$0xff] }
  0xb3   : > { %7428 = vst [vmem:[#allocation21_spill] sm:$0xff] %v5197_v38  ;;  %1324 = vmatpush.msra.mxu0 %v5197_v38  ;;  %v4499_v40 = vld [vmem:[%s7181_s9 + $0x4c] sm:$0xf] }
  0xb4   : > { %v1246_v47 = vadd.f32 %v1245_v44, %v1233_v46  ;;  %v5203_v44 = vld [vmem:[%s7180_s8 + $0x10] sm:$0xff]  ;;  %7430 = vst [vmem:[#allocation23_spill] sm:$0xff] %v5208_v52  ;;  %v4502_v46 = vld [vmem:[%s7181_s9 + $0x5c] sm:$0xf0] }
  0xb5   : > { %7429 = vst [vmem:[#allocation22_spill] sm:$0xff] %v5203_v44  ;;  %1325 = vmatpush.msra.mxu0 %v5203_v44 }
  0xb7   : > { %1326 = vmatpush.msra.mxu0 %v5208_v52 }
  0xb9   : > { %v1234_v35 = vpop.f32.mrf.mxu2 }
  0xba   : > { %v1247_v45 = vpop.f32.mrf.mxu3 }
  0xbb   : > { %v3981_v45 = vld [vmem:[%s7181_s9 + $0x40] sm:$0xf] }
  0xc9   : > { %v1258_v48 = vpop.f32.mrf.mxu0 }
  0xca   : > { %v1271_v30 = vpop.f32.mrf.mxu1  ;;  %v1259_v7 = vadd.f32 %v1258_v48, %v1246_v47  ;;  %v3991_v47 = vld [vmem:[%s7181_s9 + $0x68] sm:$0xf0] }
  0xcc   : > { %v1272_v25 = vadd.f32 %v1271_v30, %v1259_v7  ;;  %v5231_v7 = vor.u32 %v4502_v46, %v3981_v45  ;;  %v4491_v45 = vld [vmem:[%s7181_s9 + $0xc] sm:$0xf] }
  0xcd   : > { %v3959_v46 = vld [vmem:[%s7181_s9 + $0x28] sm:$0xf0] }
  0xce   : > { %7432 = vst [vmem:[#allocation25_spill] sm:$0xff] %v5231_v7  ;;  %1424 = vmatpush.bf16.msra.mxu1 %v5231_v7 }
  0xd1   : > { %v1284_v11 = vpop.f32.mrf.mxu2  ;;  %v1260_v24 = vpop.f32.mrf.mxu0 }
  0xd2   : > { %v1297_v21 = vpop.f32.mrf.mxu3  ;;  %v1285_v3 = vadd.f32 %v1284_v11, %v1272_v25  ;;  %v1273_v60 = vpop.f32.mrf.mxu1  ;;  %v3983_v11 = vld [vmem:[%s7181_s9 + $0x60] sm:$0xf0]  ;;  %v4505_v24 = vld [vmem:[%s7181_s9 + $0x74] sm:$0xf0] }
  0xd4   : > { %v1298_v20 = vadd.f32 %v1297_v21, %v1285_v3  ;;  %v5244_v21 = vor.u32 %v4499_v40, %v3991_v47  ;;  %v4005_v3 = vld [vmem:[%s7181_s9 + $0x58] sm:$0xf] }
  0xd5   : > { %v5253_v60 = vor.u32 %v4505_v24, %v4005_v3  ;;  %v3973_v40 = vld [vmem:[%s7181_s9 + $0x18] sm:$0xf]  ;;  %v3989_v24 = vld [vmem:[%s7181_s9 + $0x48] sm:$0xf] }
  0xd6   : > { %v1302_v32 = vsel %vm1301_vm0, %v1298_v20, -inf  ;;  %7434 = vst [vmem:[#allocation27_spill] sm:$0xff] %v5244_v21  ;;  %v4497_v47 = vld [vmem:[%s7181_s9 + $0x34] sm:$0xf0] }
  0xd7   : > { %1303 = vmax.xlane.f32.xlu0 %v1302_v32  ;;  %v5214_v32 = vld [vmem:[%s7180_s8] sm:$0xff]  ;;  %7435 = vst [vmem:[#allocation28_spill] sm:$0xff] %v5253_v60  ;;  %1502 = vmatpush.bf16.msra.mxu3 %v5253_v60  ;;  %v5289_v3 = vor.u32 %v4497_v47, %v3973_v40 }
  0xd8   : > { %7431 = vst [vmem:[#allocation24_spill] sm:$0xff] %v5214_v32  ;;  %1327 = vmatpush.msra.mxu0 %v5214_v32 }
  0xd9   : > { %v1286_v39 = vpop.f32.mrf.mxu2  ;;  %7439 = vst [vmem:[#allocation32_spill] sm:$0xff] %v5289_v3 }
  0xda   : > { %v1299_v35 = vpop.f32.mrf.mxu3  ;;  %1463 = vmatpush.bf16.msrb.mxu0 %v5244_v21  ;;  %v3949_v39 = vld [vmem:[%s7181_s9] sm:$0xf] }
  0xdb   : > { %v4494_v35 = vld [vmem:[%s7181_s9 + $0x1c] sm:$0xf0]  ;;  %1503 = vmatpush.bf16.msra.mxu3 %v5289_v3  ;;  %v4492_v3 = vld [vmem:[%s7181_s9 + $0x14] sm:$0xf] }
 0x14a   : > { %v1304_v56 = vpop.xlane.xlu0 %1303 }
 0x14b   : > { %v1305_v25 = vsub.f32 %v1298_v20, %v1304_v56  ;;  %v4498_v20 = vld [vmem:[%s7181_s9 + $0x44] sm:$0xf] }
 0x14c   : > { %v5242_v48 = vor.u32 %v4498_v20, %v3983_v11  ;;  %v4490_v56 = vld [vmem:[%s7181_s9 + $0x4] sm:$0xf]  ;;  %v5280_v11 = vor.u32 %v4491_v45, %v3959_v46  ;;  %v4501_v45 = vld [vmem:[%s7181_s9 + $0x5c] sm:$0xf] }
 0x14d   : > { %v1306_v30 = vmul.f32 1.442695, %v1305_v25  ;;  %v5267_v25 = vor.u32 %v4494_v35, %v3949_v39  ;;  %v4503_v39 = vld [vmem:[%s7181_s9 + $0x64] sm:$0xf0]  ;;  %v4500_v35 = vld [vmem:[%s7181_s9 + $0x54] sm:$0xf] }
 0x14e   : > { %7433 = vst [vmem:[#allocation26_spill] sm:$0xff] %v5242_v48  ;;  %1437 = vmatpush.bf16.msra.mxu2 %v5242_v48  ;;  %1464 = vmatpush.bf16.msrb.mxu0 %v5280_v11  ;;  %v4007_v46 = vld [vmem:[%s7181_s9 + $0x78] sm:$0xf0] }
 0x14f   : > { %4530 = vpow2.f32 %v1306_v30  ;;  %7436 = vst [vmem:[#allocation29_spill] sm:$0xff] %v5267_v25  ;;  %v3951_v30 = vld [vmem:[%s7181_s9 + $0x20] sm:$0xf0]  ;;  %1425 = vmatpush.bf16.msra.mxu1 %v5267_v25  ;;  %v5316_v47 = vor.u32 %v4501_v45, %v4007_v46  ;;  %v3975_v45 = vld [vmem:[%s7181_s9 + $0x38] sm:$0xf0] }
 0x150   : > { %v5278_v20 = vor.u32 %v4490_v56, %v3951_v30  ;;  %7438 = vst [vmem:[#allocation31_spill] sm:$0xff] %v5280_v11  ;;  %v5303_v56 = vor.u32 %v4503_v39, %v3989_v24  ;;  %v3999_v30 = vld [vmem:[%s7181_s9 + $0x70] sm:$0xf0]  ;;  %v3957_v24 = vld [vmem:[%s7181_s9 + $0x8] sm:$0xf] }
 0x151   : > { %v5314_v40 = vor.u32 %v4500_v35, %v3999_v30  ;;  %7442 = vst [vmem:[#allocation35_spill] sm:$0xff] %v5316_v47  ;;  %v4495_v39 = vld [vmem:[%s7181_s9 + $0x24] sm:$0xf0]  ;;  %v3967_v35 = vld [vmem:[%s7181_s9 + $0x30] sm:$0xf0] }
 0x152   : > { %7437 = vst [vmem:[#allocation30_spill] sm:$0xff] %v5278_v20  ;;  %1438 = vmatpush.bf16.msra.mxu2 %v5278_v20  ;;  %v5328_v60 = vor.u32 %v4495_v39, %v3957_v24  ;;  %v4493_v30 = vld [vmem:[%s7181_s9 + $0x1c] sm:$0xf]  ;;  %v5341_v46 = vor.u32 %v4492_v3, %v3967_v35  ;;  %v4504_v3 = vld [vmem:[%s7181_s9 + $0x6c] sm:$0xf0] }
 0x153   : > { %7440 = vst [vmem:[#allocation33_spill] sm:$0xff] %v5303_v56  ;;  %1450 = vmatpush.bf16.msrb.mxu1 %v5303_v56  ;;  %v5343_v24 = vor.u32 %v4493_v30, %v3975_v45  ;;  %v3997_v56 = vld [vmem:[%s7181_s9 + $0x50] sm:$0xf] }
 0x154   : > { %7441 = vst [vmem:[#allocation34_spill] sm:$0xff] %v5314_v40  ;;  %v5355_v45 = vor.u32 %v4504_v3, %v3997_v56  ;;  %v5384_v56 = vld [vmem:[%s7177_s5 + $0x70] sm:$0xff]  ;;  %v5389_v3 = vld [vmem:[%s7177_s5 + $0xf8] sm:$0xff] }
 0x155   : > { %v5218_v36 = vpop.eup %4530  ;;  %7443 = vst [vmem:[#allocation36_spill] sm:$0xff] %v5328_v60 }
 0x156   : > { %3946 = vmatmul.msk.f32.vlgmr.msra.gmra.mxu0 %vm1308_vm1, %v5218_v36  ;;  %1489 = vmatpush.bf16.msrb.mxu2 %v5314_v40  ;;  %7444 = vst [vmem:[#allocation37_spill] sm:$0xff] %v5341_v46  ;;  %v5449_v40 = vld [vmem:[%s7177_s5 + $0xe0] sm:$0xff] }
 0x157   : > { %1515 = vmatpush.bf16.msra.mxu0 %v5316_v47  ;;  %7445 = vst [vmem:[#allocation38_spill] sm:$0xff] %v5343_v24  ;;  %1451 = vmatpush.bf16.msrb.mxu1 %v5328_v60  ;;  %v5368_v47 = vld [vmem:[%s7177_s5 + $0x78] sm:$0xff]  ;;  %v778_v60 = vld [vmem:[%s5762_s22] sm:$0xff] }
 0x158   : > { %7446 = vst [vmem:[#allocation39_spill] sm:$0xff] %v5355_v45  ;;  %v1526_v32 = vunpack.c.l.bf16 %v778_v60 }
 0x159   : > { %7447 = vst [vmem:[#allocation40_spill] sm:$0xff] %v5368_v47 }
 0x15a   : > { %1490 = vmatpush.bf16.msrb.mxu2 %v5341_v46  ;;  %7450 = vst [vmem:[#allocation43_spill] sm:$0xff] %v5384_v56  ;;  %v5432_v46 = vld [vmem:[%s7177_s5 + $0xa0] sm:$0xff] }
 0x15b   : > { %1516 = vmatpush.bf16.msra.mxu0 %v5343_v24  ;;  %v3965_v24 = vld [vmem:[%s7181_s9 + $0x10] sm:$0xf]  ;;  %7451 = vst [vmem:[#allocation44_spill] sm:$0xff] %v5389_v3 }
 0x15c   : > { %7458 = vst [vmem:[#allocation51_spill] sm:$0xff] %v5432_v46 }
 0x15d   : > { %7461 = vst [vmem:[#allocation54_spill] sm:$0xff] %v5449_v40 }
 0x1d3   : > { %v1329_v39 = vpop.f32.mrf.mxu0 }
 0x1d4   : > { %4532 = vrcp.f32 %v1329_v39  ;;  %v4496_v39 = vld [vmem:[%s7181_s9 + $0x2c] sm:$0xf0] }
 0x1da   : > { %v4533_v11 = vpop.eup %4532 }
 0x1db   : > { %v1333_v35 = vmul.f32 %v4533_v11, %v5218_v36  ;;  %v5375_v36 = vld [vmem:[%s7177_s5 + $0xb8] sm:$0xff]  ;;  %v5378_v11 = vor.u32 %v4496_v39, %v3965_v24  ;;  %v5401_v24 = vld [vmem:[%s7177_s5 + $0xf0] sm:$0xff]  ;;  %v5408_v39 = vld [vmem:[%s7177_s5 + $0x68] sm:$0xff] }
 0x1dc   : > { %7448 = vst [vmem:[#allocation41_spill] sm:$0xff] %v5375_v36  ;;  %1999 = vmatpush.bf16.msrb.mxu3 %v5375_v36 }
 0x1dd   : > { %v1334_v30 = vpack.c.bf16 %v1333_v35, %v1333_v35  ;;  %7449 = vst [vmem:[#allocation42_spill] sm:$0xff] %v5378_v11  ;;  %v5395_v35 = vld [vmem:[%s7177_s5 + $0xb0] sm:$0xff] }
 0x1de   : > { %7452 = vst [vmem:[#allocation45_spill] sm:$0xff] %v5395_v35 }
 0x1df   : > { %4011 = vmatmul.msk.bf16.vlgmr.msra.gmra.mxu1 %vm1308_vm1, %v1334_v30  ;;  %4012 = vmatmul.msk.bf16.vlgmr.msra.gmra.mxu2 %vm1308_vm1, %v1334_v30  ;;  %7453 = vst [vmem:[#allocation46_spill] sm:$0xff] %v5401_v24 }
 0x1e0   : > { %4014 = vmatmul.msk.bf16.vlgmr.msrb.gmra.mxu0 %vm1308_vm1, %v1334_v30  ;;  %4017 = vmatmul.msk.bf16.vlgmr.msra.gmra.mxu3 %vm1308_vm1, %v1334_v30  ;;  %7454 = vst [vmem:[#allocation47_spill] sm:$0xff] %v5408_v39 }
 0x1e1   : > { %1476 = vmatpush.bf16.msra.mxu1 %v5355_v45  ;;  %1986 = vmatpush.bf16.msra.mxu2 %v5368_v47  ;;  %v5420_v47 = vld [vmem:[%s7177_s5 + $0xe8] sm:$0xff] }
 0x1e2   : > { %2012 = vmatpush.bf16.msrb.mxu0 %v5389_v3  ;;  %2000 = vmatpush.bf16.msrb.mxu3 %v5395_v35  ;;  %v5414_v3 = vld [vmem:[%s7177_s5 + $0xa8] sm:$0xff]  ;;  %7456 = vst [vmem:[#allocation49_spill] sm:$0xff] %v5420_v47 }
 0x1e3   : > { %7455 = vst [vmem:[#allocation48_spill] sm:$0xff] %v5414_v3 }
 0x1e5   : > { %1477 = vmatpush.bf16.msra.mxu1 %v5378_v11  ;;  %1987 = vmatpush.bf16.msra.mxu2 %v5384_v56  ;;  %v5426_v56 = vld [vmem:[%s7177_s5 + $0x60] sm:$0xff] }
 0x1e6   : > { %2013 = vmatpush.bf16.msrb.mxu0 %v5401_v24  ;;  %7457 = vst [vmem:[#allocation50_spill] sm:$0xff] %v5426_v56  ;;  %2001 = vmatpush.bf16.msrb.mxu3 %v5414_v3  ;;  %v5438_v24 = vld [vmem:[%s7177_s5 + $0x38] sm:$0xff]  ;;  %v5744_v3 = vld [vmem:[%s7177_s5 + $0x180] sm:$0xff] }
 0x1e7   : > { %7459 = vst [vmem:[#allocation52_spill] sm:$0xff] %v5438_v24 }
 0x1e8   : > { %7509 = vst [vmem:[#allocation102_spill] sm:$0xff] %v5744_v3 }
 0x1e9   : > { %1988 = vmatpush.bf16.msra.mxu2 %v5408_v39  ;;  %v5444_v39 = vld [vmem:[%s7177_s5 + $0x58] sm:$0xff] }
 0x1ea   : > { %2014 = vmatpush.bf16.msrb.mxu0 %v5420_v47  ;;  %7460 = vst [vmem:[#allocation53_spill] sm:$0xff] %v5444_v39  ;;  %2002 = vmatpush.bf16.msrb.mxu3 %v5432_v46  ;;  %v5455_v47 = vld [vmem:[%s7177_s5 + $0x98] sm:$0xff]  ;;  %v5473_v46 = vld [vmem:[%s7177_s5 + $0x28] sm:$0xff] }
 0x1eb   : > { %7462 = vst [vmem:[#allocation55_spill] sm:$0xff] %v5455_v47 }
 0x1ec   : > { %7464 = vst [vmem:[#allocation57_spill] sm:$0xff] %v5473_v46 }
 0x1ed   : > { %1989 = vmatpush.bf16.msra.mxu2 %v5426_v56  ;;  %v5464_v56 = vld [vmem:[%s7177_s5 + $0x30] sm:$0xff] }
 0x1ee   : > { %7463 = vst [vmem:[#allocation56_spill] sm:$0xff] %v5464_v56  ;;  %2015 = vmatpush.bf16.msrb.mxu0 %v5449_v40  ;;  %2003 = vmatpush.bf16.msrb.mxu3 %v5455_v47  ;;  %v5485_v40 = vld [vmem:[%s7177_s5 + $0x18] sm:$0xff] }
 0x1ef   : > { %4013 = vmatmul.msk.bf16.vlgmr.msrb.gmra.mxu1 %vm1308_vm1, %v1334_v30  ;;  %4016 = vmatmul.msk.bf16.vlgmr.msrb.gmra.mxu2 %vm1308_vm1, %v1334_v30  ;;  %7466 = vst [vmem:[#allocation59_spill] sm:$0xff] %v5485_v40 }
 0x1f0   : > { %4018 = vmatmul.msk.bf16.vlgmr.msra.gmra.mxu0 %vm1308_vm1, %v1334_v30  ;;  %1973 = vmatpush.bf16.msrb.mxu1 %v5438_v24  ;;  %v5479_v24 = vld [vmem:[%s7177_s5 + $0x20] sm:$0xff] }
 0x1f1   : > { %1990 = vmatpush.bf16.msra.mxu2 %v5444_v39  ;;  %7465 = vst [vmem:[#allocation58_spill] sm:$0xff] %v5479_v24  ;;  %v5492_v39 = vld [vmem:[%s7177_s5 + $0x10] sm:$0xff] }
 0x1f2   : > { %7467 = vst [vmem:[#allocation60_spill] sm:$0xff] %v5492_v39 }
 0x1f4   : > { %1974 = vmatpush.bf16.msrb.mxu1 %v5464_v56  ;;  %v5540_v56 = vld [vmem:[%s7177_s5 + $0x88] sm:$0xff] }
 0x1f5   : > { %7475 = vst [vmem:[#allocation68_spill] sm:$0xff] %v5540_v56 }
 0x1f8   : > { %1975 = vmatpush.bf16.msrb.mxu1 %v5473_v46  ;;  %v5525_v46 = vld [vmem:[%s7177_s5 + $0xd8] sm:$0xff] }
 0x1f9   : > { %7473 = vst [vmem:[#allocation66_spill] sm:$0xff] %v5525_v46  ;;  %2016 = vmatpush.bf16.msrb.mxu0 %v5525_v46  ;;  %v5557_v46 = vld [vmem:[%s7177_s5 + $0x40] sm:$0xff] }
 0x1fa   : > { %7478 = vst [vmem:[#allocation71_spill] sm:$0xff] %v5557_v46 }
 0x1fc   : > { %1976 = vmatpush.bf16.msrb.mxu1 %v5479_v24  ;;  %v5498_v24 = vld [vmem:[%s7177_s5 + $0x8] sm:$0xff] }
 0x1fd   : > { %7468 = vst [vmem:[#allocation61_spill] sm:$0xff] %v5498_v24 }
 0x1ff   : > { %4015 = vmatmul.msk.bf16.vlgmr.msra.gmra.mxu1 %vm1308_vm1, %v1334_v30  ;;  %v5504_v30 = vld [vmem:[%s7177_s5 + $0x50] sm:$0xff] }
 0x200   : > { %1977 = vmatpush.bf16.msrb.mxu1 %v5485_v40  ;;  %7469 = vst [vmem:[#allocation62_spill] sm:$0xff] %v5504_v30  ;;  %v5509_v40 = vld [vmem:[%s7177_s5] sm:$0xff]  ;;  %1991 = vmatpush.bf16.msra.mxu2 %v5504_v30  ;;  %v5531_v30 = vld [vmem:[%s7177_s5 + $0x48] sm:$0xff] }
 0x201   : > { %7470 = vst [vmem:[#allocation63_spill] sm:$0xff] %v5509_v40 }
 0x202   : > { %7474 = vst [vmem:[#allocation67_spill] sm:$0xff] %v5531_v30 }
 0x204   : > { %1978 = vmatpush.bf16.msrb.mxu1 %v5492_v39  ;;  %v5515_v39 = vld [vmem:[%s7177_s5 + $0x90] sm:$0xff]  ;;  %1992 = vmatpush.bf16.msra.mxu2 %v5531_v30  ;;  %v5569_v30 = vld [vmem:[%s7177_s5 + $0x80] sm:$0xff] }
 0x205   : > { %7471 = vst [vmem:[#allocation64_spill] sm:$0xff] %v5515_v39  ;;  %2004 = vmatpush.bf16.msrb.mxu3 %v5515_v39  ;;  %v5550_v39 = vld [vmem:[%s7177_s5 + $0xd0] sm:$0xff] }
 0x206   : > { %7477 = vst [vmem:[#allocation70_spill] sm:$0xff] %v5550_v39  ;;  %2017 = vmatpush.bf16.msrb.mxu0 %v5550_v39  ;;  %v5580_v39 = vld [vmem:[%s7177_s5 + $0xc8] sm:$0xff] }
 0x207   : > { %7480 = vst [vmem:[#allocation73_spill] sm:$0xff] %v5569_v30 }
 0x208   : > { %1979 = vmatpush.bf16.msrb.mxu1 %v5498_v24  ;;  %v5520_v24 = vld [vmem:[%s7177_s5 + $0x138] sm:$0xff]  ;;  %1993 = vmatpush.bf16.msra.mxu2 %v5557_v46  ;;  %7482 = vst [vmem:[#allocation75_spill] sm:$0xff] %v5580_v39 }
 0x209   : > { %7472 = vst [vmem:[#allocation65_spill] sm:$0xff] %v5520_v24  ;;  %2005 = vmatpush.bf16.msrb.mxu3 %v5540_v56  ;;  %v5585_v46 = vld [vmem:[%s7177_s5 + $0x1b8] sm:$0xff]  ;;  %v5599_v56 = vld [vmem:[%s7177_s5 + $0x120] sm:$0xff] }
 0x20a   : > { %7483 = vst [vmem:[#allocation76_spill] sm:$0xff] %v5585_v46  ;;  %2018 = vmatpush.bf16.msrb.mxu0 %v5580_v39  ;;  %v5610_v39 = vld [vmem:[%s7177_s5 + $0x1b0] sm:$0xff] }
 0x20b   : > { %7485 = vst [vmem:[#allocation78_spill] sm:$0xff] %v5599_v56 }
 0x20c   : > { %1980 = vmatpush.bf16.msrb.mxu1 %v5509_v40  ;;  %v5545_v40 = vld [vmem:[%s7177_s5 + $0x130] sm:$0xff]  ;;  %7487 = vst [vmem:[#allocation80_spill] sm:$0xff] %v5610_v39 }
 0x20d   : > { %7476 = vst [vmem:[#allocation69_spill] sm:$0xff] %v5545_v40  ;;  %2006 = vmatpush.bf16.msrb.mxu3 %v5569_v30  ;;  %v5701_v30 = vld [vmem:[%s7177_s5 + $0x100] sm:$0xff] }
 0x20e   : > { %7502 = vst [vmem:[#allocation95_spill] sm:$0xff] %v5701_v30 }
 0x210   : > { %2025 = vmatpush.bf16.msra.mxu1 %v5520_v24  ;;  %v5563_v24 = vld [vmem:[%s7177_s5 + $0x178] sm:$0xff] }
 0x211   : > { %7479 = vst [vmem:[#allocation72_spill] sm:$0xff] %v5563_v24  ;;  %2038 = vmatpush.bf16.msrb.mxu2 %v5563_v24  ;;  %2051 = vmatpush.bf16.msra.mxu3 %v5585_v46  ;;  %v5594_v24 = vld [vmem:[%s7177_s5 + $0x170] sm:$0xff]  ;;  %v5616_v46 = vld [vmem:[%s7177_s5 + $0x1f8] sm:$0xff] }
 0x212   : > { %7484 = vst [vmem:[#allocation77_spill] sm:$0xff] %v5594_v24 }
 0x213   : > { %7488 = vst [vmem:[#allocation81_spill] sm:$0xff] %v5616_v46 }
 0x214   : > { %2026 = vmatpush.bf16.msra.mxu1 %v5545_v40  ;;  %v5574_v40 = vld [vmem:[%s7177_s5 + $0x128] sm:$0xff] }
 0x215   : > { %7481 = vst [vmem:[#allocation74_spill] sm:$0xff] %v5574_v40  ;;  %2039 = vmatpush.bf16.msrb.mxu2 %v5594_v24  ;;  %2052 = vmatpush.bf16.msra.mxu3 %v5610_v39  ;;  %v5623_v24 = vld [vmem:[%s7177_s5 + $0x168] sm:$0xff]  ;;  %v5641_v39 = vld [vmem:[%s7177_s5 + $0x1f0] sm:$0xff] }
 0x216   : > { %7489 = vst [vmem:[#allocation82_spill] sm:$0xff] %v5623_v24 }
 0x217   : > { %7492 = vst [vmem:[#allocation85_spill] sm:$0xff] %v5641_v39 }
 0x218   : > { %2027 = vmatpush.bf16.msra.mxu1 %v5574_v40  ;;  %v5605_v40 = vld [vmem:[%s7177_s5 + $0xc0] sm:$0xff] }
 0x219   : > { %7486 = vst [vmem:[#allocation79_spill] sm:$0xff] %v5605_v40  ;;  %2019 = vmatpush.bf16.msrb.mxu0 %v5605_v40  ;;  %2040 = vmatpush.bf16.msrb.mxu2 %v5623_v24  ;;  %v5635_v40 = vld [vmem:[%s7177_s5 + $0x1a8] sm:$0xff]  ;;  %v5653_v24 = vld [vmem:[%s7177_s5 + $0x110] sm:$0xff] }
 0x21a   : > { %7491 = vst [vmem:[#allocation84_spill] sm:$0xff] %v5635_v40  ;;  %2053 = vmatpush.bf16.msra.mxu3 %v5635_v40  ;;  %v5665_v40 = vld [vmem:[%s7177_s5 + $0x1e8] sm:$0xff] }
 0x21b   : > { %7494 = vst [vmem:[#allocation87_spill] sm:$0xff] %v5653_v24 }
 0x21c   : > { %2028 = vmatpush.bf16.msra.mxu1 %v5599_v56  ;;  %v5629_v56 = vld [vmem:[%s7177_s5 + $0x118] sm:$0xff]  ;;  %7496 = vst [vmem:[#allocation89_spill] sm:$0xff] %v5665_v40 }
 0x21d   : > { %2064 = vmatpush.bf16.msra.mxu0 %v5616_v46  ;;  %7490 = vst [vmem:[#allocation83_spill] sm:$0xff] %v5629_v56  ;;  %v5647_v46 = vld [vmem:[%s7177_s5 + $0x160] sm:$0xff] }
 0x21e   : > { %7493 = vst [vmem:[#allocation86_spill] sm:$0xff] %v5647_v46  ;;  %2041 = vmatpush.bf16.msrb.mxu2 %v5647_v46  ;;  %v5677_v46 = vld [vmem:[%s7177_s5 + $0x108] sm:$0xff] }
 0x21f   : > { %7498 = vst [vmem:[#allocation91_spill] sm:$0xff] %v5677_v46 }
 0x220   : > { %2029 = vmatpush.bf16.msra.mxu1 %v5629_v56  ;;  %v5659_v56 = vld [vmem:[%s7177_s5 + $0x1a0] sm:$0xff] }
 0x221   : > { %2065 = vmatpush.bf16.msra.mxu0 %v5641_v39  ;;  %7495 = vst [vmem:[#allocation88_spill] sm:$0xff] %v5659_v56  ;;  %2054 = vmatpush.bf16.msra.mxu3 %v5659_v56  ;;  %v5671_v39 = vld [vmem:[%s7177_s5 + $0x158] sm:$0xff]  ;;  %v5687_v56 = vld [vmem:[%s7177_s5 + $0x1e0] sm:$0xff] }
 0x222   : > { %7497 = vst [vmem:[#allocation90_spill] sm:$0xff] %v5671_v39  ;;  %2042 = vmatpush.bf16.msrb.mxu2 %v5671_v39  ;;  %v5707_v39 = vld [vmem:[%s7177_s5 + $0x190] sm:$0xff] }
 0x223   : > { %7500 = vst [vmem:[#allocation93_spill] sm:$0xff] %v5687_v56 }
 0x224   : > { %2030 = vmatpush.bf16.msra.mxu1 %v5653_v24  ;;  %v5682_v24 = vld [vmem:[%s7177_s5 + $0x198] sm:$0xff]  ;;  %7503 = vst [vmem:[#allocation96_spill] sm:$0xff] %v5707_v39 }
 0x225   : > { %2066 = vmatpush.bf16.msra.mxu0 %v5665_v40  ;;  %7499 = vst [vmem:[#allocation92_spill] sm:$0xff] %v5682_v24  ;;  %v5693_v40 = vld [vmem:[%s7177_s5 + $0x150] sm:$0xff]  ;;  %2055 = vmatpush.bf16.msra.mxu3 %v5682_v24  ;;  %v5737_v24 = vld [vmem:[%s7177_s5 + $0x140] sm:$0xff] }
 0x226   : > { %7501 = vst [vmem:[#allocation94_spill] sm:$0xff] %v5693_v40  ;;  %2043 = vmatpush.bf16.msrb.mxu2 %v5693_v40  ;;  %v5719_v40 = vld [vmem:[%s7177_s5 + $0x148] sm:$0xff] }
 0x227   : > { %7505 = vst [vmem:[#allocation98_spill] sm:$0xff] %v5719_v40 }
 0x228   : > { %2031 = vmatpush.bf16.msra.mxu1 %v5677_v46  ;;  %7508 = vst [vmem:[#allocation101_spill] sm:$0xff] %v5737_v24 }
 0x229   : > { %2067 = vmatpush.bf16.msra.mxu0 %v5687_v56  ;;  %2056 = vmatpush.bf16.msra.mxu3 %v5707_v39  ;;  %v5714_v56 = vld [vmem:[%s7177_s5 + $0x1d8] sm:$0xff]  ;;  %v5731_v39 = vld [vmem:[%s7177_s5 + $0x1d0] sm:$0xff] }
 0x22a   : > { %7504 = vst [vmem:[#allocation97_spill] sm:$0xff] %v5714_v56  ;;  %2044 = vmatpush.bf16.msrb.mxu2 %v5719_v40 }
 0x22b   : > { %7507 = vst [vmem:[#allocation100_spill] sm:$0xff] %v5731_v39 }
 0x22c   : > { %2032 = vmatpush.bf16.msra.mxu1 %v5701_v30  ;;  %v5726_v30 = vld [vmem:[%s7177_s5 + $0x188] sm:$0xff] }
 0x22d   : > { %2068 = vmatpush.bf16.msra.mxu0 %v5714_v56  ;;  %7506 = vst [vmem:[#allocation99_spill] sm:$0xff] %v5726_v30  ;;  %2057 = vmatpush.bf16.msra.mxu3 %v5726_v30  ;;  %v5749_v30 = vld [vmem:[%s7177_s5 + $0x1c8] sm:$0xff] }
 0x22e   : > { %2045 = vmatpush.bf16.msrb.mxu2 %v5737_v24  ;;  %7510 = vst [vmem:[#allocation103_spill] sm:$0xff] %v5749_v30  ;;  %v5756_v24 = vld [vmem:[%s7177_s5 + $0x1c0] sm:$0xff] }
 0x22f   : > { %7511 = vst [vmem:[#allocation104_spill] sm:$0xff] %v5756_v24 }
 0x231   : > { %2069 = vmatpush.bf16.msra.mxu0 %v5731_v39  ;;  %2058 = vmatpush.bf16.msra.mxu3 %v5744_v3 }
 0x235   : > { %2070 = vmatpush.bf16.msra.mxu0 %v5749_v30 }
 0x239   : > { %2071 = vmatpush.bf16.msra.mxu0 %v5756_v24 }
 0x25c   : > { %v1427_v47 = vpop.f32.mrf.mxu1 }
 0x25d   : > { %v1466_v46 = vpop.f32.mrf.mxu0 }
 0x262   : > { %v1440_v56 = vpop.f32.mrf.mxu2 }
 0x263   : > { %v1505_v40 = vpop.f32.mrf.mxu3  ;;  %v1522_v39 = vpack.c.bf16 %v1440_v56, %v1427_v47 }
 0x264   : > { %v1429_v35 = vpop.f32.mrf.mxu1 }
 0x265   : > { %v1468_v36 = vpop.f32.mrf.mxu0 }
 0x266   : > { %v1529_v36 = vunpack.c.h.bf16 %v1522_v39 }
 0x268   : > { %v1544_v56 = vrot.slane %v1529_v36, 6 }
 0x26a   : > { %v1442_v11 = vpop.f32.mrf.mxu2 }
 0x26b   : > { %v1507_v35 = vpop.f32.mrf.mxu3  ;;  %v1528_v11 = vunpack.c.l.bf16 %v1522_v39 }
 0x26c   : > { %v1453_v3 = vpop.f32.mrf.mxu1 }
 0x26d   : > { %v1523_v30 = vpack.c.bf16 %v1466_v46, %v1453_v3  ;;  %v1518_v47 = vpop.f32.mrf.mxu0  ;;  %v1551_v48 = vsel %vm1550_vm2, %v1528_v11, %v1544_v56  ;;  %v5772_v56 = vld [vmem:[%s7176_s4 + $0x38] sm:$0xff] }
 0x26e   : > { %v1525_v36 = vpack.c.bf16 %v1518_v47, %v1505_v40  ;;  %v1527_v40 = vunpack.c.h.bf16 %v778_v60 }
 0x26f   : > { %v1530_v45 = vunpack.c.l.bf16 %v1523_v30  ;;  %v1531_v20 = vunpack.c.h.bf16 %v1523_v30 }
 0x271   : > { %v1545_v21 = vrot.slane %v1530_v45, 4  ;;  %v1546_v52 = vrot.slane %v1531_v20, 2 }
 0x272   : > { %v1492_v25 = vpop.f32.mrf.mxu2 }
 0x273   : > { %v1553_v24 = vsel %vm1552_vm3, %v1545_v21, %v1546_v52  ;;  %v1534_v21 = vunpack.c.l.bf16 %v1525_v36 }
 0x274   : > { %v1555_v35 = vsel %vm1554_vm4, %v1551_v48, %v1553_v24  ;;  %v1455_v44 = vpop.f32.mrf.mxu1  ;;  %v1535_v48 = vunpack.c.h.bf16 %v1525_v36 }
 0x275   : > { %v1561_v46 = vmul.f32 %v1555_v35, %v1526_v32  ;;  %v1520_v3 = vpop.f32.mrf.mxu0  ;;  %v5799_v35 = vld [vmem:[%s7176_s4 + $0x20] sm:$0xff] }
 0x277   : > { %v1565_v7 = vperm.slane %v1561_v46, 0  ;;  %v1566_v30 = vperm.slane %v1561_v46, 2  ;;  %v1567_v38 = vperm.slane %v1561_v46, 4  ;;  %v1568_v19 = vperm.slane %v1561_v46, 6 }
 0x279   : > { %v1581_v15 = vpack.c.bf16 %v1565_v7, %v1565_v7  ;;  %v1582_v39 = vpack.c.bf16 %v1566_v30, %v1566_v30  ;;  %v1583_v45 = vpack.c.bf16 %v1567_v38, %v1567_v38  ;;  %v1584_v20 = vpack.c.bf16 %v1568_v19, %v1568_v19  ;;  %v5778_v19 = vld [vmem:[%s7176_s4 + $0x30] sm:$0xff] }
 0x27a   : > { %v1494_v52 = vpop.f32.mrf.mxu2  ;;  %v1548_v38 = vrot.slane %v1534_v21, 4  ;;  %v7519_v21 = vld [vmem:[#allocation15_spill] sm:$0xff] }
 0x27b   : > { %1981 = vmatmul.bf16.vlgmr.msrb.gmra.mxu1 %v1581_v15  ;;  %1994 = vmatmul.bf16.vlgmr.msra.gmra.mxu2 %v1582_v39  ;;  %v1549_v15 = vrot.slane %v1535_v48, 2  ;;  %v7520_v48 = vld [vmem:[#allocation4_spill] sm:$0xff] }
 0x27c   : > { %2007 = vmatmul.bf16.vlgmr.msrb.gmra.mxu3 %v1583_v45  ;;  %2020 = vmatmul.bf16.vlgmr.msrb.gmra.mxu0 %v1584_v20  ;;  %v1479_v44 = vpop.f32.mrf.mxu1  ;;  %v5808_v45 = vld [vmem:[%s7176_s4 + $0x18] sm:$0xff]  ;;  %v5833_v20 = vld [vmem:[%s7176_s4 + $0x8] sm:$0xff] }
 0x27d   : > { %2125 = vmatpush.bf16.msrb.mxu1 %v5772_v56  ;;  %v1524_v32 = vpack.c.bf16 %v1492_v25, %v1479_v44  ;;  %2187 = vmatpush.bf16.msra.mxu2 %v4800_v0  ;;  %v5787_v25 = vld [vmem:[%s7176_s4 + $0x28] sm:$0xff]  ;;  %v1557_v0 = vsel %vm1552_vm3, %v1548_v38, %v1549_v15  ;;  %v7521_v44 = vld [vmem:[#allocation17_spill] sm:$0xff]  ;;  %v7522_v38 = vld [vmem:[#allocation18_spill] sm:$0xff] }
 0x27e   : > { %2200 = vmatpush.bf16.msrb.mxu3 %v4805_v1  ;;  %2213 = vmatpush.bf16.msrb.mxu0 %v4810_v2  ;;  %v7523_v15 = vld [vmem:[#allocation21_spill] sm:$0xff] }
 0x27f   : > { %v1533_v7 = vunpack.c.h.bf16 %v1524_v32  ;;  %v1532_v24 = vunpack.c.l.bf16 %v1524_v32 }
 0x281   : > { %v1547_v47 = vrot.slane %v1533_v7, 6  ;;  %2126 = vmatpush.bf16.msrb.mxu1 %v5778_v19  ;;  %2188 = vmatpush.bf16.msra.mxu2 %v4820_v4 }
 0x282   : > { %2201 = vmatpush.bf16.msrb.mxu3 %v4825_v5  ;;  %2214 = vmatpush.bf16.msrb.mxu0 %v4831_v6 }
 0x283   : > { %v1556_v1 = vsel %vm1550_vm2, %v1532_v24, %v1547_v47  ;;  %v7525_v24 = vld [vmem:[#allocation19_spill] sm:$0xff]  ;;  %v7526_v47 = vld [vmem:[#allocation5_spill] sm:$0xff] }
 0x284   : > { %v1558_v2 = vsel %vm1554_vm4, %v1556_v1, %v1557_v0  ;;  %v1481_v60 = vpop.f32.mrf.mxu1  ;;  %v7527_v0 = vld [vmem:[#allocation22_spill] sm:$0xff] }
 0x285   : > { %v1562_v11 = vmul.f32 %v1558_v2, %v1527_v40  ;;  %2127 = vmatpush.bf16.msrb.mxu1 %v5787_v25  ;;  %2189 = vmatpush.bf16.msra.mxu2 %v4843_v8  ;;  %v5813_v8 = vld [vmem:[%s4887_s20 + $0x8] sm:$0xff]  ;;  %v7524_v40 = vld [vmem:[#allocation25_spill] sm:$0xff]  ;;  %v7528_v1 = vld [vmem:[#allocation26_spill] sm:$0xff] }
 0x286   : > { %2202 = vmatpush.bf16.msrb.mxu3 %v4848_v9  ;;  %2215 = vmatpush.bf16.msrb.mxu0 %v4854_v10  ;;  %v5816_v9 = vld [vmem:[%s4893_s24 + $0x8] sm:$0xff]  ;;  %v5822_v10 = vld [vmem:[%s7176_s4 + $0x10] sm:$0xff]  ;;  %v7529_v2 = vld [vmem:[#allocation29_spill] sm:$0xff] }
 0x287   : > { %v1569_v4 = vperm.slane %v1562_v11, 0  ;;  %v1570_v5 = vperm.slane %v1562_v11, 2  ;;  %v1571_v6 = vperm.slane %v1562_v11, 4  ;;  %v1572_v46 = vperm.slane %v1562_v11, 6  ;;  %v7530_v60 = vld [vmem:[#allocation23_spill] sm:$0xff] }
 0x288   : > { %v7531_v11 = vld [vmem:[#allocation27_spill] sm:$0xff] }
 0x289   : > { %2128 = vmatpush.bf16.msrb.mxu1 %v5799_v35  ;;  %v1585_v3 = vpack.c.bf16 %v1569_v4, %v1569_v4  ;;  %v1586_v36 = vpack.c.bf16 %v1570_v5, %v1570_v5  ;;  %v1587_v30 = vpack.c.bf16 %v1571_v6, %v1571_v6  ;;  %v1588_v39 = vpack.c.bf16 %v1572_v46, %v1572_v46  ;;  %v7532_v4 = vld [vmem:[#allocation6_spill] sm:$0xff]  ;;  %v7533_v5 = vld [vmem:[#allocation24_spill] sm:$0xff]  ;;  %v7535_v46 = vld [vmem:[#allocation33_spill] sm:$0xff] }
 0x28a   : > { %2190 = vmatpush.bf16.msra.mxu2 %v4867_v12  ;;  %2203 = vmatpush.bf16.msrb.mxu3 %v4872_v13  ;;  %v2155_v12 = vunpack.c.l.bf16 %v5813_v8  ;;  %v2157_v13 = vunpack.c.l.bf16 %v5816_v9  ;;  %v7534_v6 = vld [vmem:[#allocation30_spill] sm:$0xff] }
 0x28b   : > { %2033 = vmatmul.bf16.vlgmr.msra.gmra.mxu1 %v1585_v3  ;;  %2046 = vmatmul.bf16.vlgmr.msrb.gmra.mxu2 %v1586_v36  ;;  %v7536_v3 = vld [vmem:[#allocation39_spill] sm:$0xff] }
 0x28c   : > { %2059 = vmatmul.bf16.vlgmr.msra.gmra.mxu3 %v1587_v30  ;;  %2072 = vmatmul.bf16.vlgmr.msra.gmra.mxu0 %v1588_v39  ;;  %v5836_v52 = vmul.f32 %v2157_v13, %v2155_v12  ;;  %v7537_v36 = vld [vmem:[#allocation31_spill] sm:$0xff]  ;;  %v7539_v39 = vld [vmem:[#allocation36_spill] sm:$0xff] }
 0x28d   : > { %2129 = vmatpush.bf16.msrb.mxu1 %v5808_v45  ;;  %2216 = vmatpush.bf16.msrb.mxu0 %v4878_v14  ;;  %v5844_v14 = vld [vmem:[%s7176_s4] sm:$0xff]  ;;  %v7538_v30 = vld [vmem:[#allocation7_spill] sm:$0xff]  ;;  %v7542_v12 = vld [vmem:[#allocation12_spill] sm:$0xff] }
 0x28e   : > { %2191 = vmatpush.bf16.msra.mxu2 %v4900_v16  ;;  %2204 = vmatpush.bf16.msrb.mxu3 %v4905_v17  ;;  %v2163_v16 = vperm.slane %v5836_v52, 0  ;;  %v2164_v17 = vperm.slane %v5836_v52, 2 }
 0x291   : > { %2130 = vmatpush.bf16.msrb.mxu1 %v5822_v10  ;;  %2217 = vmatpush.bf16.msrb.mxu0 %v4910_v18  ;;  %v2165_v18 = vperm.slane %v5836_v52, 4 }
 0x292   : > { %2192 = vmatpush.bf16.msra.mxu2 %v4927_v22  ;;  %2205 = vmatpush.bf16.msrb.mxu3 %v4932_v23  ;;  %v779_v22 = vld [vmem:[%s5853_s30] sm:$0x1]  ;;  %v2179_v23 = vpack.c.bf16 %v2163_v16, %v2163_v16 }
 0x295   : > { %2131 = vmatpush.bf16.msrb.mxu1 %v5833_v20  ;;  %2218 = vmatpush.bf16.msrb.mxu0 %v4940_v26  ;;  %v5864_v26 = vld [vmem:[%s7179_s7 + $0xf8] sm:$0xff] }
 0x296   : > { %2193 = vmatpush.bf16.msra.mxu2 %v4952_v28  ;;  %2206 = vmatpush.bf16.msrb.mxu3 %v4957_v29  ;;  %v2180_v28 = vpack.c.bf16 %v2164_v17, %v2164_v17  ;;  %v2181_v29 = vpack.c.bf16 %v2165_v18, %v2165_v18  ;;  %v7544_v17 = vld [vmem:[#allocation20_spill] sm:$0xff] }
 0x297   : > { %v7545_v18 = vld [vmem:[#allocation28_spill] sm:$0xff] }
 0x299   : > { %2132 = vmatpush.bf16.msrb.mxu1 %v5844_v14  ;;  %2219 = vmatpush.bf16.msrb.mxu0 %v4964_v31  ;;  %v5875_v31 = vld [vmem:[%s7179_s7 + $0xf0] sm:$0xff] }
 0x29a   : > { %2194 = vmatpush.bf16.msra.mxu2 %v4976_v33  ;;  %2207 = vmatpush.bf16.msrb.mxu3 %v4981_v34  ;;  %v5884_v33 = vld [vmem:[%s7179_s7 + $0xe8] sm:$0xff]  ;;  %v5893_v34 = vld [vmem:[%s7179_s7 + $0xe0] sm:$0xff] }
 0x29c   : > { %2133 = vmatmul.bf16.vlgmr.msrb.gmra.mxu1 %v779_v22  ;;  %v7546_v22 = vld [vmem:[#allocation32_spill] sm:$0xff] }
 0x29d   : > { %2226 = vmatpush.bf16.msra.mxu1 %v5864_v26  ;;  %2220 = vmatpush.bf16.msrb.mxu0 %v4988_v37  ;;  %v5902_v37 = vld [vmem:[%s7179_s7 + $0xd8] sm:$0xff] }
 0x29e   : > { %2239 = vmatpush.bf16.msrb.mxu2 %v4998_v41  ;;  %2252 = vmatpush.bf16.msra.mxu3 %v5003_v42  ;;  %v2156_v41 = vunpack.c.h.bf16 %v5813_v8  ;;  %v2158_v42 = vunpack.c.h.bf16 %v5816_v9  ;;  %v7540_v8 = vld [vmem:[#allocation42_spill] sm:$0xff]  ;;  %v7541_v9 = vld [vmem:[#allocation8_spill] sm:$0xff] }
 0x29f   : > { %2195 = vmatmul.bf16.vlgmr.msra.gmra.mxu2 %v2179_v23  ;;  %2208 = vmatmul.bf16.vlgmr.msrb.gmra.mxu3 %v2180_v28  ;;  %v7547_v23 = vld [vmem:[#allocation41_spill] sm:$0xff] }
 0x2a0   : > { %2221 = vmatmul.bf16.vlgmr.msrb.gmra.mxu0 %v2181_v29  ;;  %v7548_v28 = vld [vmem:[#allocation45_spill] sm:$0xff]  ;;  %v7549_v29 = vld [vmem:[#allocation48_spill] sm:$0xff] }
 0x2a1   : > { %2227 = vmatpush.bf16.msra.mxu1 %v5875_v31  ;;  %2265 = vmatpush.bf16.msra.mxu0 %v5008_v43  ;;  %v2160_v43 = vmul.f32 %v2158_v42, %v2156_v41  ;;  %v7550_v41 = vld [vmem:[#allocation51_spill] sm:$0xff] }
 0x2a2   : > { %2240 = vmatpush.bf16.msrb.mxu2 %v5024_v49  ;;  %2253 = vmatpush.bf16.msra.mxu3 %v5029_v50  ;;  %v7512_v49 = vld [vmem:[#allocation9_spill] sm:$0xff]  ;;  %v7513_v50 = vld [vmem:[#allocation10_spill] sm:$0xff]  ;;  %v7551_v42 = vld [vmem:[#allocation55_spill] sm:$0xff] }
 0x2a3   : > { %v2170_v13 = vperm.slane %v2160_v43, 6 }
 0x2a5   : > { %2228 = vmatpush.bf16.msra.mxu1 %v5884_v33  ;;  %2266 = vmatpush.bf16.msra.mxu0 %v5036_v51  ;;  %v2166_v51 = vperm.slane %v5836_v52, 6  ;;  %v7543_v52 = vld [vmem:[#allocation16_spill] sm:$0xff]  ;;  %v2186_v16 = vpack.c.bf16 %v2170_v13, %v2170_v13 }
 0x2a6   : > { %2241 = vmatpush.bf16.msrb.mxu2 %v5048_v53  ;;  %2254 = vmatpush.bf16.msra.mxu3 %v5053_v54  ;;  %v7514_v53 = vld [vmem:[#allocation2_spill] sm:$0xff]  ;;  %v7515_v54 = vld [vmem:[#allocation11_spill] sm:$0xff] }
 0x2a9   : > { %2229 = vmatpush.bf16.msra.mxu1 %v5893_v34  ;;  %2267 = vmatpush.bf16.msra.mxu0 %v5060_v55  ;;  %v2167_v55 = vperm.slane %v2160_v43, 0 }
 0x2aa   : > { %2242 = vmatpush.bf16.msrb.mxu2 %v5072_v57  ;;  %2255 = vmatpush.bf16.msra.mxu3 %v5077_v58  ;;  %v7516_v57 = vld [vmem:[#allocation13_spill] sm:$0xff]  ;;  %v2168_v58 = vperm.slane %v2160_v43, 2 }
 0x2ac   : > { %v2184_v32 = vpack.c.bf16 %v2168_v58, %v2168_v58 }
 0x2ad   : > { %2230 = vmatpush.bf16.msra.mxu1 %v5902_v37  ;;  %2268 = vmatpush.bf16.msra.mxu0 %v5084_v59  ;;  %v7517_v59 = vld [vmem:[#allocation14_spill] sm:$0xff] }
 0x2ae   : > { %2243 = vmatpush.bf16.msrb.mxu2 %v5096_v61  ;;  %2256 = vmatpush.bf16.msra.mxu3 %v5101_v62  ;;  %v2169_v61 = vperm.slane %v2160_v43, 4  ;;  %v7518_v62 = vld [vmem:[#allocation3_spill] sm:$0xff]  ;;  %v7552_v43 = vld [vmem:[#allocation64_spill] sm:$0xff] }
 0x2b0   : > { %v2185_v7 = vpack.c.bf16 %v2169_v61, %v2169_v61 }
 0x2b1   : > { %2231 = vmatpush.bf16.msra.mxu1 %v4945_v27  ;;  %2269 = vmatpush.bf16.msra.mxu0 %v5108_v63  ;;  %v2182_v27 = vpack.c.bf16 %v2166_v51, %v2166_v51  ;;  %v2183_v63 = vpack.c.bf16 %v2167_v55, %v2167_v55 }
 0x2b2   : > { %2244 = vmatpush.bf16.msrb.mxu2 %v7512_v49  ;;  %2257 = vmatpush.bf16.msra.mxu3 %v7513_v50  ;;  %v7553_v49 = vld [vmem:[#allocation68_spill] sm:$0xff]  ;;  %v7554_v50 = vld [vmem:[#allocation73_spill] sm:$0xff] }
 0x2b5   : > { %2232 = vmatpush.bf16.msra.mxu1 %v7514_v53  ;;  %2270 = vmatpush.bf16.msra.mxu0 %v7515_v54 }
 0x2b6   : > { %2245 = vmatpush.bf16.msrb.mxu2 %v7516_v57  ;;  %2258 = vmatpush.bf16.msra.mxu3 %v7517_v59 }
 0x2b9   : > { %2233 = vmatpush.bf16.msra.mxu1 %v7518_v62  ;;  %2271 = vmatpush.bf16.msra.mxu0 %v7519_v21 }
 0x2ba   : > { %2246 = vmatpush.bf16.msrb.mxu2 %v7521_v44  ;;  %2259 = vmatpush.bf16.msra.mxu3 %v7522_v38 }
 0x2bc   : > { %2234 = vmatmul.bf16.vlgmr.msra.gmra.mxu1 %v2182_v27 }
 0x2bd   : > { %2278 = vmatpush.bf16.msrb.mxu1 %v7520_v48  ;;  %2247 = vmatmul.bf16.vlgmr.msrb.gmra.mxu2 %v2183_v63 }
 0x2be   : > { %2312 = vmatpush.msra.mxu2 %v7523_v15  ;;  %2332 = vmatpush.bf16.msrb.mxu3 %v7524_v40 }
 0x2bf   : > { %2272 = vmatpush.bf16.msra.mxu0 %v7525_v24  ;;  %2260 = vmatmul.bf16.vlgmr.msra.gmra.mxu3 %v2184_v32 }
 0x2c0   : > { %2313 = vmatpush.msra.mxu2 %v7527_v0 }
 0x2c1   : > { %2279 = vmatpush.bf16.msrb.mxu1 %v7526_v47 }
 0x2c2   : > { %2273 = vmatmul.bf16.vlgmr.msra.gmra.mxu0 %v2185_v7  ;;  %2333 = vmatpush.bf16.msrb.mxu3 %v7529_v2 }
 0x2c3   : > { %2345 = vmatpush.bf16.msrb.mxu0 %v7528_v1  ;;  %2314 = vmatpush.msra.mxu2 %v7530_v60 }
 0x2c5   : > { %2280 = vmatpush.bf16.msrb.mxu1 %v7532_v4  ;;  %2315 = vmatpush.msra.mxu2 %v7533_v5  ;;  %v5959_v5 = vld [vmem:[%s7178_s6] sm:$0x1] }
 0x2c6   : > { %2371 = vmatpush.bf16.msra.mxu3 %v7531_v11 }
 0x2c7   : > { %2346 = vmatpush.bf16.msrb.mxu0 %v7534_v6  ;;  %2358 = vmatpush.bf16.msrb.mxu2 %v7535_v46 }
 0x2c9   : > { %2281 = vmatpush.bf16.msrb.mxu1 %v7538_v30 }
 0x2ca   : > { %2372 = vmatpush.bf16.msra.mxu3 %v7537_v36 }
 0x2cb   : > { %2384 = vmatpush.bf16.msra.mxu0 %v7536_v3  ;;  %2359 = vmatpush.bf16.msrb.mxu2 %v7539_v39 }
 0x2cd   : > { %2282 = vmatpush.bf16.msrb.mxu1 %v7541_v9 }
 0x2cf   : > { %2385 = vmatpush.bf16.msra.mxu0 %v7540_v8 }
 0x2d1   : > { %2283 = vmatpush.bf16.msrb.mxu1 %v7542_v12 }
 0x2d5   : > { %2284 = vmatpush.bf16.msrb.mxu1 %v7543_v52 }
 0x2d9   : > { %2285 = vmatpush.bf16.msrb.mxu1 %v7544_v17 }
 0x2dc   : > { %2286 = vmatmul.bf16.vlgmr.msrb.gmra.mxu1 %v2186_v16 }
 0x2dd   : > { %2410 = vmatpush.bf16.msra.mxu1 %v7545_v18 }
 0x2e1   : > { %2411 = vmatpush.bf16.msra.mxu1 %v7546_v22 }
 0x2e5   : > { %2520 = vmatpush.bf16.msrb.mxu1 %v7547_v23 }
 0x2e9   : > { %2521 = vmatpush.bf16.msrb.mxu1 %v7548_v28  ;;  %v7555_v28 = vmov 0 }
 0x2ea   : > { %v7556_v28 = vsel %vm5968_vm7, 4294967295, %v7555_v28 }
 0x2eb   : > { %7557 = vst [vmem:[#allocation9_spill] sm:$0xff] %v7556_v28 }
 0x2ed   : > { %2522 = vmatpush.bf16.msrb.mxu1 %v7549_v29  ;;  %v2144_v29 = vld [vmem:[%s5966_s13] sm:$0x1] }
 0x2f1   : > { %2523 = vmatpush.bf16.msrb.mxu1 %v7550_v41 }
 0x2f5   : > { %2524 = vmatpush.bf16.msrb.mxu1 %v7551_v42 }
 0x2f8   : > { %v1982_v51 = vpop.f32.mrf.mxu1 }
 0x2f9   : > { %2525 = vmatpush.bf16.msrb.mxu1 %v7552_v43  ;;  %v2021_v53 = vpop.f32.mrf.mxu0 }
 0x2fd   : > { %2526 = vmatpush.bf16.msrb.mxu1 %v7553_v49 }
 0x2fe   : > { %v1995_v54 = vpop.f32.mrf.mxu2 }
 0x2ff   : > { %v2008_v55 = vpop.f32.mrf.mxu3  ;;  %v1996_v59 = vadd.f32 %v1995_v54, %v1982_v51 }
 0x300   : > { %v1984_v57 = vpop.f32.mrf.mxu1 }
 0x301   : > { %2527 = vmatpush.bf16.msrb.mxu1 %v7554_v50  ;;  %v2023_v58 = vpop.f32.mrf.mxu0  ;;  %v2009_v62 = vadd.f32 %v2008_v55, %v1996_v59 }
 0x303   : > { %v2022_v48 = vadd.f32 %v2021_v53, %v2009_v62 }
 0x306   : > { %v1997_v27 = vpop.f32.mrf.mxu2 }
 0x307   : > { %v2010_v61 = vpop.f32.mrf.mxu3 }
 0x308   : > { %v2034_v63 = vpop.f32.mrf.mxu1 }
 0x309   : > { %v2073_v21 = vpop.f32.mrf.mxu0  ;;  %v2035_v44 = vadd.f32 %v2034_v63, %v2022_v48 }
 0x30e   : > { %v2047_v32 = vpop.f32.mrf.mxu2 }
 0x30f   : > { %v2060_v38 = vpop.f32.mrf.mxu3  ;;  %v2048_v15 = vadd.f32 %v2047_v32, %v2035_v44 }
 0x310   : > { %v2036_v7 = vpop.f32.mrf.mxu1 }
 0x311   : > { %v2075_v24 = vpop.f32.mrf.mxu0  ;;  %v2061_v47 = vadd.f32 %v2060_v38, %v2048_v15 }
 0x313   : > { %v2074_v4 = vadd.f32 %v2073_v21, %v2061_v47 }
 0x316   : > { %v2049_v0 = vpop.f32.mrf.mxu2 }
 0x317   : > { %v2062_v60 = vpop.f32.mrf.mxu3 }
 0x319   : > { %v2134_v30 = vpop.f32.mrf.mxu1 }
 0x31a   : > { %v2135_v9 = vadd.f32 %v2134_v30, %v2074_v4  ;;  %v7558_v4 = vld [vmem:[#allocation34_spill] sm:$0xff]  ;;  %v7559_v30 = vld [vmem:[#allocation37_spill] sm:$0xff] }
 0x31c   : > { %v2138_v12 = vadd.f32 %v2135_v9, %v5959_v5 }
 0x31d   : > { %v2222_v13 = vpop.f32.mrf.mxu0 }
 0x31e   : > { %4534 = vtanh.f32 %v2138_v12 }
 0x321   : > { %v2136_v16 = vpop.f32.mrf.mxu1 }
 0x322   : > { %v2196_v52 = vpop.f32.mrf.mxu2  ;;  %v2209_v17 = vpop.f32.mrf.mxu3  ;;  %v7560_v16 = vld [vmem:[#allocation35_spill] sm:$0xff] }
 0x323   : > { %v2210_v55 = vadd.f32 %v2209_v17, %v2196_v52  ;;  %v7561_v17 = vld [vmem:[#allocation52_spill] sm:$0xff] }
 0x324   : > { %v4535_v23 = vpop.eup %4534 }
 0x325   : > { %v2140_v41 = vpack.c.bf16 %v4535_v23, %v4535_v23  ;;  %v2224_v42 = vpop.f32.mrf.mxu0  ;;  %v2223_v59 = vadd.f32 %v2222_v13, %v2210_v55  ;;  %v7562_v23 = vld [vmem:[#allocation40_spill] sm:$0xff]  ;;  %v7572_v55 = vld [vmem:[#allocation50_spill] sm:$0xff] }
 0x326   : > { %v7565_v42 = vld [vmem:[#allocation56_spill] sm:$0xff] }
 0x327   : > { %v2145_v43 = vsel %vm5968_vm7, %v2140_v41, %v2144_v29  ;;  %v7563_v29 = vld [vmem:[#allocation76_spill] sm:$0xff]  ;;  %v7564_v41 = vld [vmem:[#allocation38_spill] sm:$0xff] }
 0x328   : > { %2146 = vst [vmem:[%s5966_s13] sm:$0x1] %v2145_v43  ;;  %v7566_v43 = vld [vmem:[#allocation43_spill] sm:$0xff] }
 0x32a   : > { %v2198_v49 = vpop.f32.mrf.mxu2  ;;  %v2211_v50 = vpop.f32.mrf.mxu3 }
 0x32b   : > { %v7567_v49 = vld [vmem:[#allocation80_spill] sm:$0xff]  ;;  %v7568_v50 = vld [vmem:[#allocation57_spill] sm:$0xff] }
 0x339   : > { %v2235_v51 = vpop.f32.mrf.mxu1 }
 0x33a   : > { %v2236_v62 = vadd.f32 %v2235_v51, %v2223_v59  ;;  %v7569_v51 = vld [vmem:[#allocation47_spill] sm:$0xff] }
 0x33b   : > { %v7575_v59 = vld [vmem:[#allocation59_spill] sm:$0xff] }
 0x33f   : > { %v2274_v53 = vpop.f32.mrf.mxu0 }
 0x340   : > { %v2248_v54 = vpop.f32.mrf.mxu2 }
 0x341   : > { %v2237_v57 = vpop.f32.mrf.mxu1  ;;  %v2249_v21 = vadd.f32 %v2248_v54, %v2236_v62  ;;  %v7571_v54 = vld [vmem:[#allocation58_spill] sm:$0xff] }
 0x342   : > { %v2261_v58 = vpop.f32.mrf.mxu3  ;;  %v7573_v57 = vld [vmem:[#allocation88_spill] sm:$0xff]  ;;  %v7578_v62 = vld [vmem:[#allocation46_spill] sm:$0xff] }
 0x343   : > { %v2262_v48 = vadd.f32 %v2261_v58, %v2249_v21  ;;  %v7574_v58 = vld [vmem:[#allocation44_spill] sm:$0xff]  ;;  %v7580_v21 = vld [vmem:[#allocation62_spill] sm:$0xff] }
 0x345   : > { %v2275_v44 = vadd.f32 %v2274_v53, %v2262_v48  ;;  %v7570_v53 = vld [vmem:[#allocation84_spill] sm:$0xff] }
 0x346   : > { %v7581_v48 = vld [vmem:[#allocation96_spill] sm:$0xff] }
 0x347   : > { %v2276_v27 = vpop.f32.mrf.mxu0 }
 0x348   : > { %v2250_v61 = vpop.f32.mrf.mxu2  ;;  %v7576_v27 = vld [vmem:[#allocation53_spill] sm:$0xff] }
 0x349   : > { %v7577_v61 = vld [vmem:[#allocation92_spill] sm:$0xff] }
 0x34a   : > { %v2263_v63 = vpop.f32.mrf.mxu3 }
 0x34b   : > { %v7579_v63 = vld [vmem:[#allocation60_spill] sm:$0xff] }
 0x359   : > { %v2287_v32 = vpop.f32.mrf.mxu1 }
 0x35a   : > { %v2288_v38 = vadd.f32 %v2287_v32, %v2275_v44  ;;  %v7582_v44 = vld [vmem:[#allocation49_spill] sm:$0xff] }
 0x35b   : > { %v7583_v32 = vld [vmem:[#allocation61_spill] sm:$0xff] }
 0x35c   : > { %v2291_v15 = vsel %vm1301_vm0, %v2288_v38, -inf }
 0x35d   : > { %2292 = vmax.xlane.f32.xlu0 %v2291_v15  ;;  %v7585_v15 = vld [vmem:[#allocation99_spill] sm:$0xff] }
 0x361   : > { %v2289_v7 = vpop.f32.mrf.mxu1 }
 0x362   : > { %v7586_v7 = vld [vmem:[#allocation54_spill] sm:$0xff] }
 0x3d0   : > { %v2293_v24 = vpop.xlane.xlu0 %2292 }
 0x3d1   : > { %v2294_v47 = vsub.f32 %v2288_v38, %v2293_v24  ;;  %v7584_v38 = vld [vmem:[#allocation67_spill] sm:$0xff] }
 0x3d2   : > { %v7587_v24 = vld [vmem:[#allocation63_spill] sm:$0xff] }
 0x3d3   : > { %v2295_v0 = vmul.f32 1.442695, %v2294_v47  ;;  %v7588_v47 = vld [vmem:[#allocation65_spill] sm:$0xff] }
 0x3d5   : > { %4536 = vpow2.f32 %v2295_v0  ;;  %v7589_v0 = vld [vmem:[#allocation71_spill] sm:$0xff] }
 0x3db   : > { %v4537_v60 = vpop.eup %4536 }
 0x3dc   : > { %4311 = vmatmul.msk.f32.vlgmr.msra.gmra.mxu2 %vm1308_vm1, %v4537_v60 }
 0x3dd   : > { %2397 = vmatpush.bf16.msra.mxu2 %v7558_v4 }
 0x3e1   : > { %2398 = vmatpush.bf16.msra.mxu2 %v7559_v30 }
 0x45f   : > { %v2317_v9 = vpop.f32.mrf.mxu2 }
 0x460   : > { %4538 = vrcp.f32 %v2317_v9  ;;  %v7591_v9 = vld [vmem:[#allocation66_spill] sm:$0xff] }
 0x466   : > { %v4539_v12 = vpop.eup %4538 }
 0x467   : > { %v2321_v13 = vmul.f32 %v4539_v12, %v4537_v60  ;;  %v7590_v60 = vld [vmem:[#allocation72_spill] sm:$0xff]  ;;  %v7592_v12 = vld [vmem:[#allocation102_spill] sm:$0xff] }
 0x469   : > { %v2322_v52 = vpack.c.bf16 %v2321_v13, %v2321_v13  ;;  %v7593_v13 = vld [vmem:[#allocation69_spill] sm:$0xff] }
 0x46b   : > { %4312 = vmatmul.msk.bf16.vlgmr.msrb.gmra.mxu3 %vm1308_vm1, %v2322_v52  ;;  %4313 = vmatmul.msk.bf16.vlgmr.msrb.gmra.mxu0 %vm1308_vm1, %v2322_v52 }
 0x46c   : > { %4314 = vmatmul.msk.bf16.vlgmr.msrb.gmra.mxu2 %vm1308_vm1, %v2322_v52  ;;  %4318 = vmatmul.msk.bf16.vlgmr.msra.gmra.mxu1 %vm1308_vm1, %v2322_v52 }
 0x46d   : > { %2423 = vmatpush.bf16.msrb.mxu3 %v7560_v16  ;;  %2494 = vmatpush.bf16.msrb.mxu0 %v7561_v17  ;;  %v7594_v17 = vld [vmem:[#allocation77_spill] sm:$0xff] }
 0x46e   : > { %2507 = vmatpush.bf16.msrb.mxu2 %v7562_v23  ;;  %2572 = vmatpush.bf16.msra.mxu1 %v7563_v29  ;;  %v7595_v23 = vld [vmem:[#allocation70_spill] sm:$0xff] }
 0x46f   : > { %v7596_v29 = vld [vmem:[#allocation74_spill] sm:$0xff] }
 0x471   : > { %2424 = vmatpush.bf16.msrb.mxu3 %v7564_v41  ;;  %2495 = vmatpush.bf16.msrb.mxu0 %v7565_v42  ;;  %v7597_v42 = vld [vmem:[#allocation82_spill] sm:$0xff] }
 0x472   : > { %2508 = vmatpush.bf16.msrb.mxu2 %v7566_v43  ;;  %2573 = vmatpush.bf16.msra.mxu1 %v7567_v49  ;;  %v7598_v43 = vld [vmem:[#allocation75_spill] sm:$0xff]  ;;  %v7599_v49 = vld [vmem:[#allocation78_spill] sm:$0xff] }
 0x475   : > { %2496 = vmatpush.bf16.msrb.mxu0 %v7568_v50  ;;  %v7601_v50 = vld [vmem:[#allocation79_spill] sm:$0xff] }
 0x476   : > { %2509 = vmatpush.bf16.msrb.mxu2 %v7569_v51  ;;  %2574 = vmatpush.bf16.msra.mxu1 %v7570_v53  ;;  %v7602_v51 = vld [vmem:[#allocation81_spill] sm:$0xff]  ;;  %v7603_v53 = vld [vmem:[#allocation83_spill] sm:$0xff] }
 0x479   : > { %2497 = vmatpush.bf16.msrb.mxu0 %v7571_v54  ;;  %v7604_v54 = vld [vmem:[#allocation90_spill] sm:$0xff] }
 0x47a   : > { %2510 = vmatpush.bf16.msrb.mxu2 %v7572_v55  ;;  %2575 = vmatpush.bf16.msra.mxu1 %v7573_v57  ;;  %v7605_v55 = vld [vmem:[#allocation85_spill] sm:$0xff]  ;;  %v7606_v57 = vld [vmem:[#allocation87_spill] sm:$0xff] }
 0x47b   : > { %4315 = vmatmul.msk.bf16.vlgmr.msra.gmra.mxu3 %vm1308_vm1, %v2322_v52  ;;  %4316 = vmatmul.msk.bf16.vlgmr.msra.gmra.mxu0 %vm1308_vm1, %v2322_v52 }
 0x47c   : > { %4317 = vmatmul.msk.bf16.vlgmr.msra.gmra.mxu2 %vm1308_vm1, %v2322_v52  ;;  %2533 = vmatpush.bf16.msra.mxu3 %v7574_v58  ;;  %v7607_v58 = vld [vmem:[#allocation94_spill] sm:$0xff] }
 0x47d   : > { %2498 = vmatpush.bf16.msrb.mxu0 %v7575_v59  ;;  %v7608_v59 = vld [vmem:[#allocation89_spill] sm:$0xff] }
 0x47e   : > { %2511 = vmatpush.bf16.msrb.mxu2 %v7576_v27  ;;  %2576 = vmatpush.bf16.msra.mxu1 %v7577_v61  ;;  %v7609_v27 = vld [vmem:[#allocation91_spill] sm:$0xff]  ;;  %v7610_v61 = vld [vmem:[#allocation98_spill] sm:$0xff] }
 0x480   : > { %2534 = vmatpush.bf16.msra.mxu3 %v7578_v62  ;;  %v7611_v62 = vld [vmem:[#allocation93_spill] sm:$0xff] }
 0x481   : > { %2499 = vmatpush.bf16.msrb.mxu0 %v7579_v63  ;;  %v7612_v63 = vld [vmem:[#allocation95_spill] sm:$0xff] }
 0x482   : > { %2512 = vmatpush.bf16.msrb.mxu2 %v7580_v21  ;;  %2577 = vmatpush.bf16.msra.mxu1 %v7581_v48  ;;  %v7613_v21 = vld [vmem:[#allocation101_spill] sm:$0xff] }
 0x483   : > { %v7614_v48 = vld [vmem:[#allocation97_spill] sm:$0xff] }
 0x484   : > { %2535 = vmatpush.bf16.msra.mxu3 %v7582_v44  ;;  %v7615_v44 = vld [vmem:[#allocation100_spill] sm:$0xff] }
 0x485   : > { %2500 = vmatpush.bf16.msrb.mxu0 %v7583_v32  ;;  %v7616_v32 = vld [vmem:[#allocation103_spill] sm:$0xff] }
 0x486   : > { %2513 = vmatpush.bf16.msrb.mxu2 %v7584_v38  ;;  %2578 = vmatpush.bf16.msra.mxu1 %v7585_v15  ;;  %v7617_v38 = vld [vmem:[#allocation104_spill] sm:$0xff] }
 0x488   : > { %2536 = vmatpush.bf16.msra.mxu3 %v7586_v7 }
 0x489   : > { %2501 = vmatpush.bf16.msrb.mxu0 %v7587_v24 }
 0x48a   : > { %2514 = vmatpush.bf16.msrb.mxu2 %v7589_v0  ;;  %2579 = vmatpush.bf16.msra.mxu1 %v7592_v12 }
 0x48b   : > { %4319 = vmatmul.msk.bf16.vlgmr.msrb.gmra.mxu3 %vm1308_vm1, %v2322_v52  ;;  %v7600_v52 = vld [vmem:[#allocation86_spill] sm:$0xff] }
 0x48c   : > { %2537 = vmatpush.bf16.msra.mxu3 %v7591_v9 }
 0x48d   : > { %2546 = vmatpush.bf16.msra.mxu0 %v7588_v47 }
 0x48e   : > { %2559 = vmatpush.bf16.msra.mxu2 %v7590_v60 }
 0x490   : > { %2538 = vmatpush.bf16.msra.mxu3 %v7595_v23 }
 0x491   : > { %2547 = vmatpush.bf16.msra.mxu0 %v7593_v13 }
 0x492   : > { %2560 = vmatpush.bf16.msra.mxu2 %v7594_v17 }
 0x494   : > { %2539 = vmatpush.bf16.msra.mxu3 %v7598_v43 }
 0x495   : > { %2548 = vmatpush.bf16.msra.mxu0 %v7596_v29 }
 0x496   : > { %2561 = vmatpush.bf16.msra.mxu2 %v7597_v42 }
 0x498   : > { %2540 = vmatpush.bf16.msra.mxu3 %v7601_v50 }
 0x499   : > { %2549 = vmatpush.bf16.msra.mxu0 %v7599_v49  ;;  %v4308_v49 = vld [vmem:[%s5762_s22 + $0x8] sm:$0xff] }
 0x49a   : > { %2562 = vmatpush.bf16.msra.mxu2 %v7600_v52 }
 0x49c   : > { %2585 = vmatpush.bf16.msrb.mxu3 %v7602_v51 }
 0x49d   : > { %2550 = vmatpush.bf16.msra.mxu0 %v7603_v53 }
 0x49e   : > { %2563 = vmatpush.bf16.msra.mxu2 %v7604_v54 }
 0x4a0   : > { %2586 = vmatpush.bf16.msrb.mxu3 %v7605_v55  ;;  %v2434_v55 = vunpack.c.l.bf16 %v4308_v49 }
 0x4a1   : > { %2551 = vmatpush.bf16.msra.mxu0 %v7606_v57 }
 0x4a2   : > { %2564 = vmatpush.bf16.msra.mxu2 %v7607_v58 }
 0x4a4   : > { %2587 = vmatpush.bf16.msrb.mxu3 %v7608_v59 }
 0x4a5   : > { %2552 = vmatpush.bf16.msra.mxu0 %v7609_v27 }
 0x4a6   : > { %2565 = vmatpush.bf16.msra.mxu2 %v7610_v61 }
 0x4a8   : > { %2588 = vmatpush.bf16.msrb.mxu3 %v7611_v62 }
 0x4a9   : > { %2553 = vmatpush.bf16.msra.mxu0 %v7612_v63 }
 0x4aa   : > { %2566 = vmatpush.bf16.msra.mxu2 %v7613_v21 }
 0x4ac   : > { %2589 = vmatpush.bf16.msrb.mxu3 %v7614_v48 }
 0x4b0   : > { %2590 = vmatpush.bf16.msrb.mxu3 %v7615_v44 }
 0x4b4   : > { %2591 = vmatpush.bf16.msrb.mxu3 %v7616_v32 }
 0x4b8   : > { %2592 = vmatpush.bf16.msrb.mxu3 %v7617_v38 }
 0x4e8   : > { %v2348_v15 = vpop.f32.mrf.mxu0 }
 0x4e9   : > { %v2413_v7 = vpop.f32.mrf.mxu1 }
 0x4ee   : > { %v2335_v24 = vpop.f32.mrf.mxu3 }
 0x4ef   : > { %v2361_v47 = vpop.f32.mrf.mxu2  ;;  %v2430_v17 = vpack.c.bf16 %v2348_v15, %v2335_v24 }
 0x4f0   : > { %v2350_v0 = vpop.f32.mrf.mxu0 }
 0x4f1   : > { %v2415_v60 = vpop.f32.mrf.mxu1  ;;  %v2437_v23 = vunpack.c.h.bf16 %v2430_v17  ;;  %v2436_v54 = vunpack.c.l.bf16 %v2430_v17 }
 0x4f3   : > { %v2452_v50 = vrot.slane %v2437_v23, 6  ;;  %v6060_v23 = vld [vmem:[%s7179_s7 + $0xb8] sm:$0xff] }
 0x4f5   : > { %v2458_v59 = vsel %vm1550_vm2, %v2436_v54, %v2452_v50  ;;  %v6079_v54 = vld [vmem:[%s7179_s7 + $0xb0] sm:$0xff] }
 0x4f6   : > { %v2337_v9 = vpop.f32.mrf.mxu3 }
 0x4f7   : > { %v2363_v12 = vpop.f32.mrf.mxu2 }
 0x4f8   : > { %v2387_v13 = vpop.f32.mrf.mxu0 }
 0x4fe   : > { %v2374_v29 = vpop.f32.mrf.mxu3 }
 0x4ff   : > { %v2431_v42 = vpack.c.bf16 %v2374_v29, %v2361_v47  ;;  %v2400_v43 = vpop.f32.mrf.mxu2  ;;  %v6066_v29 = vld [vmem:[%s7179_s7 + $0x78] sm:$0xff] }
 0x500   : > { %v2389_v52 = vpop.f32.mrf.mxu0  ;;  %v2432_v48 = vpack.c.bf16 %v2400_v43, %v2387_v13  ;;  %v6054_v13 = vld [vmem:[%s7179_s7 + $0x38] sm:$0xff] }
 0x501   : > { %v2438_v51 = vunpack.c.l.bf16 %v2431_v42  ;;  %v2439_v53 = vunpack.c.h.bf16 %v2431_v42  ;;  %v2435_v52 = vunpack.c.h.bf16 %v4308_v49  ;;  %v6085_v49 = vld [vmem:[%s7179_s7 + $0x70] sm:$0xff] }
 0x502   : > { %v2441_v9 = vunpack.c.h.bf16 %v2432_v48  ;;  %v2440_v43 = vunpack.c.l.bf16 %v2432_v48 }
 0x503   : > { %v2453_v57 = vrot.slane %v2438_v51, 4  ;;  %v2454_v58 = vrot.slane %v2439_v53, 2  ;;  %v6073_v53 = vld [vmem:[%s7179_s7 + $0x30] sm:$0xff] }
 0x505   : > { %v2459_v27 = vsel %vm1552_vm3, %v2453_v57, %v2454_v58 }
 0x506   : > { %v2460_v61 = vsel %vm1554_vm4, %v2458_v59, %v2459_v27  ;;  %v2376_v62 = vpop.f32.mrf.mxu3  ;;  %v6095_v27 = vld [vmem:[%s7179_s7 + $0x28] sm:$0xff] }
 0x507   : > { %v2466_v63 = vmul.f32 %v2460_v61, %v2434_v55  ;;  %v2402_v21 = vpop.f32.mrf.mxu2  ;;  %v6101_v61 = vld [vmem:[%s7179_s7 + $0xa8] sm:$0xff] }
 0x509   : > { %v2470_v44 = vperm.slane %v2466_v63, 0  ;;  %v2471_v32 = vperm.slane %v2466_v63, 2  ;;  %v2472_v38 = vperm.slane %v2466_v63, 4  ;;  %v2473_v15 = vperm.slane %v2466_v63, 6 }
 0x50b   : > { %v2486_v24 = vpack.c.bf16 %v2470_v44, %v2470_v44  ;;  %v2487_v47 = vpack.c.bf16 %v2471_v32, %v2471_v32  ;;  %v2488_v0 = vpack.c.bf16 %v2472_v38, %v2472_v38  ;;  %v2489_v60 = vpack.c.bf16 %v2473_v15, %v2473_v15 }
 0x50d   : > { %2502 = vmatmul.bf16.vlgmr.msrb.gmra.mxu0 %v2486_v24  ;;  %2515 = vmatmul.bf16.vlgmr.msrb.gmra.mxu2 %v2487_v47  ;;  %v6112_v24 = vld [vmem:[%s4887_s20 + $0x10] sm:$0xff] }
 0x50e   : > { %2528 = vmatmul.bf16.vlgmr.msrb.gmra.mxu1 %v2488_v0  ;;  %2541 = vmatmul.bf16.vlgmr.msra.gmra.mxu3 %v2489_v60  ;;  %v2426_v12 = vpop.f32.mrf.mxu3  ;;  %v6115_v47 = vld [vmem:[%s4893_s24 + $0x10] sm:$0xff]  ;;  %v6120_v0 = vld [vmem:[%s7179_s7 + $0x20] sm:$0xff] }
 0x50f   : > { %2598 = vmatpush.bf16.msrb.mxu0 %v5772_v56  ;;  %v2433_v17 = vpack.c.bf16 %v2426_v12, %v2413_v7  ;;  %2658 = vmatpush.bf16.msrb.mxu2 %v6054_v13  ;;  %v2455_v56 = vrot.slane %v2441_v9, 6  ;;  %v6126_v60 = vld [vmem:[%s7179_s7 + $0xa0] sm:$0xff]  ;;  %v2628_v9 = vunpack.c.l.bf16 %v6115_v47 }
 0x510   : > { %2684 = vmatpush.bf16.msra.mxu3 %v6060_v23  ;;  %2671 = vmatpush.bf16.msrb.mxu1 %v6066_v29  ;;  %v6135_v12 = vld [vmem:[%s7179_s7 + $0x60] sm:$0xff] }
 0x511   : > { %v2442_v7 = vunpack.c.l.bf16 %v2433_v17  ;;  %v2443_v42 = vunpack.c.h.bf16 %v2433_v17  ;;  %v6141_v17 = vld [vmem:[%s7179_s7 + $0x18] sm:$0xff] }
 0x513   : > { %v2456_v50 = vrot.slane %v2442_v7, 4  ;;  %v2457_v51 = vrot.slane %v2443_v42, 2  ;;  %2599 = vmatpush.bf16.msrb.mxu0 %v5778_v19  ;;  %2659 = vmatpush.bf16.msrb.mxu2 %v6073_v53  ;;  %v2461_v19 = vsel %vm1550_vm2, %v2440_v43, %v2455_v56  ;;  %v6147_v56 = vld [vmem:[%s7179_s7 + $0x98] sm:$0xff]  ;;  %v6162_v42 = vld [vmem:[%s7179_s7 + $0x10] sm:$0xff] }
 0x514   : > { %2685 = vmatpush.bf16.msra.mxu3 %v6079_v54  ;;  %2672 = vmatpush.bf16.msrb.mxu1 %v6085_v49  ;;  %v6175_v43 = vld [vmem:[%s7179_s7 + $0x50] sm:$0xff] }
 0x515   : > { %v2462_v55 = vsel %vm1552_vm3, %v2456_v50, %v2457_v51  ;;  %v6182_v50 = vld [vmem:[%s7179_s7 + $0x8] sm:$0xff] }
 0x516   : > { %v2463_v57 = vsel %vm1554_vm4, %v2461_v19, %v2462_v55  ;;  %v2428_v58 = vpop.f32.mrf.mxu3  ;;  %v4309_v55 = vld [vmem:[%s5853_s30 + $0x1] sm:$0x1] }
 0x517   : > { %v2467_v59 = vmul.f32 %v2463_v57, %v2435_v52  ;;  %2600 = vmatpush.bf16.msrb.mxu0 %v5787_v25  ;;  %2660 = vmatpush.bf16.msrb.mxu2 %v6095_v27  ;;  %v6107_v25 = vld [vmem:[%s7179_s7 + $0x68] sm:$0xff] }
 0x518   : > { %2686 = vmatpush.bf16.msra.mxu3 %v6101_v61  ;;  %2673 = vmatpush.bf16.msrb.mxu1 %v6107_v25  ;;  %v6198_v57 = vld [vmem:[%s7179_s7 + $0x48] sm:$0xff] }
 0x519   : > { %v2474_v62 = vperm.slane %v2467_v59, 0  ;;  %v2475_v63 = vperm.slane %v2467_v59, 2  ;;  %v2476_v21 = vperm.slane %v2467_v59, 4  ;;  %v2477_v48 = vperm.slane %v2467_v59, 6  ;;  %v6205_v59 = vld [vmem:[%s7179_s7] sm:$0xff] }
 0x51b   : > { %2601 = vmatpush.bf16.msrb.mxu0 %v5799_v35  ;;  %v2490_v44 = vpack.c.bf16 %v2474_v62, %v2474_v62  ;;  %v2491_v32 = vpack.c.bf16 %v2475_v63, %v2475_v63  ;;  %v2492_v38 = vpack.c.bf16 %v2476_v21, %v2476_v21  ;;  %v2493_v15 = vpack.c.bf16 %v2477_v48, %v2477_v48  ;;  %v6217_v62 = vld [vmem:[%s7179_s7 + $0x80] sm:$0xff]  ;;  %v6223_v63 = vld [vmem:[%s7179_s7 + $0x1b8] sm:$0xff] }
 0x51c   : > { %2661 = vmatpush.bf16.msrb.mxu2 %v6120_v0  ;;  %2687 = vmatpush.bf16.msra.mxu3 %v6126_v60  ;;  %v2626_v35 = vunpack.c.l.bf16 %v6112_v24  ;;  %v6229_v48 = vld [vmem:[%s7179_s7 + $0x40] sm:$0xff] }
 0x51d   : > { %2554 = vmatmul.bf16.vlgmr.msra.gmra.mxu0 %v2490_v44  ;;  %2567 = vmatmul.bf16.vlgmr.msra.gmra.mxu2 %v2491_v32  ;;  %v6236_v44 = vld [vmem:[%s7179_s7 + $0x178] sm:$0xff]  ;;  %v6242_v32 = vld [vmem:[%s7179_s7 + $0x130] sm:$0xff] }
 0x51e   : > { %2580 = vmatmul.bf16.vlgmr.msra.gmra.mxu1 %v2492_v38  ;;  %2593 = vmatmul.bf16.vlgmr.msrb.gmra.mxu3 %v2493_v15  ;;  %v6157_v7 = vmul.f32 %v2628_v9, %v2626_v35  ;;  %v6248_v38 = vld [vmem:[%s7179_s7 + $0x1b0] sm:$0xff]  ;;  %v6261_v15 = vld [vmem:[%s7179_s7 + $0x128] sm:$0xff]  ;;  %v6280_v9 = vld [vmem:[%s7179_s7 + $0x120] sm:$0xff] }
 0x51f   : > { %2602 = vmatpush.bf16.msrb.mxu0 %v5808_v45  ;;  %2674 = vmatpush.bf16.msrb.mxu1 %v6135_v12  ;;  %v6154_v45 = vld [vmem:[%s7179_s7 + $0x58] sm:$0xff]  ;;  %v6267_v35 = vld [vmem:[%s7179_s7 + $0x1a8] sm:$0xff] }
 0x520   : > { %2662 = vmatpush.bf16.msrb.mxu2 %v6141_v17  ;;  %2688 = vmatpush.bf16.msra.mxu3 %v6147_v56  ;;  %v2634_v52 = vperm.slane %v6157_v7, 0  ;;  %v2636_v51 = vperm.slane %v6157_v7, 4  ;;  %v2635_v19 = vperm.slane %v6157_v7, 2 }
 0x522   : > { %v2650_v58 = vpack.c.bf16 %v2634_v52, %v2634_v52  ;;  %v2651_v21 = vpack.c.bf16 %v2635_v19, %v2635_v19  ;;  %v6286_v52 = vld [vmem:[%s7179_s7 + $0x1a0] sm:$0xff] }
 0x523   : > { %2603 = vmatpush.bf16.msrb.mxu0 %v5822_v10  ;;  %2675 = vmatpush.bf16.msrb.mxu1 %v6154_v45  ;;  %v6168_v10 = vld [vmem:[%s7179_s7 + $0x90] sm:$0xff]  ;;  %v6295_v19 = vld [vmem:[%s7179_s7 + $0x160] sm:$0xff] }
 0x524   : > { %2663 = vmatpush.bf16.msrb.mxu2 %v6162_v42  ;;  %2689 = vmatpush.bf16.msra.mxu3 %v6168_v10 }
 0x527   : > { %2604 = vmatpush.bf16.msrb.mxu0 %v5833_v20  ;;  %2676 = vmatpush.bf16.msrb.mxu1 %v6175_v43  ;;  %v6188_v20 = vld [vmem:[%s7179_s7 + $0x88] sm:$0xff] }
 0x528   : > { %2664 = vmatpush.bf16.msrb.mxu2 %v6182_v50  ;;  %2690 = vmatpush.bf16.msra.mxu3 %v6188_v20 }
 0x52b   : > { %2605 = vmatpush.bf16.msrb.mxu0 %v5844_v14  ;;  %2677 = vmatpush.bf16.msrb.mxu1 %v6198_v57  ;;  %v6211_v14 = vld [vmem:[%s7179_s7 + $0x138] sm:$0xff] }
 0x52c   : > { %2665 = vmatpush.bf16.msrb.mxu2 %v6205_v59  ;;  %2691 = vmatpush.bf16.msra.mxu3 %v6217_v62 }
 0x52e   : > { %2606 = vmatmul.bf16.vlgmr.msrb.gmra.mxu0 %v4309_v55  ;;  %v6301_v55 = vld [vmem:[%s7179_s7 + $0x118] sm:$0xff] }
 0x52f   : > { %2697 = vmatpush.bf16.msra.mxu0 %v5864_v26  ;;  %v2652_v26 = vpack.c.bf16 %v2636_v51, %v2636_v51  ;;  %2678 = vmatpush.bf16.msrb.mxu1 %v6229_v48  ;;  %v2629_v51 = vunpack.c.h.bf16 %v6115_v47  ;;  %7618 = vst [vmem:[#allocation10_spill] sm:$0xff] %v6301_v55  ;;  %v6319_v47 = vld [vmem:[%s7179_s7 + $0x158] sm:$0xff] }
 0x530   : > { %2710 = vmatpush.bf16.msra.mxu2 %v6211_v14  ;;  %2736 = vmatpush.bf16.msrb.mxu3 %v6223_v63  ;;  %7621 = vst [vmem:[#allocation13_spill] sm:$0xff] %v6319_v47 }
 0x531   : > { %2666 = vmatmul.bf16.vlgmr.msrb.gmra.mxu2 %v2650_v58  ;;  %2692 = vmatmul.bf16.vlgmr.msra.gmra.mxu3 %v2652_v26  ;;  %v6327_v26 = vld [vmem:[%s7179_s7 + $0x110] sm:$0xff] }
 0x532   : > { %2679 = vmatmul.bf16.vlgmr.msrb.gmra.mxu1 %v2651_v21  ;;  %7622 = vst [vmem:[#allocation14_spill] sm:$0xff] %v6327_v26  ;;  %v6333_v21 = vld [vmem:[%s7179_s7 + $0x190] sm:$0xff] }
 0x533   : > { %2698 = vmatpush.bf16.msra.mxu0 %v5875_v31  ;;  %2723 = vmatpush.bf16.msra.mxu1 %v6236_v44  ;;  %v6255_v31 = vld [vmem:[%s7179_s7 + $0x170] sm:$0xff]  ;;  %7623 = vst [vmem:[#allocation3_spill] sm:$0xff] %v6333_v21 }
 0x534   : > { %2711 = vmatpush.bf16.msra.mxu2 %v6242_v32  ;;  %2737 = vmatpush.bf16.msrb.mxu3 %v6248_v38 }
 0x537   : > { %2699 = vmatpush.bf16.msra.mxu0 %v5884_v33  ;;  %2724 = vmatpush.bf16.msra.mxu1 %v6255_v31  ;;  %v6274_v33 = vld [vmem:[%s7179_s7 + $0x168] sm:$0xff] }
 0x538   : > { %2712 = vmatpush.bf16.msra.mxu2 %v6261_v15  ;;  %2738 = vmatpush.bf16.msrb.mxu3 %v6267_v35 }
 0x53b   : > { %2700 = vmatpush.bf16.msra.mxu0 %v5893_v34  ;;  %2725 = vmatpush.bf16.msra.mxu1 %v6274_v33  ;;  %v2627_v34 = vunpack.c.h.bf16 %v6112_v24  ;;  %v6307_v24 = vld [vmem:[%s7179_s7 + $0x198] sm:$0xff] }
 0x53c   : > { %2713 = vmatpush.bf16.msra.mxu2 %v6280_v9  ;;  %2739 = vmatpush.bf16.msrb.mxu3 %v6286_v52  ;;  %7619 = vst [vmem:[#allocation2_spill] sm:$0xff] %v6307_v24 }
 0x53d   : > { %v6322_v58 = vmul.f32 %v2629_v51, %v2627_v34  ;;  %v6340_v34 = vld [vmem:[%s7179_s7 + $0xc8] sm:$0xff]  ;;  %v6346_v51 = vld [vmem:[%s7179_s7 + $0x150] sm:$0xff] }
 0x53e   : > { %7624 = vst [vmem:[#allocation15_spill] sm:$0xff] %v6340_v34 }
 0x53f   : > { %2701 = vmatpush.bf16.msra.mxu0 %v5902_v37  ;;  %2726 = vmatpush.bf16.msra.mxu1 %v6295_v19  ;;  %v6313_v37 = vld [vmem:[%s7179_s7 + $0xd0] sm:$0xff]  ;;  %7625 = vst [vmem:[#allocation4_spill] sm:$0xff] %v6346_v51 }
 0x540   : > { %2714 = vmatpush.bf16.msra.mxu2 %v6301_v55  ;;  %2740 = vmatpush.bf16.msrb.mxu3 %v6307_v24  ;;  %7620 = vst [vmem:[#allocation11_spill] sm:$0xff] %v6313_v37  ;;  %v2637_v24 = vperm.slane %v6157_v7, 6  ;;  %v6353_v7 = vld [vmem:[%s7179_s7 + $0x108] sm:$0xff] }
 0x541   : > { %7626 = vst [vmem:[#allocation17_spill] sm:$0xff] %v6353_v7  ;;  %v6373_v55 = vld [vmem:[%s7179_s7 + $0x148] sm:$0xff] }
 0x542   : > { %7629 = vst [vmem:[#allocation19_spill] sm:$0xff] %v6373_v55 }
 0x543   : > { %2702 = vmatpush.bf16.msra.mxu0 %v6313_v37  ;;  %2727 = vmatpush.bf16.msra.mxu1 %v6319_v47  ;;  %v2653_v37 = vpack.c.bf16 %v2637_v24, %v2637_v24  ;;  %v6367_v47 = vld [vmem:[%s7179_s7 + $0xc0] sm:$0xff]  ;;  %v6379_v24 = vld [vmem:[%s7179_s7 + $0x1f8] sm:$0xff] }
 0x544   : > { %2715 = vmatpush.bf16.msra.mxu2 %v6327_v26  ;;  %2741 = vmatpush.bf16.msrb.mxu3 %v6333_v21  ;;  %v2638_v26 = vperm.slane %v6322_v58, 0  ;;  %v2640_v21 = vperm.slane %v6322_v58, 4  ;;  %7628 = vst [vmem:[#allocation21_spill] sm:$0xff] %v6367_v47 }
 0x545   : > { %7630 = vst [vmem:[#allocation5_spill] sm:$0xff] %v6379_v24 }
 0x547   : > { %2703 = vmatpush.bf16.msra.mxu0 %v6340_v34  ;;  %2728 = vmatpush.bf16.msra.mxu1 %v6346_v51  ;;  %v6360_v34 = vld [vmem:[%s7179_s7 + $0x188] sm:$0xff]  ;;  %v2639_v51 = vperm.slane %v6322_v58, 2 }
 0x548   : > { %2716 = vmatpush.bf16.msra.mxu2 %v6353_v7  ;;  %7627 = vst [vmem:[#allocation18_spill] sm:$0xff] %v6360_v34  ;;  %2742 = vmatpush.bf16.msrb.mxu3 %v6360_v34  ;;  %v2654_v7 = vpack.c.bf16 %v2638_v26, %v2638_v26  ;;  %v6385_v34 = vld [vmem:[%s7179_s7 + $0x100] sm:$0xff]  ;;  %v2656_v26 = vpack.c.bf16 %v2640_v21, %v2640_v21 }
 0x549   : > { %7631 = vst [vmem:[#allocation22_spill] sm:$0xff] %v6385_v34  ;;  %v6404_v21 = vld [vmem:[%s7179_s7 + $0x140] sm:$0xff] }
 0x54a   : > { %7634 = vst [vmem:[#allocation24_spill] sm:$0xff] %v6404_v21 }
 0x54b   : > { %2704 = vmatpush.bf16.msra.mxu0 %v6367_v47  ;;  %2729 = vmatpush.bf16.msra.mxu1 %v6373_v55  ;;  %v6391_v47 = vld [vmem:[%s7179_s7 + $0x180] sm:$0xff]  ;;  %v6397_v55 = vld [vmem:[%s7180_s8 + $0x18] sm:$0xff] }
 0x54c   : > { %2717 = vmatpush.bf16.msra.mxu2 %v6385_v34  ;;  %7632 = vst [vmem:[#allocation23_spill] sm:$0xff] %v6391_v47  ;;  %2743 = vmatpush.bf16.msrb.mxu3 %v6391_v47  ;;  %v6410_v47 = vld [vmem:[%s7179_s7 + $0x1f0] sm:$0xff] }
 0x54d   : > { %7633 = vst [vmem:[#allocation6_spill] sm:$0xff] %v6397_v55 }
 0x54e   : > { %2705 = vmatmul.bf16.vlgmr.msra.gmra.mxu0 %v2653_v37  ;;  %7635 = vst [vmem:[#allocation39_spill] sm:$0xff] %v6410_v47  ;;  %v6416_v37 = vld [vmem:[%s7180_s8 + $0x10] sm:$0xff] }
 0x54f   : > { %2749 = vmatpush.bf16.msrb.mxu0 %v6379_v24  ;;  %v2655_v24 = vpack.c.bf16 %v2639_v51, %v2639_v51  ;;  %2718 = vmatmul.bf16.vlgmr.msra.gmra.mxu2 %v2654_v7  ;;  %7636 = vst [vmem:[#allocation7_spill] sm:$0xff] %v6416_v37  ;;  %v6424_v51 = vld [vmem:[%s7180_s8 + $0x8] sm:$0xff] }
 0x550   : > { %2783 = vmatpush.msrb.mxu2 %v6397_v55  ;;  %2829 = vmatpush.bf16.msra.mxu3 %v7535_v46  ;;  %7637 = vst [vmem:[#allocation42_spill] sm:$0xff] %v6424_v51  ;;  %v6431_v7 = vld [vmem:[%s7179_s7 + $0x1e8] sm:$0xff] }
 0x551   : > { %2730 = vmatpush.bf16.msra.mxu1 %v6404_v21  ;;  %2744 = vmatmul.bf16.vlgmr.msrb.gmra.mxu3 %v2656_v26  ;;  %7638 = vst [vmem:[#allocation8_spill] sm:$0xff] %v6431_v7  ;;  %v6447_v26 = vld [vmem:[%s7179_s7 + $0x1e0] sm:$0xff] }
 0x552   : > { %2784 = vmatpush.msrb.mxu2 %v6416_v37  ;;  %7640 = vst [vmem:[#allocation16_spill] sm:$0xff] %v6447_v26 }
 0x553   : > { %2750 = vmatpush.bf16.msrb.mxu0 %v6410_v47 }
 0x554   : > { %2731 = vmatmul.bf16.vlgmr.msra.gmra.mxu1 %v2655_v24  ;;  %2830 = vmatpush.bf16.msra.mxu3 %v7539_v39  ;;  %v6437_v24 = vld [vmem:[%s7180_s8] sm:$0xff] }
 0x555   : > { %2803 = vmatpush.bf16.msrb.mxu1 %v7524_v40  ;;  %2785 = vmatpush.msrb.mxu2 %v6424_v51  ;;  %7639 = vst [vmem:[#allocation12_spill] sm:$0xff] %v6437_v24 }
 0x557   : > { %2751 = vmatpush.bf16.msrb.mxu0 %v6431_v7  ;;  %2786 = vmatpush.msrb.mxu2 %v6437_v24 }
 0x558   : > { %2868 = vmatpush.bf16.msrb.mxu3 %v7558_v4  ;;  %v6455_v4 = vld [vmem:[%s7179_s7 + $0x1d8] sm:$0xff] }
 0x559   : > { %2804 = vmatpush.bf16.msrb.mxu1 %v7529_v2  ;;  %2816 = vmatpush.bf16.msra.mxu2 %v7528_v1  ;;  %7641 = vst [vmem:[#allocation20_spill] sm:$0xff] %v6455_v4 }
 0x55b   : > { %2752 = vmatpush.bf16.msrb.mxu0 %v6447_v26  ;;  %v2641_v26 = vperm.slane %v6322_v58, 6  ;;  %v6482_v58 = vld [vmem:[%s7177_s5 + $0xb8] sm:$0xff] }
 0x55c   : > { %2869 = vmatpush.bf16.msrb.mxu3 %v7559_v30  ;;  %v6461_v30 = vld [vmem:[%s7179_s7 + $0x1d0] sm:$0xff]  ;;  %7645 = vst [vmem:[#allocation51_spill] sm:$0xff] %v6482_v58 }
 0x55d   : > { %2842 = vmatpush.bf16.msra.mxu1 %v7531_v11  ;;  %2817 = vmatpush.bf16.msra.mxu2 %v7534_v6  ;;  %7642 = vst [vmem:[#allocation41_spill] sm:$0xff] %v6461_v30  ;;  %v6468_v6 = vld [vmem:[%s7179_s7 + $0x1c8] sm:$0xff] }
 0x55e   : > { %7643 = vst [vmem:[#allocation45_spill] sm:$0xff] %v6468_v6 }
 0x55f   : > { %2753 = vmatpush.bf16.msrb.mxu0 %v6455_v4  ;;  %v6474_v4 = vld [vmem:[%s7179_s7 + $0x1c0] sm:$0xff] }
 0x560   : > { %7644 = vst [vmem:[#allocation48_spill] sm:$0xff] %v6474_v4 }
 0x561   : > { %2843 = vmatpush.bf16.msra.mxu1 %v7537_v36  ;;  %v2657_v36 = vpack.c.bf16 %v2641_v26, %v2641_v26  ;;  %v6488_v26 = vld [vmem:[%s7177_s5 + $0xb0] sm:$0xff] }
 0x562   : > { %7646 = vst [vmem:[#allocation55_spill] sm:$0xff] %v6488_v26 }
 0x563   : > { %2754 = vmatpush.bf16.msrb.mxu0 %v6461_v30 }
 0x567   : > { %2755 = vmatpush.bf16.msrb.mxu0 %v6468_v6 }
 0x56b   : > { %2756 = vmatpush.bf16.msrb.mxu0 %v6474_v4 }
 0x56e   : > { %2757 = vmatmul.bf16.vlgmr.msrb.gmra.mxu0 %v2657_v36  ;;  %v6494_v36 = vld [vmem:[%s7177_s5 + $0xa8] sm:$0xff] }
 0x56f   : > { %2881 = vmatpush.bf16.msra.mxu0 %v7545_v18  ;;  %7647 = vst [vmem:[#allocation64_spill] sm:$0xff] %v6494_v36 }
 0x573   : > { %2882 = vmatpush.bf16.msra.mxu0 %v7546_v22  ;;  %v6500_v22 = vld [vmem:[%s7177_s5 + $0xa0] sm:$0xff] }
 0x574   : > { %7648 = vst [vmem:[#allocation68_spill] sm:$0xff] %v6500_v22 }
 0x577   : > { %2991 = vmatpush.bf16.msrb.mxu0 %v6482_v58  ;;  %v6506_v58 = vld [vmem:[%s7177_s5 + $0x98] sm:$0xff] }
 0x578   : > { %7649 = vst [vmem:[#allocation73_spill] sm:$0xff] %v6506_v58 }
 0x57b   : > { %2992 = vmatpush.bf16.msrb.mxu0 %v6488_v26  ;;  %v6512_v26 = vld [vmem:[%s7177_s5 + $0x90] sm:$0xff] }
 0x57c   : > { %7650 = vst [vmem:[#allocation52_spill] sm:$0xff] %v6512_v26 }
 0x57f   : > { %2993 = vmatpush.bf16.msrb.mxu0 %v6494_v36  ;;  %v6518_v36 = vld [vmem:[%s7177_s5 + $0x88] sm:$0xff] }
 0x580   : > { %7651 = vst [vmem:[#allocation40_spill] sm:$0xff] %v6518_v36 }
 0x583   : > { %2994 = vmatpush.bf16.msrb.mxu0 %v6500_v22  ;;  %v6524_v22 = vld [vmem:[%s7177_s5 + $0x80] sm:$0xff] }
 0x584   : > { %7652 = vst [vmem:[#allocation76_spill] sm:$0xff] %v6524_v22 }
 0x587   : > { %2995 = vmatpush.bf16.msrb.mxu0 %v6506_v58 }
 0x58a   : > { %v2503_v58 = vpop.f32.mrf.mxu0 }
 0x58b   : > { %2996 = vmatpush.bf16.msrb.mxu0 %v6512_v26  ;;  %v2529_v18 = vpop.f32.mrf.mxu1 }
 0x58f   : > { %2997 = vmatpush.bf16.msrb.mxu0 %v6518_v36 }
 0x590   : > { %v2516_v4 = vpop.f32.mrf.mxu2 }
 0x591   : > { %v2542_v6 = vpop.f32.mrf.mxu3  ;;  %v2517_v1 = vadd.f32 %v2516_v4, %v2503_v58 }
 0x592   : > { %v2505_v30 = vpop.f32.mrf.mxu0 }
 0x593   : > { %2998 = vmatpush.bf16.msrb.mxu0 %v6524_v22  ;;  %v2531_v26 = vpop.f32.mrf.mxu1  ;;  %v2530_v7 = vadd.f32 %v2529_v18, %v2517_v1 }
 0x595   : > { %v2543_v36 = vadd.f32 %v2542_v6, %v2530_v7 }
 0x598   : > { %v2518_v39 = vpop.f32.mrf.mxu2 }
 0x599   : > { %v2544_v24 = vpop.f32.mrf.mxu3 }
 0x59a   : > { %v2555_v11 = vpop.f32.mrf.mxu0 }
 0x59b   : > { %v2581_v51 = vpop.f32.mrf.mxu1  ;;  %v2556_v2 = vadd.f32 %v2555_v11, %v2543_v36 }
 0x5a0   : > { %v2568_v46 = vpop.f32.mrf.mxu2 }
 0x5a1   : > { %v2594_v37 = vpop.f32.mrf.mxu3  ;;  %v2569_v47 = vadd.f32 %v2568_v46, %v2556_v2 }
 0x5a2   : > { %v2557_v40 = vpop.f32.mrf.mxu0 }
 0x5a3   : > { %v2583_v55 = vpop.f32.mrf.mxu1  ;;  %v2582_v22 = vadd.f32 %v2581_v51, %v2569_v47  ;;  %v4320_v40 = vld [vmem:[%s5966_s13 + $0x1] sm:$0x1] }
 0x5a5   : > { %v2595_v30 = vadd.f32 %v2594_v37, %v2582_v22 }
 0x5a8   : > { %v2570_v21 = vpop.f32.mrf.mxu2 }
 0x5a9   : > { %v2596_v34 = vpop.f32.mrf.mxu3 }
 0x5ab   : > { %v2607_v26 = vpop.f32.mrf.mxu0 }
 0x5ac   : > { %v2608_v4 = vadd.f32 %v2607_v26, %v2595_v30 }
 0x5ae   : > { %v2611_v39 = vadd.f32 %v2608_v4, %v5959_v5 }
 0x5af   : > { %v2680_v1 = vpop.f32.mrf.mxu1 }
 0x5b0   : > { %4540 = vtanh.f32 %v2611_v39 }
 0x5b3   : > { %v2609_v6 = vpop.f32.mrf.mxu0 }
 0x5b4   : > { %v2667_v18 = vpop.f32.mrf.mxu2  ;;  %v2693_v11 = vpop.f32.mrf.mxu3 }
 0x5b5   : > { %v2681_v37 = vadd.f32 %v2680_v1, %v2667_v18 }
 0x5b6   : > { %v4541_v7 = vpop.eup %4540 }
 0x5b7   : > { %v2613_v24 = vpack.c.bf16 %v4541_v7, %v4541_v7  ;;  %v2682_v2 = vpop.f32.mrf.mxu1  ;;  %v2694_v58 = vadd.f32 %v2693_v11, %v2681_v37  ;;  %v6562_v37 = vld [vmem:[%s7177_s5 + $0x1b8] sm:$0xff] }
 0x5b8   : > { %7655 = vst [vmem:[#allocation80_spill] sm:$0xff] %v6562_v37 }
 0x5b9   : > { %v2616_v46 = vsel %vm5968_vm7, %v2613_v24, %v4320_v40 }
 0x5ba   : > { %4321 = vst [vmem:[%s5966_s13 + $0x1] sm:$0x1] %v2616_v46 }
 0x5bc   : > { %v2669_v55 = vpop.f32.mrf.mxu2  ;;  %v2695_v47 = vpop.f32.mrf.mxu3 }
 0x5cb   : > { %v2706_v22 = vpop.f32.mrf.mxu0 }
 0x5cc   : > { %v2707_v26 = vadd.f32 %v2706_v22, %v2694_v58  ;;  %v6581_v58 = vld [vmem:[%s7177_s5 + $0x1b0] sm:$0xff] }
 0x5cd   : > { %7658 = vst [vmem:[#allocation84_spill] sm:$0xff] %v6581_v58 }
 0x5d1   : > { %v2732_v34 = vpop.f32.mrf.mxu1 }
 0x5d2   : > { %v2719_v21 = vpop.f32.mrf.mxu2 }
 0x5d3   : > { %v2708_v5 = vpop.f32.mrf.mxu0  ;;  %v2720_v39 = vadd.f32 %v2719_v21, %v2707_v26  ;;  %v6556_v21 = vld [vmem:[%s7177_s5 + $0x78] sm:$0xff]  ;;  %v6599_v26 = vld [vmem:[%s7177_s5 + $0x1a8] sm:$0xff] }
 0x5d4   : > { %v2745_v51 = vpop.f32.mrf.mxu3  ;;  %7654 = vst [vmem:[#allocation43_spill] sm:$0xff] %v6556_v21  ;;  %v6569_v5 = vld [vmem:[%s7177_s5 + $0x30] sm:$0xff] }
 0x5d5   : > { %v2733_v6 = vadd.f32 %v2732_v34, %v2720_v39  ;;  %7656 = vst [vmem:[#allocation57_spill] sm:$0xff] %v6569_v5  ;;  %v6611_v39 = vld [vmem:[%s7177_s5 + $0x60] sm:$0xff] }
 0x5d6   : > { %7661 = vst [vmem:[#allocation88_spill] sm:$0xff] %v6599_v26 }
 0x5d7   : > { %v2746_v7 = vadd.f32 %v2745_v51, %v2733_v6  ;;  %v6575_v51 = vld [vmem:[%s7177_s5 + $0x70] sm:$0xff]  ;;  %7663 = vst [vmem:[#allocation59_spill] sm:$0xff] %v6611_v39  ;;  %v6617_v6 = vld [vmem:[%s7177_s5 + $0x1a0] sm:$0xff] }
 0x5d8   : > { %7657 = vst [vmem:[#allocation47_spill] sm:$0xff] %v6575_v51 }
 0x5d9   : > { %v2734_v36 = vpop.f32.mrf.mxu1  ;;  %7664 = vst [vmem:[#allocation53_spill] sm:$0xff] %v6617_v6 }
 0x5da   : > { %v2721_v30 = vpop.f32.mrf.mxu2  ;;  %v6587_v36 = vld [vmem:[%s7177_s5 + $0x28] sm:$0xff] }
 0x5db   : > { %7659 = vst [vmem:[#allocation58_spill] sm:$0xff] %v6587_v36  ;;  %v6593_v30 = vld [vmem:[%s7177_s5 + $0x68] sm:$0xff] }
 0x5dc   : > { %v2747_v4 = vpop.f32.mrf.mxu3  ;;  %7660 = vst [vmem:[#allocation50_spill] sm:$0xff] %v6593_v30 }
 0x5dd   : > { %v6605_v4 = vld [vmem:[%s7177_s5 + $0x20] sm:$0xff] }
 0x5de   : > { %7662 = vst [vmem:[#allocation44_spill] sm:$0xff] %v6605_v4 }
 0x5eb   : > { %v2758_v2 = vpop.f32.mrf.mxu0 }
 0x5ec   : > { %v2759_v28 = vadd.f32 %v2758_v2, %v2746_v7  ;;  %v6629_v7 = vld [vmem:[%s7177_s5 + $0xf8] sm:$0xff] }
 0x5ed   : > { %7665 = vst [vmem:[#allocation92_spill] sm:$0xff] %v6629_v7  ;;  %v6635_v2 = vld [vmem:[%s7177_s5 + $0x18] sm:$0xff] }
 0x5ee   : > { %v2762_v24 = vsel %vm1301_vm0, %v2759_v28, -inf  ;;  %7666 = vst [vmem:[#allocation46_spill] sm:$0xff] %v6635_v2 }
 0x5ef   : > { %2763 = vmax.xlane.f32.xlu1 %v2762_v24  ;;  %v6641_v24 = vld [vmem:[%s7177_s5 + $0x58] sm:$0xff] }
 0x5f0   : > { %7667 = vst [vmem:[#allocation60_spill] sm:$0xff] %v6641_v24 }
 0x5f3   : > { %v2760_v40 = vpop.f32.mrf.mxu0 }
 0x5f4   : > { %v6647_v40 = vld [vmem:[%s7177_s5 + $0x198] sm:$0xff] }
 0x5f5   : > { %7668 = vst [vmem:[#allocation62_spill] sm:$0xff] %v6647_v40 }
 0x662   : > { %v2764_v46 = vpop.xlane.xlu1 %2763 }
 0x663   : > { %v2765_v55 = vsub.f32 %v2759_v28, %v2764_v46  ;;  %v6550_v28 = vld [vmem:[%s7177_s5 + $0x38] sm:$0xff]  ;;  %v6653_v46 = vld [vmem:[%s7177_s5 + $0xf0] sm:$0xff] }
 0x664   : > { %7653 = vst [vmem:[#allocation56_spill] sm:$0xff] %v6550_v28 }
 0x665   : > { %v2766_v47 = vmul.f32 1.442695, %v2765_v55  ;;  %7669 = vst [vmem:[#allocation96_spill] sm:$0xff] %v6653_v46  ;;  %v6659_v55 = vld [vmem:[%s7177_s5 + $0x10] sm:$0xff] }
 0x666   : > { %7670 = vst [vmem:[#allocation49_spill] sm:$0xff] %v6659_v55 }
 0x667   : > { %4542 = vpow2.f32 %v2766_v47  ;;  %v6665_v47 = vld [vmem:[%s7177_s5 + $0x50] sm:$0xff] }
 0x668   : > { %7671 = vst [vmem:[#allocation61_spill] sm:$0xff] %v6665_v47 }
 0x66d   : > { %v4543_v1 = vpop.eup %4542 }
 0x66e   : > { %4326 = vmatmul.msk.f32.vlgmr.msrb.gmra.mxu2 %vm1308_vm1, %v4543_v1 }
 0x66f   : > { %2855 = vmatpush.bf16.msrb.mxu2 %v7536_v3 }
 0x673   : > { %2856 = vmatpush.bf16.msrb.mxu2 %v7540_v8 }
 0x6f1   : > { %v2788_v18 = vpop.f32.mrf.mxu2 }
 0x6f2   : > { %4544 = vrcp.f32 %v2788_v18  ;;  %v6677_v18 = vld [vmem:[%s7177_s5 + $0xe8] sm:$0xff] }
 0x6f3   : > { %7673 = vst [vmem:[#allocation99_spill] sm:$0xff] %v6677_v18 }
 0x6f8   : > { %v4545_v11 = vpop.eup %4544 }
 0x6f9   : > { %v2792_v22 = vmul.f32 %v4545_v11, %v4543_v1  ;;  %v6671_v1 = vld [vmem:[%s7177_s5 + $0x190] sm:$0xff]  ;;  %v6683_v11 = vld [vmem:[%s7177_s5 + $0x8] sm:$0xff] }
 0x6fa   : > { %7672 = vst [vmem:[#allocation67_spill] sm:$0xff] %v6671_v1 }
 0x6fb   : > { %v6536_v34 = vpack.c.bf16 %v2792_v22, %v2792_v22  ;;  %7674 = vst [vmem:[#allocation54_spill] sm:$0xff] %v6683_v11  ;;  %v6689_v22 = vld [vmem:[%s7177_s5 + $0x48] sm:$0xff] }
 0x6fc   : > { %7675 = vst [vmem:[#allocation63_spill] sm:$0xff] %v6689_v22 }
 0x6fd   : > { %4327 = vmatmul.msk.bf16.vlgmr.msrb.gmra.mxu1 %vm1308_vm1, %v6536_v34  ;;  %4328 = vmatmul.msk.bf16.vlgmr.msra.gmra.mxu2 %vm1308_vm1, %v6536_v34 }
 0x6fe   : > { %4329 = vmatmul.msk.bf16.vlgmr.msra.gmra.mxu3 %vm1308_vm1, %v6536_v34  ;;  %4333 = vmatmul.msk.bf16.vlgmr.msra.gmra.mxu0 %vm1308_vm1, %v6536_v34 }
 0x6ff   : > { %2894 = vmatpush.bf16.msrb.mxu1 %v7560_v16  ;;  %2965 = vmatpush.bf16.msra.mxu2 %v6550_v28 }
 0x700   : > { %2978 = vmatpush.bf16.msra.mxu3 %v6556_v21  ;;  %3043 = vmatpush.bf16.msra.mxu0 %v6562_v37 }
 0x703   : > { %2895 = vmatpush.bf16.msrb.mxu1 %v7564_v41  ;;  %2966 = vmatpush.bf16.msra.mxu2 %v6569_v5 }
 0x704   : > { %2979 = vmatpush.bf16.msra.mxu3 %v6575_v51  ;;  %3044 = vmatpush.bf16.msra.mxu0 %v6581_v58 }
 0x707   : > { %2967 = vmatpush.bf16.msra.mxu2 %v6587_v36 }
 0x708   : > { %2980 = vmatpush.bf16.msra.mxu3 %v6593_v30  ;;  %3045 = vmatpush.bf16.msra.mxu0 %v6599_v26 }
 0x70b   : > { %2968 = vmatpush.bf16.msra.mxu2 %v6605_v4 }
 0x70c   : > { %2981 = vmatpush.bf16.msra.mxu3 %v6611_v39  ;;  %3046 = vmatpush.bf16.msra.mxu0 %v6617_v6 }
 0x70d   : > { %4330 = vmatmul.msk.bf16.vlgmr.msra.gmra.mxu1 %vm1308_vm1, %v6536_v34  ;;  %4331 = vmatmul.msk.bf16.vlgmr.msrb.gmra.mxu2 %vm1308_vm1, %v6536_v34 }
 0x70e   : > { %4332 = vmatmul.msk.bf16.vlgmr.msrb.gmra.mxu3 %vm1308_vm1, %v6536_v34  ;;  %3004 = vmatpush.bf16.msra.mxu1 %v6629_v7 }
 0x70f   : > { %2969 = vmatpush.bf16.msra.mxu2 %v6635_v2 }
 0x710   : > { %2982 = vmatpush.bf16.msra.mxu3 %v6641_v24  ;;  %3047 = vmatpush.bf16.msra.mxu0 %v6647_v40 }
 0x712   : > { %3005 = vmatpush.bf16.msra.mxu1 %v6653_v46 }
 0x713   : > { %2970 = vmatpush.bf16.msra.mxu2 %v6659_v55 }
 0x714   : > { %2983 = vmatpush.bf16.msra.mxu3 %v6665_v47  ;;  %3048 = vmatpush.bf16.msra.mxu0 %v6671_v1  ;;  %v6695_v1 = vld [vmem:[%s7177_s5 + $0x188] sm:$0xff] }
 0x715   : > { %7676 = vst [vmem:[#allocation65_spill] sm:$0xff] %v6695_v1 }
 0x716   : > { %3006 = vmatpush.bf16.msra.mxu1 %v6677_v18  ;;  %v6701_v18 = vld [vmem:[%s7177_s5 + $0xe0] sm:$0xff] }
 0x717   : > { %2971 = vmatpush.bf16.msra.mxu2 %v6683_v11  ;;  %7677 = vst [vmem:[#allocation71_spill] sm:$0xff] %v6701_v18  ;;  %v6707_v11 = vld [vmem:[%s7177_s5] sm:$0xff] }
 0x718   : > { %2984 = vmatpush.bf16.msra.mxu3 %v6689_v22  ;;  %3049 = vmatpush.bf16.msra.mxu0 %v6695_v1  ;;  %7678 = vst [vmem:[#allocation72_spill] sm:$0xff] %v6707_v11  ;;  %v6713_v22 = vld [vmem:[%s7177_s5 + $0x138] sm:$0xff]  ;;  %v6719_v1 = vld [vmem:[%s7177_s5 + $0x40] sm:$0xff] }
 0x719   : > { %7679 = vst [vmem:[#allocation66_spill] sm:$0xff] %v6713_v22 }
 0x71a   : > { %3007 = vmatpush.bf16.msra.mxu1 %v6701_v18  ;;  %7680 = vst [vmem:[#allocation102_spill] sm:$0xff] %v6719_v1 }
 0x71b   : > { %2972 = vmatpush.bf16.msra.mxu2 %v6707_v11  ;;  %v6727_v11 = vld [vmem:[%s7177_s5 + $0x178] sm:$0xff] }
 0x71c   : > { %2985 = vmatpush.bf16.msra.mxu3 %v6719_v1  ;;  %7681 = vst [vmem:[#allocation69_spill] sm:$0xff] %v6727_v11  ;;  %v6739_v1 = vld [vmem:[%s7177_s5 + $0x180] sm:$0xff] }
 0x71d   : > { %4334 = vmatmul.msk.bf16.vlgmr.msrb.gmra.mxu1 %vm1308_vm1, %v6536_v34  ;;  %7683 = vst [vmem:[#allocation70_spill] sm:$0xff] %v6739_v1  ;;  %3050 = vmatpush.bf16.msra.mxu0 %v6739_v1  ;;  %v6745_v34 = vld [vmem:[%s7177_s5 + $0x130] sm:$0xff]  ;;  %v6763_v1 = vld [vmem:[%s7177_s5 + $0x128] sm:$0xff] }
 0x71e   : > { %7684 = vst [vmem:[#allocation74_spill] sm:$0xff] %v6745_v34 }
 0x71f   : > { %3017 = vmatpush.bf16.msrb.mxu2 %v6713_v22  ;;  %v6733_v22 = vld [vmem:[%s7177_s5 + $0xd8] sm:$0xff]  ;;  %7687 = vst [vmem:[#allocation78_spill] sm:$0xff] %v6763_v1 }
 0x720   : > { %3030 = vmatpush.bf16.msrb.mxu3 %v6727_v11  ;;  %7682 = vst [vmem:[#allocation77_spill] sm:$0xff] %v6733_v22  ;;  %3008 = vmatpush.bf16.msra.mxu1 %v6733_v22  ;;  %v6751_v11 = vld [vmem:[%s7177_s5 + $0x170] sm:$0xff] }
 0x721   : > { %7685 = vst [vmem:[#allocation82_spill] sm:$0xff] %v6751_v11  ;;  %v6757_v22 = vld [vmem:[%s7177_s5 + $0xd0] sm:$0xff] }
 0x722   : > { %7686 = vst [vmem:[#allocation75_spill] sm:$0xff] %v6757_v22 }
 0x723   : > { %3018 = vmatpush.bf16.msrb.mxu2 %v6745_v34  ;;  %v6769_v34 = vld [vmem:[%s7177_s5 + $0x168] sm:$0xff] }
 0x724   : > { %3031 = vmatpush.bf16.msrb.mxu3 %v6751_v11  ;;  %3009 = vmatpush.bf16.msra.mxu1 %v6757_v22  ;;  %7688 = vst [vmem:[#allocation86_spill] sm:$0xff] %v6769_v34  ;;  %v6775_v11 = vld [vmem:[%s7177_s5 + $0xc8] sm:$0xff]  ;;  %v6781_v22 = vld [vmem:[%s7177_s5 + $0x120] sm:$0xff] }
 0x725   : > { %7689 = vst [vmem:[#allocation79_spill] sm:$0xff] %v6775_v11 }
 0x726   : > { %7690 = vst [vmem:[#allocation81_spill] sm:$0xff] %v6781_v22 }
 0x727   : > { %3019 = vmatpush.bf16.msrb.mxu2 %v6763_v1  ;;  %v6787_v1 = vld [vmem:[%s7177_s5 + $0x160] sm:$0xff] }
 0x728   : > { %3032 = vmatpush.bf16.msrb.mxu3 %v6769_v34  ;;  %3010 = vmatpush.bf16.msra.mxu1 %v6775_v11  ;;  %7691 = vst [vmem:[#allocation83_spill] sm:$0xff] %v6787_v1  ;;  %v6793_v34 = vld [vmem:[%s7177_s5 + $0xc0] sm:$0xff]  ;;  %v6799_v11 = vld [vmem:[%s7177_s5 + $0x1f8] sm:$0xff] }
 0x729   : > { %7692 = vst [vmem:[#allocation90_spill] sm:$0xff] %v6793_v34 }
 0x72a   : > { %7693 = vst [vmem:[#allocation85_spill] sm:$0xff] %v6799_v11 }
 0x72b   : > { %3020 = vmatpush.bf16.msrb.mxu2 %v6781_v22  ;;  %v6805_v22 = vld [vmem:[%s7177_s5 + $0x118] sm:$0xff] }
 0x72c   : > { %3033 = vmatpush.bf16.msrb.mxu3 %v6787_v1  ;;  %3011 = vmatpush.bf16.msra.mxu1 %v6793_v34  ;;  %7694 = vst [vmem:[#allocation87_spill] sm:$0xff] %v6805_v22  ;;  %v6811_v1 = vld [vmem:[%s7177_s5 + $0x158] sm:$0xff]  ;;  %v6817_v34 = vld [vmem:[%s7177_s5 + $0x1f0] sm:$0xff] }
 0x72d   : > { %7695 = vst [vmem:[#allocation94_spill] sm:$0xff] %v6811_v1 }
 0x72e   : > { %7696 = vst [vmem:[#allocation89_spill] sm:$0xff] %v6817_v34 }
 0x72f   : > { %3021 = vmatpush.bf16.msrb.mxu2 %v6805_v22  ;;  %v6829_v22 = vld [vmem:[%s7177_s5 + $0x150] sm:$0xff] }
 0x730   : > { %3056 = vmatpush.bf16.msrb.mxu1 %v6799_v11  ;;  %3034 = vmatpush.bf16.msrb.mxu3 %v6811_v1  ;;  %v6823_v11 = vld [vmem:[%s7177_s5 + $0x110] sm:$0xff]  ;;  %7698 = vst [vmem:[#allocation98_spill] sm:$0xff] %v6829_v22  ;;  %v6835_v1 = vld [vmem:[%s7177_s5 + $0x1e8] sm:$0xff] }
 0x731   : > { %7697 = vst [vmem:[#allocation91_spill] sm:$0xff] %v6823_v11 }
 0x732   : > { %7699 = vst [vmem:[#allocation93_spill] sm:$0xff] %v6835_v1 }
 0x733   : > { %3022 = vmatpush.bf16.msrb.mxu2 %v6823_v11  ;;  %v6847_v11 = vld [vmem:[%s7177_s5 + $0x148] sm:$0xff] }
 0x734   : > { %3057 = vmatpush.bf16.msrb.mxu1 %v6817_v34  ;;  %3035 = vmatpush.bf16.msrb.mxu3 %v6829_v22  ;;  %v6841_v34 = vld [vmem:[%s7177_s5 + $0x108] sm:$0xff]  ;;  %7701 = vst [vmem:[#allocation101_spill] sm:$0xff] %v6847_v11  ;;  %v6853_v22 = vld [vmem:[%s7177_s5 + $0x1e0] sm:$0xff] }
 0x735   : > { %7700 = vst [vmem:[#allocation95_spill] sm:$0xff] %v6841_v34 }
 0x736   : > { %7702 = vst [vmem:[#allocation97_spill] sm:$0xff] %v6853_v22 }
 0x737   : > { %3023 = vmatpush.bf16.msrb.mxu2 %v6841_v34  ;;  %v6865_v34 = vld [vmem:[%s7177_s5 + $0x140] sm:$0xff] }
 0x738   : > { %3058 = vmatpush.bf16.msrb.mxu1 %v6835_v1  ;;  %3036 = vmatpush.bf16.msrb.mxu3 %v6847_v11  ;;  %v6859_v1 = vld [vmem:[%s7177_s5 + $0x100] sm:$0xff]  ;;  %7704 = vst [vmem:[#allocation103_spill] sm:$0xff] %v6865_v34  ;;  %v6871_v11 = vld [vmem:[%s7177_s5 + $0x1d8] sm:$0xff] }
 0x739   : > { %7703 = vst [vmem:[#allocation100_spill] sm:$0xff] %v6859_v1 }
 0x73a   : > { %7705 = vst [vmem:[#allocation104_spill] sm:$0xff] %v6871_v11 }
 0x73b   : > { %3024 = vmatpush.bf16.msrb.mxu2 %v6859_v1  ;;  %v6883_v1 = vld [vmem:[%s7177_s5 + $0x1c8] sm:$0xff] }
 0x73c   : > { %3059 = vmatpush.bf16.msrb.mxu1 %v6853_v22  ;;  %3037 = vmatpush.bf16.msrb.mxu3 %v6865_v34  ;;  %v6877_v22 = vld [vmem:[%s7177_s5 + $0x1d0] sm:$0xff]  ;;  %7707 = vst [vmem:[#allocation106_spill] sm:$0xff] %v6883_v1  ;;  %v6889_v34 = vld [vmem:[%s7177_s5 + $0x1c0] sm:$0xff] }
 0x73d   : > { %7706 = vst [vmem:[#allocation105_spill] sm:$0xff] %v6877_v22 }
 0x73e   : > { %7708 = vst [vmem:[#allocation107_spill] sm:$0xff] %v6889_v34 }
 0x740   : > { %3060 = vmatpush.bf16.msrb.mxu1 %v6871_v11 }
 0x744   : > { %3061 = vmatpush.bf16.msrb.mxu1 %v6877_v22 }
 0x748   : > { %3062 = vmatpush.bf16.msrb.mxu1 %v6883_v1  ;;  %v4323_v1 = vld [vmem:[%s5762_s22 + $0x10] sm:$0xff] }
 0x749   : > { %v2905_v58 = vunpack.c.l.bf16 %v4323_v1 }
 0x74c   : > { %3063 = vmatpush.bf16.msrb.mxu1 %v6889_v34 }
 0x77a   : > { %v2806_v11 = vpop.f32.mrf.mxu1 }
 0x77b   : > { %v2884_v18 = vpop.f32.mrf.mxu0 }
 0x780   : > { %v2819_v47 = vpop.f32.mrf.mxu2 }
 0x781   : > { %v2832_v55 = vpop.f32.mrf.mxu3  ;;  %v2901_v40 = vpack.c.bf16 %v2819_v47, %v2806_v11 }
 0x782   : > { %v2808_v22 = vpop.f32.mrf.mxu1 }
 0x783   : > { %v2886_v46 = vpop.f32.mrf.mxu0  ;;  %v2908_v2 = vunpack.c.h.bf16 %v2901_v40  ;;  %v2907_v36 = vunpack.c.l.bf16 %v2901_v40 }
 0x785   : > { %v2923_v4 = vrot.slane %v2908_v2, 6 }
 0x787   : > { %v2929_v41 = vsel %vm1550_vm2, %v2907_v36, %v2923_v4  ;;  %v2906_v36 = vunpack.c.h.bf16 %v4323_v1 }
 0x788   : > { %v2821_v24 = vpop.f32.mrf.mxu2 }
 0x789   : > { %v2834_v7 = vpop.f32.mrf.mxu3 }
 0x78a   : > { %v2845_v6 = vpop.f32.mrf.mxu1 }
 0x78b   : > { %v2902_v39 = vpack.c.bf16 %v2845_v6, %v2832_v55 }
 0x78d   : > { %v2909_v26 = vunpack.c.l.bf16 %v2902_v39  ;;  %v2910_v30 = vunpack.c.h.bf16 %v2902_v39 }
 0x78f   : > { %v2924_v51 = vrot.slane %v2909_v26, 4  ;;  %v2925_v34 = vrot.slane %v2910_v30, 2 }
 0x790   : > { %v2858_v5 = vpop.f32.mrf.mxu2 }
 0x791   : > { %v2930_v22 = vsel %vm1552_vm3, %v2924_v51, %v2925_v34  ;;  %v2871_v46 = vpop.f32.mrf.mxu3 }
 0x792   : > { %v2931_v24 = vsel %vm1554_vm4, %v2929_v41, %v2930_v22  ;;  %v2847_v47 = vpop.f32.mrf.mxu1  ;;  %v2903_v11 = vpack.c.bf16 %v2871_v46, %v2858_v5  ;;  %v6899_v41 = vld [vmem:[%s7176_s4 + $0x38] sm:$0xff]  ;;  %v6908_v22 = vld [vmem:[%s7176_s4 + $0x30] sm:$0xff] }
 0x793   : > { %v2937_v7 = vmul.f32 %v2931_v24, %v2905_v58  ;;  %v6929_v24 = vld [vmem:[%s7176_s4 + $0x20] sm:$0xff] }
 0x794   : > { %v2912_v28 = vunpack.c.h.bf16 %v2903_v11 }
 0x795   : > { %v2941_v6 = vperm.slane %v2937_v7, 0  ;;  %v2942_v55 = vperm.slane %v2937_v7, 2  ;;  %v2943_v2 = vperm.slane %v2937_v7, 4  ;;  %v2944_v37 = vperm.slane %v2937_v7, 6 }
 0x797   : > { %v2957_v39 = vpack.c.bf16 %v2941_v6, %v2941_v6  ;;  %v2958_v40 = vpack.c.bf16 %v2942_v55, %v2942_v55  ;;  %v2959_v21 = vpack.c.bf16 %v2943_v2, %v2943_v2  ;;  %v2960_v26 = vpack.c.bf16 %v2944_v37, %v2944_v37  ;;  %v6945_v2 = vld [vmem:[%s7176_s4 + $0x18] sm:$0xff] }
 0x798   : > { %v2860_v30 = vpop.f32.mrf.mxu2 }
 0x799   : > { %v2873_v16 = vpop.f32.mrf.mxu3  ;;  %2973 = vmatmul.bf16.vlgmr.msra.gmra.mxu2 %v2957_v39  ;;  %2986 = vmatmul.bf16.vlgmr.msra.gmra.mxu3 %v2958_v40  ;;  %v7715_v39 = vld [vmem:[#allocation15_spill] sm:$0xff] }
 0x79a   : > { %2999 = vmatmul.bf16.vlgmr.msrb.gmra.mxu0 %v2959_v21  ;;  %3012 = vmatmul.bf16.vlgmr.msra.gmra.mxu1 %v2960_v26  ;;  %v2897_v51 = vpop.f32.mrf.mxu1  ;;  %v2926_v16 = vrot.slane %v2912_v28, 6  ;;  %v2911_v21 = vunpack.c.l.bf16 %v2903_v11  ;;  %v7716_v40 = vld [vmem:[#allocation3_spill] sm:$0xff]  ;;  %v7717_v26 = vld [vmem:[#allocation17_spill] sm:$0xff] }
 0x79b   : > { %3069 = vmatpush.bf16.msra.mxu2 %v6899_v41  ;;  %v2904_v5 = vpack.c.bf16 %v2897_v51, %v2884_v18  ;;  %3129 = vmatpush.bf16.msra.mxu3 %v6054_v13  ;;  %v6920_v18 = vld [vmem:[%s7176_s4 + $0x28] sm:$0xff] }
 0x79c   : > { %3142 = vmatpush.bf16.msrb.mxu0 %v6066_v29  ;;  %3155 = vmatpush.bf16.msra.mxu1 %v6060_v23  ;;  %v2932_v13 = vsel %vm1550_vm2, %v2911_v21, %v2926_v16  ;;  %v7718_v51 = vld [vmem:[#allocation19_spill] sm:$0xff]  ;;  %v7720_v21 = vld [vmem:[#allocation18_spill] sm:$0xff] }
 0x79d   : > { %v2913_v37 = vunpack.c.l.bf16 %v2904_v5  ;;  %v2914_v58 = vunpack.c.h.bf16 %v2904_v5 }
 0x79f   : > { %v2927_v4 = vrot.slane %v2913_v37, 4  ;;  %v2928_v34 = vrot.slane %v2914_v58, 2  ;;  %3070 = vmatpush.bf16.msra.mxu2 %v6908_v22  ;;  %3130 = vmatpush.bf16.msra.mxu3 %v6073_v53  ;;  %v7719_v37 = vld [vmem:[#allocation21_spill] sm:$0xff] }
 0x7a0   : > { %3143 = vmatpush.bf16.msrb.mxu0 %v6085_v49  ;;  %3156 = vmatpush.bf16.msra.mxu1 %v6079_v54 }
 0x7a1   : > { %v2933_v23 = vsel %vm1552_vm3, %v2927_v4, %v2928_v34  ;;  %v7722_v4 = vld [vmem:[#allocation22_spill] sm:$0xff] }
 0x7a2   : > { %v2934_v29 = vsel %vm1554_vm4, %v2932_v13, %v2933_v23  ;;  %v2899_v28 = vpop.f32.mrf.mxu1  ;;  %v7723_v13 = vld [vmem:[#allocation24_spill] sm:$0xff]  ;;  %v7724_v23 = vld [vmem:[#allocation6_spill] sm:$0xff] }
 0x7a3   : > { %v2938_v1 = vmul.f32 %v2934_v29, %v2906_v36  ;;  %3071 = vmatpush.bf16.msra.mxu2 %v6920_v18  ;;  %3131 = vmatpush.bf16.msra.mxu3 %v6095_v27  ;;  %v6933_v27 = vld [vmem:[%s4887_s20 + $0x18] sm:$0xff] }
 0x7a4   : > { %3144 = vmatpush.bf16.msrb.mxu0 %v6107_v25  ;;  %3157 = vmatpush.bf16.msra.mxu1 %v6101_v61  ;;  %v6936_v25 = vld [vmem:[%s4893_s24 + $0x18] sm:$0xff]  ;;  %v3097_v61 = vunpack.c.l.bf16 %v6933_v27 }
 0x7a5   : > { %v2945_v53 = vperm.slane %v2938_v1, 0  ;;  %v2946_v54 = vperm.slane %v2938_v1, 2  ;;  %v2947_v49 = vperm.slane %v2938_v1, 4  ;;  %v2948_v46 = vperm.slane %v2938_v1, 6  ;;  %v7721_v36 = vld [vmem:[#allocation5_spill] sm:$0xff]  ;;  %v7726_v1 = vld [vmem:[#allocation23_spill] sm:$0xff] }
 0x7a6   : > { %v3099_v55 = vunpack.c.l.bf16 %v6936_v25  ;;  %v7725_v28 = vld [vmem:[#allocation25_spill] sm:$0xff] }
 0x7a7   : > { %3072 = vmatpush.bf16.msra.mxu2 %v6929_v24  ;;  %v2961_v47 = vpack.c.bf16 %v2945_v53, %v2945_v53  ;;  %v2962_v7 = vpack.c.bf16 %v2946_v54, %v2946_v54  ;;  %v2963_v11 = vpack.c.bf16 %v2947_v49, %v2947_v49  ;;  %v2964_v6 = vpack.c.bf16 %v2948_v46, %v2948_v46  ;;  %v7727_v53 = vld [vmem:[#allocation39_spill] sm:$0xff]  ;;  %v7729_v49 = vld [vmem:[#allocation33_spill] sm:$0xff] }
 0x7a8   : > { %3132 = vmatpush.bf16.msra.mxu3 %v6120_v0  ;;  %3145 = vmatpush.bf16.msrb.mxu0 %v6135_v12  ;;  %v6954_v0 = vld [vmem:[%s7176_s4 + $0x10] sm:$0xff]  ;;  %v6958_v12 = vmul.f32 %v3099_v55, %v3097_v61  ;;  %v7728_v54 = vld [vmem:[#allocation7_spill] sm:$0xff]  ;;  %v7730_v46 = vld [vmem:[#allocation29_spill] sm:$0xff] }
 0x7a9   : > { %3025 = vmatmul.bf16.vlgmr.msrb.gmra.mxu2 %v2961_v47  ;;  %3038 = vmatmul.bf16.vlgmr.msrb.gmra.mxu3 %v2962_v7  ;;  %v7731_v47 = vld [vmem:[#allocation42_spill] sm:$0xff]  ;;  %v7732_v7 = vld [vmem:[#allocation27_spill] sm:$0xff] }
 0x7aa   : > { %3051 = vmatmul.bf16.vlgmr.msra.gmra.mxu0 %v2963_v11  ;;  %3064 = vmatmul.bf16.vlgmr.msrb.gmra.mxu1 %v2964_v6  ;;  %v7733_v11 = vld [vmem:[#allocation8_spill] sm:$0xff]  ;;  %v7737_v61 = vld [vmem:[#allocation34_spill] sm:$0xff]  ;;  %v7738_v55 = vld [vmem:[#allocation31_spill] sm:$0xff] }
 0x7ab   : > { %3073 = vmatpush.bf16.msra.mxu2 %v6945_v2  ;;  %3158 = vmatpush.bf16.msra.mxu1 %v6126_v60  ;;  %v6965_v60 = vld [vmem:[%s7176_s4 + $0x8] sm:$0xff]  ;;  %v7734_v6 = vld [vmem:[#allocation12_spill] sm:$0xff] }
 0x7ac   : > { %3133 = vmatpush.bf16.msra.mxu3 %v6141_v17  ;;  %3146 = vmatpush.bf16.msrb.mxu0 %v6154_v45  ;;  %v3105_v17 = vperm.slane %v6958_v12, 0  ;;  %v4324_v45 = vld [vmem:[%s5853_s30 + $0x2] sm:$0x1] }
 0x7af   : > { %3074 = vmatpush.bf16.msra.mxu2 %v6954_v0  ;;  %3159 = vmatpush.bf16.msra.mxu1 %v6147_v56  ;;  %v6975_v56 = vld [vmem:[%s7176_s4] sm:$0xff] }
 0x7b0   : > { %3134 = vmatpush.bf16.msra.mxu3 %v6162_v42  ;;  %3147 = vmatpush.bf16.msrb.mxu0 %v6175_v43  ;;  %v3121_v42 = vpack.c.bf16 %v3105_v17, %v3105_v17  ;;  %v3106_v43 = vperm.slane %v6958_v12, 2  ;;  %v7740_v17 = vld [vmem:[#allocation30_spill] sm:$0xff] }
 0x7b3   : > { %3075 = vmatpush.bf16.msra.mxu2 %v6965_v60  ;;  %3160 = vmatpush.bf16.msra.mxu1 %v6168_v10  ;;  %v4694_v10 = vld [vmem:[%s7179_s7 + $0xf8] sm:$0xff] }
 0x7b4   : > { %3135 = vmatpush.bf16.msra.mxu3 %v6182_v50  ;;  %3148 = vmatpush.bf16.msrb.mxu0 %v6198_v57  ;;  %v3122_v50 = vpack.c.bf16 %v3106_v43, %v3106_v43  ;;  %v4695_v57 = vld [vmem:[%s7179_s7 + $0xf0] sm:$0xff] }
 0x7b7   : > { %3076 = vmatpush.bf16.msra.mxu2 %v6975_v56  ;;  %3161 = vmatpush.bf16.msra.mxu1 %v6188_v20  ;;  %v3107_v20 = vperm.slane %v6958_v12, 4 }
 0x7b8   : > { %3136 = vmatpush.bf16.msra.mxu3 %v6205_v59  ;;  %3149 = vmatpush.bf16.msrb.mxu0 %v6229_v48  ;;  %v3100_v48 = vunpack.c.h.bf16 %v6936_v25  ;;  %v7736_v25 = vld [vmem:[#allocation26_spill] sm:$0xff] }
 0x7b9   : > { %v3123_v59 = vpack.c.bf16 %v3107_v20, %v3107_v20 }
 0x7ba   : > { %3077 = vmatmul.bf16.vlgmr.msra.gmra.mxu2 %v4324_v45  ;;  %v7741_v45 = vld [vmem:[#allocation37_spill] sm:$0xff] }
 0x7bb   : > { %3168 = vmatpush.bf16.msrb.mxu2 %v4694_v10  ;;  %3162 = vmatpush.bf16.msra.mxu1 %v6217_v62  ;;  %v4697_v62 = vld [vmem:[%s7179_s7 + $0xe0] sm:$0xff]  ;;  %v7743_v10 = vld [vmem:[#allocation41_spill] sm:$0xff] }
 0x7bc   : > { %3181 = vmatpush.bf16.msrb.mxu3 %v6211_v14  ;;  %3194 = vmatpush.bf16.msra.mxu0 %v6236_v44  ;;  %v4696_v14 = vld [vmem:[%s7179_s7 + $0xe8] sm:$0xff]  ;;  %v4698_v44 = vld [vmem:[%s7179_s7 + $0xd8] sm:$0xff] }
 0x7bd   : > { %3137 = vmatmul.bf16.vlgmr.msra.gmra.mxu3 %v3121_v42  ;;  %3150 = vmatmul.bf16.vlgmr.msrb.gmra.mxu0 %v3122_v50  ;;  %v7742_v42 = vld [vmem:[#allocation20_spill] sm:$0xff]  ;;  %v7744_v50 = vld [vmem:[#allocation45_spill] sm:$0xff] }
 0x7be   : > { %3163 = vmatmul.bf16.vlgmr.msra.gmra.mxu1 %v3123_v59  ;;  %v7746_v59 = vld [vmem:[#allocation28_spill] sm:$0xff] }
 0x7bf   : > { %3169 = vmatpush.bf16.msrb.mxu2 %v4695_v57  ;;  %3207 = vmatpush.bf16.msrb.mxu1 %v6223_v63  ;;  %v3098_v63 = vunpack.c.h.bf16 %v6933_v27  ;;  %v7735_v27 = vld [vmem:[#allocation36_spill] sm:$0xff] }
 0x7c0   : > { %3182 = vmatpush.bf16.msrb.mxu3 %v6242_v32  ;;  %3195 = vmatpush.bf16.msra.mxu0 %v6255_v31  ;;  %v7709_v32 = vld [vmem:[#allocation10_spill] sm:$0xff]  ;;  %v7711_v31 = vld [vmem:[#allocation11_spill] sm:$0xff]  ;;  %v7745_v57 = vld [vmem:[#allocation48_spill] sm:$0xff] }
 0x7c3   : > { %3170 = vmatpush.bf16.msrb.mxu2 %v4696_v14  ;;  %3208 = vmatpush.bf16.msrb.mxu1 %v6248_v38  ;;  %v7710_v38 = vld [vmem:[#allocation13_spill] sm:$0xff]  ;;  %v7747_v14 = vld [vmem:[#allocation32_spill] sm:$0xff] }
 0x7c4   : > { %3183 = vmatpush.bf16.msrb.mxu3 %v6261_v15  ;;  %3196 = vmatpush.bf16.msra.mxu0 %v6274_v33  ;;  %v7712_v15 = vld [vmem:[#allocation2_spill] sm:$0xff] }
 0x7c5   : > { %v7713_v33 = vld [vmem:[#allocation14_spill] sm:$0xff] }
 0x7c7   : > { %3171 = vmatpush.bf16.msrb.mxu2 %v4697_v62  ;;  %3209 = vmatpush.bf16.msrb.mxu1 %v6267_v35  ;;  %v3102_v35 = vmul.f32 %v3100_v48, %v3098_v63  ;;  %v7748_v62 = vld [vmem:[#allocation51_spill] sm:$0xff]  ;;  %v7750_v48 = vld [vmem:[#allocation64_spill] sm:$0xff] }
 0x7c8   : > { %3184 = vmatpush.bf16.msrb.mxu3 %v6280_v9  ;;  %3197 = vmatpush.bf16.msra.mxu0 %v6295_v19  ;;  %v7714_v9 = vld [vmem:[#allocation4_spill] sm:$0xff]  ;;  %v3108_v19 = vperm.slane %v6958_v12, 6  ;;  %v7749_v63 = vld [vmem:[#allocation55_spill] sm:$0xff] }
 0x7c9   : > { %v3110_v30 = vperm.slane %v3102_v35, 2  ;;  %v3111_v16 = vperm.slane %v3102_v35, 4  ;;  %v7739_v12 = vld [vmem:[#allocation16_spill] sm:$0xff]  ;;  %v3112_v43 = vperm.slane %v3102_v35, 6 }
 0x7ca   : > { %v3124_v5 = vpack.c.bf16 %v3108_v19, %v3108_v19 }
 0x7cb   : > { %3172 = vmatpush.bf16.msrb.mxu2 %v4698_v44  ;;  %3210 = vmatpush.bf16.msrb.mxu1 %v6286_v52  ;;  %v3109_v52 = vperm.slane %v3102_v35, 0  ;;  %v3126_v34 = vpack.c.bf16 %v3110_v30, %v3110_v30  ;;  %v3127_v29 = vpack.c.bf16 %v3111_v16, %v3111_v16  ;;  %v3128_v20 = vpack.c.bf16 %v3112_v43, %v3112_v43  ;;  %v7751_v44 = vld [vmem:[#allocation68_spill] sm:$0xff] }
 0x7cc   : > { %3185 = vmatpush.bf16.msrb.mxu3 %v7709_v32  ;;  %3198 = vmatpush.bf16.msra.mxu0 %v7710_v38  ;;  %v7752_v32 = vld [vmem:[#allocation73_spill] sm:$0xff]  ;;  %v7753_v38 = vld [vmem:[#allocation52_spill] sm:$0xff] }
 0x7cd   : > { %v3125_v58 = vpack.c.bf16 %v3109_v52, %v3109_v52 }
 0x7cf   : > { %3173 = vmatpush.bf16.msrb.mxu2 %v7711_v31  ;;  %3211 = vmatpush.bf16.msrb.mxu1 %v7712_v15  ;;  %v7754_v31 = vld [vmem:[#allocation40_spill] sm:$0xff] }
 0x7d0   : > { %3186 = vmatpush.bf16.msrb.mxu3 %v7713_v33  ;;  %3199 = vmatpush.bf16.msra.mxu0 %v7714_v9  ;;  %v7755_v15 = vld [vmem:[#allocation76_spill] sm:$0xff] }
 0x7d3   : > { %3174 = vmatpush.bf16.msrb.mxu2 %v7715_v39  ;;  %3212 = vmatpush.bf16.msrb.mxu1 %v7716_v40 }
 0x7d4   : > { %3187 = vmatpush.bf16.msrb.mxu3 %v7717_v26  ;;  %3200 = vmatpush.bf16.msra.mxu0 %v7718_v51 }
 0x7d7   : > { %3175 = vmatpush.bf16.msrb.mxu2 %v7719_v37  ;;  %3213 = vmatpush.bf16.msrb.mxu1 %v7720_v21 }
 0x7d8   : > { %3188 = vmatpush.bf16.msrb.mxu3 %v7722_v4  ;;  %3201 = vmatpush.bf16.msra.mxu0 %v7723_v13 }
 0x7da   : > { %3176 = vmatmul.bf16.vlgmr.msrb.gmra.mxu2 %v3124_v5 }
 0x7db   : > { %3220 = vmatpush.bf16.msra.mxu2 %v7721_v36  ;;  %3189 = vmatmul.bf16.vlgmr.msrb.gmra.mxu3 %v3125_v58 }
 0x7dc   : > { %3254 = vmatpush.msra.mxu3 %v7724_v23  ;;  %3274 = vmatpush.bf16.msrb.mxu0 %v7725_v28 }
 0x7dd   : > { %3214 = vmatpush.bf16.msrb.mxu1 %v7726_v1  ;;  %3202 = vmatmul.bf16.vlgmr.msra.gmra.mxu0 %v3126_v34 }
 0x7de   : > { %3255 = vmatpush.msra.mxu3 %v7728_v54 }
 0x7df   : > { %3221 = vmatpush.bf16.msra.mxu2 %v7727_v53 }
 0x7e0   : > { %3215 = vmatmul.bf16.vlgmr.msrb.gmra.mxu1 %v3127_v29  ;;  %3275 = vmatpush.bf16.msrb.mxu0 %v7730_v46 }
 0x7e1   : > { %3300 = vmatpush.bf16.msra.mxu1 %v7729_v49  ;;  %3256 = vmatpush.msra.mxu3 %v7731_v47 }
 0x7e3   : > { %3222 = vmatpush.bf16.msra.mxu2 %v7733_v11  ;;  %3257 = vmatpush.msra.mxu3 %v7734_v6 }
 0x7e4   : > { %3313 = vmatpush.bf16.msra.mxu0 %v7732_v7  ;;  %v7065_v7 = vld [vmem:[%s7178_s6] sm:$0x1] }
 0x7e5   : > { %3301 = vmatpush.bf16.msra.mxu1 %v7735_v27  ;;  %3287 = vmatpush.bf16.msrb.mxu3 %v7736_v25 }
 0x7e7   : > { %3223 = vmatpush.bf16.msra.mxu2 %v7739_v12 }
 0x7e8   : > { %3314 = vmatpush.bf16.msra.mxu0 %v7738_v55 }
 0x7e9   : > { %3339 = vmatpush.bf16.msrb.mxu1 %v7737_v61  ;;  %3288 = vmatpush.bf16.msrb.mxu3 %v7740_v17  ;;  %v4335_v17 = vld [vmem:[%s5966_s13 + $0x2] sm:$0x1] }
 0x7eb   : > { %3224 = vmatpush.bf16.msra.mxu2 %v7742_v42 }
 0x7ed   : > { %3340 = vmatpush.bf16.msrb.mxu1 %v7741_v45 }
 0x7ef   : > { %3225 = vmatpush.bf16.msra.mxu2 %v7743_v10 }
 0x7f3   : > { %3226 = vmatpush.bf16.msra.mxu2 %v7744_v50 }
 0x7f7   : > { %3227 = vmatpush.bf16.msra.mxu2 %v7745_v57 }
 0x7fa   : > { %3228 = vmatmul.bf16.vlgmr.msra.gmra.mxu2 %v3128_v20 }
 0x7fb   : > { %3352 = vmatpush.bf16.msrb.mxu2 %v7746_v59 }
 0x7ff   : > { %3353 = vmatpush.bf16.msrb.mxu2 %v7747_v14 }
 0x803   : > { %3462 = vmatpush.bf16.msra.mxu2 %v7748_v62 }
 0x807   : > { %3463 = vmatpush.bf16.msra.mxu2 %v7749_v63 }
 0x80b   : > { %3464 = vmatpush.bf16.msra.mxu2 %v7750_v48 }
 0x80f   : > { %3465 = vmatpush.bf16.msra.mxu2 %v7751_v44 }
 0x813   : > { %3466 = vmatpush.bf16.msra.mxu2 %v7752_v32 }
 0x817   : > { %3467 = vmatpush.bf16.msra.mxu2 %v7753_v38  ;;  %v3000_v35 = vpop.f32.mrf.mxu0  ;;  %v3013_v33 = vpop.f32.mrf.mxu1 }
 0x81b   : > { %3468 = vmatpush.bf16.msra.mxu2 %v7754_v31 }
 0x81c   : > { %v2974_v9 = vpop.f32.mrf.mxu2  ;;  %v2987_v19 = vpop.f32.mrf.mxu3 }
 0x81d   : > { %v2988_v30 = vadd.f32 %v2987_v19, %v2974_v9 }
 0x81f   : > { %3469 = vmatpush.bf16.msra.mxu2 %v7755_v15  ;;  %v3002_v39 = vpop.f32.mrf.mxu0  ;;  %v3015_v40 = vpop.f32.mrf.mxu1  ;;  %v3001_v16 = vadd.f32 %v3000_v35, %v2988_v30 }
 0x821   : > { %v3014_v21 = vadd.f32 %v3013_v33, %v3001_v16  ;;  %v7757_v16 = vld [vmem:[#allocation35_spill] sm:$0xff] }
 0x824   : > { %v2976_v52 = vpop.f32.mrf.mxu2  ;;  %v2989_v26 = vpop.f32.mrf.mxu3 }
 0x827   : > { %v3052_v51 = vpop.f32.mrf.mxu0  ;;  %v3065_v5 = vpop.f32.mrf.mxu1 }
 0x82c   : > { %v3026_v37 = vpop.f32.mrf.mxu2  ;;  %v3039_v58 = vpop.f32.mrf.mxu3 }
 0x82d   : > { %v3027_v34 = vadd.f32 %v3026_v37, %v3014_v21  ;;  %v7758_v37 = vld [vmem:[#allocation56_spill] sm:$0xff]  ;;  %v7762_v21 = vld [vmem:[#allocation57_spill] sm:$0xff] }
 0x82f   : > { %v3054_v36 = vpop.f32.mrf.mxu0  ;;  %v3067_v4 = vpop.f32.mrf.mxu1  ;;  %v3040_v13 = vadd.f32 %v3039_v58, %v3027_v34  ;;  %v7761_v58 = vld [vmem:[#allocation38_spill] sm:$0xff] }
 0x830   : > { %v7763_v36 = vld [vmem:[#allocation47_spill] sm:$0xff]  ;;  %v7764_v4 = vld [vmem:[#allocation84_spill] sm:$0xff]  ;;  %v7765_v34 = vld [vmem:[#allocation58_spill] sm:$0xff] }
 0x831   : > { %v3053_v28 = vadd.f32 %v3052_v51, %v3040_v13  ;;  %v7766_v13 = vld [vmem:[#allocation50_spill] sm:$0xff] }
 0x833   : > { %v3066_v54 = vadd.f32 %v3065_v5, %v3053_v28  ;;  %v7769_v28 = vld [vmem:[#allocation59_spill] sm:$0xff] }
 0x834   : > { %v3028_v23 = vpop.f32.mrf.mxu2  ;;  %v3041_v29 = vpop.f32.mrf.mxu3 }
 0x835   : > { %v7767_v23 = vld [vmem:[#allocation88_spill] sm:$0xff] }
 0x836   : > { %v7768_v29 = vld [vmem:[#allocation44_spill] sm:$0xff] }
 0x83a   : > { %v3151_v1 = vpop.f32.mrf.mxu0 }
 0x83b   : > { %v3164_v53 = vpop.f32.mrf.mxu1 }
 0x83d   : > { %v3078_v49 = vpop.f32.mrf.mxu2 }
 0x83e   : > { %v3079_v46 = vadd.f32 %v3078_v49, %v3066_v54  ;;  %v7772_v54 = vld [vmem:[#allocation46_spill] sm:$0xff]  ;;  %v7773_v49 = vld [vmem:[#allocation60_spill] sm:$0xff] }
 0x840   : > { %v3138_v47 = vpop.f32.mrf.mxu3  ;;  %v3082_v11 = vadd.f32 %v7065_v7, %v3079_v46  ;;  %v7774_v46 = vld [vmem:[#allocation62_spill] sm:$0xff] }
 0x841   : > { %v3152_v14 = vadd.f32 %v3151_v1, %v3138_v47  ;;  %v7770_v1 = vld [vmem:[#allocation53_spill] sm:$0xff]  ;;  %v7775_v47 = vld [vmem:[#allocation96_spill] sm:$0xff] }
 0x842   : > { %4546 = vtanh.f32 %v3082_v11  ;;  %v3153_v6 = vpop.f32.mrf.mxu0  ;;  %v7776_v11 = vld [vmem:[#allocation49_spill] sm:$0xff] }
 0x843   : > { %v3166_v27 = vpop.f32.mrf.mxu1  ;;  %v3165_v48 = vadd.f32 %v3164_v53, %v3152_v14  ;;  %v7771_v53 = vld [vmem:[#allocation92_spill] sm:$0xff]  ;;  %v7777_v6 = vld [vmem:[#allocation61_spill] sm:$0xff]  ;;  %v7791_v14 = vld [vmem:[#allocation82_spill] sm:$0xff] }
 0x844   : > { %v7778_v27 = vld [vmem:[#allocation67_spill] sm:$0xff] }
 0x845   : > { %v3080_v25 = vpop.f32.mrf.mxu2 }
 0x846   : > { %v7779_v25 = vld [vmem:[#allocation99_spill] sm:$0xff] }
 0x848   : > { %v3140_v61 = vpop.f32.mrf.mxu3  ;;  %v4547_v55 = vpop.eup %4546 }
 0x849   : > { %v3084_v12 = vpack.c.bf16 %v4547_v55, %v4547_v55  ;;  %v7780_v61 = vld [vmem:[#allocation54_spill] sm:$0xff]  ;;  %v7781_v55 = vld [vmem:[#allocation63_spill] sm:$0xff] }
 0x84b   : > { %v3087_v42 = vsel %vm5968_vm7, %v3084_v12, %v4335_v17  ;;  %v7782_v12 = vld [vmem:[#allocation65_spill] sm:$0xff]  ;;  %v7783_v17 = vld [vmem:[#allocation71_spill] sm:$0xff] }
 0x84c   : > { %4336 = vst [vmem:[%s5966_s13 + $0x2] sm:$0x1] %v3087_v42  ;;  %v7784_v42 = vld [vmem:[#allocation72_spill] sm:$0xff] }
 0x85a   : > { %v3203_v10 = vpop.f32.mrf.mxu0 }
 0x85d   : > { %v3216_v43 = vpop.f32.mrf.mxu1  ;;  %v3177_v50 = vpop.f32.mrf.mxu2 }
 0x85e   : > { %v3190_v20 = vpop.f32.mrf.mxu3  ;;  %v3178_v44 = vadd.f32 %v3177_v50, %v3165_v48  ;;  %v7787_v50 = vld [vmem:[#allocation69_spill] sm:$0xff]  ;;  %v7794_v48 = vld [vmem:[#allocation86_spill] sm:$0xff] }
 0x860   : > { %v3191_v32 = vadd.f32 %v3190_v20, %v3178_v44  ;;  %v7788_v20 = vld [vmem:[#allocation77_spill] sm:$0xff]  ;;  %v7795_v44 = vld [vmem:[#allocation79_spill] sm:$0xff] }
 0x862   : > { %v3205_v57 = vpop.f32.mrf.mxu0  ;;  %v3204_v38 = vadd.f32 %v3203_v10, %v3191_v32  ;;  %v7785_v10 = vld [vmem:[#allocation66_spill] sm:$0xff]  ;;  %v7796_v32 = vld [vmem:[#allocation81_spill] sm:$0xff] }
 0x863   : > { %v7789_v57 = vld [vmem:[#allocation70_spill] sm:$0xff] }
 0x864   : > { %v3217_v31 = vadd.f32 %v3216_v43, %v3204_v38  ;;  %v7786_v43 = vld [vmem:[#allocation102_spill] sm:$0xff]  ;;  %v7797_v38 = vld [vmem:[#allocation83_spill] sm:$0xff] }
 0x865   : > { %v3218_v59 = vpop.f32.mrf.mxu1  ;;  %v3179_v62 = vpop.f32.mrf.mxu2 }
 0x866   : > { %v3192_v63 = vpop.f32.mrf.mxu3  ;;  %v7790_v59 = vld [vmem:[#allocation74_spill] sm:$0xff]  ;;  %v7792_v62 = vld [vmem:[#allocation75_spill] sm:$0xff] }
 0x867   : > { %v7793_v63 = vld [vmem:[#allocation78_spill] sm:$0xff] }
 0x87d   : > { %v3229_v15 = vpop.f32.mrf.mxu2 }
 0x87e   : > { %v3230_v35 = vadd.f32 %v3229_v15, %v3217_v31  ;;  %v7798_v31 = vld [vmem:[#allocation90_spill] sm:$0xff]  ;;  %v7799_v15 = vld [vmem:[#allocation85_spill] sm:$0xff] }
 0x880   : > { %v3233_v33 = vsel %vm1301_vm0, %v3230_v35, -inf }
 0x881   : > { %3234 = vmax.xlane.f32.xlu1 %v3233_v33  ;;  %v7801_v33 = vld [vmem:[#allocation94_spill] sm:$0xff] }
 0x885   : > { %v3231_v9 = vpop.f32.mrf.mxu2 }
 0x886   : > { %v7802_v9 = vld [vmem:[#allocation89_spill] sm:$0xff] }
 0x8f4   : > { %v3235_v19 = vpop.xlane.xlu1 %3234 }
 0x8f5   : > { %v3236_v39 = vsub.f32 %v3230_v35, %v3235_v19  ;;  %v7800_v35 = vld [vmem:[#allocation87_spill] sm:$0xff] }
 0x8f6   : > { %v7803_v19 = vld [vmem:[#allocation91_spill] sm:$0xff] }
 0x8f7   : > { %v3237_v40 = vmul.f32 1.442695, %v3236_v39  ;;  %v7804_v39 = vld [vmem:[#allocation98_spill] sm:$0xff] }
 0x8f9   : > { %4548 = vpow2.f32 %v3237_v40  ;;  %v7805_v40 = vld [vmem:[#allocation93_spill] sm:$0xff] }
 0x8ff   : > { %v4549_v52 = vpop.eup %4548 }
 0x900   : > { %4341 = vmatmul.msk.f32.vlgmr.msra.gmra.mxu3 %vm1308_vm1, %v4549_v52 }
 0x901   : > { %3326 = vmatpush.bf16.msra.mxu3 %v7536_v3  ;;  %v7759_v3 = vld [vmem:[#allocation43_spill] sm:$0xff] }
 0x905   : > { %3327 = vmatpush.bf16.msra.mxu3 %v7540_v8  ;;  %v7760_v8 = vld [vmem:[#allocation80_spill] sm:$0xff] }
 0x983   : > { %v3259_v26 = vpop.f32.mrf.mxu3 }
 0x984   : > { %4550 = vrcp.f32 %v3259_v26  ;;  %v7807_v26 = vld [vmem:[#allocation101_spill] sm:$0xff] }
 0x98a   : > { %v4551_v30 = vpop.eup %4550 }
 0x98b   : > { %v3263_v51 = vmul.f32 %v4551_v30, %v4549_v52  ;;  %v7806_v52 = vld [vmem:[#allocation95_spill] sm:$0xff]  ;;  %v7808_v30 = vld [vmem:[#allocation97_spill] sm:$0xff] }
 0x98d   : > { %v3264_v5 = vpack.c.bf16 %v3263_v51, %v3263_v51  ;;  %v7809_v51 = vld [vmem:[#allocation100_spill] sm:$0xff] }
 0x98f   : > { %4342 = vmatmul.msk.bf16.vlgmr.msrb.gmra.mxu0 %vm1308_vm1, %v3264_v5  ;;  %4343 = vmatmul.msk.bf16.vlgmr.msrb.gmra.mxu3 %vm1308_vm1, %v3264_v5 }
 0x990   : > { %4344 = vmatmul.msk.bf16.vlgmr.msra.gmra.mxu1 %vm1308_vm1, %v3264_v5  ;;  %4348 = vmatmul.msk.bf16.vlgmr.msrb.gmra.mxu2 %vm1308_vm1, %v3264_v5 }
 0x991   : > { %3365 = vmatpush.bf16.msrb.mxu0 %v7757_v16  ;;  %3436 = vmatpush.bf16.msrb.mxu3 %v7758_v37  ;;  %v7811_v16 = vld [vmem:[#allocation104_spill] sm:$0xff]  ;;  %v7812_v37 = vld [vmem:[#allocation105_spill] sm:$0xff] }
 0x992   : > { %3449 = vmatpush.bf16.msra.mxu1 %v7759_v3  ;;  %3514 = vmatpush.bf16.msrb.mxu2 %v7760_v8  ;;  %v7813_v3 = vld [vmem:[#allocation106_spill] sm:$0xff]  ;;  %v7814_v8 = vld [vmem:[#allocation107_spill] sm:$0xff] }
 0x995   : > { %3366 = vmatpush.bf16.msrb.mxu0 %v7761_v58  ;;  %3437 = vmatpush.bf16.msrb.mxu3 %v7762_v21 }
 0x996   : > { %3450 = vmatpush.bf16.msra.mxu1 %v7763_v36  ;;  %3515 = vmatpush.bf16.msrb.mxu2 %v7764_v4 }
 0x999   : > { %3438 = vmatpush.bf16.msrb.mxu3 %v7765_v34 }
 0x99a   : > { %3451 = vmatpush.bf16.msra.mxu1 %v7766_v13  ;;  %3516 = vmatpush.bf16.msrb.mxu2 %v7767_v23 }
 0x99d   : > { %3439 = vmatpush.bf16.msrb.mxu3 %v7768_v29 }
 0x99e   : > { %3452 = vmatpush.bf16.msra.mxu1 %v7769_v28  ;;  %3517 = vmatpush.bf16.msrb.mxu2 %v7770_v1 }
 0x99f   : > { %4345 = vmatmul.msk.bf16.vlgmr.msra.gmra.mxu0 %vm1308_vm1, %v3264_v5  ;;  %4346 = vmatmul.msk.bf16.vlgmr.msra.gmra.mxu3 %vm1308_vm1, %v3264_v5 }
 0x9a0   : > { %4347 = vmatmul.msk.bf16.vlgmr.msrb.gmra.mxu1 %vm1308_vm1, %v3264_v5  ;;  %3475 = vmatpush.bf16.msra.mxu0 %v7771_v53 }
 0x9a1   : > { %3440 = vmatpush.bf16.msrb.mxu3 %v7772_v54 }
 0x9a2   : > { %3453 = vmatpush.bf16.msra.mxu1 %v7773_v49  ;;  %3518 = vmatpush.bf16.msrb.mxu2 %v7774_v46  ;;  %v4338_v46 = vld [vmem:[%s5762_s22 + $0x18] sm:$0xff] }
 0x9a4   : > { %3476 = vmatpush.bf16.msra.mxu0 %v7775_v47 }
 0x9a5   : > { %3441 = vmatpush.bf16.msrb.mxu3 %v7776_v11 }
 0x9a6   : > { %3454 = vmatpush.bf16.msra.mxu1 %v7777_v6  ;;  %3519 = vmatpush.bf16.msrb.mxu2 %v7778_v27 }
 0x9a8   : > { %3477 = vmatpush.bf16.msra.mxu0 %v7779_v25  ;;  %v3376_v25 = vunpack.c.l.bf16 %v4338_v46 }
 0x9a9   : > { %3442 = vmatpush.bf16.msrb.mxu3 %v7780_v61 }
 0x9aa   : > { %3455 = vmatpush.bf16.msra.mxu1 %v7781_v55  ;;  %3520 = vmatpush.bf16.msrb.mxu2 %v7782_v12 }
 0x9ac   : > { %3478 = vmatpush.bf16.msra.mxu0 %v7783_v17 }
 0x9ad   : > { %3443 = vmatpush.bf16.msrb.mxu3 %v7784_v42 }
 0x9ae   : > { %3456 = vmatpush.bf16.msra.mxu1 %v7786_v43  ;;  %3521 = vmatpush.bf16.msrb.mxu2 %v7789_v57 }
 0x9af   : > { %4349 = vmatmul.msk.bf16.vlgmr.msrb.gmra.mxu0 %vm1308_vm1, %v3264_v5  ;;  %v7810_v5 = vld [vmem:[#allocation103_spill] sm:$0xff] }
 0x9b0   : > { %3479 = vmatpush.bf16.msra.mxu0 %v7788_v20 }
 0x9b1   : > { %3488 = vmatpush.bf16.msra.mxu3 %v7785_v10 }
 0x9b2   : > { %3501 = vmatpush.bf16.msrb.mxu1 %v7787_v50 }
 0x9b4   : > { %3480 = vmatpush.bf16.msra.mxu0 %v7792_v62 }
 0x9b5   : > { %3489 = vmatpush.bf16.msra.mxu3 %v7790_v59 }
 0x9b6   : > { %3502 = vmatpush.bf16.msrb.mxu1 %v7791_v14 }
 0x9b8   : > { %3481 = vmatpush.bf16.msra.mxu0 %v7795_v44 }
 0x9b9   : > { %3490 = vmatpush.bf16.msra.mxu3 %v7793_v63 }
 0x9ba   : > { %3503 = vmatpush.bf16.msrb.mxu1 %v7794_v48 }
 0x9bc   : > { %3482 = vmatpush.bf16.msra.mxu0 %v7798_v31 }
 0x9bd   : > { %3491 = vmatpush.bf16.msra.mxu3 %v7796_v32 }
 0x9be   : > { %3504 = vmatpush.bf16.msrb.mxu1 %v7797_v38 }
 0x9c0   : > { %3527 = vmatpush.bf16.msrb.mxu0 %v7799_v15 }
 0x9c1   : > { %3492 = vmatpush.bf16.msra.mxu3 %v7800_v35 }
 0x9c2   : > { %3505 = vmatpush.bf16.msrb.mxu1 %v7801_v33 }
 0x9c4   : > { %3528 = vmatpush.bf16.msrb.mxu0 %v7802_v9 }
 0x9c5   : > { %3493 = vmatpush.bf16.msra.mxu3 %v7803_v19 }
 0x9c6   : > { %3506 = vmatpush.bf16.msrb.mxu1 %v7804_v39 }
 0x9c8   : > { %3529 = vmatpush.bf16.msrb.mxu0 %v7805_v40 }
 0x9c9   : > { %3494 = vmatpush.bf16.msra.mxu3 %v7806_v52  ;;  %v3377_v52 = vunpack.c.h.bf16 %v4338_v46 }
 0x9ca   : > { %3507 = vmatpush.bf16.msrb.mxu1 %v7807_v26 }
 0x9cc   : > { %3530 = vmatpush.bf16.msrb.mxu0 %v7808_v30 }
 0x9cd   : > { %3495 = vmatpush.bf16.msra.mxu3 %v7809_v51 }
 0x9ce   : > { %3508 = vmatpush.bf16.msrb.mxu1 %v7810_v5 }
 0x9d0   : > { %3531 = vmatpush.bf16.msrb.mxu0 %v7811_v16 }
 0x9d4   : > { %3532 = vmatpush.bf16.msrb.mxu0 %v7812_v37 }
 0x9d8   : > { %3533 = vmatpush.bf16.msrb.mxu0 %v7813_v3 }
 0x9dc   : > { %3534 = vmatpush.bf16.msrb.mxu0 %v7814_v8 }
 0xa0c   : > { %v3277_v58 = vpop.f32.mrf.mxu0 }
 0xa0d   : > { %v3303_v21 = vpop.f32.mrf.mxu1 }
 0xa12   : > { %v3290_v36 = vpop.f32.mrf.mxu3 }
 0xa13   : > { %v3355_v4 = vpop.f32.mrf.mxu2  ;;  %v3372_v23 = vpack.c.bf16 %v3290_v36, %v3277_v58 }
 0xa14   : > { %v3279_v34 = vpop.f32.mrf.mxu0 }
 0xa15   : > { %v3305_v13 = vpop.f32.mrf.mxu1  ;;  %v3379_v28 = vunpack.c.h.bf16 %v3372_v23  ;;  %v3378_v27 = vunpack.c.l.bf16 %v3372_v23 }
 0xa17   : > { %v3394_v47 = vrot.slane %v3379_v28, 6 }
 0xa19   : > { %v3400_v17 = vsel %vm1550_vm2, %v3378_v27, %v3394_v47 }
 0xa1a   : > { %v3292_v29 = vpop.f32.mrf.mxu3 }
 0xa1b   : > { %v3357_v1 = vpop.f32.mrf.mxu2 }
 0xa1c   : > { %v3316_v53 = vpop.f32.mrf.mxu0 }
 0xa1d   : > { %v3373_v54 = vpack.c.bf16 %v3316_v53, %v3303_v21  ;;  %v3342_v49 = vpop.f32.mrf.mxu1 }
 0xa1f   : > { %v3380_v11 = vunpack.c.l.bf16 %v3373_v54  ;;  %v3381_v6 = vunpack.c.h.bf16 %v3373_v54 }
 0xa21   : > { %v3395_v61 = vrot.slane %v3380_v11, 4  ;;  %v3396_v55 = vrot.slane %v3381_v6, 2 }
 0xa22   : > { %v3329_v12 = vpop.f32.mrf.mxu3 }
 0xa23   : > { %v3401_v42 = vsel %vm1552_vm3, %v3395_v61, %v3396_v55  ;;  %v3374_v57 = vpack.c.bf16 %v3342_v49, %v3329_v12 }
 0xa24   : > { %v3402_v10 = vsel %vm1554_vm4, %v3400_v17, %v3401_v42  ;;  %v3318_v43 = vpop.f32.mrf.mxu0 }
 0xa25   : > { %v3408_v50 = vmul.f32 %v3402_v10, %v3376_v25  ;;  %v3344_v20 = vpop.f32.mrf.mxu1  ;;  %v3383_v15 = vunpack.c.h.bf16 %v3374_v57  ;;  %v3382_v40 = vunpack.c.l.bf16 %v3374_v57 }
 0xa27   : > { %v3412_v59 = vperm.slane %v3408_v50, 0  ;;  %v3413_v14 = vperm.slane %v3408_v50, 2  ;;  %v3414_v62 = vperm.slane %v3408_v50, 4  ;;  %v3415_v63 = vperm.slane %v3408_v50, 6 }
 0xa28   : > { %v3397_v9 = vrot.slane %v3383_v15, 6 }
 0xa29   : > { %v3428_v48 = vpack.c.bf16 %v3412_v59, %v3412_v59  ;;  %v3429_v44 = vpack.c.bf16 %v3413_v14, %v3413_v14  ;;  %v3430_v32 = vpack.c.bf16 %v3414_v62, %v3414_v62  ;;  %v3431_v31 = vpack.c.bf16 %v3415_v63, %v3415_v63  ;;  %v4350_v59 = vld [vmem:[%s5966_s13 + $0x3] sm:$0x1] }
 0xa2a   : > { %v3331_v38 = vpop.f32.mrf.mxu3  ;;  %v3403_v51 = vsel %vm1550_vm2, %v3382_v40, %v3397_v9 }
 0xa2b   : > { %3444 = vmatmul.bf16.vlgmr.msrb.gmra.mxu3 %v3428_v48  ;;  %3457 = vmatmul.bf16.vlgmr.msra.gmra.mxu1 %v3429_v44 }
 0xa2c   : > { %3470 = vmatmul.bf16.vlgmr.msra.gmra.mxu2 %v3430_v32  ;;  %3483 = vmatmul.bf16.vlgmr.msra.gmra.mxu0 %v3431_v31  ;;  %v3368_v35 = vpop.f32.mrf.mxu0 }
 0xa2d   : > { %v3375_v33 = vpack.c.bf16 %v3368_v35, %v3355_v4  ;;  %3540 = vmatpush.bf16.msrb.mxu3 %v6899_v41 }
 0xa2f   : > { %v3384_v19 = vunpack.c.l.bf16 %v3375_v33  ;;  %v3385_v39 = vunpack.c.h.bf16 %v3375_v33 }
 0xa31   : > { %v3398_v26 = vrot.slane %v3384_v19, 4  ;;  %v3399_v30 = vrot.slane %v3385_v39, 2  ;;  %3541 = vmatpush.bf16.msrb.mxu3 %v6908_v22 }
 0xa33   : > { %v3404_v5 = vsel %vm1552_vm3, %v3398_v26, %v3399_v30 }
 0xa34   : > { %v3405_v16 = vsel %vm1554_vm4, %v3403_v51, %v3404_v5  ;;  %v3370_v37 = vpop.f32.mrf.mxu0 }
 0xa35   : > { %v3409_v3 = vmul.f32 %v3405_v16, %v3377_v52  ;;  %3542 = vmatpush.bf16.msrb.mxu3 %v6920_v18  ;;  %v4339_v18 = vld [vmem:[%s5853_s30 + $0x3] sm:$0x1] }
 0xa37   : > { %v3416_v41 = vperm.slane %v3409_v3, 0  ;;  %v3417_v8 = vperm.slane %v3409_v3, 2  ;;  %v3418_v58 = vperm.slane %v3409_v3, 4  ;;  %v3419_v21 = vperm.slane %v3409_v3, 6 }
 0xa39   : > { %3543 = vmatpush.bf16.msrb.mxu3 %v6929_v24  ;;  %v3432_v36 = vpack.c.bf16 %v3416_v41, %v3416_v41  ;;  %v3433_v4 = vpack.c.bf16 %v3417_v8, %v3417_v8  ;;  %v3434_v22 = vpack.c.bf16 %v3418_v58, %v3418_v58  ;;  %v3435_v34 = vpack.c.bf16 %v3419_v21, %v3419_v21 }
 0xa3b   : > { %3496 = vmatmul.bf16.vlgmr.msra.gmra.mxu3 %v3432_v36  ;;  %3509 = vmatmul.bf16.vlgmr.msrb.gmra.mxu1 %v3433_v4 }
 0xa3c   : > { %3522 = vmatmul.bf16.vlgmr.msrb.gmra.mxu2 %v3434_v22  ;;  %3535 = vmatmul.bf16.vlgmr.msrb.gmra.mxu0 %v3435_v34 }
 0xa3d   : > { %3544 = vmatpush.bf16.msrb.mxu3 %v6945_v2 }
 0xa41   : > { %3545 = vmatpush.bf16.msrb.mxu3 %v6954_v0 }
 0xa45   : > { %3546 = vmatpush.bf16.msrb.mxu3 %v6965_v60 }
 0xa49   : > { %3547 = vmatpush.bf16.msrb.mxu3 %v6975_v56 }
 0xa4c   : > { %3548 = vmatmul.bf16.vlgmr.msrb.gmra.mxu3 %v4339_v18 }
 0xaa8   : > { %v3458_v13 = vpop.f32.mrf.mxu1 }
 0xaa9   : > { %v3484_v24 = vpop.f32.mrf.mxu0 }
 0xaae   : > { %v3445_v23 = vpop.f32.mrf.mxu3 }
 0xaaf   : > { %v3471_v29 = vpop.f32.mrf.mxu2  ;;  %v3459_v49 = vadd.f32 %v3458_v13, %v3445_v23 }
 0xab0   : > { %v3460_v28 = vpop.f32.mrf.mxu1 }
 0xab1   : > { %v3486_v1 = vpop.f32.mrf.mxu0  ;;  %v3472_v2 = vadd.f32 %v3471_v29, %v3459_v49 }
 0xab3   : > { %v3485_v6 = vadd.f32 %v3484_v24, %v3472_v2 }
 0xab6   : > { %v3447_v53 = vpop.f32.mrf.mxu3 }
 0xab7   : > { %v3473_v54 = vpop.f32.mrf.mxu2 }
 0xab8   : > { %v3510_v46 = vpop.f32.mrf.mxu1 }
 0xab9   : > { %v3536_v47 = vpop.f32.mrf.mxu0 }
 0xabe   : > { %v3497_v11 = vpop.f32.mrf.mxu3 }
 0xabf   : > { %v3523_v0 = vpop.f32.mrf.mxu2  ;;  %v3498_v27 = vadd.f32 %v3497_v11, %v3485_v6 }
 0xac0   : > { %v3512_v60 = vpop.f32.mrf.mxu1 }
 0xac1   : > { %v3538_v56 = vpop.f32.mrf.mxu0  ;;  %v3511_v25 = vadd.f32 %v3510_v46, %v3498_v27 }
 0xac3   : > { %v3524_v12 = vadd.f32 %v3523_v0, %v3511_v25 }
 0xac5   : > { %v3537_v17 = vadd.f32 %v3536_v47, %v3524_v12 }
 0xac6   : > { %v3499_v61 = vpop.f32.mrf.mxu3 }
 0xac7   : > { %v3525_v55 = vpop.f32.mrf.mxu2 }
 0xacf   : > { %v3549_v42 = vpop.f32.mrf.mxu3 }
 0xad0   : > { %v3550_v10 = vadd.f32 %v3549_v42, %v3537_v17 }
 0xad2   : > { %v3553_v43 = vadd.f32 %v7065_v7, %v3550_v10 }
 0xad4   : > { %4552 = vtanh.f32 %v3553_v43 }
 0xad7   : > { %v3551_v50 = vpop.f32.mrf.mxu3 }
 0xada   : > { %v4553_v20 = vpop.eup %4552 }
 0xadb   : > { %v3555_v57 = vpack.c.bf16 %v4553_v20, %v4553_v20 }
 0xadd   : > { %v3558_v14 = vsel %vm5968_vm7, %v3555_v57, %v4350_v59 }
 0xade   : > { %4351 = vst [vmem:[%s5966_s13 + $0x3] sm:$0x1] %v3558_v14 }
 0xadf PF: > { %s20_s15 = sadd.s32 1, %s4722_s15   ;;  %s7815_s13 = smov %s4718_s14 }
 0xae0   : > { %p17_p5 = scmp.ge.s32.totalorder %s20_s15, 4   ;;  %s7816_s14 = smov %s7818_s16 }
 0xae2   :  { %19 = sbr.rel (!%p17_p5) target bundleno = 2 (0x2), region = 114 }

// kernel: kgcn_forward.2
= control target key start
LH: loop header
LB: loop body
LE: loop exit
PB: predicated region body
PF: predicated region fallthrough
CT: control target
= control target key end

     0   :  { %s5280_s13 = smov 0   ;;  %s5282_s14 = smov 0   ;;  %s7611_s0 = inlined_call_operand.vmem [shape: bf16[8,3,128], index: 0, kind: input, shape index: {}]   ;;  %s7612_s1 = inlined_call_operand.vmem [shape: bf16[8,3,1024], index: 1, kind: input, shape index: {}]   ;;  %s7613_s2 = inlined_call_operand.vmem [shape: bf16[8,3,1024], index: 2, kind: input, shape index: {}]   ;;  %s7614_s3 = inlined_call_operand.vmem [shape: bf16[8,1,1024], index: 3, kind: input, shape index: {}]   ;;  %s7615_s4 = inlined_call_operand.vmem [shape: bf16[128,128], index: 4, kind: input, shape index: {}]   ;;  %s7616_s5 = inlined_call_operand.vmem [shape: bf16[1024,128], index: 5, kind: input, shape index: {}]   ;;  %s7617_s6 = inlined_call_operand.vmem [shape: f32[1,128], index: 6, kind: input, shape index: {}]   ;;  %s7618_s7 = inlined_call_operand.vmem [shape: bf16[1024,32], index: 7, kind: input, shape index: {}]   ;;  %s7619_s8 = inlined_call_operand.vmem [shape: f32[32,32], index: 8, kind: input, shape index: {}]   ;;  %s7620_s9 = inlined_call_operand.vmem [shape: bf16[32,1024], index: 9, kind: input, shape index: {}]   ;;  %s7621_s10 = inlined_call_operand.vmem [shape: bf16[8,3,128], index: 10, kind: output, shape index: {}]  }
   0x1   :  { %s5284_s15 = smov 0  }
   0x2 LB: > { %s32_s16 = sadd.s32 1, %s5219_s14  ;;  %p4124_p0 = scmp.ge.s32.totalorder %s5223_s15, 1  ;;  %s5223_s15 = sphi %s5284_s15, %s20_s15   ;;  %s5219_s14 = sphi %s5282_s14, %s8121_s14   ;;  %s5215_s13 = sphi %s5280_s13, %s8120_s13  }
   0x3   : > { %p34_p1 = scmp.ge.s32.totalorder %s32_s16, 2  ;;  %p379_p2 = scmp.lt.s32.totalorder %s5223_s15, 3 }
   0x5   : > { %s8123_s16 = smov (%p34_p1, %s32_s16), 0  ;;  %p380_p3 = pnand %p4124_p0, %p379_p2 }
   0x7   : > { %383 = sbr.rel (%p380_p3) target bundleno = 2776 (0xad8), region = 60 }
   0xc   : > { %v4892_v0 = vld [vmem:[%s7618_s7 + $0x38] sm:$0xff]  ;;  %s4125_s23 = sshll.u32 %s5215_s13, 2  ;;  %v5313_v4 = vld [vmem:[%s7618_s7 + $0x30] sm:$0xff]  ;;  %v5330_v8 = vld [vmem:[%s7618_s7 + $0x28] sm:$0xff]  ;;  %vm852_vm0 = vcmask 1043456   ;;  %vm1388_vm1 = vcmask 256000  }
   0xd   : > { %v4900_v1 = vld [vmem:[%s7618_s7 + $0x78] sm:$0xff]  ;;  %p449_p4 = scmp.lt.s32.totalorder %s4125_s23, 7  ;;  %1284 = vmatpush.bf16.msra.mxu0 %v4892_v0  ;;  %v4899_v5 = vld [vmem:[%s7618_s7 + $0x70] sm:$0xff]  ;;  %v4898_v9 = vld [vmem:[%s7618_s7 + $0x68] sm:$0xff]  ;;  %vm1395_vm2 = vcmask 261120   ;;  %vm2257_vm5 = vcmask 1041408  }
   0xe   : > { %v4908_v2 = vld [vmem:[%s7618_s7 + $0xb8] sm:$0xff]  ;;  %1297 = vmatpush.bf16.msra.mxu1 %v4900_v1  ;;  %v4907_v6 = vld [vmem:[%s7618_s7 + $0xb0] sm:$0xff]  ;;  %v4906_v10 = vld [vmem:[%s7618_s7 + $0xa8] sm:$0xff]  ;;  %vm2258_vm6 = vsmask.f32 1280 }
   0xf   : > { %v4916_v3 = vld [vmem:[%s7618_s7 + $0xf8] sm:$0xff]  ;;  %1310 = vmatpush.bf16.msra.mxu2 %v4908_v2  ;;  %v4915_v7 = vld [vmem:[%s7618_s7 + $0xf0] sm:$0xff]  ;;  %s8125_s23 = smov (!%p449_p4, %s4125_s23), 7  ;;  %v4914_v11 = vld [vmem:[%s7618_s7 + $0xe8] sm:$0xff] }
  0x10   : > { %1323 = vmatpush.bf16.msra.mxu3 %v4916_v3  ;;  %s4134_s26 = sshll.u32 %s8125_s23, 3  ;;  %v5346_v12 = vld [vmem:[%s7618_s7 + $0x20] sm:$0xff]  ;;  %v5367_v17 = vld [vmem:[%s7618_s7 + $0x18] sm:$0xff]  ;;  %v5390_v21 = vld [vmem:[%s7618_s7 + $0x10] sm:$0xff]  ;;  %s4126_s18 = sshll.u32 %s8125_s23, 1 }
  0x11   : > { %1285 = vmatpush.bf16.msra.mxu0 %v5313_v4  ;;  %v4897_v13 = vld [vmem:[%s7618_s7 + $0x60] sm:$0xff]  ;;  %s5354_s13 = scalar_lea.vmem %s7614_s3, %s4134_s26  ;;  %v4896_v18 = vld [vmem:[%s7618_s7 + $0x58] sm:$0xff]  ;;  %s4811_s26 = sshll.u32 %s8125_s23, 4  ;;  %v4895_v22 = vld [vmem:[%s7618_s7 + $0x50] sm:$0xff] }
  0x12   : > { %1298 = vmatpush.bf16.msra.mxu1 %v4899_v5  ;;  %v4905_v14 = vld [vmem:[%s7618_s7 + $0xa0] sm:$0xff]  ;;  %v4904_v19 = vld [vmem:[%s7618_s7 + $0x98] sm:$0xff]  ;;  %s5384_s17 = scalar_lea.vmem %s7613_s2, %s4811_s26  ;;  %v4903_v23 = vld [vmem:[%s7618_s7 + $0x90] sm:$0xff]  ;;  %s6163_s22 = scalar_lea.vmem %s7612_s1, %s4811_s26 }
  0x13   : > { %1311 = vmatpush.bf16.msra.mxu2 %v4907_v6  ;;  %v4913_v15 = vld [vmem:[%s7618_s7 + $0xe0] sm:$0xff]  ;;  %v4912_v20 = vld [vmem:[%s7618_s7 + $0xd8] sm:$0xff]  ;;  %v4911_v24 = vld [vmem:[%s7618_s7 + $0xd0] sm:$0xff]  ;;  %s6351_s27 = scalar_lea.vmem %s7611_s0, %s4126_s18  ;;  %s6531_s28 = scalar_lea.vmem %s7621_s10, %s4126_s18 }
  0x14   : > { %1324 = vmatpush.bf16.msra.mxu3 %v4915_v7  ;;  %v793_v16 = vld [vmem:[%s5354_s13] sm:$0xff]  ;;  %v4886_v25 = vld [vmem:[%s7618_s7 + $0x8] sm:$0xff]  ;;  %v5437_v1 = vld [vmem:[%s7618_s7 + $0x138] sm:$0xff] }
  0x15   : > { %1286 = vmatpush.bf16.msra.mxu0 %v5330_v8  ;;  %795 = vst [vmem:[#allocation1] ss:$9 sm:$0xff] %v793_v16  ;;  %v5405_v26 = vld [vmem:[%s5384_s17] sm:$0xff]  ;;  %v4894_v30 = vld [vmem:[%s7618_s7 + $0x48] sm:$0xff]  ;;  %v4932_v2 = vld [vmem:[%s7618_s7 + $0x178] sm:$0xff] }
  0x16   : > { %1299 = vmatpush.bf16.msra.mxu1 %v4898_v9  ;;  %v4902_v36 = vld [vmem:[%s7618_s7 + $0x88] sm:$0xff]  ;;  %v829_v38 = vunpack.c.h.bf16 %v5405_v26  ;;  %v828_v44 = vunpack.c.l.bf16 %v5405_v26  ;;  %v5423_v53 = vld [vmem:[%s7618_s7] sm:$0xff]  ;;  %v4940_v9 = vld [vmem:[%s7618_s7 + $0x1b8] sm:$0xff] }
  0x17   : > { %1312 = vmatpush.bf16.msra.mxu2 %v4906_v10  ;;  %v4910_v37 = vld [vmem:[%s7618_s7 + $0xc8] sm:$0xff]  ;;  %v4893_v54 = vld [vmem:[%s7618_s7 + $0x40] sm:$0xff]  ;;  %v4948_v10 = vld [vmem:[%s7618_s7 + $0x1f8] sm:$0xff] }
  0x18   : > { %1325 = vmatpush.bf16.msra.mxu3 %v4914_v11  ;;  %v789_v49 = vld [vmem:[%s5384_s17 + $0x8] sm:$0xff]  ;;  %v4901_v59 = vld [vmem:[%s7618_s7 + $0x80] sm:$0xff]  ;;  %vm6534_vm9 = vmand %vm2257_vm5, %vm2258_vm6 }
  0x19   : > { %1287 = vmatpush.bf16.msra.mxu0 %v5346_v12  ;;  %v4909_v60 = vld [vmem:[%s7618_s7 + $0xc0] sm:$0xff]  ;;  %v830_v6 = vunpack.c.l.bf16 %v789_v49 }
  0x1a   : > { %1300 = vmatpush.bf16.msra.mxu1 %v4897_v13 }
  0x1b   : > { %1313 = vmatpush.bf16.msra.mxu2 %v4905_v14 }
  0x1c   : > { %1326 = vmatpush.bf16.msra.mxu3 %v4913_v15  ;;  %v797_v27 = vld [vmem:[#allocation1 + $0x9] sm:$0xff]  ;;  %v798_v28 = vld [vmem:[#allocation1 + $0x12] sm:$0xff]  ;;  %v799_v29 = vld [vmem:[#allocation1 + $0x1b] sm:$0xff] }
  0x1d   : > { %1288 = vmatpush.bf16.msra.mxu0 %v5367_v17  ;;  %v801_v31 = vld [vmem:[#allocation1 + $0x2d] sm:$0xff]  ;;  %v810_v32 = vpack.i.b16 %v798_v28, %v798_v28  ;;  %v813_v33 = vpack.i.b16 %v799_v29, %v799_v29  ;;  %v796_v34 = vld [vmem:[#allocation1] sm:$0xff]  ;;  %v807_v35 = vpack.i.b16 %v797_v27, %v797_v27  ;;  %v802_v46 = vld [vmem:[#allocation1 + $0x36] sm:$0xff] }
  0x1e   : > { %1301 = vmatpush.bf16.msra.mxu1 %v4896_v18  ;;  %v804_v39 = vpack.i.b16 %v796_v34, %v796_v34  ;;  %v819_v40 = vpack.i.b16 %v801_v31, %v801_v31  ;;  %v800_v45 = vld [vmem:[#allocation1 + $0x24] sm:$0xff]  ;;  %v822_v52 = vpack.i.b16 %v802_v46, %v802_v46  ;;  %v4939_v28 = vld [vmem:[%s7618_s7 + $0x1b0] sm:$0xff] }
  0x1f   : > { %1314 = vmatpush.bf16.msra.mxu2 %v4904_v19  ;;  %v812_v41 = vperm.slane %v810_v32, 0  ;;  %v815_v42 = vperm.slane %v813_v33, 0  ;;  %v809_v43 = vperm.slane %v807_v35, 0  ;;  %v803_v47 = vld [vmem:[#allocation1 + $0x3f] sm:$0xff]  ;;  %v816_v50 = vpack.i.b16 %v800_v45, %v800_v45  ;;  %v4947_v29 = vld [vmem:[%s7618_s7 + $0x1f0] sm:$0xff]  ;;  %v5472_v32 = vld [vmem:[%s7618_s7 + $0x128] sm:$0xff] }
  0x20   : > { %1327 = vmatpush.bf16.msra.mxu3 %v4912_v20  ;;  %v806_v48 = vperm.slane %v804_v39, 0  ;;  %v821_v51 = vperm.slane %v819_v40, 0  ;;  %v825_v58 = vpack.i.b16 %v803_v47, %v803_v47  ;;  %v824_v0 = vperm.slane %v822_v52, 0  ;;  %v5477_v33 = vld [vmem:[%s7618_s7 + $0x168] sm:$0xff]  ;;  %v5503_v46 = vld [vmem:[%s7618_s7 + $0x1a0] sm:$0xff]  ;;  %v5534_v52 = vld [vmem:[%s7618_s7 + $0x110] sm:$0xff] }
  0x21   : > { %1289 = vmatpush.bf16.msra.mxu0 %v5390_v21  ;;  %v834_v55 = vunpack.c.l.bf16 %v812_v41  ;;  %v835_v56 = vunpack.c.l.bf16 %v815_v42  ;;  %v833_v57 = vunpack.c.l.bf16 %v809_v43  ;;  %v818_v62 = vperm.slane %v816_v50, 0  ;;  %v5482_v34 = vld [vmem:[%s7618_s7 + $0x1a8] sm:$0xff]  ;;  %v4945_v47 = vld [vmem:[%s7618_s7 + $0x1e0] sm:$0xff]  ;;  %v5524_v50 = vld [vmem:[%s7618_s7 + $0x198] sm:$0xff] }
  0x22   : > { %1302 = vmatpush.bf16.msra.mxu1 %v4895_v22  ;;  %v832_v61 = vunpack.c.l.bf16 %v806_v48  ;;  %v837_v63 = vunpack.c.l.bf16 %v821_v51  ;;  %v827_v7 = vperm.slane %v825_v58, 0  ;;  %v838_v16 = vunpack.c.l.bf16 %v824_v0  ;;  %v4946_v35 = vld [vmem:[%s7618_s7 + $0x1e8] sm:$0xff]  ;;  %v5513_v48 = vld [vmem:[%s7618_s7 + $0x118] sm:$0xff]  ;;  %v4941_v0 = vld [vmem:[%s7618_s7 + $0x1c0] sm:$0xff] }
  0x23   : > { %1315 = vmatpush.bf16.msra.mxu2 %v4903_v23  ;;  %v849_v3 = vrot.slane %v835_v56, 4  ;;  %v848_v5 = vrot.slane %v833_v57, 4  ;;  %v836_v11 = vunpack.c.l.bf16 %v818_v62  ;;  %v831_v23 = vunpack.c.h.bf16 %v789_v49  ;;  %v5518_v49 = vld [vmem:[%s7618_s7 + $0x158] sm:$0xff]  ;;  %v4943_v56 = vld [vmem:[%s7618_s7 + $0x1d0] sm:$0xff]  ;;  %v5555_v57 = vld [vmem:[%s7618_s7 + $0x108] sm:$0xff] }
  0x24   : > { %1328 = vmatpush.bf16.msra.mxu3 %v4911_v24  ;;  %v850_v13 = vrot.slane %v837_v63, 4  ;;  %v839_v18 = vunpack.c.l.bf16 %v827_v7  ;;  %v5456_v24 = vld [vmem:[%s7618_s7 + $0x130] sm:$0xff]  ;;  %v4944_v51 = vld [vmem:[%s7618_s7 + $0x1d8] sm:$0xff]  ;;  %v5560_v58 = vld [vmem:[%s7618_s7 + $0x148] sm:$0xff] }
  0x25   : > { %1290 = vmatpush.bf16.msra.mxu0 %v4886_v25  ;;  %v854_v14 = vsel %vm852_vm0, %v834_v55, %v849_v3  ;;  %v853_v15 = vsel %vm852_vm0, %v832_v61, %v848_v5  ;;  %v4931_v25 = vld [vmem:[%s7618_s7 + $0x170] sm:$0xff]  ;;  %v5574_v61 = vld [vmem:[%s7618_s7 + $0x100] sm:$0xff] }
  0x26   : > { %1303 = vmatpush.bf16.msra.mxu1 %v4894_v30  ;;  %v862_v19 = vmul.f32 %v854_v14, %v829_v38  ;;  %v861_v20 = vmul.f32 %v853_v15, %v828_v44  ;;  %v855_v22 = vsel %vm852_vm0, %v836_v11, %v850_v13  ;;  %v851_v27 = vrot.slane %v839_v18, 4  ;;  %v5545_v55 = vld [vmem:[%s7618_s7 + $0x190] sm:$0xff]  ;;  %v5579_v62 = vld [vmem:[%s7618_s7 + $0x140] sm:$0xff] }
  0x27   : > { %1316 = vmatpush.bf16.msra.mxu2 %v4902_v36  ;;  %v863_v26 = vmul.f32 %v855_v22, %v830_v6  ;;  %v5490_v36 = vld [vmem:[%s7618_s7 + $0x120] sm:$0xff] }
  0x28   : > { %1329 = vmatpush.bf16.msra.mxu3 %v4910_v37  ;;  %871 = vst [vmem:[#allocation1 + $0x10] ss:$2 sm:$0xff] %v862_v19  ;;  %v856_v30 = vsel %vm852_vm0, %v838_v16, %v851_v27  ;;  %v5495_v37 = vld [vmem:[%s7618_s7 + $0x160] sm:$0xff] }
  0x29   : > { %1291 = vmatpush.bf16.msra.mxu0 %v5423_v53  ;;  %869 = vst [vmem:[#allocation1] ss:$2 sm:$0xff] %v861_v20  ;;  %v864_v31 = vmul.f32 %v856_v30, %v831_v23  ;;  %v5584_v63 = vld [vmem:[%s7618_s7 + $0x180] sm:$0xff] }
  0x2a   : > { %1304 = vmatpush.bf16.msra.mxu1 %v4893_v54  ;;  %873 = vst [vmem:[#allocation1 + $0x20] ss:$2 sm:$0xff] %v863_v26  ;;  %v5539_v54 = vld [vmem:[%s7618_s7 + $0x150] sm:$0xff] }
  0x2b   : > { %1317 = vmatpush.bf16.msra.mxu2 %v4901_v59  ;;  %875 = vst [vmem:[#allocation1 + $0x30] ss:$2 sm:$0xff] %v864_v31  ;;  %v5566_v59 = vld [vmem:[%s7618_s7 + $0x188] sm:$0xff] }
  0x2c   : > { %1330 = vmatpush.bf16.msra.mxu3 %v4909_v60  ;;  %v4942_v60 = vld [vmem:[%s7618_s7 + $0x1c8] sm:$0xff] }
  0x2d   : > { %1336 = vmatpush.bf16.msrb.mxu0 %v5437_v1 }
  0x2e   : > { %1349 = vmatpush.bf16.msrb.mxu1 %v4932_v2 }
  0x2f   : > { %1362 = vmatpush.bf16.msrb.mxu2 %v4940_v9  ;;  %v878_v38 = vld.sshfl [vmem:[#allocation1 + $0x10] sm:$0xff pattern:$0x75316420]  ;;  %v879_v39 = vld.sshfl [vmem:[#allocation1 + $0x18] sm:$0xff pattern:$0x75316420] }
  0x30   : > { %1375 = vmatpush.bf16.msrb.mxu3 %v4948_v10  ;;  %v894_v40 = vpack.c.bf16 %v878_v38, %v878_v38  ;;  %v876_v41 = vld.sshfl [vmem:[#allocation1] sm:$0xff pattern:$0x75316420]  ;;  %v895_v42 = vpack.c.bf16 %v879_v39, %v879_v39  ;;  %v877_v43 = vld.sshfl [vmem:[#allocation1 + $0x8] sm:$0xff pattern:$0x75316420] }
  0x31   : > { %1337 = vmatpush.bf16.msrb.mxu0 %v5456_v24  ;;  %v892_v44 = vpack.c.bf16 %v876_v41, %v876_v41  ;;  %v893_v45 = vpack.c.bf16 %v877_v43, %v877_v43  ;;  %v880_v2 = vld.sshfl [vmem:[#allocation1 + $0x20] sm:$0xff pattern:$0x75316420]  ;;  %v881_v3 = vld.sshfl [vmem:[#allocation1 + $0x28] sm:$0xff pattern:$0x75316420] }
  0x32   : > { %1350 = vmatpush.bf16.msrb.mxu1 %v4931_v25  ;;  %1318 = vmatmul.bf16.vlgmr.msra.gmra.mxu2 %v894_v40  ;;  %v882_v5 = vld.sshfl [vmem:[#allocation1 + $0x30] sm:$0xff pattern:$0x75316420]  ;;  %v883_v6 = vld.sshfl [vmem:[#allocation1 + $0x38] sm:$0xff pattern:$0x75316420]  ;;  %v896_v7 = vpack.c.bf16 %v880_v2, %v880_v2  ;;  %v897_v9 = vpack.c.bf16 %v881_v3, %v881_v3 }
  0x33   : > { %1363 = vmatpush.bf16.msrb.mxu2 %v4939_v28  ;;  %1331 = vmatmul.bf16.vlgmr.msra.gmra.mxu3 %v895_v42  ;;  %v898_v10 = vpack.c.bf16 %v882_v5, %v882_v5  ;;  %v899_v11 = vpack.c.bf16 %v883_v6, %v883_v6  ;;  %v4428_v5 = vld [vmem:[%s7620_s9 + $0x40] sm:$0xf] }
  0x34   : > { %1376 = vmatpush.bf16.msrb.mxu3 %v4947_v29  ;;  %1292 = vmatmul.bf16.vlgmr.msra.gmra.mxu0 %v892_v44  ;;  %v4961_v6 = vld [vmem:[%s7620_s9 + $0x5c] sm:$0xf0] }
  0x35   : > { %1338 = vmatpush.bf16.msrb.mxu0 %v5472_v32  ;;  %1305 = vmatmul.bf16.vlgmr.msra.gmra.mxu1 %v893_v45  ;;  %v5599_v45 = vld [vmem:[%s7619_s8 + $0x18] sm:$0xff] }
  0x36   : > { %1351 = vmatpush.bf16.msrb.mxu1 %v5477_v33 }
  0x37   : > { %1364 = vmatpush.bf16.msrb.mxu2 %v5482_v34 }
  0x38   : > { %1377 = vmatpush.bf16.msrb.mxu3 %v4946_v35 }
  0x39   : > { %1339 = vmatpush.bf16.msrb.mxu0 %v5490_v36 }
  0x3a   : > { %1352 = vmatpush.bf16.msrb.mxu1 %v5495_v37 }
  0x3b   : > { %1365 = vmatpush.bf16.msrb.mxu2 %v5503_v46 }
  0x3c   : > { %1378 = vmatpush.bf16.msrb.mxu3 %v4945_v47  ;;  %v5604_v47 = vld [vmem:[%s7619_s8 + $0x10] sm:$0xff] }
  0x3d   : > { %1340 = vmatpush.bf16.msrb.mxu0 %v5513_v48 }
  0x3e   : > { %1353 = vmatpush.bf16.msrb.mxu1 %v5518_v49 }
  0x3f   : > { %1366 = vmatpush.bf16.msrb.mxu2 %v5524_v50 }
  0x40   : > { %1379 = vmatpush.bf16.msrb.mxu3 %v4944_v51  ;;  %v5610_v51 = vld [vmem:[%s7619_s8 + $0x8] sm:$0xff] }
  0x41   : > { %1341 = vmatpush.bf16.msrb.mxu0 %v5534_v52 }
  0x42   : > { %1354 = vmatpush.bf16.msrb.mxu1 %v5539_v54 }
  0x43   : > { %1367 = vmatpush.bf16.msrb.mxu2 %v5545_v55 }
  0x44   : > { %1380 = vmatpush.bf16.msrb.mxu3 %v4943_v56  ;;  %v5616_v56 = vld [vmem:[%s7619_s8] sm:$0xff] }
  0x45   : > { %1342 = vmatpush.bf16.msrb.mxu0 %v5555_v57 }
  0x46   : > { %1355 = vmatpush.bf16.msrb.mxu1 %v5560_v58 }
  0x47   : > { %1368 = vmatpush.bf16.msrb.mxu2 %v5566_v59 }
  0x48   : > { %1381 = vmatpush.bf16.msrb.mxu3 %v4942_v60 }
  0x49   : > { %1343 = vmatpush.bf16.msrb.mxu0 %v5574_v61 }
  0x4a   : > { %1356 = vmatpush.bf16.msrb.mxu1 %v5579_v62 }
  0x4b   : > { %1369 = vmatpush.bf16.msrb.mxu2 %v5584_v63 }
  0x4c   : > { %1382 = vmatpush.bf16.msrb.mxu3 %v4941_v0  ;;  %1344 = vmatmul.bf16.vlgmr.msrb.gmra.mxu0 %v896_v7  ;;  %v4957_v7 = vld [vmem:[%s7620_s9 + $0x44] sm:$0xf] }
  0x4d   : > { %1357 = vmatmul.bf16.vlgmr.msrb.gmra.mxu1 %v897_v9  ;;  %1411 = vmatpush.msra.mxu0 %v5599_v45  ;;  %v5633_v9 = vor.u32 %v4961_v6, %v4428_v5  ;;  %v4404_v5 = vld [vmem:[%s7620_s9 + $0x8] sm:$0xf] }
  0x4e   : > { %1370 = vmatmul.bf16.vlgmr.msrb.gmra.mxu2 %v898_v10  ;;  %v4430_v10 = vld [vmem:[%s7620_s9 + $0x60] sm:$0xf0]  ;;  %v4954_v6 = vld [vmem:[%s7620_s9 + $0x24] sm:$0xf0] }
  0x4f   : > { %1383 = vmatmul.bf16.vlgmr.msrb.gmra.mxu3 %v899_v11  ;;  %1412 = vmatpush.msra.mxu0 %v5604_v47  ;;  %v4958_v11 = vld [vmem:[%s7620_s9 + $0x4c] sm:$0xf] }
  0x50   : > { %1511 = vmatpush.bf16.msra.mxu1 %v5633_v9 }
  0x51   : > { %1413 = vmatpush.msra.mxu0 %v5610_v51 }
  0x53   : > { %1414 = vmatpush.msra.mxu0 %v5616_v56 }
  0xb1   : > { %v1293_v13 = vpop.f32.mrf.mxu0 }
  0xb2   : > { %v1306_v14 = vpop.f32.mrf.mxu1 }
  0xb3   : > { %v1307_v20 = vadd.f32 %v1306_v14, %v1293_v13  ;;  %v4438_v13 = vld [vmem:[%s7620_s9 + $0x68] sm:$0xf0]  ;;  %v5644_v14 = vor.u32 %v4957_v7, %v4430_v10  ;;  %v4951_v7 = vld [vmem:[%s7620_s9 + $0x14] sm:$0xf]  ;;  %v5730_v10 = vor.u32 %v4954_v6, %v4404_v5 }
  0xb4   : > { %v5797_v5 = vld [vmem:[%s7616_s5 + $0xb0] sm:$0xff] }
  0xb5   : > { %v1319_v15 = vpop.f32.mrf.mxu2  ;;  %1524 = vmatpush.bf16.msra.mxu2 %v5644_v14  ;;  %7803 = vst [vmem:[#allocation14_spill] sm:$0xff] %v5797_v5  ;;  %v5803_v6 = vld [vmem:[%s7616_s5 + $0xf0] sm:$0xff] }
  0xb6   : > { %v1332_v16 = vpop.f32.mrf.mxu3  ;;  %v1320_v25 = vadd.f32 %v1319_v15, %v1307_v20  ;;  %v5646_v15 = vor.u32 %v4958_v11, %v4438_v13  ;;  %v4396_v20 = vld [vmem:[%s7620_s9] sm:$0xf]  ;;  %v4414_v11 = vld [vmem:[%s7620_s9 + $0x30] sm:$0xf0]  ;;  %v4952_v13 = vld [vmem:[%s7620_s9 + $0x1c] sm:$0xf] }
  0xb7   : > { %7804 = vst [vmem:[#allocation15_spill] sm:$0xff] %v5803_v6 }
  0xb8   : > { %v1333_v26 = vadd.f32 %v1332_v16, %v1320_v25  ;;  %v4452_v16 = vld [vmem:[%s7620_s9 + $0x58] sm:$0xf]  ;;  %1550 = vmatpush.bf16.msrb.mxu0 %v5646_v15 }
  0xb9   : > { %v1295_v18 = vpop.f32.mrf.mxu0 }
  0xba   : > { %v1308_v19 = vpop.f32.mrf.mxu1  ;;  %v4964_v18 = vld [vmem:[%s7620_s9 + $0x74] sm:$0xf0] }
  0xbb   : > { %v5655_v19 = vor.u32 %v4964_v18, %v4452_v16  ;;  %v4422_v16 = vld [vmem:[%s7620_s9 + $0x38] sm:$0xf0]  ;;  %v5743_v18 = vor.u32 %v4951_v7, %v4414_v11  ;;  %v5811_v7 = vld [vmem:[%s7616_s5 + $0x68] sm:$0xff] }
  0xbc   : > { %7805 = vst [vmem:[#allocation16_spill] sm:$0xff] %v5811_v7  ;;  %v5816_v11 = vld [vmem:[%s7616_s5 + $0xa8] sm:$0xff] }
  0xbd   : > { %v1321_v22 = vpop.f32.mrf.mxu2  ;;  %7791 = vst [vmem:[#allocation2_spill] sm:$0xff] %v5655_v19  ;;  %1589 = vmatpush.bf16.msra.mxu3 %v5655_v19 }
  0xbe   : > { %v1334_v23 = vpop.f32.mrf.mxu3  ;;  %v4953_v22 = vld [vmem:[%s7620_s9 + $0x1c] sm:$0xf0]  ;;  %7795 = vst [vmem:[#allocation6_spill] sm:$0xff] %v5743_v18 }
  0xbf   : > { %v4949_v23 = vld [vmem:[%s7620_s9 + $0x4] sm:$0xf]  ;;  %v5669_v25 = vor.u32 %v4953_v22, %v4396_v20  ;;  %v5745_v20 = vor.u32 %v4952_v13, %v4422_v16  ;;  %7806 = vst [vmem:[#allocation17_spill] sm:$0xff] %v5816_v11  ;;  %v5822_v13 = vld [vmem:[%s7616_s5 + $0xe8] sm:$0xff] }
  0xc0   : > { %7807 = vst [vmem:[#allocation18_spill] sm:$0xff] %v5822_v13  ;;  %v5829_v16 = vld [vmem:[%s7616_s5 + $0x60] sm:$0xff] }
  0xc1   : > { %1512 = vmatpush.bf16.msra.mxu1 %v5669_v25  ;;  %7796 = vst [vmem:[#allocation7_spill] sm:$0xff] %v5745_v20 }
  0xc2   : > { %7808 = vst [vmem:[#allocation19_spill] sm:$0xff] %v5829_v16 }
  0xc9   : > { %v1345_v27 = vpop.f32.mrf.mxu0 }
  0xca   : > { %v1358_v28 = vpop.f32.mrf.mxu1  ;;  %v1346_v29 = vadd.f32 %v1345_v27, %v1333_v26  ;;  %v4398_v26 = vld [vmem:[%s7620_s9 + $0x20] sm:$0xf0]  ;;  %v4950_v27 = vld [vmem:[%s7620_s9 + $0xc] sm:$0xf] }
  0xcc   : > { %v1359_v30 = vadd.f32 %v1358_v28, %v1346_v29  ;;  %v4406_v28 = vld [vmem:[%s7620_s9 + $0x28] sm:$0xf0]  ;;  %v5680_v29 = vor.u32 %v4949_v23, %v4398_v26  ;;  %v4444_v26 = vld [vmem:[%s7620_s9 + $0x50] sm:$0xf] }
  0xce   : > { %1525 = vmatpush.bf16.msra.mxu2 %v5680_v29 }
  0xd1   : > { %v1371_v31 = vpop.f32.mrf.mxu2  ;;  %v1347_v39 = vpop.f32.mrf.mxu0 }
  0xd2   : > { %v1384_v35 = vpop.f32.mrf.mxu3  ;;  %v1372_v38 = vadd.f32 %v1371_v31, %v1359_v30  ;;  %v1360_v40 = vpop.f32.mrf.mxu1  ;;  %v5682_v30 = vor.u32 %v4950_v27, %v4406_v28  ;;  %v4420_v31 = vld [vmem:[%s7620_s9 + $0x18] sm:$0xf]  ;;  %v4436_v39 = vld [vmem:[%s7620_s9 + $0x48] sm:$0xf]  ;;  %v4963_v27 = vld [vmem:[%s7620_s9 + $0x6c] sm:$0xf0] }
  0xd3   : > { %v4962_v40 = vld [vmem:[%s7620_s9 + $0x64] sm:$0xf0] }
  0xd4   : > { %v1385_v41 = vadd.f32 %v1384_v35, %v1372_v38  ;;  %v4956_v35 = vld [vmem:[%s7620_s9 + $0x34] sm:$0xf0]  ;;  %1551 = vmatpush.bf16.msrb.mxu0 %v5682_v30 }
  0xd5   : > { %v5691_v38 = vor.u32 %v4956_v35, %v4420_v31  ;;  %v5757_v35 = vor.u32 %v4963_v27, %v4444_v26  ;;  %v5845_v26 = vld [vmem:[%s7616_s5 + $0xe0] sm:$0xff]  ;;  %v5852_v27 = vld [vmem:[%s7616_s5 + $0x58] sm:$0xff] }
  0xd6   : > { %v1389_v42 = vsel %vm1388_vm1, %v1385_v41, -inf  ;;  %7811 = vst [vmem:[#allocation22_spill] sm:$0xff] %v5845_v26 }
  0xd7   : > { %1390 = vmax.xlane.f32.xlu0 %v1389_v42  ;;  %7792 = vst [vmem:[#allocation3_spill] sm:$0xff] %v5691_v38  ;;  %1590 = vmatpush.bf16.msra.mxu3 %v5691_v38  ;;  %v5705_v42 = vor.u32 %v4962_v40, %v4436_v39  ;;  %v4412_v39 = vld [vmem:[%s7620_s9 + $0x10] sm:$0xf] }
  0xd8   : > { %7797 = vst [vmem:[#allocation8_spill] sm:$0xff] %v5757_v35  ;;  %v4955_v40 = vld [vmem:[%s7620_s9 + $0x2c] sm:$0xf0] }
  0xd9   : > { %v1373_v43 = vpop.f32.mrf.mxu2  ;;  %1537 = vmatpush.bf16.msrb.mxu1 %v5705_v42  ;;  %7812 = vst [vmem:[#allocation23_spill] sm:$0xff] %v5852_v27 }
  0xda   : > { %v1386_v44 = vpop.f32.mrf.mxu3  ;;  %v4446_v43 = vld [vmem:[%s7620_s9 + $0x70] sm:$0xf0] }
  0xdb   : > { %v4960_v44 = vld [vmem:[%s7620_s9 + $0x5c] sm:$0xf] }
  0xdd   : > { %1538 = vmatpush.bf16.msrb.mxu1 %v5730_v10 }
 0x14a   : > { %v1391_v60 = vpop.xlane.xlu0 %1390 }
 0x14b   : > { %v1392_v0 = vsub.f32 %v1385_v41, %v1391_v60  ;;  %v4959_v41 = vld [vmem:[%s7620_s9 + $0x54] sm:$0xf]  ;;  %v4454_v60 = vld [vmem:[%s7620_s9 + $0x78] sm:$0xf0] }
 0x14d   : > { %v1393_v2 = vmul.f32 1.442695, %v1392_v0  ;;  %v5716_v0 = vor.u32 %v4959_v41, %v4446_v43  ;;  %v5777_v41 = vld [vmem:[%s7616_s5 + $0xb8] sm:$0xff] }
 0x14e   : > { %7799 = vst [vmem:[#allocation10_spill] sm:$0xff] %v5777_v41  ;;  %v5782_v43 = vld [vmem:[%s7616_s5 + $0xf8] sm:$0xff]  ;;  %2094 = vmatpush.bf16.msrb.mxu3 %v5777_v41 }
 0x14f   : > { %4990 = vpow2.f32 %v1393_v2  ;;  %7793 = vst [vmem:[#allocation4_spill] sm:$0xff] %v5716_v0  ;;  %v5718_v2 = vor.u32 %v4960_v44, %v4454_v60  ;;  %1576 = vmatpush.bf16.msrb.mxu2 %v5716_v0  ;;  %v5785_v44 = vor.u32 %v4955_v40, %v4412_v39  ;;  %v5792_v60 = vld [vmem:[%s7616_s5 + $0x70] sm:$0xff]  ;;  %v5872_v40 = vld [vmem:[%s7616_s5 + $0xd8] sm:$0xff] }
 0x150   : > { %7800 = vst [vmem:[#allocation11_spill] sm:$0xff] %v5782_v43  ;;  %v5866_v39 = vld [vmem:[%s7616_s5 + $0x30] sm:$0xff] }
 0x151   : > { %7794 = vst [vmem:[#allocation5_spill] sm:$0xff] %v5718_v2 }
 0x152   : > { %7801 = vst [vmem:[#allocation12_spill] sm:$0xff] %v5785_v44  ;;  %2095 = vmatpush.bf16.msrb.mxu3 %v5797_v5 }
 0x153   : > { %1577 = vmatpush.bf16.msrb.mxu2 %v5743_v18  ;;  %7802 = vst [vmem:[#allocation13_spill] sm:$0xff] %v5792_v60 }
 0x154   : > { %7814 = vst [vmem:[#allocation25_spill] sm:$0xff] %v5866_v39 }
 0x155   : > { %v5620_v3 = vpop.eup %4990  ;;  %7815 = vst [vmem:[#allocation26_spill] sm:$0xff] %v5872_v40 }
 0x156   : > { %4393 = vmatmul.msk.f32.vlgmr.msra.gmra.mxu0 %vm1395_vm2, %v5620_v3  ;;  %2096 = vmatpush.bf16.msrb.mxu3 %v5816_v11 }
 0x157   : > { %1602 = vmatpush.bf16.msra.mxu0 %v5718_v2 }
 0x15b   : > { %1603 = vmatpush.bf16.msra.mxu0 %v5745_v20  ;;  %v6156_v20 = vld [vmem:[%s7616_s5 + $0x1c0] sm:$0xff] }
 0x15c   : > { %7862 = vst [vmem:[#allocation73_spill] sm:$0xff] %v6156_v20 }
 0x1d3   : > { %v1416_v22 = vpop.f32.mrf.mxu0 }
 0x1d4   : > { %4992 = vrcp.f32 %v1416_v22  ;;  %v5834_v22 = vld [vmem:[%s7616_s5 + $0xa0] sm:$0xff] }
 0x1d5   : > { %7809 = vst [vmem:[#allocation20_spill] sm:$0xff] %v5834_v22  ;;  %2097 = vmatpush.bf16.msrb.mxu3 %v5834_v22 }
 0x1da   : > { %v4993_v23 = vpop.eup %4992 }
 0x1db   : > { %v1420_v28 = vmul.f32 %v4993_v23, %v5620_v3  ;;  %v5772_v3 = vld [vmem:[%s7616_s5 + $0x78] sm:$0xff] }
 0x1dc   : > { %7798 = vst [vmem:[#allocation9_spill] sm:$0xff] %v5772_v3  ;;  %v5840_v23 = vld [vmem:[%s7616_s5 + $0x38] sm:$0xff] }
 0x1dd   : > { %v1421_v31 = vpack.c.bf16 %v1420_v28, %v1420_v28  ;;  %7810 = vst [vmem:[#allocation21_spill] sm:$0xff] %v5840_v23  ;;  %v5857_v28 = vld [vmem:[%s7616_s5 + $0x98] sm:$0xff] }
 0x1de   : > { %7813 = vst [vmem:[#allocation24_spill] sm:$0xff] %v5857_v28  ;;  %2098 = vmatpush.bf16.msrb.mxu3 %v5857_v28 }
 0x1df   : > { %4458 = vmatmul.msk.bf16.vlgmr.msra.gmra.mxu1 %vm1395_vm2, %v1421_v31  ;;  %4459 = vmatmul.msk.bf16.vlgmr.msra.gmra.mxu2 %vm1395_vm2, %v1421_v31 }
 0x1e0   : > { %4461 = vmatmul.msk.bf16.vlgmr.msrb.gmra.mxu0 %vm1395_vm2, %v1421_v31  ;;  %4464 = vmatmul.msk.bf16.vlgmr.msra.gmra.mxu3 %vm1395_vm2, %v1421_v31 }
 0x1e1   : > { %1563 = vmatpush.bf16.msra.mxu1 %v5757_v35  ;;  %2081 = vmatpush.bf16.msra.mxu2 %v5772_v3 }
 0x1e2   : > { %2107 = vmatpush.bf16.msrb.mxu0 %v5782_v43  ;;  %v5904_v43 = vld [vmem:[%s7616_s5 + $0x20] sm:$0xff] }
 0x1e3   : > { %7820 = vst [vmem:[#allocation31_spill] sm:$0xff] %v5904_v43 }
 0x1e5   : > { %1564 = vmatpush.bf16.msra.mxu1 %v5785_v44  ;;  %2082 = vmatpush.bf16.msra.mxu2 %v5792_v60  ;;  %v6138_v60 = vld [vmem:[%s7616_s5 + $0x1c8] sm:$0xff] }
 0x1e6   : > { %2108 = vmatpush.bf16.msrb.mxu0 %v5803_v6  ;;  %v5884_v6 = vld [vmem:[%s7616_s5 + $0x90] sm:$0xff]  ;;  %7859 = vst [vmem:[#allocation70_spill] sm:$0xff] %v6138_v60 }
 0x1e7   : > { %7817 = vst [vmem:[#allocation28_spill] sm:$0xff] %v5884_v6  ;;  %2099 = vmatpush.bf16.msrb.mxu3 %v5884_v6 }
 0x1e9   : > { %2083 = vmatpush.bf16.msra.mxu2 %v5811_v7  ;;  %v5986_v7 = vld [vmem:[%s7616_s5 + $0x178] sm:$0xff] }
 0x1ea   : > { %2109 = vmatpush.bf16.msrb.mxu0 %v5822_v13  ;;  %v5879_v13 = vld [vmem:[%s7616_s5 + $0x50] sm:$0xff]  ;;  %7834 = vst [vmem:[#allocation45_spill] sm:$0xff] %v5986_v7 }
 0x1eb   : > { %7816 = vst [vmem:[#allocation27_spill] sm:$0xff] %v5879_v13 }
 0x1ed   : > { %2084 = vmatpush.bf16.msra.mxu2 %v5829_v16  ;;  %v5952_v16 = vld [vmem:[%s7616_s5 + $0x88] sm:$0xff] }
 0x1ee   : > { %2110 = vmatpush.bf16.msrb.mxu0 %v5845_v26  ;;  %v5890_v26 = vld [vmem:[%s7616_s5 + $0x28] sm:$0xff]  ;;  %7828 = vst [vmem:[#allocation39_spill] sm:$0xff] %v5952_v16  ;;  %2100 = vmatpush.bf16.msrb.mxu3 %v5952_v16 }
 0x1ef   : > { %4460 = vmatmul.msk.bf16.vlgmr.msrb.gmra.mxu1 %vm1395_vm2, %v1421_v31  ;;  %4463 = vmatmul.msk.bf16.vlgmr.msrb.gmra.mxu2 %vm1395_vm2, %v1421_v31  ;;  %7818 = vst [vmem:[#allocation29_spill] sm:$0xff] %v5890_v26 }
 0x1f0   : > { %4465 = vmatmul.msk.bf16.vlgmr.msra.gmra.mxu0 %vm1395_vm2, %v1421_v31  ;;  %2068 = vmatpush.bf16.msrb.mxu1 %v5840_v23 }
 0x1f1   : > { %2085 = vmatpush.bf16.msra.mxu2 %v5852_v27  ;;  %v5896_v27 = vld [vmem:[%s7616_s5 + $0xd0] sm:$0xff] }
 0x1f2   : > { %2111 = vmatpush.bf16.msrb.mxu0 %v5872_v40  ;;  %7819 = vst [vmem:[#allocation30_spill] sm:$0xff] %v5896_v27  ;;  %v5911_v40 = vld [vmem:[%s7616_s5 + $0x18] sm:$0xff] }
 0x1f3   : > { %7821 = vst [vmem:[#allocation32_spill] sm:$0xff] %v5911_v40 }
 0x1f4   : > { %2069 = vmatpush.bf16.msrb.mxu1 %v5866_v39 }
 0x1f5   : > { %2086 = vmatpush.bf16.msra.mxu2 %v5879_v13  ;;  %v5918_v13 = vld [vmem:[%s7616_s5 + $0x10] sm:$0xff] }
 0x1f6   : > { %2112 = vmatpush.bf16.msrb.mxu0 %v5896_v27  ;;  %7822 = vst [vmem:[#allocation33_spill] sm:$0xff] %v5918_v13  ;;  %v5924_v27 = vld [vmem:[%s7616_s5 + $0x8] sm:$0xff] }
 0x1f7   : > { %7823 = vst [vmem:[#allocation34_spill] sm:$0xff] %v5924_v27 }
 0x1f8   : > { %2070 = vmatpush.bf16.msrb.mxu1 %v5890_v26  ;;  %v5998_v26 = vld [vmem:[%s7616_s5 + $0x1f8] sm:$0xff] }
 0x1f9   : > { %7836 = vst [vmem:[#allocation47_spill] sm:$0xff] %v5998_v26 }
 0x1fc   : > { %2071 = vmatpush.bf16.msrb.mxu1 %v5904_v43  ;;  %v5969_v43 = vld [vmem:[%s7616_s5 + $0x128] sm:$0xff] }
 0x1fd   : > { %7831 = vst [vmem:[#allocation42_spill] sm:$0xff] %v5969_v43 }
 0x1ff   : > { %4462 = vmatmul.msk.bf16.vlgmr.msra.gmra.mxu1 %vm1395_vm2, %v1421_v31  ;;  %v5930_v31 = vld [vmem:[%s7616_s5] sm:$0xff] }
 0x200   : > { %2072 = vmatpush.bf16.msrb.mxu1 %v5911_v40  ;;  %7824 = vst [vmem:[#allocation35_spill] sm:$0xff] %v5930_v31  ;;  %v5935_v40 = vld [vmem:[%s7616_s5 + $0x138] sm:$0xff] }
 0x201   : > { %7825 = vst [vmem:[#allocation36_spill] sm:$0xff] %v5935_v40 }
 0x204   : > { %2073 = vmatpush.bf16.msrb.mxu1 %v5918_v13  ;;  %v5942_v13 = vld [vmem:[%s7616_s5 + $0x48] sm:$0xff] }
 0x205   : > { %7826 = vst [vmem:[#allocation37_spill] sm:$0xff] %v5942_v13  ;;  %2087 = vmatpush.bf16.msra.mxu2 %v5942_v13  ;;  %v5976_v13 = vld [vmem:[%s7616_s5 + $0x80] sm:$0xff] }
 0x206   : > { %7832 = vst [vmem:[#allocation43_spill] sm:$0xff] %v5976_v13  ;;  %2101 = vmatpush.bf16.msrb.mxu3 %v5976_v13 }
 0x208   : > { %2074 = vmatpush.bf16.msrb.mxu1 %v5924_v27  ;;  %v5947_v27 = vld [vmem:[%s7616_s5 + $0x130] sm:$0xff] }
 0x209   : > { %7827 = vst [vmem:[#allocation38_spill] sm:$0xff] %v5947_v27 }
 0x20c   : > { %2075 = vmatpush.bf16.msrb.mxu1 %v5930_v31  ;;  %v5957_v31 = vld [vmem:[%s7616_s5 + $0xc8] sm:$0xff] }
 0x20d   : > { %7829 = vst [vmem:[#allocation40_spill] sm:$0xff] %v5957_v31  ;;  %2113 = vmatpush.bf16.msrb.mxu0 %v5957_v31  ;;  %v5993_v31 = vld [vmem:[%s7616_s5 + $0x1b8] sm:$0xff] }
 0x20e   : > { %7835 = vst [vmem:[#allocation46_spill] sm:$0xff] %v5993_v31  ;;  %2146 = vmatpush.bf16.msra.mxu3 %v5993_v31 }
 0x210   : > { %2120 = vmatpush.bf16.msra.mxu1 %v5935_v40  ;;  %v5964_v40 = vld [vmem:[%s7616_s5 + $0x40] sm:$0xff] }
 0x211   : > { %7830 = vst [vmem:[#allocation41_spill] sm:$0xff] %v5964_v40  ;;  %2088 = vmatpush.bf16.msra.mxu2 %v5964_v40  ;;  %v6013_v40 = vld [vmem:[%s7616_s5 + $0x170] sm:$0xff] }
 0x212   : > { %7838 = vst [vmem:[#allocation49_spill] sm:$0xff] %v6013_v40 }
 0x214   : > { %2121 = vmatpush.bf16.msra.mxu1 %v5947_v27  ;;  %v5981_v27 = vld [vmem:[%s7616_s5 + $0xc0] sm:$0xff] }
 0x215   : > { %7833 = vst [vmem:[#allocation44_spill] sm:$0xff] %v5981_v27  ;;  %2114 = vmatpush.bf16.msrb.mxu0 %v5981_v27  ;;  %2133 = vmatpush.bf16.msrb.mxu2 %v5986_v7  ;;  %v6019_v27 = vld [vmem:[%s7616_s5 + $0x1b0] sm:$0xff] }
 0x216   : > { %7839 = vst [vmem:[#allocation50_spill] sm:$0xff] %v6019_v27  ;;  %v6024_v7 = vld [vmem:[%s7616_s5 + $0x1f0] sm:$0xff]  ;;  %2147 = vmatpush.bf16.msra.mxu3 %v6019_v27  ;;  %v6048_v27 = vld [vmem:[%s7616_s5 + $0x1e8] sm:$0xff] }
 0x217   : > { %7840 = vst [vmem:[#allocation51_spill] sm:$0xff] %v6024_v7 }
 0x218   : > { %2122 = vmatpush.bf16.msra.mxu1 %v5969_v43  ;;  %v6007_v43 = vld [vmem:[%s7616_s5 + $0x120] sm:$0xff]  ;;  %7844 = vst [vmem:[#allocation55_spill] sm:$0xff] %v6048_v27 }
 0x219   : > { %7837 = vst [vmem:[#allocation48_spill] sm:$0xff] %v6007_v43  ;;  %2159 = vmatpush.bf16.msra.mxu0 %v5998_v26  ;;  %2134 = vmatpush.bf16.msrb.mxu2 %v6013_v40  ;;  %v6031_v26 = vld [vmem:[%s7616_s5 + $0x118] sm:$0xff]  ;;  %v6043_v40 = vld [vmem:[%s7616_s5 + $0x1a8] sm:$0xff] }
 0x21a   : > { %7841 = vst [vmem:[#allocation52_spill] sm:$0xff] %v6031_v26  ;;  %2148 = vmatpush.bf16.msra.mxu3 %v6043_v40 }
 0x21b   : > { %7843 = vst [vmem:[#allocation54_spill] sm:$0xff] %v6043_v40  ;;  %v6072_v40 = vld [vmem:[%s7616_s5 + $0x1e0] sm:$0xff] }
 0x21c   : > { %2123 = vmatpush.bf16.msra.mxu1 %v6007_v43  ;;  %v6037_v43 = vld [vmem:[%s7616_s5 + $0x168] sm:$0xff]  ;;  %7848 = vst [vmem:[#allocation59_spill] sm:$0xff] %v6072_v40 }
 0x21d   : > { %2160 = vmatpush.bf16.msra.mxu0 %v6024_v7  ;;  %7842 = vst [vmem:[#allocation53_spill] sm:$0xff] %v6037_v43  ;;  %2135 = vmatpush.bf16.msrb.mxu2 %v6037_v43  ;;  %v6055_v7 = vld [vmem:[%s7616_s5 + $0x110] sm:$0xff]  ;;  %v6067_v43 = vld [vmem:[%s7616_s5 + $0x1a0] sm:$0xff] }
 0x21e   : > { %7845 = vst [vmem:[#allocation56_spill] sm:$0xff] %v6055_v7  ;;  %2149 = vmatpush.bf16.msra.mxu3 %v6067_v43 }
 0x21f   : > { %7847 = vst [vmem:[#allocation58_spill] sm:$0xff] %v6067_v43  ;;  %v6096_v43 = vld [vmem:[%s7616_s5 + $0x1d8] sm:$0xff] }
 0x220   : > { %2124 = vmatpush.bf16.msra.mxu1 %v6031_v26  ;;  %v6061_v26 = vld [vmem:[%s7616_s5 + $0x160] sm:$0xff]  ;;  %7852 = vst [vmem:[#allocation63_spill] sm:$0xff] %v6096_v43 }
 0x221   : > { %2161 = vmatpush.bf16.msra.mxu0 %v6048_v27  ;;  %7846 = vst [vmem:[#allocation57_spill] sm:$0xff] %v6061_v26  ;;  %2136 = vmatpush.bf16.msrb.mxu2 %v6061_v26  ;;  %v6079_v27 = vld [vmem:[%s7616_s5 + $0x108] sm:$0xff]  ;;  %v6091_v26 = vld [vmem:[%s7616_s5 + $0x198] sm:$0xff] }
 0x222   : > { %7849 = vst [vmem:[#allocation60_spill] sm:$0xff] %v6079_v27  ;;  %2150 = vmatpush.bf16.msra.mxu3 %v6091_v26 }
 0x223   : > { %7851 = vst [vmem:[#allocation62_spill] sm:$0xff] %v6091_v26  ;;  %v6120_v26 = vld [vmem:[%s7616_s5 + $0x1d0] sm:$0xff] }
 0x224   : > { %2125 = vmatpush.bf16.msra.mxu1 %v6055_v7  ;;  %v6085_v7 = vld [vmem:[%s7616_s5 + $0x158] sm:$0xff]  ;;  %7856 = vst [vmem:[#allocation67_spill] sm:$0xff] %v6120_v26 }
 0x225   : > { %2162 = vmatpush.bf16.msra.mxu0 %v6072_v40  ;;  %7850 = vst [vmem:[#allocation61_spill] sm:$0xff] %v6085_v7  ;;  %2137 = vmatpush.bf16.msrb.mxu2 %v6085_v7  ;;  %v6103_v40 = vld [vmem:[%s7616_s5 + $0x100] sm:$0xff]  ;;  %v6115_v7 = vld [vmem:[%s7616_s5 + $0x190] sm:$0xff] }
 0x226   : > { %7853 = vst [vmem:[#allocation64_spill] sm:$0xff] %v6103_v40  ;;  %2151 = vmatpush.bf16.msra.mxu3 %v6115_v7 }
 0x227   : > { %7855 = vst [vmem:[#allocation66_spill] sm:$0xff] %v6115_v7  ;;  %v6151_v7 = vld [vmem:[%s7616_s5 + $0x180] sm:$0xff] }
 0x228   : > { %2126 = vmatpush.bf16.msra.mxu1 %v6079_v27  ;;  %v6109_v27 = vld [vmem:[%s7616_s5 + $0x150] sm:$0xff]  ;;  %7861 = vst [vmem:[#allocation72_spill] sm:$0xff] %v6151_v7 }
 0x229   : > { %2163 = vmatpush.bf16.msra.mxu0 %v6096_v43  ;;  %7854 = vst [vmem:[#allocation65_spill] sm:$0xff] %v6109_v27  ;;  %2138 = vmatpush.bf16.msrb.mxu2 %v6109_v27  ;;  %v6128_v43 = vld [vmem:[%s7616_s5 + $0x148] sm:$0xff] }
 0x22a   : > { %7857 = vst [vmem:[#allocation68_spill] sm:$0xff] %v6128_v43 }
 0x22c   : > { %2127 = vmatpush.bf16.msra.mxu1 %v6103_v40  ;;  %v6133_v40 = vld [vmem:[%s7616_s5 + $0x188] sm:$0xff] }
 0x22d   : > { %2164 = vmatpush.bf16.msra.mxu0 %v6120_v26  ;;  %7858 = vst [vmem:[#allocation69_spill] sm:$0xff] %v6133_v40  ;;  %2139 = vmatpush.bf16.msrb.mxu2 %v6128_v43  ;;  %v6146_v26 = vld [vmem:[%s7616_s5 + $0x140] sm:$0xff] }
 0x22e   : > { %2152 = vmatpush.bf16.msra.mxu3 %v6133_v40  ;;  %7860 = vst [vmem:[#allocation71_spill] sm:$0xff] %v6146_v26  ;;  %v790_v43 = vld [vmem:[%s6163_s22] sm:$0xff] }
 0x22f   : > { %v1613_v18 = vunpack.c.l.bf16 %v790_v43 }
 0x231   : > { %2165 = vmatpush.bf16.msra.mxu0 %v6138_v60  ;;  %2140 = vmatpush.bf16.msrb.mxu2 %v6146_v26 }
 0x232   : > { %2153 = vmatpush.bf16.msra.mxu3 %v6151_v7 }
 0x235   : > { %2166 = vmatpush.bf16.msra.mxu0 %v6156_v20  ;;  %v791_v20 = vld [vmem:[%s6163_s22 + $0x8] sm:$0xff] }
 0x25c   : > { %v1514_v27 = vpop.f32.mrf.mxu1 }
 0x25d   : > { %v1553_v39 = vpop.f32.mrf.mxu0 }
 0x262   : > { %v1527_v60 = vpop.f32.mrf.mxu2 }
 0x263   : > { %v1609_v40 = vpack.c.bf16 %v1527_v60, %v1514_v27  ;;  %v1592_v31 = vpop.f32.mrf.mxu3  ;;  %v1614_v27 = vunpack.c.h.bf16 %v790_v43 }
 0x264   : > { %v1516_v3 = vpop.f32.mrf.mxu1 }
 0x265   : > { %v1618_v23 = vunpack.c.h.bf16 %v1609_v40  ;;  %v1555_v2 = vpop.f32.mrf.mxu0  ;;  %v1617_v0 = vunpack.c.l.bf16 %v1609_v40 }
 0x266   : > { %v1616_v2 = vunpack.c.h.bf16 %v791_v20 }
 0x267   : > { %v1633_v13 = vrot.slane %v1618_v23, 4 }
 0x269   : > { %v1637_v16 = vsel %vm852_vm0, %v1617_v0, %v1633_v13  ;;  %v6174_v0 = vld [vmem:[%s7615_s4 + $0x38] sm:$0xff] }
 0x26a   : > { %v1645_v6 = vmul.f32 %v1637_v16, %v1613_v18  ;;  %v1529_v28 = vpop.f32.mrf.mxu2 }
 0x26b   : > { %v1594_v26 = vpop.f32.mrf.mxu3 }
 0x26c   : > { %1653 = vst [vmem:[#allocation1] ss:$2 sm:$0xff] %v1645_v6  ;;  %v1540_v7 = vpop.f32.mrf.mxu1 }
 0x26d   : > { %v1610_v22 = vpack.c.bf16 %v1553_v39, %v1540_v7  ;;  %v1605_v11 = vpop.f32.mrf.mxu0 }
 0x26e   : > { %v1612_v5 = vpack.c.bf16 %v1605_v11, %v1592_v31 }
 0x26f   : > { %v1620_v60 = vunpack.c.h.bf16 %v1610_v22  ;;  %v1619_v3 = vunpack.c.l.bf16 %v1610_v22 }
 0x270   : > { %v1624_v41 = vunpack.c.h.bf16 %v1612_v5  ;;  %v1623_v19 = vunpack.c.l.bf16 %v1612_v5  ;;  %v6194_v5 = vld [vmem:[%s7615_s4 + $0x28] sm:$0xff] }
 0x271   : > { %v1634_v38 = vrot.slane %v1620_v60, 4 }
 0x272   : > { %v1636_v40 = vrot.slane %v1624_v41, 4  ;;  %v1579_v23 = vpop.f32.mrf.mxu2 }
 0x273   : > { %v1638_v18 = vsel %vm852_vm0, %v1619_v3, %v1634_v38  ;;  %v1660_v6 = vld.sshfl [vmem:[#allocation1] sm:$0xff pattern:$0x75316420]  ;;  %v1661_v7 = vld.sshfl [vmem:[#allocation1 + $0x8] sm:$0xff pattern:$0x75316420] }
 0x274   : > { %v1646_v13 = vmul.f32 %v1638_v18, %v1614_v27  ;;  %v1640_v11 = vsel %vm852_vm0, %v1623_v19, %v1636_v40  ;;  %v1542_v43 = vpop.f32.mrf.mxu1  ;;  %v1676_v16 = vpack.c.bf16 %v1660_v6, %v1660_v6  ;;  %v1677_v22 = vpack.c.bf16 %v1661_v7, %v1661_v7  ;;  %v6182_v38 = vld [vmem:[%s7615_s4 + $0x30] sm:$0xff]  ;;  %v6187_v19 = vld [vmem:[%s7618_s7 + $0x38] sm:$0xff]  ;;  %v6201_v18 = vld [vmem:[%s7615_s4 + $0x20] sm:$0xff] }
 0x275   : > { %v1648_v26 = vmul.f32 %v1640_v11, %v1616_v2  ;;  %v1607_v28 = vpop.f32.mrf.mxu0  ;;  %v1615_v6 = vunpack.c.l.bf16 %v791_v20  ;;  %v6221_v20 = vld [vmem:[%s7615_s4 + $0x18] sm:$0xff] }
 0x276   : > { %1655 = vst [vmem:[#allocation1 + $0x10] ss:$2 sm:$0xff] %v1646_v13  ;;  %2076 = vmatmul.bf16.vlgmr.msrb.gmra.mxu1 %v1676_v16  ;;  %2089 = vmatmul.bf16.vlgmr.msra.gmra.mxu2 %v1677_v22  ;;  %v6213_v13 = vld [vmem:[%s7618_s7 + $0xb8] sm:$0xff]  ;;  %v6227_v16 = vld [vmem:[%s7618_s7 + $0x70] sm:$0xff]  ;;  %v6252_v28 = vld [vmem:[%s7618_s7 + $0xa8] sm:$0xff] }
 0x277   : > { %1659 = vst [vmem:[#allocation1 + $0x30] ss:$2 sm:$0xff] %v1648_v26  ;;  %2220 = vmatpush.bf16.msrb.mxu1 %v6174_v0  ;;  %2378 = vmatpush.bf16.msra.mxu2 %v6187_v19  ;;  %v6233_v22 = vld [vmem:[%s7618_s7 + $0xb0] sm:$0xff]  ;;  %v6246_v26 = vld [vmem:[%s7618_s7 + $0x68] sm:$0xff] }
 0x278   : > { %7863 = vst [vmem:[#allocation74_spill] sm:$0xff] %v6227_v16 }
 0x279   : > { %7864 = vst [vmem:[#allocation75_spill] sm:$0xff] %v6233_v22 }
 0x27a   : > { %v1581_v41 = vpop.f32.mrf.mxu2  ;;  %7865 = vst [vmem:[#allocation76_spill] sm:$0xff] %v6246_v26 }
 0x27b   : > { %2221 = vmatpush.bf16.msrb.mxu1 %v6182_v38  ;;  %2379 = vmatpush.bf16.msra.mxu2 %v5313_v4  ;;  %7866 = vst [vmem:[#allocation77_spill] sm:$0xff] %v6252_v28  ;;  %v4760_v41 = vld [vmem:[%s5354_s13 + $0x8] sm:$0xff] }
 0x27c   : > { %v1566_v39 = vpop.f32.mrf.mxu1 }
 0x27d   : > { %v1611_v31 = vpack.c.bf16 %v1579_v23, %v1566_v39  ;;  %v1662_v60 = vld.sshfl [vmem:[#allocation1 + $0x10] sm:$0xff pattern:$0x75316420]  ;;  %v1663_v27 = vld.sshfl [vmem:[#allocation1 + $0x18] sm:$0xff pattern:$0x75316420] }
 0x27e   : > { %v1678_v3 = vpack.c.bf16 %v1662_v60, %v1662_v60  ;;  %v1679_v2 = vpack.c.bf16 %v1663_v27, %v1663_v27  ;;  %v6207_v23 = vld [vmem:[%s7618_s7 + $0x78] sm:$0xff]  ;;  %v1666_v39 = vld.sshfl [vmem:[#allocation1 + $0x30] sm:$0xff pattern:$0x75316420] }
 0x27f   : > { %v1622_v40 = vunpack.c.h.bf16 %v1611_v31  ;;  %2222 = vmatpush.bf16.msrb.mxu1 %v6194_v5  ;;  %2380 = vmatpush.bf16.msra.mxu2 %v5330_v8  ;;  %v1621_v4 = vunpack.c.l.bf16 %v1611_v31  ;;  %v1667_v31 = vld.sshfl [vmem:[#allocation1 + $0x38] sm:$0xff pattern:$0x75316420] }
 0x280   : > { %2102 = vmatmul.bf16.vlgmr.msrb.gmra.mxu3 %v1678_v3  ;;  %2115 = vmatmul.bf16.vlgmr.msrb.gmra.mxu0 %v1679_v2  ;;  %v6266_v3 = vld [vmem:[%s7618_s7 + $0x60] sm:$0xff] }
 0x281   : > { %v1635_v7 = vrot.slane %v1622_v40, 4  ;;  %2391 = vmatpush.bf16.msrb.mxu3 %v6207_v23  ;;  %2404 = vmatpush.bf16.msrb.mxu0 %v6213_v13  ;;  %7868 = vst [vmem:[#allocation79_spill] sm:$0xff] %v6266_v3  ;;  %v6272_v2 = vld [vmem:[%s7618_s7 + $0xa0] sm:$0xff] }
 0x282   : > { %7869 = vst [vmem:[#allocation80_spill] sm:$0xff] %v6272_v2 }
 0x283   : > { %v1639_v8 = vsel %vm852_vm0, %v1621_v4, %v1635_v7  ;;  %2223 = vmatpush.bf16.msrb.mxu1 %v6201_v18  ;;  %2381 = vmatpush.bf16.msra.mxu2 %v5346_v12  ;;  %v6240_v12 = vld [vmem:[%s7615_s4 + $0x10] sm:$0xff]  ;;  %v1683_v4 = vpack.c.bf16 %v1667_v31, %v1667_v31  ;;  %v6279_v7 = vld [vmem:[%s7615_s4] sm:$0xff] }
 0x284   : > { %v1647_v11 = vmul.f32 %v1639_v8, %v1615_v6  ;;  %v1568_v43 = vpop.f32.mrf.mxu1  ;;  %v1682_v6 = vpack.c.bf16 %v1666_v39, %v1666_v39  ;;  %7870 = vst [vmem:[#allocation81_spill] sm:$0xff] %v6279_v7  ;;  %v6284_v8 = vld [vmem:[%s7618_s7 + $0x8] sm:$0xff] }
 0x285   : > { %2392 = vmatpush.bf16.msrb.mxu3 %v6227_v16  ;;  %2405 = vmatpush.bf16.msrb.mxu0 %v6233_v22  ;;  %7871 = vst [vmem:[#allocation82_spill] sm:$0xff] %v6284_v8  ;;  %v6296_v43 = vld [vmem:[%s7618_s7 + $0x98] sm:$0xff] }
 0x286   : > { %1657 = vst [vmem:[#allocation1 + $0x20] ss:$2 sm:$0xff] %v1647_v11  ;;  %v6290_v11 = vld [vmem:[%s7618_s7 + $0x58] sm:$0xff] }
 0x287   : > { %2224 = vmatpush.bf16.msrb.mxu1 %v6221_v20  ;;  %2382 = vmatpush.bf16.msra.mxu2 %v5367_v17  ;;  %v6260_v17 = vld [vmem:[%s7615_s4 + $0x8] sm:$0xff]  ;;  %7872 = vst [vmem:[#allocation83_spill] sm:$0xff] %v6290_v11 }
 0x288   : > { %7867 = vst [vmem:[#allocation78_spill] sm:$0xff] %v6260_v17 }
 0x289   : > { %2393 = vmatpush.bf16.msrb.mxu3 %v6246_v26  ;;  %2406 = vmatpush.bf16.msrb.mxu0 %v6252_v28  ;;  %7873 = vst [vmem:[#allocation84_spill] sm:$0xff] %v6296_v43  ;;  %v6327_v28 = vld [vmem:[%s7618_s7 + $0xf0] sm:$0xff] }
 0x28a   : > { %7877 = vst [vmem:[#allocation88_spill] sm:$0xff] %v6327_v28 }
 0x28b   : > { %2225 = vmatpush.bf16.msrb.mxu1 %v6240_v12  ;;  %2383 = vmatpush.bf16.msra.mxu2 %v5390_v21 }
 0x28d   : > { %v1664_v60 = vld.sshfl [vmem:[#allocation1 + $0x20] sm:$0xff pattern:$0x75316420]  ;;  %v1665_v27 = vld.sshfl [vmem:[#allocation1 + $0x28] sm:$0xff pattern:$0x75316420]  ;;  %2394 = vmatpush.bf16.msrb.mxu3 %v6266_v3  ;;  %2407 = vmatpush.bf16.msrb.mxu0 %v6272_v2 }
 0x28e   : > { %2274 = vst [vmem:[#allocation1] ss:$9 sm:$0xff] %v4760_v41  ;;  %v1680_v21 = vpack.c.bf16 %v1664_v60, %v1664_v60  ;;  %v1681_v40 = vpack.c.bf16 %v1665_v27, %v1665_v27  ;;  %v6304_v41 = vld [vmem:[%s7618_s7 + $0xf8] sm:$0xff] }
 0x28f   : > { %2226 = vmatpush.bf16.msrb.mxu1 %v6260_v17  ;;  %2384 = vmatpush.bf16.msra.mxu2 %v6284_v8  ;;  %7874 = vst [vmem:[#allocation85_spill] sm:$0xff] %v6304_v41  ;;  %v4756_v3 = vld [vmem:[%s5384_s17 + $0x18] sm:$0xff]  ;;  %v6336_v17 = vld [vmem:[%s7618_s7 + $0x48] sm:$0xff] }
 0x290   : > { %2128 = vmatmul.bf16.vlgmr.msra.gmra.mxu1 %v1680_v21  ;;  %2141 = vmatmul.bf16.vlgmr.msrb.gmra.mxu2 %v1681_v40  ;;  %7878 = vst [vmem:[#allocation89_spill] sm:$0xff] %v6336_v17  ;;  %v2310_v16 = vunpack.c.h.bf16 %v4756_v3 }
 0x291   : > { %2154 = vmatmul.bf16.vlgmr.msra.gmra.mxu3 %v1682_v6  ;;  %2167 = vmatmul.bf16.vlgmr.msra.gmra.mxu0 %v1683_v4  ;;  %v6317_v6 = vld [vmem:[%s7618_s7 + $0x90] sm:$0xff] }
 0x292   : > { %2395 = vmatpush.bf16.msrb.mxu3 %v6290_v11  ;;  %2408 = vmatpush.bf16.msrb.mxu0 %v6296_v43  ;;  %7876 = vst [vmem:[#allocation87_spill] sm:$0xff] %v6317_v6 }
 0x293   : > { %2227 = vmatpush.bf16.msrb.mxu1 %v6279_v7  ;;  %2385 = vmatpush.bf16.msra.mxu2 %v5423_v53  ;;  %v6311_v53 = vld [vmem:[%s7618_s7 + $0x50] sm:$0xff] }
 0x294   : > { %7875 = vst [vmem:[#allocation86_spill] sm:$0xff] %v6311_v53 }
 0x295   : > { %v2278_v39 = vld [vmem:[#allocation1 + $0x1b] sm:$0xff]  ;;  %v2279_v31 = vld [vmem:[#allocation1 + $0x24] sm:$0xff]  ;;  %v2280_v60 = vld [vmem:[#allocation1 + $0x2d] sm:$0xff] }
 0x296   : > { %v2292_v27 = vpack.i.b16 %v2278_v39, %v2278_v39  ;;  %v2295_v21 = vpack.i.b16 %v2279_v31, %v2279_v31  ;;  %v2298_v40 = vpack.i.b16 %v2280_v60, %v2280_v60  ;;  %2396 = vmatpush.bf16.msrb.mxu3 %v6311_v53  ;;  %2409 = vmatpush.bf16.msrb.mxu0 %v6317_v6  ;;  %v2276_v4 = vld [vmem:[#allocation1 + $0x9] sm:$0xff]  ;;  %v2277_v39 = vld [vmem:[#allocation1 + $0x12] sm:$0xff]  ;;  %v2282_v2 = vld [vmem:[#allocation1 + $0x3f] sm:$0xff] }
 0x297   : > { %2417 = vmatpush.bf16.msra.mxu1 %v6304_v41  ;;  %2430 = vmatpush.bf16.msrb.mxu2 %v5437_v1  ;;  %v2275_v1 = vld [vmem:[#allocation1] sm:$0xff]  ;;  %v6321_v31 = vld [vmem:[%s5384_s17 + $0x10] sm:$0xff]  ;;  %v2286_v43 = vpack.i.b16 %v2276_v4, %v2276_v4  ;;  %v2289_v11 = vpack.i.b16 %v2277_v39, %v2277_v39  ;;  %v2304_v26 = vpack.i.b16 %v2282_v2, %v2282_v2 }
 0x298   : > { %v2283_v60 = vpack.i.b16 %v2275_v1, %v2275_v1  ;;  %v2281_v41 = vld [vmem:[#allocation1 + $0x36] sm:$0xff]  ;;  %v2294_v53 = vperm.slane %v2292_v27, 0  ;;  %v2297_v7 = vperm.slane %v2295_v21, 0  ;;  %v2300_v8 = vperm.slane %v2298_v40, 0 }
 0x299   : > { %v2301_v1 = vpack.i.b16 %v2281_v41, %v2281_v41  ;;  %v2288_v39 = vperm.slane %v2286_v43, 0  ;;  %v2291_v6 = vperm.slane %v2289_v11, 0  ;;  %v2307_v27 = vunpack.c.l.bf16 %v6321_v31 }
 0x29a   : > { %v2285_v4 = vperm.slane %v2283_v60, 0  ;;  %v2314_v21 = vunpack.c.l.bf16 %v2294_v53  ;;  %v2316_v40 = vunpack.c.l.bf16 %v2300_v8  ;;  %2397 = vmatpush.bf16.msrb.mxu3 %v6336_v17  ;;  %v2308_v2 = vunpack.c.h.bf16 %v6321_v31 }
 0x29b   : > { %2418 = vmatpush.bf16.msra.mxu1 %v6327_v28  ;;  %2431 = vmatpush.bf16.msrb.mxu2 %v5456_v24  ;;  %v6342_v24 = vld [vmem:[%s7618_s7 + $0x88] sm:$0xff]  ;;  %v2303_v11 = vperm.slane %v2301_v1, 0  ;;  %v2309_v43 = vunpack.c.l.bf16 %v4756_v3  ;;  %v2312_v8 = vunpack.c.l.bf16 %v2288_v39  ;;  %v2306_v41 = vperm.slane %v2304_v26, 0  ;;  %v6370_v39 = vld [vmem:[%s7618_s7 + $0x80] sm:$0xff] }
 0x29c   : > { %7879 = vst [vmem:[#allocation90_spill] sm:$0xff] %v6342_v24  ;;  %2410 = vmatpush.bf16.msrb.mxu0 %v6342_v24  ;;  %v2315_v53 = vunpack.c.l.bf16 %v2297_v7  ;;  %v2328_v60 = vrot.slane %v2314_v21, 4  ;;  %v2329_v17 = vrot.slane %v2316_v40, 4  ;;  %v6356_v24 = vld [vmem:[%s7618_s7 + $0xe8] sm:$0xff]  ;;  %v2313_v31 = vunpack.c.l.bf16 %v2291_v6  ;;  %v6364_v7 = vld [vmem:[%s7618_s7 + $0x40] sm:$0xff]  ;;  %v6384_v21 = vld [vmem:[%s7618_s7 + $0x1b8] sm:$0xff] }
 0x29d   : > { %v2311_v1 = vunpack.c.l.bf16 %v2285_v4  ;;  %v2327_v28 = vrot.slane %v2312_v8, 4  ;;  %v2318_v22 = vunpack.c.l.bf16 %v2306_v41  ;;  %v2317_v3 = vunpack.c.l.bf16 %v2303_v11  ;;  %v6391_v11 = vld [vmem:[%s7618_s7 + $0xe0] sm:$0xff] }
 0x29e   : > { %v2333_v26 = vsel %vm852_vm0, %v2315_v53, %v2329_v17  ;;  %2398 = vmatpush.bf16.msrb.mxu3 %v6364_v7  ;;  %v2332_v6 = vsel %vm852_vm0, %v2313_v31, %v2328_v60  ;;  %v6378_v17 = vld [vmem:[%s7618_s7 + $0x178] sm:$0xff] }
 0x29f   : > { %2419 = vmatpush.bf16.msra.mxu1 %v6356_v24  ;;  %2432 = vmatpush.bf16.msrb.mxu2 %v5472_v32  ;;  %v792_v32 = vld [vmem:[%s6351_s27] sm:$0x3]  ;;  %v2341_v4 = vmul.f32 %v2333_v26, %v2309_v43  ;;  %v2331_v40 = vsel %vm852_vm0, %v2311_v1, %v2327_v28  ;;  %v2340_v8 = vmul.f32 %v2332_v6, %v2308_v2  ;;  %v2330_v41 = vrot.slane %v2318_v22, 4  ;;  %v6399_v22 = vld [vmem:[%s7618_s7 + $0x170] sm:$0xff]  ;;  %v7880_v6 = vld [vmem:[#allocation2_spill] sm:$0xff] }
 0x2a0   : > { %2411 = vmatpush.bf16.msrb.mxu0 %v6370_v39  ;;  %v2339_v43 = vmul.f32 %v2331_v40, %v2307_v27  ;;  %2228 = vmatmul.bf16.vlgmr.msrb.gmra.mxu1 %v792_v32  ;;  %v6405_v28 = vld [vmem:[%s7618_s7 + $0x1b0] sm:$0xff]  ;;  %v7883_v40 = vld [vmem:[#allocation14_spill] sm:$0xff] }
 0x2a1   : > { %2351 = vst [vmem:[#allocation1 + $0x20] ss:$2 sm:$0xff] %v2341_v4  ;;  %v2334_v53 = vsel %vm852_vm0, %v2317_v3, %v2330_v41  ;;  %v7881_v3 = vld [vmem:[#allocation3_spill] sm:$0xff]  ;;  %v7882_v4 = vld [vmem:[#allocation10_spill] sm:$0xff]  ;;  %v7885_v41 = vld [vmem:[#allocation20_spill] sm:$0xff] }
 0x2a2   : > { %2443 = vmatpush.bf16.msra.mxu3 %v6378_v17  ;;  %2347 = vst [vmem:[#allocation1] ss:$2 sm:$0xff] %v2339_v43  ;;  %v2342_v60 = vmul.f32 %v2334_v53, %v2310_v16  ;;  %v6420_v16 = vld [vmem:[%s7618_s7 + $0xd0] sm:$0xff]  ;;  %v7886_v43 = vld [vmem:[#allocation24_spill] sm:$0xff] }
 0x2a3   : > { %2420 = vmatpush.bf16.msra.mxu1 %v6391_v11  ;;  %2433 = vmatpush.bf16.msrb.mxu2 %v5490_v36  ;;  %2349 = vst [vmem:[#allocation1 + $0x10] ss:$2 sm:$0xff] %v2340_v8  ;;  %v6411_v36 = vld [vmem:[%s7618_s7 + $0xd8] sm:$0xff]  ;;  %v7884_v8 = vld [vmem:[#allocation17_spill] sm:$0xff] }
 0x2a4   : > { %2456 = vmatpush.bf16.msra.mxu0 %v6384_v21  ;;  %2353 = vst [vmem:[#allocation1 + $0x30] ss:$2 sm:$0xff] %v2342_v60  ;;  %v7887_v53 = vld [vmem:[#allocation28_spill] sm:$0xff]  ;;  %v7888_v60 = vld [vmem:[#allocation39_spill] sm:$0xff] }
 0x2a6   : > { %2444 = vmatpush.bf16.msra.mxu3 %v6399_v22 }
 0x2a7   : > { %2421 = vmatpush.bf16.msra.mxu1 %v6411_v36  ;;  %2434 = vmatpush.bf16.msrb.mxu2 %v5513_v48  ;;  %v6444_v48 = vld [vmem:[%s7618_s7 + $0x1f8] sm:$0xff] }
 0x2a8   : > { %2457 = vmatpush.bf16.msra.mxu0 %v6405_v28 }
 0x2a9   : > { %v2354_v27 = vld.sshfl [vmem:[#allocation1] sm:$0xff pattern:$0x75316420]  ;;  %v2355_v2 = vld.sshfl [vmem:[#allocation1 + $0x8] sm:$0xff pattern:$0x75316420] }
 0x2aa   : > { %2445 = vmatpush.bf16.msra.mxu3 %v5477_v33  ;;  %v2370_v31 = vpack.c.bf16 %v2354_v27, %v2354_v27  ;;  %v2371_v1 = vpack.c.bf16 %v2355_v2, %v2355_v2  ;;  %v2356_v26 = vld.sshfl [vmem:[#allocation1 + $0x10] sm:$0xff pattern:$0x75316420] }
 0x2ab   : > { %2422 = vmatpush.bf16.msra.mxu1 %v6420_v16  ;;  %2435 = vmatpush.bf16.msrb.mxu2 %v5534_v52  ;;  %v2372_v33 = vpack.c.bf16 %v2356_v26, %v2356_v26  ;;  %v7889_v27 = vld [vmem:[#allocation43_spill] sm:$0xff] }
 0x2ac   : > { %2458 = vmatpush.bf16.msra.mxu0 %v5482_v34  ;;  %2386 = vmatmul.bf16.vlgmr.msra.gmra.mxu2 %v2370_v31  ;;  %v6429_v34 = vld [vmem:[%s7618_s7 + $0xc8] sm:$0xff] }
 0x2ad   : > { %2399 = vmatmul.bf16.vlgmr.msrb.gmra.mxu3 %v2371_v1  ;;  %2412 = vmatmul.bf16.vlgmr.msrb.gmra.mxu0 %v2372_v33 }
 0x2ae   : > { %2446 = vmatpush.bf16.msra.mxu3 %v5495_v37  ;;  %v2357_v37 = vld.sshfl [vmem:[#allocation1 + $0x18] sm:$0xff pattern:$0x75316420] }
 0x2af   : > { %2423 = vmatpush.bf16.msra.mxu1 %v6429_v34  ;;  %2436 = vmatpush.bf16.msrb.mxu2 %v5555_v57  ;;  %v2373_v52 = vpack.c.bf16 %v2357_v37, %v2357_v37  ;;  %v6464_v57 = vld [vmem:[%s7618_s7 + $0x1e8] sm:$0xff] }
 0x2b0   : > { %2459 = vmatpush.bf16.msra.mxu0 %v5503_v46  ;;  %v6438_v46 = vld [vmem:[%s7618_s7 + $0xc0] sm:$0xff] }
 0x2b2   : > { %2447 = vmatpush.bf16.msra.mxu3 %v5518_v49  ;;  %v6454_v49 = vld [vmem:[%s7618_s7 + $0x1f0] sm:$0xff] }
 0x2b3   : > { %2424 = vmatpush.bf16.msra.mxu1 %v6438_v46  ;;  %2437 = vmatpush.bf16.msrb.mxu2 %v5574_v61 }
 0x2b4   : > { %2460 = vmatpush.bf16.msra.mxu0 %v5524_v50  ;;  %v2358_v50 = vld.sshfl [vmem:[#allocation1 + $0x20] sm:$0xff pattern:$0x75316420] }
 0x2b5   : > { %v2374_v61 = vpack.c.bf16 %v2358_v50, %v2358_v50 }
 0x2b6   : > { %2448 = vmatpush.bf16.msra.mxu3 %v5539_v54  ;;  %2425 = vmatmul.bf16.vlgmr.msra.gmra.mxu1 %v2373_v52  ;;  %v2359_v54 = vld.sshfl [vmem:[#allocation1 + $0x28] sm:$0xff pattern:$0x75316420] }
 0x2b7   : > { %2469 = vmatpush.bf16.msrb.mxu1 %v6444_v48  ;;  %2503 = vmatpush.msra.mxu2 %v5599_v45  ;;  %v6476_v45 = vld [vmem:[%s7618_s7 + $0x1e0] sm:$0xff] }
 0x2b8   : > { %2461 = vmatpush.bf16.msra.mxu0 %v5545_v55  ;;  %v2360_v55 = vld.sshfl [vmem:[#allocation1 + $0x30] sm:$0xff pattern:$0x75316420] }
 0x2b9   : > { %2504 = vmatpush.msra.mxu2 %v5604_v47  ;;  %v6501_v47 = vld [vmem:[%s7618_s7 + $0x1c8] sm:$0xff] }
 0x2ba   : > { %2449 = vmatpush.bf16.msra.mxu3 %v5560_v58  ;;  %v2375_v58 = vpack.c.bf16 %v2359_v54, %v2359_v54 }
 0x2bb   : > { %2470 = vmatpush.bf16.msrb.mxu1 %v6454_v49  ;;  %2505 = vmatpush.msra.mxu2 %v5610_v51  ;;  %v2361_v51 = vld.sshfl [vmem:[#allocation1 + $0x38] sm:$0xff pattern:$0x75316420] }
 0x2bc   : > { %2462 = vmatpush.bf16.msra.mxu0 %v5566_v59  ;;  %2438 = vmatmul.bf16.vlgmr.msrb.gmra.mxu2 %v2374_v61  ;;  %v2376_v59 = vpack.c.bf16 %v2360_v55, %v2360_v55  ;;  %v2377_v32 = vpack.c.bf16 %v2361_v51, %v2361_v51 }
 0x2bd   : > { %2506 = vmatpush.msra.mxu2 %v5616_v56  ;;  %v6507_v56 = vld [vmem:[%s7618_s7 + $0x1c0] sm:$0xff] }
 0x2be   : > { %2450 = vmatpush.bf16.msra.mxu3 %v5579_v62  ;;  %v6487_v62 = vld [vmem:[%s7618_s7 + $0x1d8] sm:$0xff] }
 0x2bf   : > { %2471 = vmatpush.bf16.msrb.mxu1 %v6464_v57  ;;  %2549 = vmatpush.bf16.msrb.mxu2 %v5705_v42 }
 0x2c0   : > { %2463 = vmatpush.bf16.msra.mxu0 %v5584_v63  ;;  %v6495_v63 = vld [vmem:[%s7618_s7 + $0x1d0] sm:$0xff] }
 0x2c1   : > { %2451 = vmatmul.bf16.vlgmr.msra.gmra.mxu3 %v2375_v58 }
 0x2c2   : > { %2523 = vmatpush.bf16.msrb.mxu3 %v5633_v9 }
 0x2c3   : > { %2464 = vmatmul.bf16.vlgmr.msra.gmra.mxu0 %v2376_v59  ;;  %2472 = vmatpush.bf16.msrb.mxu1 %v6476_v45 }
 0x2c4   : > { %2536 = vmatpush.bf16.msrb.mxu0 %v5644_v14  ;;  %2550 = vmatpush.bf16.msrb.mxu2 %v5730_v10 }
 0x2c6   : > { %2524 = vmatpush.bf16.msrb.mxu3 %v5669_v25 }
 0x2c7   : > { %2473 = vmatpush.bf16.msrb.mxu1 %v6487_v62 }
 0x2c8   : > { %2537 = vmatpush.bf16.msrb.mxu0 %v5680_v29 }
 0x2ca   : > { %2562 = vmatpush.bf16.msra.mxu3 %v5646_v15 }
 0x2cb   : > { %2474 = vmatpush.bf16.msrb.mxu1 %v6495_v63 }
 0x2cc   : > { %2575 = vmatpush.bf16.msra.mxu0 %v5757_v35 }
 0x2ce   : > { %2563 = vmatpush.bf16.msra.mxu3 %v5682_v30 }
 0x2cf   : > { %2475 = vmatpush.bf16.msrb.mxu1 %v6501_v47 }
 0x2d0   : > { %2576 = vmatpush.bf16.msra.mxu0 %v5785_v44 }
 0x2d3   : > { %2476 = vmatpush.bf16.msrb.mxu1 %v6507_v56 }
 0x2d6   : > { %2477 = vmatmul.bf16.vlgmr.msrb.gmra.mxu1 %v2377_v32 }
 0x2d7   : > { %2601 = vmatpush.bf16.msra.mxu1 %v7880_v6 }
 0x2db   : > { %2602 = vmatpush.bf16.msra.mxu1 %v7881_v3 }
 0x2df   : > { %2722 = vmatpush.bf16.msrb.mxu1 %v7882_v4 }
 0x2e3   : > { %2723 = vmatpush.bf16.msrb.mxu1 %v7883_v40 }
 0x2e7   : > { %2724 = vmatpush.bf16.msrb.mxu1 %v7884_v8 }
 0x2eb   : > { %2725 = vmatpush.bf16.msrb.mxu1 %v7885_v41 }
 0x2ef   : > { %2726 = vmatpush.bf16.msrb.mxu1 %v7886_v43 }
 0x2f3   : > { %2727 = vmatpush.bf16.msrb.mxu1 %v7887_v53  ;;  %v2077_v2 = vpop.f32.mrf.mxu1 }
 0x2f7   : > { %2728 = vmatpush.bf16.msrb.mxu1 %v7888_v60 }
 0x2f9   : > { %v2090_v31 = vpop.f32.mrf.mxu2 }
 0x2fa   : > { %v2091_v50 = vadd.f32 %v2090_v31, %v2077_v2 }
 0x2fb   : > { %2729 = vmatpush.bf16.msrb.mxu1 %v7889_v27  ;;  %v2079_v1 = vpop.f32.mrf.mxu1 }
 0x2fc   : > { %v6523_v1 = vld [vmem:[%s7617_s6] ss:$0 sm:$0xff] }
 0x2fd   : > { %v2116_v26 = vpop.f32.mrf.mxu0  ;;  %7890 = vst [vmem:[#allocation2_spill] sm:$0xff] %v6523_v1 }
 0x301   : > { %v2092_v33 = vpop.f32.mrf.mxu2 }
 0x303   : > { %v2103_v37 = vpop.f32.mrf.mxu3 }
 0x304   : > { %v2104_v55 = vadd.f32 %v2103_v37, %v2091_v50 }
 0x305   : > { %v2118_v52 = vpop.f32.mrf.mxu0 }
 0x306   : > { %v2117_v59 = vadd.f32 %v2116_v26, %v2104_v55 }
 0x30b   : > { %v2105_v54 = vpop.f32.mrf.mxu3 }
 0x30d   : > { %v2129_v61 = vpop.f32.mrf.mxu1 }
 0x30e   : > { %v2168_v58 = vpop.f32.mrf.mxu0  ;;  %v2130_v51 = vadd.f32 %v2129_v61, %v2117_v59 }
 0x313   : > { %v2142_v32 = vpop.f32.mrf.mxu2 }
 0x314   : > { %v2155_v4 = vpop.f32.mrf.mxu3  ;;  %v2143_v40 = vadd.f32 %v2142_v32, %v2130_v51 }
 0x315   : > { %v2131_v8 = vpop.f32.mrf.mxu1 }
 0x316   : > { %v2170_v41 = vpop.f32.mrf.mxu0  ;;  %v2156_v43 = vadd.f32 %v2155_v4, %v2143_v40 }
 0x318   : > { %v2169_v27 = vadd.f32 %v2168_v58, %v2156_v43 }
 0x31b   : > { %v2144_v53 = vpop.f32.mrf.mxu2 }
 0x31c   : > { %v2157_v60 = vpop.f32.mrf.mxu3 }
 0x31d   : > { %v2229_v2 = vpop.f32.mrf.mxu1 }
 0x31e   : > { %v2230_v31 = vadd.f32 %v2229_v2, %v2169_v27 }
 0x320   : > { %v2236_v33 = vadd.f32 %v6523_v1, %v2230_v31 }
 0x322   : > { %v4754_v26 = vmul.f32 -1.442695, %v2236_v33 }
 0x324   : > { %4994 = vpow2.f32 %v4754_v26 }
 0x325   : > { %v2231_v37 = vpop.f32.mrf.mxu1 }
 0x326   : > { %v2260_v37 = vld [vmem:[%s6531_s28] sm:$0x3] }
 0x32a   : > { %v2413_v52 = vpop.f32.mrf.mxu0  ;;  %v4995_v50 = vpop.eup %4994 }
 0x32b   : > { %v2240_v54 = vadd.f32 1.0, %v4995_v50 }
 0x32d   : > { %4996 = vrcp.f32 %v2240_v54  ;;  %v2252_v41 = vand.u32 2147483648, %v2240_v54  ;;  %v2250_v53 = vand.u32 2147483647, %v2240_v54  ;;  %vm2246_vm4 = vweird.f32 %v2240_v54 }
 0x32f   : > { %v2387_v55 = vpop.f32.mrf.mxu2  ;;  %v2253_v31 = vor.u32 1.1754944e-38, %v2252_v41  ;;  %vm2251_vm8 = vcmp.eq.f32.partialorder %v2250_v53, 8.507059e+37 }
 0x330   : > { %v2400_v61 = vpop.f32.mrf.mxu3 }
 0x331   : > { %v2401_v33 = vadd.f32 %v2400_v61, %v2387_v55 }
 0x332   : > { %v2415_v59 = vpop.f32.mrf.mxu0 }
 0x333   : > { %v2426_v58 = vpop.f32.mrf.mxu1  ;;  %v4997_v51 = vpop.eup %4996  ;;  %v7891_v59 = vmov 0 }
 0x334   : > { %v2242_v32 = vmul.f32 %v4997_v51, %v2240_v54  ;;  %vm2247_vm3 = vweird.f32 %v4997_v51  ;;  %v7892_v59 = vsel %vm6534_vm9, 4294967295, %v7891_v59 }
 0x335   : > { %vm2248_vm7 = vmor %vm2246_vm4, %vm2247_vm3  ;;  %7893 = vst [vmem:[#allocation10_spill] sm:$0xff] %v7892_v59 }
 0x336   : > { %v2243_v4 = vsub.f32 1.0, %v2242_v32 }
 0x337   : > { %v2389_v40 = vpop.f32.mrf.mxu2 }
 0x338   : > { %v2402_v8 = vpop.f32.mrf.mxu3  ;;  %v2244_v43 = vmul.f32 %v4997_v51, %v2243_v4  ;;  %v2414_v40 = vadd.f32 %v2413_v52, %v2401_v33 }
 0x33a   : > { %v2245_v27 = vadd.f32 %v4997_v51, %v2244_v43 }
 0x33b   : > { %v2428_v60 = vpop.f32.mrf.mxu1 }
 0x33c   : > { %v2249_v26 = vsel %vm2248_vm7, %v4997_v51, %v2245_v27  ;;  %v2427_v60 = vadd.f32 %v2426_v58, %v2414_v40  ;;  %v7895_v58 = vld [vmem:[#allocation6_spill] sm:$0xff] }
 0x33d   : > { %v2254_v50 = vsel %vm2251_vm8, %v2253_v31, %v2249_v26 }
 0x33e   : > { %v2256_v32 = vpack.c.bf16 %v2254_v50, %v2254_v50 }
 0x33f   : > { %v2439_v4 = vpop.f32.mrf.mxu2 }
 0x340   : > { %v2465_v2 = vpop.f32.mrf.mxu0  ;;  %v2261_v54 = vsel %vm6534_vm9, %v2256_v32, %v2260_v37  ;;  %v2440_v41 = vadd.f32 %v2439_v4, %v2427_v60  ;;  %v7894_v32 = vld [vmem:[#allocation4_spill] sm:$0xff]  ;;  %v7899_v60 = vld [vmem:[#allocation46_spill] sm:$0xff] }
 0x341   : > { %2262 = vst [vmem:[%s6531_s28] sm:$0x3] %v2261_v54 }
 0x344   : > { %v2452_v8 = vpop.f32.mrf.mxu3 }
 0x345   : > { %v2453_v51 = vadd.f32 %v2452_v8, %v2440_v41  ;;  %v7897_v8 = vld [vmem:[#allocation21_spill] sm:$0xff]  ;;  %v7900_v41 = vld [vmem:[#allocation7_spill] sm:$0xff] }
 0x347   : > { %v2441_v55 = vpop.f32.mrf.mxu2  ;;  %v2466_v53 = vadd.f32 %v2465_v2, %v2453_v51  ;;  %v7903_v51 = vld [vmem:[#allocation50_spill] sm:$0xff] }
 0x348   : > { %v2467_v43 = vpop.f32.mrf.mxu0  ;;  %v7901_v55 = vld [vmem:[#allocation25_spill] sm:$0xff] }
 0x349   : > { %v7898_v43 = vld [vmem:[#allocation9_spill] sm:$0xff] }
 0x34c   : > { %v2454_v61 = vpop.f32.mrf.mxu3 }
 0x34d   : > { %v7902_v61 = vld [vmem:[#allocation13_spill] sm:$0xff] }
 0x353   : > { %v2478_v27 = vpop.f32.mrf.mxu1 }
 0x354   : > { %v2479_v31 = vadd.f32 %v2478_v27, %v2466_v53  ;;  %v7904_v53 = vld [vmem:[#allocation29_spill] sm:$0xff]  ;;  %v7905_v27 = vld [vmem:[#allocation16_spill] sm:$0xff] }
 0x356   : > { %v2482_v26 = vsel %vm1388_vm1, %v2479_v31, -inf }
 0x357   : > { %2483 = vmax.xlane.f32.xlu0 %v2482_v26  ;;  %v7907_v26 = vld [vmem:[#allocation31_spill] sm:$0xff] }
 0x35b   : > { %v2480_v50 = vpop.f32.mrf.mxu1 }
 0x35c   : > { %v7908_v50 = vld [vmem:[#allocation19_spill] sm:$0xff] }
 0x3ca   : > { %v2484_v44 = vpop.xlane.xlu0 %2483 }
 0x3cb   : > { %v2485_v52 = vsub.f32 %v2479_v31, %v2484_v44  ;;  %v7896_v44 = vld [vmem:[#allocation5_spill] sm:$0xff]  ;;  %v7906_v31 = vld [vmem:[#allocation54_spill] sm:$0xff] }
 0x3cd   : > { %v2486_v33 = vmul.f32 1.442695, %v2485_v52  ;;  %v7909_v52 = vld [vmem:[#allocation58_spill] sm:$0xff] }
 0x3cf   : > { %4998 = vpow2.f32 %v2486_v33  ;;  %v7910_v33 = vld [vmem:[#allocation11_spill] sm:$0xff] }
 0x3d5   : > { %v4999_v37 = vpop.eup %4998 }
 0x3d6   : > { %4761 = vmatmul.msk.f32.vlgmr.msra.gmra.mxu2 %vm1395_vm2, %v4999_v37 }
 0x3d7   : > { %2588 = vmatpush.bf16.msra.mxu2 %v7894_v32 }
 0x3db   : > { %2589 = vmatpush.bf16.msra.mxu2 %v7895_v58 }
 0x459   : > { %v2508_v4 = vpop.f32.mrf.mxu2 }
 0x45a   : > { %5000 = vrcp.f32 %v2508_v4  ;;  %v7912_v4 = vld [vmem:[#allocation23_spill] sm:$0xff] }
 0x460   : > { %v5001_v2 = vpop.eup %5000 }
 0x461   : > { %v2512_v40 = vmul.f32 %v5001_v2, %v4999_v37  ;;  %v7911_v37 = vld [vmem:[#allocation32_spill] sm:$0xff]  ;;  %v7913_v2 = vld [vmem:[#allocation62_spill] sm:$0xff] }
 0x463   : > { %v2513_v54 = vpack.c.bf16 %v2512_v40, %v2512_v40  ;;  %v7914_v40 = vld [vmem:[#allocation15_spill] sm:$0xff] }
 0x465   : > { %4762 = vmatmul.msk.bf16.vlgmr.msrb.gmra.mxu3 %vm1395_vm2, %v2513_v54  ;;  %4763 = vmatmul.msk.bf16.vlgmr.msrb.gmra.mxu0 %vm1395_vm2, %v2513_v54 }
 0x466   : > { %4764 = vmatmul.msk.bf16.vlgmr.msrb.gmra.mxu2 %vm1395_vm2, %v2513_v54  ;;  %4768 = vmatmul.msk.bf16.vlgmr.msra.gmra.mxu1 %vm1395_vm2, %v2513_v54 }
 0x467   : > { %2614 = vmatpush.bf16.msrb.mxu3 %v7896_v44  ;;  %2696 = vmatpush.bf16.msrb.mxu0 %v7897_v8  ;;  %v7915_v8 = vld [vmem:[#allocation33_spill] sm:$0xff] }
 0x468   : > { %2709 = vmatpush.bf16.msrb.mxu2 %v7898_v43  ;;  %2774 = vmatpush.bf16.msra.mxu1 %v7899_v60  ;;  %v7916_v43 = vld [vmem:[#allocation27_spill] sm:$0xff]  ;;  %v7917_v60 = vld [vmem:[#allocation66_spill] sm:$0xff] }
 0x46b   : > { %2615 = vmatpush.bf16.msrb.mxu3 %v7900_v41  ;;  %2697 = vmatpush.bf16.msrb.mxu0 %v7901_v55  ;;  %v7918_v55 = vld [vmem:[#allocation18_spill] sm:$0xff] }
 0x46c   : > { %2710 = vmatpush.bf16.msrb.mxu2 %v7902_v61  ;;  %2775 = vmatpush.bf16.msra.mxu1 %v7903_v51  ;;  %v7919_v61 = vld [vmem:[#allocation34_spill] sm:$0xff]  ;;  %v7920_v51 = vld [vmem:[#allocation37_spill] sm:$0xff] }
 0x46f   : > { %2698 = vmatpush.bf16.msrb.mxu0 %v7904_v53  ;;  %v7921_v53 = vld [vmem:[#allocation69_spill] sm:$0xff] }
 0x470   : > { %2711 = vmatpush.bf16.msrb.mxu2 %v7905_v27  ;;  %2776 = vmatpush.bf16.msra.mxu1 %v7906_v31  ;;  %v7922_v27 = vld [vmem:[#allocation22_spill] sm:$0xff]  ;;  %v7923_v31 = vld [vmem:[#allocation35_spill] sm:$0xff] }
 0x473   : > { %2699 = vmatpush.bf16.msrb.mxu0 %v7907_v26  ;;  %v7924_v26 = vld [vmem:[#allocation36_spill] sm:$0xff] }
 0x474   : > { %2712 = vmatpush.bf16.msrb.mxu2 %v7908_v50  ;;  %2777 = vmatpush.bf16.msra.mxu1 %v7909_v52  ;;  %v7925_v50 = vld [vmem:[#allocation41_spill] sm:$0xff] }
 0x475   : > { %4765 = vmatmul.msk.bf16.vlgmr.msra.gmra.mxu3 %vm1395_vm2, %v2513_v54  ;;  %4766 = vmatmul.msk.bf16.vlgmr.msra.gmra.mxu0 %vm1395_vm2, %v2513_v54  ;;  %v7926_v52 = vld [vmem:[#allocation45_spill] sm:$0xff] }
 0x476   : > { %4767 = vmatmul.msk.bf16.vlgmr.msra.gmra.mxu2 %vm1395_vm2, %v2513_v54  ;;  %2735 = vmatpush.bf16.msra.mxu3 %v7910_v33  ;;  %v7927_v33 = vld [vmem:[#allocation26_spill] sm:$0xff] }
 0x477   : > { %2700 = vmatpush.bf16.msrb.mxu0 %v7911_v37  ;;  %v7928_v37 = vld [vmem:[#allocation72_spill] sm:$0xff] }
 0x478   : > { %2713 = vmatpush.bf16.msrb.mxu2 %v7912_v4  ;;  %2778 = vmatpush.bf16.msra.mxu1 %v7913_v2  ;;  %v7929_v4 = vld [vmem:[#allocation38_spill] sm:$0xff]  ;;  %v7930_v2 = vld [vmem:[#allocation49_spill] sm:$0xff] }
 0x47a   : > { %2736 = vmatpush.bf16.msra.mxu3 %v7914_v40  ;;  %v7931_v40 = vld [vmem:[#allocation30_spill] sm:$0xff] }
 0x47b   : > { %2701 = vmatpush.bf16.msrb.mxu0 %v7915_v8  ;;  %v7932_v8 = vld [vmem:[#allocation42_spill] sm:$0xff] }
 0x47c   : > { %2714 = vmatpush.bf16.msrb.mxu2 %v7916_v43  ;;  %2779 = vmatpush.bf16.msra.mxu1 %v7917_v60  ;;  %v7933_v43 = vld [vmem:[#allocation53_spill] sm:$0xff]  ;;  %v7934_v60 = vld [vmem:[#allocation40_spill] sm:$0xff] }
 0x47e   : > { %2737 = vmatpush.bf16.msra.mxu3 %v7918_v55  ;;  %v7935_v55 = vld [vmem:[#allocation48_spill] sm:$0xff] }
 0x47f   : > { %2702 = vmatpush.bf16.msrb.mxu0 %v7919_v61  ;;  %v7937_v61 = vld [vmem:[#allocation44_spill] sm:$0xff] }
 0x480   : > { %2715 = vmatpush.bf16.msrb.mxu2 %v7920_v51  ;;  %2780 = vmatpush.bf16.msra.mxu1 %v7921_v53  ;;  %v7938_v51 = vld [vmem:[#allocation47_spill] sm:$0xff]  ;;  %v7939_v53 = vld [vmem:[#allocation52_spill] sm:$0xff] }
 0x482   : > { %2738 = vmatpush.bf16.msra.mxu3 %v7922_v27  ;;  %v7940_v27 = vld [vmem:[#allocation61_spill] sm:$0xff] }
 0x483   : > { %2703 = vmatpush.bf16.msrb.mxu0 %v7923_v31  ;;  %v7941_v31 = vld [vmem:[#allocation51_spill] sm:$0xff] }
 0x484   : > { %2716 = vmatpush.bf16.msrb.mxu2 %v7925_v50  ;;  %2781 = vmatpush.bf16.msra.mxu1 %v7928_v37  ;;  %v7943_v50 = vld [vmem:[#allocation65_spill] sm:$0xff]  ;;  %v7946_v37 = vld [vmem:[#allocation68_spill] sm:$0xff] }
 0x485   : > { %4769 = vmatmul.msk.bf16.vlgmr.msrb.gmra.mxu3 %vm1395_vm2, %v2513_v54  ;;  %v7936_v54 = vld [vmem:[#allocation57_spill] sm:$0xff] }
 0x486   : > { %2739 = vmatpush.bf16.msra.mxu3 %v7927_v33  ;;  %v7945_v33 = vld [vmem:[#allocation60_spill] sm:$0xff] }
 0x487   : > { %2748 = vmatpush.bf16.msra.mxu0 %v7924_v26  ;;  %v7942_v26 = vld [vmem:[#allocation56_spill] sm:$0xff] }
 0x488   : > { %2761 = vmatpush.bf16.msra.mxu2 %v7926_v52  ;;  %v7944_v52 = vld [vmem:[#allocation55_spill] sm:$0xff] }
 0x48a   : > { %2740 = vmatpush.bf16.msra.mxu3 %v7931_v40  ;;  %v7949_v40 = vld [vmem:[#allocation71_spill] sm:$0xff] }
 0x48b   : > { %2749 = vmatpush.bf16.msra.mxu0 %v7929_v4  ;;  %v7947_v4 = vld [vmem:[#allocation59_spill] sm:$0xff] }
 0x48c   : > { %2762 = vmatpush.bf16.msra.mxu2 %v7930_v2  ;;  %v7948_v2 = vld [vmem:[#allocation64_spill] sm:$0xff] }
 0x48e   : > { %2741 = vmatpush.bf16.msra.mxu3 %v7934_v60  ;;  %v7952_v60 = vld [vmem:[#allocation70_spill] sm:$0xff] }
 0x48f   : > { %2750 = vmatpush.bf16.msra.mxu0 %v7932_v8  ;;  %v7950_v8 = vld [vmem:[#allocation63_spill] sm:$0xff] }
 0x490   : > { %2763 = vmatpush.bf16.msra.mxu2 %v7933_v43  ;;  %v7951_v43 = vld [vmem:[#allocation67_spill] sm:$0xff] }
 0x492   : > { %2742 = vmatpush.bf16.msra.mxu3 %v7937_v61 }
 0x493   : > { %2751 = vmatpush.bf16.msra.mxu0 %v7935_v55  ;;  %v7953_v55 = vld [vmem:[#allocation73_spill] sm:$0xff] }
 0x494   : > { %2764 = vmatpush.bf16.msra.mxu2 %v7936_v54 }
 0x496   : > { %2787 = vmatpush.bf16.msrb.mxu3 %v7938_v51 }
 0x497   : > { %2752 = vmatpush.bf16.msra.mxu0 %v7939_v53  ;;  %v4757_v53 = vld [vmem:[%s6163_s22 + $0x10] sm:$0xff] }
 0x498   : > { %2765 = vmatpush.bf16.msra.mxu2 %v7940_v27 }
 0x49a   : > { %2788 = vmatpush.bf16.msrb.mxu3 %v7941_v31 }
 0x49b   : > { %2753 = vmatpush.bf16.msra.mxu0 %v7942_v26 }
 0x49c   : > { %2766 = vmatpush.bf16.msra.mxu2 %v7943_v50 }
 0x49e   : > { %2789 = vmatpush.bf16.msrb.mxu3 %v7944_v52 }
 0x49f   : > { %2754 = vmatpush.bf16.msra.mxu0 %v7945_v33  ;;  %v2625_v33 = vunpack.c.l.bf16 %v4757_v53 }
 0x4a0   : > { %2767 = vmatpush.bf16.msra.mxu2 %v7946_v37 }
 0x4a2   : > { %2790 = vmatpush.bf16.msrb.mxu3 %v7947_v4 }
 0x4a3   : > { %2755 = vmatpush.bf16.msra.mxu0 %v7948_v2 }
 0x4a4   : > { %2768 = vmatpush.bf16.msra.mxu2 %v7949_v40 }
 0x4a6   : > { %2791 = vmatpush.bf16.msrb.mxu3 %v7950_v8 }
 0x4aa   : > { %2792 = vmatpush.bf16.msrb.mxu3 %v7951_v43 }
 0x4ae   : > { %2793 = vmatpush.bf16.msrb.mxu3 %v7952_v60 }
 0x4b2   : > { %2794 = vmatpush.bf16.msrb.mxu3 %v7953_v55 }
 0x4e2   : > { %v2539_v54 = vpop.f32.mrf.mxu0 }
 0x4e3   : > { %v2604_v61 = vpop.f32.mrf.mxu1 }
 0x4e8   : > { %v2526_v51 = vpop.f32.mrf.mxu3 }
 0x4e9   : > { %v2621_v27 = vpack.c.bf16 %v2539_v54, %v2526_v51  ;;  %v2552_v31 = vpop.f32.mrf.mxu2  ;;  %v4758_v51 = vld [vmem:[%s6163_s22 + $0x18] sm:$0xff] }
 0x4ea   : > { %v2541_v26 = vpop.f32.mrf.mxu0 }
 0x4eb   : > { %v2630_v50 = vunpack.c.h.bf16 %v2621_v27  ;;  %v2606_v52 = vpop.f32.mrf.mxu1  ;;  %v2629_v37 = vunpack.c.l.bf16 %v2621_v27  ;;  %v2626_v27 = vunpack.c.h.bf16 %v4757_v53 }
 0x4ed   : > { %v2645_v4 = vrot.slane %v2630_v50, 4 }
 0x4ef   : > { %v2649_v2 = vsel %vm852_vm0, %v2629_v37, %v2645_v4  ;;  %v2627_v4 = vunpack.c.l.bf16 %v4758_v51 }
 0x4f0   : > { %v2657_v40 = vmul.f32 %v2649_v2, %v2625_v33  ;;  %v2528_v8 = vpop.f32.mrf.mxu3 }
 0x4f1   : > { %v2554_v43 = vpop.f32.mrf.mxu2 }
 0x4f2   : > { %2665 = vst [vmem:[#allocation1] ss:$2 sm:$0xff] %v2657_v40  ;;  %v2578_v60 = vpop.f32.mrf.mxu0  ;;  %v6636_v43 = vld [vmem:[%s7618_s7 + $0x20] sm:$0xff] }
 0x4f8   : > { %v2565_v55 = vpop.f32.mrf.mxu3 }
 0x4f9   : > { %v2622_v41 = vpack.c.bf16 %v2565_v55, %v2552_v31  ;;  %v2591_v44 = vpop.f32.mrf.mxu2  ;;  %v2672_v35 = vld.sshfl [vmem:[#allocation1] sm:$0xff pattern:$0x75316420]  ;;  %v2673_v54 = vld.sshfl [vmem:[#allocation1 + $0x8] sm:$0xff pattern:$0x75316420] }
 0x4fa   : > { %v2623_v26 = vpack.c.bf16 %v2591_v44, %v2578_v60  ;;  %v2580_v59 = vpop.f32.mrf.mxu0  ;;  %v2688_v1 = vpack.c.bf16 %v2672_v35, %v2672_v35  ;;  %v2689_v52 = vpack.c.bf16 %v2673_v54, %v2673_v54 }
 0x4fb   : > { %v2632_v3 = vunpack.c.h.bf16 %v2622_v41  ;;  %v2631_v33 = vunpack.c.l.bf16 %v2622_v41 }
 0x4fc   : > { %v2634_v50 = vunpack.c.h.bf16 %v2623_v26  ;;  %2704 = vmatmul.bf16.vlgmr.msrb.gmra.mxu0 %v2688_v1  ;;  %2717 = vmatmul.bf16.vlgmr.msrb.gmra.mxu2 %v2689_v52  ;;  %v2633_v31 = vunpack.c.l.bf16 %v2623_v26 }
 0x4fd   : > { %v2646_v37 = vrot.slane %v2632_v3, 4  ;;  %2800 = vmatpush.bf16.msrb.mxu0 %v6174_v0  ;;  %2953 = vmatpush.bf16.msrb.mxu2 %v6187_v19  ;;  %v6622_v3 = vld [vmem:[%s7618_s7 + $0x30] sm:$0xff]  ;;  %v6629_v0 = vld [vmem:[%s7618_s7 + $0x28] sm:$0xff] }
 0x4fe   : > { %v2647_v2 = vrot.slane %v2634_v50, 4  ;;  %v2628_v50 = vunpack.c.h.bf16 %v4758_v51 }
 0x4ff   : > { %v2650_v40 = vsel %vm852_vm0, %v2631_v33, %v2646_v37  ;;  %v6646_v37 = vld [vmem:[%s7618_s7 + $0x18] sm:$0xff] }
 0x500   : > { %v2658_v44 = vmul.f32 %v2650_v40, %v2626_v27  ;;  %v2651_v35 = vsel %vm852_vm0, %v2633_v31, %v2647_v2  ;;  %v2567_v59 = vpop.f32.mrf.mxu3  ;;  %v7955_v31 = vld [vmem:[#allocation75_spill] sm:$0xff]  ;;  %v7957_v2 = vld [vmem:[#allocation76_spill] sm:$0xff] }
 0x501   : > { %v2659_v8 = vmul.f32 %v2651_v35, %v2627_v4  ;;  %v2593_v53 = vpop.f32.mrf.mxu2  ;;  %2801 = vmatpush.bf16.msrb.mxu0 %v6182_v38  ;;  %2954 = vmatpush.bf16.msrb.mxu2 %v6622_v3  ;;  %v4778_v40 = vld [vmem:[%s5354_s13 + $0x10] sm:$0xff] }
 0x502   : > { %2667 = vst [vmem:[#allocation1 + $0x10] ss:$2 sm:$0xff] %v2658_v44  ;;  %v7958_v44 = vld [vmem:[#allocation77_spill] sm:$0xff]  ;;  %v7961_v53 = vld [vmem:[#allocation79_spill] sm:$0xff] }
 0x503   : > { %2669 = vst [vmem:[#allocation1 + $0x20] ss:$2 sm:$0xff] %v2659_v8  ;;  %v7960_v8 = vld [vmem:[#allocation81_spill] sm:$0xff] }
 0x505   : > { %2802 = vmatpush.bf16.msrb.mxu0 %v6194_v5  ;;  %2955 = vmatpush.bf16.msrb.mxu2 %v6629_v0 }
 0x508   : > { %v2617_v19 = vpop.f32.mrf.mxu3 }
 0x509   : > { %v2624_v38 = vpack.c.bf16 %v2617_v19, %v2604_v61  ;;  %2803 = vmatpush.bf16.msrb.mxu0 %v6201_v18  ;;  %v2674_v1 = vld.sshfl [vmem:[#allocation1 + $0x10] sm:$0xff pattern:$0x75316420]  ;;  %v2675_v41 = vld.sshfl [vmem:[#allocation1 + $0x18] sm:$0xff pattern:$0x75316420]  ;;  %2956 = vmatpush.bf16.msrb.mxu2 %v6636_v43 }
 0x50a   : > { %v2676_v5 = vld.sshfl [vmem:[#allocation1 + $0x20] sm:$0xff pattern:$0x75316420]  ;;  %v2677_v60 = vld.sshfl [vmem:[#allocation1 + $0x28] sm:$0xff pattern:$0x75316420]  ;;  %v2690_v55 = vpack.c.bf16 %v2674_v1, %v2674_v1  ;;  %v2691_v54 = vpack.c.bf16 %v2675_v41, %v2675_v41 }
 0x50b   : > { %v2636_v26 = vunpack.c.h.bf16 %v2624_v38  ;;  %v2692_v52 = vpack.c.bf16 %v2676_v5, %v2676_v5  ;;  %v2693_v27 = vpack.c.bf16 %v2677_v60, %v2677_v60  ;;  %v2635_v18 = vunpack.c.l.bf16 %v2624_v38  ;;  %v4759_v1 = vld [vmem:[%s6351_s27 + $0x2] sm:$0x3]  ;;  %v7962_v41 = vld [vmem:[#allocation80_spill] sm:$0xff] }
 0x50c   : > { %2730 = vmatmul.bf16.vlgmr.msrb.gmra.mxu1 %v2690_v55  ;;  %2743 = vmatmul.bf16.vlgmr.msra.gmra.mxu3 %v2691_v54  ;;  %v7963_v5 = vld [vmem:[#allocation85_spill] sm:$0xff]  ;;  %v7964_v55 = vld [vmem:[#allocation83_spill] sm:$0xff]  ;;  %v6678_v54 = vld [vmem:[%s7618_s7 + $0x138] sm:$0xff] }
 0x50d   : > { %v2648_v61 = vrot.slane %v2636_v26, 4  ;;  %2756 = vmatmul.bf16.vlgmr.msra.gmra.mxu0 %v2692_v52  ;;  %2769 = vmatmul.bf16.vlgmr.msra.gmra.mxu2 %v2693_v27  ;;  %v6671_v60 = vld [vmem:[%s7618_s7] sm:$0xff]  ;;  %v7965_v26 = vld [vmem:[#allocation84_spill] sm:$0xff] }
 0x50e   : > { %2804 = vmatpush.bf16.msrb.mxu0 %v6221_v20  ;;  %2966 = vmatpush.bf16.msrb.mxu1 %v6207_v23  ;;  %v7954_v20 = vld [vmem:[#allocation74_spill] sm:$0xff]  ;;  %v6655_v23 = vld [vmem:[%s7618_s7 + $0x10] sm:$0xff]  ;;  %v7966_v52 = vld [vmem:[#allocation88_spill] sm:$0xff] }
 0x50f   : > { %v2652_v33 = vsel %vm852_vm0, %v2635_v18, %v2648_v61  ;;  %2979 = vmatpush.bf16.msra.mxu3 %v6213_v13  ;;  %2957 = vmatpush.bf16.msrb.mxu2 %v6646_v37  ;;  %v7956_v13 = vld [vmem:[#allocation78_spill] sm:$0xff] }
 0x510   : > { %v2660_v51 = vmul.f32 %v2652_v33, %v2628_v50  ;;  %v2619_v4 = vpop.f32.mrf.mxu3 }
 0x512   : > { %2671 = vst [vmem:[#allocation1 + $0x30] ss:$2 sm:$0xff] %v2660_v51  ;;  %2805 = vmatpush.bf16.msrb.mxu0 %v6240_v12  ;;  %2967 = vmatpush.bf16.msrb.mxu1 %v7954_v20  ;;  %v7959_v12 = vld [vmem:[#allocation82_spill] sm:$0xff] }
 0x513   : > { %2980 = vmatpush.bf16.msra.mxu3 %v7955_v31  ;;  %2958 = vmatpush.bf16.msrb.mxu2 %v6655_v23 }
 0x516   : > { %2806 = vmatpush.bf16.msrb.mxu0 %v7956_v13  ;;  %2968 = vmatpush.bf16.msrb.mxu1 %v7957_v2  ;;  %v7967_v13 = vld [vmem:[#allocation86_spill] sm:$0xff]  ;;  %v6687_v2 = vld [vmem:[%s7618_s7 + $0x130] sm:$0xff] }
 0x517   : > { %2981 = vmatpush.bf16.msra.mxu3 %v7958_v44  ;;  %2959 = vmatpush.bf16.msrb.mxu2 %v7959_v12  ;;  %7968 = vst [vmem:[#allocation14_spill] sm:$0xff] %v6687_v2 }
 0x519   : > { %v2678_v35 = vld.sshfl [vmem:[#allocation1 + $0x30] sm:$0xff pattern:$0x75316420]  ;;  %v2679_v59 = vld.sshfl [vmem:[#allocation1 + $0x38] sm:$0xff pattern:$0x75316420] }
 0x51a   : > { %2849 = vst [vmem:[#allocation1] ss:$9 sm:$0xff] %v4778_v40  ;;  %2807 = vmatpush.bf16.msrb.mxu0 %v7960_v8  ;;  %2969 = vmatpush.bf16.msrb.mxu1 %v7961_v53  ;;  %v2694_v19 = vpack.c.bf16 %v2678_v35, %v2678_v35  ;;  %v2695_v38 = vpack.c.bf16 %v2679_v59, %v2679_v59  ;;  %v4773_v40 = vld [vmem:[%s5384_s17 + $0x20] sm:$0xff]  ;;  %v7969_v53 = vld [vmem:[#allocation87_spill] sm:$0xff] }
 0x51b   : > { %2982 = vmatpush.bf16.msra.mxu3 %v7962_v41  ;;  %2960 = vmatpush.bf16.msrb.mxu2 %v6671_v60 }
 0x51c   : > { %2782 = vmatmul.bf16.vlgmr.msra.gmra.mxu1 %v2694_v19  ;;  %2795 = vmatmul.bf16.vlgmr.msrb.gmra.mxu3 %v2695_v38 }
 0x51d   : > { %2808 = vmatmul.bf16.vlgmr.msrb.gmra.mxu0 %v4759_v1 }
 0x51e   : > { %2992 = vmatpush.bf16.msra.mxu0 %v7963_v5  ;;  %2970 = vmatpush.bf16.msrb.mxu1 %v7964_v55 }
 0x51f   : > { %3005 = vmatpush.bf16.msra.mxu2 %v6678_v54  ;;  %2983 = vmatpush.bf16.msra.mxu3 %v7965_v26  ;;  %v4774_v26 = vld [vmem:[%s5384_s17 + $0x28] sm:$0xff] }
 0x521   : > { %v2850_v27 = vld [vmem:[#allocation1] sm:$0xff]  ;;  %v2851_v50 = vld [vmem:[#allocation1 + $0x9] sm:$0xff]  ;;  %v2852_v18 = vld [vmem:[#allocation1 + $0x12] sm:$0xff] }
 0x522   : > { %2993 = vmatpush.bf16.msra.mxu0 %v7966_v52  ;;  %v2858_v61 = vpack.i.b16 %v2850_v27, %v2850_v27  ;;  %v2861_v33 = vpack.i.b16 %v2851_v50, %v2851_v50  ;;  %v2864_v51 = vpack.i.b16 %v2852_v18, %v2852_v18  ;;  %v2853_v4 = vld [vmem:[#allocation1 + $0x1b] sm:$0xff]  ;;  %v2854_v20 = vld [vmem:[#allocation1 + $0x24] sm:$0xff]  ;;  %v2855_v31 = vld [vmem:[#allocation1 + $0x2d] sm:$0xff]  ;;  %2971 = vmatpush.bf16.msrb.mxu1 %v7967_v13  ;;  %v2882_v50 = vunpack.c.l.bf16 %v4773_v40 }
 0x523   : > { %3006 = vmatpush.bf16.msra.mxu2 %v6687_v2  ;;  %v2867_v44 = vpack.i.b16 %v2853_v4, %v2853_v4  ;;  %v2870_v12 = vpack.i.b16 %v2854_v20, %v2854_v20  ;;  %v2856_v35 = vld [vmem:[#allocation1 + $0x36] sm:$0xff]  ;;  %v2857_v59 = vld [vmem:[#allocation1 + $0x3f] sm:$0xff]  ;;  %v2873_v8 = vpack.i.b16 %v2855_v31, %v2855_v31  ;;  %2984 = vmatpush.bf16.msra.mxu3 %v7969_v53  ;;  %v6698_v31 = vld [vmem:[%s7618_s7 + $0x128] sm:$0xff]  ;;  %v2885_v2 = vunpack.c.h.bf16 %v4774_v26 }
 0x524   : > { %v2860_v19 = vperm.slane %v2858_v61, 0  ;;  %v2863_v38 = vperm.slane %v2861_v33, 0  ;;  %v2866_v1 = vperm.slane %v2864_v51, 0  ;;  %v2876_v41 = vpack.i.b16 %v2856_v35, %v2856_v35  ;;  %v7970_v20 = vld [vmem:[#allocation89_spill] sm:$0xff]  ;;  %7971 = vst [vmem:[#allocation17_spill] sm:$0xff] %v6698_v31  ;;  %v7972_v13 = vld [vmem:[#allocation90_spill] sm:$0xff] }
 0x525   : > { %v2869_v5 = vperm.slane %v2867_v44, 0  ;;  %v2872_v55 = vperm.slane %v2870_v12, 0  ;;  %v2875_v52 = vperm.slane %v2873_v8, 0  ;;  %v2879_v27 = vpack.i.b16 %v2857_v59, %v2857_v59 }
 0x526   : > { %2994 = vmatpush.bf16.msra.mxu0 %v6356_v24  ;;  %v2887_v18 = vunpack.c.l.bf16 %v2863_v38  ;;  %v2878_v4 = vperm.slane %v2876_v41, 0  ;;  %2972 = vmatpush.bf16.msrb.mxu1 %v7970_v20  ;;  %v2883_v24 = vunpack.c.h.bf16 %v4773_v40  ;;  %v2886_v44 = vunpack.c.l.bf16 %v2860_v19  ;;  %v6708_v40 = vld [vmem:[%s7618_s7 + $0x120] sm:$0xff] }
 0x527   : > { %3007 = vmatpush.bf16.msra.mxu2 %v6698_v31  ;;  %v2889_v61 = vunpack.c.l.bf16 %v2869_v5  ;;  %v2881_v33 = vperm.slane %v2879_v27, 0  ;;  %v2891_v51 = vunpack.c.l.bf16 %v2875_v52  ;;  %2985 = vmatpush.bf16.msra.mxu3 %v7972_v13  ;;  %v2888_v12 = vunpack.c.l.bf16 %v2866_v1  ;;  %v6721_v27 = vld [vmem:[%s7618_s7 + $0x118] sm:$0xff]  ;;  %v6800_v13 = vld [vmem:[%s7618_s7 + $0x150] sm:$0xff] }
 0x528   : > { %v2902_v35 = vrot.slane %v2887_v18, 4  ;;  %v2884_v59 = vunpack.c.l.bf16 %v4774_v26  ;;  %v2890_v8 = vunpack.c.l.bf16 %v2872_v55  ;;  %v2892_v31 = vunpack.c.l.bf16 %v2878_v4  ;;  %v6749_v4 = vld [vmem:[%s7618_s7 + $0x108] sm:$0xff] }
 0x529   : > { %v2903_v53 = vrot.slane %v2889_v61, 4  ;;  %v2893_v38 = vunpack.c.l.bf16 %v2881_v33  ;;  %v2904_v41 = vrot.slane %v2891_v51, 4  ;;  %v6775_v61 = vld [vmem:[%s7618_s7 + $0x158] sm:$0xff]  ;;  %v6794_v51 = vld [vmem:[%s7619_s8 + $0x10] sm:$0xff] }
 0x52a   : > { %2995 = vmatpush.bf16.msra.mxu0 %v6391_v11  ;;  %v2906_v20 = vsel %vm852_vm0, %v2886_v44, %v2902_v35  ;;  %2973 = vmatpush.bf16.msrb.mxu1 %v6364_v7  ;;  %v6788_v33 = vld [vmem:[%s7619_s8 + $0x18] sm:$0xff]  ;;  %v6813_v44 = vld [vmem:[%s7619_s8 + $0x8] sm:$0xff]  ;;  %v6819_v35 = vld [vmem:[%s7619_s8] sm:$0xff] }
 0x52b   : > { %3008 = vmatpush.bf16.msra.mxu2 %v6708_v40  ;;  %v2914_v11 = vmul.f32 %v2906_v20, %v2882_v50  ;;  %v2907_v19 = vsel %vm852_vm0, %v2888_v12, %v2903_v53  ;;  %v2905_v1 = vrot.slane %v2893_v38, 4  ;;  %v2908_v5 = vsel %vm852_vm0, %v2890_v8, %v2904_v41  ;;  %2986 = vmatpush.bf16.msra.mxu3 %v6370_v39  ;;  %v6730_v39 = vld [vmem:[%s7618_s7 + $0x110] sm:$0xff]  ;;  %v6838_v41 = vld [vmem:[%s7618_s7 + $0x140] sm:$0xff] }
 0x52c   : > { %v2915_v55 = vmul.f32 %v2907_v19, %v2883_v24  ;;  %v2916_v26 = vmul.f32 %v2908_v5, %v2884_v59  ;;  %v6762_v24 = vld [vmem:[%s7618_s7 + $0x1a0] sm:$0xff]  ;;  %v6825_v59 = vld [vmem:[%s7618_s7 + $0x148] sm:$0xff]  ;;  %v7973_v19 = vld [vmem:[#allocation3_spill] sm:$0xff] }
 0x52d   : > { %2922 = vst [vmem:[#allocation1] ss:$2 sm:$0xff] %v2914_v11  ;;  %v2909_v7 = vsel %vm852_vm0, %v2892_v31, %v2905_v1  ;;  %v6756_v31 = vld [vmem:[%s7618_s7 + $0x160] sm:$0xff]  ;;  %v6866_v1 = vld [vmem:[%s7616_s5 + $0xb8] sm:$0xff] }
 0x52e   : > { %2996 = vmatpush.bf16.msra.mxu0 %v6411_v36  ;;  %3018 = vmatpush.bf16.msra.mxu1 %v6378_v17  ;;  %2924 = vst [vmem:[#allocation1 + $0x10] ss:$2 sm:$0xff] %v2915_v55  ;;  %v2917_v52 = vmul.f32 %v2909_v7, %v2885_v2  ;;  %v6737_v17 = vld [vmem:[%s7618_s7 + $0x168] sm:$0xff]  ;;  %v6844_v20 = vld [vmem:[%s7618_s7 + $0x180] sm:$0xff]  ;;  %v6890_v55 = vld [vmem:[%s7616_s5 + $0x98] sm:$0xff] }
 0x52f   : > { %3031 = vmatpush.bf16.msrb.mxu3 %v6384_v21  ;;  %3009 = vmatpush.bf16.msra.mxu2 %v6721_v27  ;;  %2926 = vst [vmem:[#allocation1 + $0x20] ss:$2 sm:$0xff] %v2916_v26  ;;  %v6743_v21 = vld [vmem:[%s7618_s7 + $0x1a8] sm:$0xff]  ;;  %v6884_v5 = vld [vmem:[%s7616_s5 + $0xa0] sm:$0xff]  ;;  %v6896_v26 = vld [vmem:[%s7616_s5 + $0x90] sm:$0xff] }
 0x530   : > { %2928 = vst [vmem:[#allocation1 + $0x30] ss:$2 sm:$0xff] %v2917_v52  ;;  %v6902_v7 = vld [vmem:[%s7616_s5 + $0x88] sm:$0xff]  ;;  %v6908_v52 = vld [vmem:[%s7616_s5 + $0x80] sm:$0xff] }
 0x531   : > { %7974 = vst [vmem:[#allocation20_spill] sm:$0xff] %v6866_v1 }
 0x532   : > { %2997 = vmatpush.bf16.msra.mxu0 %v6420_v16  ;;  %3019 = vmatpush.bf16.msra.mxu1 %v6399_v22  ;;  %7977 = vst [vmem:[#allocation39_spill] sm:$0xff] %v6884_v5 }
 0x533   : > { %3032 = vmatpush.bf16.msrb.mxu3 %v6405_v28  ;;  %3010 = vmatpush.bf16.msra.mxu2 %v6730_v39  ;;  %7978 = vst [vmem:[#allocation43_spill] sm:$0xff] %v6890_v55 }
 0x534   : > { %v2929_v22 = vld.sshfl [vmem:[#allocation1] sm:$0xff pattern:$0x75316420]  ;;  %v2930_v28 = vld.sshfl [vmem:[#allocation1 + $0x8] sm:$0xff pattern:$0x75316420] }
 0x535   : > { %v2945_v36 = vpack.c.bf16 %v2929_v22, %v2929_v22  ;;  %v2946_v16 = vpack.c.bf16 %v2930_v28, %v2930_v28  ;;  %v2931_v2 = vld.sshfl [vmem:[#allocation1 + $0x10] sm:$0xff pattern:$0x75316420]  ;;  %7979 = vst [vmem:[#allocation4_spill] sm:$0xff] %v6896_v26 }
 0x536   : > { %2998 = vmatpush.bf16.msra.mxu0 %v6429_v34  ;;  %3020 = vmatpush.bf16.msra.mxu1 %v6737_v17  ;;  %v2932_v34 = vld.sshfl [vmem:[#allocation1 + $0x18] sm:$0xff pattern:$0x75316420]  ;;  %v2947_v50 = vpack.c.bf16 %v2931_v2, %v2931_v2  ;;  %v2933_v12 = vld.sshfl [vmem:[#allocation1 + $0x20] sm:$0xff pattern:$0x75316420] }
 0x537   : > { %3033 = vmatpush.bf16.msrb.mxu3 %v6743_v21  ;;  %v2948_v18 = vpack.c.bf16 %v2932_v34, %v2932_v34  ;;  %3011 = vmatpush.bf16.msra.mxu2 %v6749_v4  ;;  %v2949_v8 = vpack.c.bf16 %v2933_v12, %v2933_v12  ;;  %v2934_v53 = vld.sshfl [vmem:[#allocation1 + $0x28] sm:$0xff pattern:$0x75316420]  ;;  %v2935_v38 = vld.sshfl [vmem:[#allocation1 + $0x30] sm:$0xff pattern:$0x75316420] }
 0x538   : > { %2961 = vmatmul.bf16.vlgmr.msrb.gmra.mxu2 %v2945_v36  ;;  %2974 = vmatmul.bf16.vlgmr.msrb.gmra.mxu1 %v2946_v16  ;;  %v2951_v11 = vpack.c.bf16 %v2935_v38, %v2935_v38  ;;  %7980 = vst [vmem:[#allocation6_spill] sm:$0xff] %v6902_v7 }
 0x539   : > { %2987 = vmatmul.bf16.vlgmr.msra.gmra.mxu3 %v2947_v50  ;;  %7981 = vst [vmem:[#allocation21_spill] sm:$0xff] %v6908_v52 }
 0x53a   : > { %2999 = vmatpush.bf16.msra.mxu0 %v6438_v46  ;;  %3021 = vmatpush.bf16.msra.mxu1 %v6756_v31  ;;  %v6769_v46 = vld [vmem:[%s7618_s7 + $0x100] sm:$0xff] }
 0x53b   : > { %3034 = vmatpush.bf16.msrb.mxu3 %v6762_v24  ;;  %3012 = vmatpush.bf16.msra.mxu2 %v6769_v46 }
 0x53d   : > { %3000 = vmatmul.bf16.vlgmr.msra.gmra.mxu0 %v2948_v18 }
 0x53e   : > { %3044 = vmatpush.bf16.msrb.mxu0 %v6444_v48  ;;  %3022 = vmatpush.bf16.msra.mxu1 %v6775_v61  ;;  %v6781_v48 = vld [vmem:[%s7618_s7 + $0x198] sm:$0xff] }
 0x53f   : > { %3035 = vmatpush.bf16.msrb.mxu3 %v6781_v48  ;;  %3078 = vmatpush.msrb.mxu2 %v6788_v33 }
 0x541   : > { %3079 = vmatpush.msrb.mxu2 %v6794_v51 }
 0x542   : > { %3045 = vmatpush.bf16.msrb.mxu0 %v6454_v49  ;;  %3023 = vmatpush.bf16.msra.mxu1 %v6800_v13  ;;  %v6806_v49 = vld [vmem:[%s7618_s7 + $0x190] sm:$0xff] }
 0x543   : > { %3036 = vmatpush.bf16.msrb.mxu3 %v6806_v49  ;;  %3080 = vmatpush.msrb.mxu2 %v6813_v44 }
 0x545   : > { %3081 = vmatpush.msrb.mxu2 %v6819_v35 }
 0x546   : > { %3046 = vmatpush.bf16.msrb.mxu0 %v6464_v57  ;;  %3024 = vmatpush.bf16.msra.mxu1 %v6825_v59  ;;  %v6831_v57 = vld [vmem:[%s7618_s7 + $0x188] sm:$0xff] }
 0x547   : > { %3037 = vmatpush.bf16.msrb.mxu3 %v6831_v57 }
 0x548   : > { %3013 = vmatmul.bf16.vlgmr.msra.gmra.mxu2 %v2949_v8 }
 0x549   : > { %3111 = vmatpush.bf16.msra.mxu2 %v5644_v14 }
 0x54a   : > { %3047 = vmatpush.bf16.msrb.mxu0 %v6476_v45  ;;  %3025 = vmatpush.bf16.msra.mxu1 %v6838_v41  ;;  %v2950_v45 = vpack.c.bf16 %v2934_v53, %v2934_v53 }
 0x54b   : > { %3038 = vmatpush.bf16.msrb.mxu3 %v6844_v20 }
 0x54d   : > { %3026 = vmatmul.bf16.vlgmr.msra.gmra.mxu1 %v2950_v45  ;;  %3112 = vmatpush.bf16.msra.mxu2 %v5680_v29 }
 0x54e   : > { %3048 = vmatpush.bf16.msrb.mxu0 %v6487_v62  ;;  %3098 = vmatpush.bf16.msrb.mxu1 %v5633_v9  ;;  %v2936_v62 = vld.sshfl [vmem:[#allocation1 + $0x38] sm:$0xff pattern:$0x75316420] }
 0x54f   : > { %3124 = vmatpush.bf16.msra.mxu3 %v5705_v42 }
 0x550   : > { %3039 = vmatmul.bf16.vlgmr.msrb.gmra.mxu3 %v2951_v11 }
 0x552   : > { %3049 = vmatpush.bf16.msrb.mxu0 %v6495_v63  ;;  %3099 = vmatpush.bf16.msrb.mxu1 %v5669_v25  ;;  %v2952_v63 = vpack.c.bf16 %v2936_v62, %v2936_v62 }
 0x553   : > { %3125 = vmatpush.bf16.msra.mxu3 %v5730_v10 }
 0x556   : > { %3137 = vmatpush.bf16.msra.mxu1 %v5646_v15  ;;  %3050 = vmatpush.bf16.msrb.mxu0 %v6501_v47  ;;  %v6872_v47 = vld [vmem:[%s7616_s5 + $0xb0] sm:$0xff] }
 0x557   : > { %3163 = vmatpush.bf16.msrb.mxu3 %v7894_v32  ;;  %7975 = vst [vmem:[#allocation24_spill] sm:$0xff] %v6872_v47 }
 0x55a   : > { %3138 = vmatpush.bf16.msra.mxu1 %v5682_v30  ;;  %3051 = vmatpush.bf16.msrb.mxu0 %v6507_v56  ;;  %v6878_v56 = vld [vmem:[%s7616_s5 + $0xa8] sm:$0xff] }
 0x55b   : > { %3164 = vmatpush.bf16.msrb.mxu3 %v7895_v58  ;;  %7976 = vst [vmem:[#allocation28_spill] sm:$0xff] %v6878_v56 }
 0x55d   : > { %3052 = vmatmul.bf16.vlgmr.msrb.gmra.mxu0 %v2952_v63 }
 0x55e   : > { %3176 = vmatpush.bf16.msra.mxu0 %v7880_v6 }
 0x562   : > { %3177 = vmatpush.bf16.msra.mxu0 %v7973_v19 }
 0x566   : > { %3297 = vmatpush.bf16.msrb.mxu0 %v6866_v1  ;;  %v7982_v1 = vld [vmem:[#allocation2_spill] sm:$0xff] }
 0x56a   : > { %3298 = vmatpush.bf16.msrb.mxu0 %v6872_v47 }
 0x56e   : > { %3299 = vmatpush.bf16.msrb.mxu0 %v6878_v56 }
 0x572   : > { %3300 = vmatpush.bf16.msrb.mxu0 %v6884_v5 }
 0x576   : > { %3301 = vmatpush.bf16.msrb.mxu0 %v6890_v55 }
 0x579   : > { %v2705_v22 = vpop.f32.mrf.mxu0 }
 0x57a   : > { %3302 = vmatpush.bf16.msrb.mxu0 %v6896_v26 }
 0x57e   : > { %3303 = vmatpush.bf16.msrb.mxu0 %v6902_v7 }
 0x57f   : > { %v2718_v28 = vpop.f32.mrf.mxu2 }
 0x580   : > { %v2719_v18 = vadd.f32 %v2718_v28, %v2705_v22 }
 0x581   : > { %v2707_v36 = vpop.f32.mrf.mxu0 }
 0x582   : > { %3304 = vmatpush.bf16.msrb.mxu0 %v6908_v52 }
 0x587   : > { %v2720_v16 = vpop.f32.mrf.mxu2 }
 0x589   : > { %v2731_v2 = vpop.f32.mrf.mxu1 }
 0x58a   : > { %v2757_v34 = vpop.f32.mrf.mxu0  ;;  %v2732_v53 = vadd.f32 %v2731_v2, %v2719_v18 }
 0x58f   : > { %v2744_v50 = vpop.f32.mrf.mxu3 }
 0x590   : > { %v2770_v12 = vpop.f32.mrf.mxu2  ;;  %v2745_v45 = vadd.f32 %v2744_v50, %v2732_v53 }
 0x591   : > { %v2733_v8 = vpop.f32.mrf.mxu1 }
 0x592   : > { %v2759_v38 = vpop.f32.mrf.mxu0  ;;  %v2758_v62 = vadd.f32 %v2757_v34, %v2745_v45 }
 0x594   : > { %v2771_v55 = vadd.f32 %v2770_v12, %v2758_v62 }
 0x597   : > { %v2746_v11 = vpop.f32.mrf.mxu3 }
 0x598   : > { %v2772_v63 = vpop.f32.mrf.mxu2 }
 0x599   : > { %v2783_v7 = vpop.f32.mrf.mxu1 }
 0x59a   : > { %v2809_v26 = vpop.f32.mrf.mxu0  ;;  %v2784_v52 = vadd.f32 %v2783_v7, %v2771_v55 }
 0x59f   : > { %v2796_v5 = vpop.f32.mrf.mxu3 }
 0x5a0   : > { %v2797_v56 = vadd.f32 %v2796_v5, %v2784_v52 }
 0x5a1   : > { %v2785_v36 = vpop.f32.mrf.mxu1 }
 0x5a2   : > { %v2810_v16 = vadd.f32 %v2809_v26, %v2797_v56  ;;  %v2811_v47 = vpop.f32.mrf.mxu0  ;;  %v4771_v36 = vld [vmem:[%s6531_s28 + $0x2] sm:$0x3] }
 0x5a4   : > { %v2813_v19 = vadd.f32 %v7982_v1, %v2810_v16 }
 0x5a6   : > { %v4770_v22 = vmul.f32 -1.442695, %v2813_v19 }
 0x5a7   : > { %v2798_v28 = vpop.f32.mrf.mxu3 }
 0x5a8   : > { %5002 = vpow2.f32 %v4770_v22 }
 0x5ae   : > { %v5003_v2 = vpop.eup %5002 }
 0x5af   : > { %v2817_v18 = vadd.f32 1.0, %v5003_v2 }
 0x5b1   : > { %5004 = vrcp.f32 %v2817_v18  ;;  %v2829_v55 = vand.u32 2147483648, %v2817_v18  ;;  %v2827_v56 = vand.u32 2147483647, %v2817_v18  ;;  %vm2823_vm11 = vweird.f32 %v2817_v18 }
 0x5b3   : > { %v2830_v5 = vor.u32 1.1754944e-38, %v2829_v55  ;;  %vm2828_vm13 = vcmp.eq.f32.partialorder %v2827_v56, 8.507059e+37 }
 0x5b5   : > { %v2975_v50 = vpop.f32.mrf.mxu1 }
 0x5b7   : > { %v5005_v34 = vpop.eup %5004 }
 0x5b8   : > { %v2819_v53 = vmul.f32 %v5005_v34, %v2817_v18  ;;  %vm2824_vm10 = vweird.f32 %v5005_v34 }
 0x5b9   : > { %vm2825_vm12 = vmor %vm2823_vm11, %vm2824_vm10 }
 0x5ba   : > { %v3001_v8 = vpop.f32.mrf.mxu0  ;;  %v2820_v38 = vsub.f32 1.0, %v2819_v53 }
 0x5bb   : > { %v2962_v12 = vpop.f32.mrf.mxu2 }
 0x5bc   : > { %v2821_v7 = vmul.f32 %v5005_v34, %v2820_v38  ;;  %v2988_v47 = vpop.f32.mrf.mxu3  ;;  %v2976_v62 = vadd.f32 %v2975_v50, %v2962_v12 }
 0x5bd   : > { %v2977_v19 = vpop.f32.mrf.mxu1 }
 0x5be   : > { %v2822_v1 = vadd.f32 %v5005_v34, %v2821_v7  ;;  %v2989_v2 = vadd.f32 %v2988_v47, %v2976_v62  ;;  %v7985_v62 = vld [vmem:[#allocation12_spill] sm:$0xff] }
 0x5c0   : > { %v2826_v52 = vsel %vm2825_vm12, %v5005_v34, %v2822_v1  ;;  %v3002_v38 = vadd.f32 %v3001_v8, %v2989_v2  ;;  %v7984_v8 = vld [vmem:[#allocation8_spill] sm:$0xff] }
 0x5c1   : > { %v2831_v45 = vsel %vm2828_vm13, %v2830_v5, %v2826_v52 }
 0x5c2   : > { %v3003_v26 = vpop.f32.mrf.mxu0  ;;  %v2833_v11 = vpack.c.bf16 %v2831_v45, %v2831_v45 }
 0x5c3   : > { %v2964_v63 = vpop.f32.mrf.mxu2 }
 0x5c4   : > { %v2836_v22 = vsel %vm6534_vm9, %v2833_v11, %v4771_v36  ;;  %v2990_v28 = vpop.f32.mrf.mxu3 }
 0x5c5   : > { %4772 = vst [vmem:[%s6531_s28 + $0x2] sm:$0x3] %v2836_v22 }
 0x5ca   : > { %v3027_v53 = vpop.f32.mrf.mxu1 }
 0x5cb   : > { %v3014_v18 = vpop.f32.mrf.mxu2 }
 0x5cc   : > { %v3015_v7 = vadd.f32 %v3014_v18, %v3002_v38  ;;  %v6934_v38 = vld [vmem:[%s7616_s5 + $0x38] sm:$0xff] }
 0x5cd   : > { %7987 = vst [vmem:[#allocation9_spill] sm:$0xff] %v6934_v38  ;;  %v6940_v18 = vld [vmem:[%s7616_s5 + $0x78] sm:$0xff] }
 0x5ce   : > { %v3028_v55 = vadd.f32 %v3027_v53, %v3015_v7  ;;  %v7986_v53 = vld [vmem:[#allocation5_spill] sm:$0xff]  ;;  %7988 = vst [vmem:[#allocation46_spill] sm:$0xff] %v6940_v18  ;;  %v6946_v7 = vld [vmem:[%s7616_s5 + $0x1b8] sm:$0xff] }
 0x5cf   : > { %7989 = vst [vmem:[#allocation25_spill] sm:$0xff] %v6946_v7 }
 0x5d2   : > { %v3029_v26 = vpop.f32.mrf.mxu1 }
 0x5d3   : > { %v3040_v19 = vpop.f32.mrf.mxu3  ;;  %v3016_v34 = vpop.f32.mrf.mxu2  ;;  %v6959_v26 = vld [vmem:[%s7616_s5 + $0x70] sm:$0xff] }
 0x5d4   : > { %v3041_v56 = vadd.f32 %v3040_v19, %v3028_v55  ;;  %v7990_v19 = vld [vmem:[#allocation7_spill] sm:$0xff]  ;;  %7992 = vst [vmem:[#allocation50_spill] sm:$0xff] %v6959_v26 }
 0x5d5   : > { %v6953_v55 = vld [vmem:[%s7616_s5 + $0x30] sm:$0xff] }
 0x5d6   : > { %7991 = vst [vmem:[#allocation13_spill] sm:$0xff] %v6953_v55  ;;  %v6965_v34 = vld [vmem:[%s7616_s5 + $0x1b0] sm:$0xff] }
 0x5d7   : > { %7993 = vst [vmem:[#allocation29_spill] sm:$0xff] %v6965_v34 }
 0x5da   : > { %v3053_v1 = vpop.f32.mrf.mxu0 }
 0x5db   : > { %v3054_v5 = vadd.f32 %v3053_v1, %v3041_v56  ;;  %v3042_v50 = vpop.f32.mrf.mxu3  ;;  %v6971_v56 = vld [vmem:[%s7616_s5 + $0x28] sm:$0xff] }
 0x5dc   : > { %7994 = vst [vmem:[#allocation16_spill] sm:$0xff] %v6971_v56  ;;  %v6977_v1 = vld [vmem:[%s7616_s5 + $0x68] sm:$0xff]  ;;  %v6989_v50 = vld [vmem:[%s7616_s5 + $0x20] sm:$0xff] }
 0x5dd   : > { %v3057_v12 = vsel %vm1388_vm1, %v3054_v5, -inf  ;;  %7995 = vst [vmem:[#allocation54_spill] sm:$0xff] %v6977_v1 }
 0x5de   : > { %3058 = vmax.xlane.f32.xlu1 %v3057_v12  ;;  %7997 = vst [vmem:[#allocation19_spill] sm:$0xff] %v6989_v50  ;;  %v6995_v12 = vld [vmem:[%s7616_s5 + $0x60] sm:$0xff] }
 0x5df   : > { %7998 = vst [vmem:[#allocation58_spill] sm:$0xff] %v6995_v12 }
 0x5e2   : > { %v3055_v52 = vpop.f32.mrf.mxu0 }
 0x5e3   : > { %v7001_v52 = vld [vmem:[%s7616_s5 + $0x1a0] sm:$0xff] }
 0x5e4   : > { %7999 = vst [vmem:[#allocation11_spill] sm:$0xff] %v7001_v52 }
 0x651   : > { %v3059_v45 = vpop.xlane.xlu1 %3058 }
 0x652   : > { %v3060_v11 = vsub.f32 %v3054_v5, %v3059_v45  ;;  %v6983_v5 = vld [vmem:[%s7616_s5 + $0x1a8] sm:$0xff]  ;;  %v7013_v45 = vld [vmem:[%s7616_s5 + $0xf8] sm:$0xff] }
 0x653   : > { %7996 = vst [vmem:[#allocation31_spill] sm:$0xff] %v6983_v5 }
 0x654   : > { %v3061_v63 = vmul.f32 1.442695, %v3060_v11  ;;  %8000 = vst [vmem:[#allocation32_spill] sm:$0xff] %v7013_v45  ;;  %v7019_v11 = vld [vmem:[%s7616_s5 + $0x18] sm:$0xff] }
 0x655   : > { %8001 = vst [vmem:[#allocation23_spill] sm:$0xff] %v7019_v11 }
 0x656   : > { %5006 = vpow2.f32 %v3061_v63  ;;  %v7025_v63 = vld [vmem:[%s7616_s5 + $0x58] sm:$0xff] }
 0x657   : > { %8002 = vst [vmem:[#allocation62_spill] sm:$0xff] %v7025_v63 }
 0x65c   : > { %v5007_v47 = vpop.eup %5006 }
 0x65d   : > { %4779 = vmatmul.msk.f32.vlgmr.msrb.gmra.mxu2 %vm1395_vm2, %v5007_v47 }
 0x65e   : > { %3150 = vmatpush.bf16.msrb.mxu2 %v7984_v8 }
 0x662   : > { %3151 = vmatpush.bf16.msrb.mxu2 %v7985_v62  ;;  %v4776_v62 = vld [vmem:[%s6163_s22 + $0x28] sm:$0xff] }
 0x6e0   : > { %v3083_v36 = vpop.f32.mrf.mxu2 }
 0x6e1   : > { %5008 = vrcp.f32 %v3083_v36  ;;  %v7037_v36 = vld [vmem:[%s7616_s5 + $0xf0] sm:$0xff] }
 0x6e2   : > { %8004 = vst [vmem:[#allocation33_spill] sm:$0xff] %v7037_v36 }
 0x6e7   : > { %v5009_v22 = vpop.eup %5008 }
 0x6e8   : > { %v3087_v28 = vmul.f32 %v5009_v22, %v5007_v47  ;;  %v7031_v47 = vld [vmem:[%s7616_s5 + $0x198] sm:$0xff]  ;;  %v7043_v22 = vld [vmem:[%s7616_s5 + $0x10] sm:$0xff] }
 0x6e9   : > { %8003 = vst [vmem:[#allocation15_spill] sm:$0xff] %v7031_v47 }
 0x6ea   : > { %v6920_v2 = vpack.c.bf16 %v3087_v28, %v3087_v28  ;;  %8005 = vst [vmem:[#allocation27_spill] sm:$0xff] %v7043_v22  ;;  %v7049_v28 = vld [vmem:[%s7616_s5 + $0x50] sm:$0xff] }
 0x6eb   : > { %8006 = vst [vmem:[#allocation66_spill] sm:$0xff] %v7049_v28 }
 0x6ec   : > { %4780 = vmatmul.msk.bf16.vlgmr.msrb.gmra.mxu1 %vm1395_vm2, %v6920_v2  ;;  %4781 = vmatmul.msk.bf16.vlgmr.msra.gmra.mxu2 %vm1395_vm2, %v6920_v2 }
 0x6ed   : > { %4782 = vmatmul.msk.bf16.vlgmr.msra.gmra.mxu3 %vm1395_vm2, %v6920_v2  ;;  %4786 = vmatmul.msk.bf16.vlgmr.msra.gmra.mxu0 %vm1395_vm2, %v6920_v2 }
 0x6ee   : > { %3189 = vmatpush.bf16.msrb.mxu1 %v7986_v53  ;;  %3271 = vmatpush.bf16.msra.mxu2 %v6934_v38 }
 0x6ef   : > { %3284 = vmatpush.bf16.msra.mxu3 %v6940_v18  ;;  %3349 = vmatpush.bf16.msra.mxu0 %v6946_v7 }
 0x6f2   : > { %3190 = vmatpush.bf16.msrb.mxu1 %v7990_v19  ;;  %3272 = vmatpush.bf16.msra.mxu2 %v6953_v55 }
 0x6f3   : > { %3285 = vmatpush.bf16.msra.mxu3 %v6959_v26  ;;  %3350 = vmatpush.bf16.msra.mxu0 %v6965_v34 }
 0x6f6   : > { %3273 = vmatpush.bf16.msra.mxu2 %v6971_v56 }
 0x6f7   : > { %3286 = vmatpush.bf16.msra.mxu3 %v6977_v1  ;;  %3351 = vmatpush.bf16.msra.mxu0 %v6983_v5 }
 0x6fa   : > { %3274 = vmatpush.bf16.msra.mxu2 %v6989_v50 }
 0x6fb   : > { %3287 = vmatpush.bf16.msra.mxu3 %v6995_v12  ;;  %3352 = vmatpush.bf16.msra.mxu0 %v7001_v52 }
 0x6fc   : > { %4783 = vmatmul.msk.bf16.vlgmr.msra.gmra.mxu1 %vm1395_vm2, %v6920_v2  ;;  %4784 = vmatmul.msk.bf16.vlgmr.msrb.gmra.mxu2 %vm1395_vm2, %v6920_v2 }
 0x6fd   : > { %4785 = vmatmul.msk.bf16.vlgmr.msrb.gmra.mxu3 %vm1395_vm2, %v6920_v2  ;;  %3310 = vmatpush.bf16.msra.mxu1 %v7013_v45 }
 0x6fe   : > { %3275 = vmatpush.bf16.msra.mxu2 %v7019_v11  ;;  %v4775_v11 = vld [vmem:[%s6163_s22 + $0x20] sm:$0xff] }
 0x6ff   : > { %3288 = vmatpush.bf16.msra.mxu3 %v7025_v63  ;;  %3353 = vmatpush.bf16.msra.mxu0 %v7031_v47  ;;  %v7055_v47 = vld [vmem:[%s7616_s5 + $0x190] sm:$0xff]  ;;  %v3200_v5 = vunpack.c.l.bf16 %v4775_v11  ;;  %v3201_v18 = vunpack.c.h.bf16 %v4775_v11 }
 0x700   : > { %8007 = vst [vmem:[#allocation18_spill] sm:$0xff] %v7055_v47 }
 0x701   : > { %3311 = vmatpush.bf16.msra.mxu1 %v7037_v36  ;;  %v7061_v36 = vld [vmem:[%s7616_s5 + $0xe8] sm:$0xff] }
 0x702   : > { %3276 = vmatpush.bf16.msra.mxu2 %v7043_v22  ;;  %8008 = vst [vmem:[#allocation34_spill] sm:$0xff] %v7061_v36  ;;  %v7067_v22 = vld [vmem:[%s7616_s5 + $0x8] sm:$0xff] }
 0x703   : > { %3289 = vmatpush.bf16.msra.mxu3 %v7049_v28  ;;  %3354 = vmatpush.bf16.msra.mxu0 %v7055_v47  ;;  %8009 = vst [vmem:[#allocation37_spill] sm:$0xff] %v7067_v22  ;;  %v7073_v28 = vld [vmem:[%s7616_s5 + $0x48] sm:$0xff] }
 0x704   : > { %8010 = vst [vmem:[#allocation69_spill] sm:$0xff] %v7073_v28  ;;  %v7079_v47 = vld [vmem:[%s7616_s5 + $0x188] sm:$0xff] }
 0x705   : > { %3312 = vmatpush.bf16.msra.mxu1 %v7061_v36  ;;  %8011 = vst [vmem:[#allocation22_spill] sm:$0xff] %v7079_v47  ;;  %v7085_v36 = vld [vmem:[%s7616_s5 + $0xe0] sm:$0xff] }
 0x706   : > { %3277 = vmatpush.bf16.msra.mxu2 %v7067_v22  ;;  %8012 = vst [vmem:[#allocation35_spill] sm:$0xff] %v7085_v36  ;;  %v7091_v22 = vld [vmem:[%s7616_s5] sm:$0xff] }
 0x707   : > { %3290 = vmatpush.bf16.msra.mxu3 %v7073_v28  ;;  %3355 = vmatpush.bf16.msra.mxu0 %v7079_v47  ;;  %8013 = vst [vmem:[#allocation36_spill] sm:$0xff] %v7091_v22  ;;  %v7097_v28 = vld [vmem:[%s7616_s5 + $0x138] sm:$0xff]  ;;  %v7103_v47 = vld [vmem:[%s7616_s5 + $0x40] sm:$0xff] }
 0x708   : > { %8014 = vst [vmem:[#allocation41_spill] sm:$0xff] %v7097_v28 }
 0x709   : > { %3313 = vmatpush.bf16.msra.mxu1 %v7085_v36  ;;  %8015 = vst [vmem:[#allocation45_spill] sm:$0xff] %v7103_v47 }
 0x70a   : > { %3278 = vmatpush.bf16.msra.mxu2 %v7091_v22  ;;  %v7111_v22 = vld [vmem:[%s7616_s5 + $0x178] sm:$0xff] }
 0x70b   : > { %3291 = vmatpush.bf16.msra.mxu3 %v7103_v47  ;;  %8016 = vst [vmem:[#allocation26_spill] sm:$0xff] %v7111_v22  ;;  %v7123_v47 = vld [vmem:[%s7616_s5 + $0x180] sm:$0xff] }
 0x70c   : > { %4787 = vmatmul.msk.bf16.vlgmr.msrb.gmra.mxu1 %vm1395_vm2, %v6920_v2  ;;  %8018 = vst [vmem:[#allocation38_spill] sm:$0xff] %v7123_v47  ;;  %3356 = vmatpush.bf16.msra.mxu0 %v7123_v47  ;;  %v7129_v2 = vld [vmem:[%s7616_s5 + $0x130] sm:$0xff]  ;;  %v7147_v47 = vld [vmem:[%s7616_s5 + $0x128] sm:$0xff] }
 0x70d   : > { %8019 = vst [vmem:[#allocation49_spill] sm:$0xff] %v7129_v2 }
 0x70e   : > { %3323 = vmatpush.bf16.msrb.mxu2 %v7097_v28  ;;  %v7117_v28 = vld [vmem:[%s7616_s5 + $0xd8] sm:$0xff]  ;;  %8022 = vst [vmem:[#allocation53_spill] sm:$0xff] %v7147_v47 }
 0x70f   : > { %3336 = vmatpush.bf16.msrb.mxu3 %v7111_v22  ;;  %8017 = vst [vmem:[#allocation72_spill] sm:$0xff] %v7117_v28  ;;  %3314 = vmatpush.bf16.msra.mxu1 %v7117_v28  ;;  %v7135_v22 = vld [vmem:[%s7616_s5 + $0x170] sm:$0xff] }
 0x710   : > { %8020 = vst [vmem:[#allocation30_spill] sm:$0xff] %v7135_v22  ;;  %v7141_v28 = vld [vmem:[%s7616_s5 + $0xd0] sm:$0xff] }
 0x711   : > { %8021 = vst [vmem:[#allocation42_spill] sm:$0xff] %v7141_v28 }
 0x712   : > { %3324 = vmatpush.bf16.msrb.mxu2 %v7129_v2  ;;  %v7153_v2 = vld [vmem:[%s7616_s5 + $0x168] sm:$0xff] }
 0x713   : > { %3337 = vmatpush.bf16.msrb.mxu3 %v7135_v22  ;;  %3315 = vmatpush.bf16.msra.mxu1 %v7141_v28  ;;  %8023 = vst [vmem:[#allocation40_spill] sm:$0xff] %v7153_v2  ;;  %v7159_v22 = vld [vmem:[%s7616_s5 + $0xc8] sm:$0xff]  ;;  %v7165_v28 = vld [vmem:[%s7616_s5 + $0x120] sm:$0xff] }
 0x714   : > { %8024 = vst [vmem:[#allocation48_spill] sm:$0xff] %v7159_v22 }
 0x715   : > { %8025 = vst [vmem:[#allocation57_spill] sm:$0xff] %v7165_v28 }
 0x716   : > { %3325 = vmatpush.bf16.msrb.mxu2 %v7147_v47  ;;  %v7171_v47 = vld [vmem:[%s7616_s5 + $0x160] sm:$0xff] }
 0x717   : > { %3338 = vmatpush.bf16.msrb.mxu3 %v7153_v2  ;;  %3316 = vmatpush.bf16.msra.mxu1 %v7159_v22  ;;  %8026 = vst [vmem:[#allocation44_spill] sm:$0xff] %v7171_v47  ;;  %v7177_v2 = vld [vmem:[%s7616_s5 + $0xc0] sm:$0xff]  ;;  %v7183_v22 = vld [vmem:[%s7616_s5 + $0x1f8] sm:$0xff] }
 0x718   : > { %8027 = vst [vmem:[#allocation47_spill] sm:$0xff] %v7177_v2 }
 0x719   : > { %8028 = vst [vmem:[#allocation52_spill] sm:$0xff] %v7183_v22 }
 0x71a   : > { %3326 = vmatpush.bf16.msrb.mxu2 %v7165_v28  ;;  %v7189_v28 = vld [vmem:[%s7616_s5 + $0x118] sm:$0xff] }
 0x71b   : > { %3339 = vmatpush.bf16.msrb.mxu3 %v7171_v47  ;;  %3317 = vmatpush.bf16.msra.mxu1 %v7177_v2  ;;  %8029 = vst [vmem:[#allocation61_spill] sm:$0xff] %v7189_v28  ;;  %v7195_v47 = vld [vmem:[%s7616_s5 + $0x158] sm:$0xff]  ;;  %v7201_v2 = vld [vmem:[%s7616_s5 + $0x1f0] sm:$0xff] }
 0x71c   : > { %8030 = vst [vmem:[#allocation51_spill] sm:$0xff] %v7195_v47 }
 0x71d   : > { %8031 = vst [vmem:[#allocation56_spill] sm:$0xff] %v7201_v2 }
 0x71e   : > { %3327 = vmatpush.bf16.msrb.mxu2 %v7189_v28  ;;  %v7213_v28 = vld [vmem:[%s7616_s5 + $0x150] sm:$0xff] }
 0x71f   : > { %3362 = vmatpush.bf16.msrb.mxu1 %v7183_v22  ;;  %3340 = vmatpush.bf16.msrb.mxu3 %v7195_v47  ;;  %v7207_v22 = vld [vmem:[%s7616_s5 + $0x110] sm:$0xff]  ;;  %8033 = vst [vmem:[#allocation55_spill] sm:$0xff] %v7213_v28  ;;  %v7219_v47 = vld [vmem:[%s7616_s5 + $0x1e8] sm:$0xff] }
 0x720   : > { %8032 = vst [vmem:[#allocation65_spill] sm:$0xff] %v7207_v22 }
 0x721   : > { %8034 = vst [vmem:[#allocation60_spill] sm:$0xff] %v7219_v47 }
 0x722   : > { %3328 = vmatpush.bf16.msrb.mxu2 %v7207_v22  ;;  %v7231_v22 = vld [vmem:[%s7616_s5 + $0x148] sm:$0xff] }
 0x723   : > { %3363 = vmatpush.bf16.msrb.mxu1 %v7201_v2  ;;  %3341 = vmatpush.bf16.msrb.mxu3 %v7213_v28  ;;  %v7225_v2 = vld [vmem:[%s7616_s5 + $0x108] sm:$0xff]  ;;  %8036 = vst [vmem:[#allocation59_spill] sm:$0xff] %v7231_v22  ;;  %v7237_v28 = vld [vmem:[%s7616_s5 + $0x1e0] sm:$0xff] }
 0x724   : > { %8035 = vst [vmem:[#allocation68_spill] sm:$0xff] %v7225_v2 }
 0x725   : > { %8037 = vst [vmem:[#allocation64_spill] sm:$0xff] %v7237_v28 }
 0x726   : > { %3329 = vmatpush.bf16.msrb.mxu2 %v7225_v2  ;;  %v7249_v2 = vld [vmem:[%s7616_s5 + $0x140] sm:$0xff] }
 0x727   : > { %3364 = vmatpush.bf16.msrb.mxu1 %v7219_v47  ;;  %3342 = vmatpush.bf16.msrb.mxu3 %v7231_v22  ;;  %v7243_v47 = vld [vmem:[%s7616_s5 + $0x100] sm:$0xff]  ;;  %8039 = vst [vmem:[#allocation63_spill] sm:$0xff] %v7249_v2  ;;  %v7255_v22 = vld [vmem:[%s7616_s5 + $0x1d8] sm:$0xff] }
 0x728   : > { %8038 = vst [vmem:[#allocation71_spill] sm:$0xff] %v7243_v47 }
 0x729   : > { %8040 = vst [vmem:[#allocation67_spill] sm:$0xff] %v7255_v22 }
 0x72a   : > { %3330 = vmatpush.bf16.msrb.mxu2 %v7243_v47  ;;  %v7267_v47 = vld [vmem:[%s7616_s5 + $0x1c8] sm:$0xff] }
 0x72b   : > { %3365 = vmatpush.bf16.msrb.mxu1 %v7237_v28  ;;  %3343 = vmatpush.bf16.msrb.mxu3 %v7249_v2  ;;  %v7261_v28 = vld [vmem:[%s7616_s5 + $0x1d0] sm:$0xff]  ;;  %8042 = vst [vmem:[#allocation73_spill] sm:$0xff] %v7267_v47  ;;  %v7273_v2 = vld [vmem:[%s7616_s5 + $0x1c0] sm:$0xff] }
 0x72c   : > { %8041 = vst [vmem:[#allocation70_spill] sm:$0xff] %v7261_v28 }
 0x72d   : > { %8043 = vst [vmem:[#allocation74_spill] sm:$0xff] %v7273_v2 }
 0x72f   : > { %3366 = vmatpush.bf16.msrb.mxu1 %v7255_v22 }
 0x733   : > { %3367 = vmatpush.bf16.msrb.mxu1 %v7261_v28 }
 0x737   : > { %3368 = vmatpush.bf16.msrb.mxu1 %v7267_v47 }
 0x73b   : > { %3369 = vmatpush.bf16.msrb.mxu1 %v7273_v2 }
 0x769   : > { %v3101_v22 = vpop.f32.mrf.mxu1 }
 0x76a   : > { %v3179_v36 = vpop.f32.mrf.mxu0 }
 0x76f   : > { %v3114_v63 = vpop.f32.mrf.mxu2 }
 0x770   : > { %v3196_v45 = vpack.c.bf16 %v3114_v63, %v3101_v22  ;;  %v3127_v28 = vpop.f32.mrf.mxu3 }
 0x771   : > { %v3103_v52 = vpop.f32.mrf.mxu1 }
 0x772   : > { %v3205_v12 = vunpack.c.h.bf16 %v3196_v45  ;;  %v3181_v50 = vpop.f32.mrf.mxu0  ;;  %v3204_v1 = vunpack.c.l.bf16 %v3196_v45 }
 0x774   : > { %v3220_v56 = vrot.slane %v3205_v12, 4 }
 0x776   : > { %v3224_v47 = vsel %vm852_vm0, %v3204_v1, %v3220_v56 }
 0x777   : > { %v3232_v34 = vmul.f32 %v3224_v47, %v3200_v5  ;;  %v3116_v26 = vpop.f32.mrf.mxu2 }
 0x778   : > { %v3129_v55 = vpop.f32.mrf.mxu3 }
 0x779   : > { %3240 = vst [vmem:[#allocation1] ss:$2 sm:$0xff] %v3232_v34  ;;  %v3140_v2 = vpop.f32.mrf.mxu1  ;;  %v3202_v34 = vunpack.c.l.bf16 %v4776_v62 }
 0x77a   : > { %v3197_v19 = vpack.c.bf16 %v3140_v2, %v3127_v28  ;;  %v7293_v2 = vld [vmem:[%s7615_s4 + $0x30] sm:$0xff] }
 0x77c   : > { %v3207_v7 = vunpack.c.h.bf16 %v3197_v19  ;;  %v3206_v38 = vunpack.c.l.bf16 %v3197_v19 }
 0x77e   : > { %v3221_v63 = vrot.slane %v3207_v7, 4  ;;  %v7283_v7 = vld [vmem:[%s7615_s4 + $0x38] sm:$0xff] }
 0x77f   : > { %v3153_v22 = vpop.f32.mrf.mxu2 }
 0x780   : > { %v3225_v52 = vsel %vm852_vm0, %v3206_v38, %v3221_v63  ;;  %v3166_v50 = vpop.f32.mrf.mxu3  ;;  %v3247_v53 = vld.sshfl [vmem:[#allocation1] sm:$0xff pattern:$0x75316420]  ;;  %v3248_v45 = vld.sshfl [vmem:[#allocation1 + $0x8] sm:$0xff pattern:$0x75316420] }
 0x781   : > { %v3233_v12 = vmul.f32 %v3225_v52, %v3201_v18  ;;  %v3198_v56 = vpack.c.bf16 %v3166_v50, %v3153_v22  ;;  %v3142_v1 = vpop.f32.mrf.mxu1  ;;  %v3263_v5 = vpack.c.bf16 %v3247_v53, %v3247_v53  ;;  %v3264_v26 = vpack.c.bf16 %v3248_v45, %v3248_v45  ;;  %v5155_v38 = vld [vmem:[%s7618_s7 + $0x38] sm:$0xff] }
 0x783   : > { %3242 = vst [vmem:[#allocation1 + $0x10] ss:$2 sm:$0xff] %v3233_v12  ;;  %v3209_v55 = vunpack.c.h.bf16 %v3198_v56  ;;  %3279 = vmatmul.bf16.vlgmr.msra.gmra.mxu2 %v3263_v5  ;;  %3292 = vmatmul.bf16.vlgmr.msra.gmra.mxu3 %v3264_v26  ;;  %v3208_v18 = vunpack.c.l.bf16 %v3198_v56  ;;  %v7300_v56 = vld [vmem:[%s7615_s4 + $0x28] sm:$0xff]  ;;  %v3203_v5 = vunpack.c.h.bf16 %v4776_v62 }
 0x784   : > { %3375 = vmatpush.bf16.msra.mxu2 %v7283_v7  ;;  %3528 = vmatpush.bf16.msra.mxu3 %v5155_v38 }
 0x785   : > { %v3222_v53 = vrot.slane %v3209_v55, 4  ;;  %v5159_v55 = vld [vmem:[%s7618_s7 + $0xb8] sm:$0xff] }
 0x787   : > { %v3226_v19 = vsel %vm852_vm0, %v3208_v18, %v3222_v53  ;;  %v3155_v11 = vpop.f32.mrf.mxu2 }
 0x788   : > { %v3234_v47 = vmul.f32 %v3226_v19, %v3202_v34  ;;  %v3168_v28 = vpop.f32.mrf.mxu3  ;;  %3376 = vmatpush.bf16.msra.mxu2 %v7293_v2  ;;  %3529 = vmatpush.bf16.msra.mxu3 %v6622_v3  ;;  %v5161_v19 = vld [vmem:[%s7618_s7 + $0x70] sm:$0xff] }
 0x789   : > { %v3192_v63 = vpop.f32.mrf.mxu1  ;;  %v5162_v28 = vld [vmem:[%s7618_s7 + $0xb0] sm:$0xff] }
 0x78a   : > { %3244 = vst [vmem:[#allocation1 + $0x20] ss:$2 sm:$0xff] %v3234_v47  ;;  %v3199_v22 = vpack.c.bf16 %v3192_v63, %v3179_v36  ;;  %v3249_v52 = vld.sshfl [vmem:[#allocation1 + $0x10] sm:$0xff pattern:$0x75316420]  ;;  %v5158_v36 = vld [vmem:[%s7618_s7 + $0x78] sm:$0xff] }
 0x78b   : > { %v3250_v50 = vld.sshfl [vmem:[#allocation1 + $0x18] sm:$0xff pattern:$0x75316420]  ;;  %v3265_v45 = vpack.c.bf16 %v3249_v52, %v3249_v52  ;;  %v5164_v63 = vld [vmem:[%s7618_s7 + $0x68] sm:$0xff] }
 0x78c   : > { %v3211_v12 = vunpack.c.h.bf16 %v3199_v22  ;;  %3377 = vmatpush.bf16.msra.mxu2 %v7300_v56  ;;  %v3266_v1 = vpack.c.bf16 %v3250_v50, %v3250_v50  ;;  %3530 = vmatpush.bf16.msra.mxu3 %v6629_v0  ;;  %v3210_v3 = vunpack.c.l.bf16 %v3199_v22  ;;  %v7314_v0 = vld [vmem:[%s7615_s4 + $0x20] sm:$0xff]  ;;  %v5165_v22 = vld [vmem:[%s7618_s7 + $0xa8] sm:$0xff]  ;;  %v4796_v52 = vld [vmem:[%s5354_s13 + $0x18] sm:$0xff] }
 0x78d   : > { %3305 = vmatmul.bf16.vlgmr.msrb.gmra.mxu0 %v3265_v45  ;;  %v7341_v50 = vld [vmem:[%s7615_s4 + $0x10] sm:$0xff] }
 0x78e   : > { %v3223_v26 = vrot.slane %v3211_v12, 4  ;;  %3318 = vmatmul.bf16.vlgmr.msra.gmra.mxu1 %v3266_v1  ;;  %3541 = vmatpush.bf16.msrb.mxu0 %v5158_v36  ;;  %8044 = vst [vmem:[#allocation75_spill] sm:$0xff] %v7341_v50  ;;  %v5167_v12 = vld [vmem:[%s7618_s7 + $0x60] sm:$0xff]  ;;  %v5171_v36 = vld [vmem:[%s7618_s7 + $0x98] sm:$0xff] }
 0x78f   : > { %3554 = vmatpush.bf16.msra.mxu1 %v5159_v55  ;;  %v5168_v1 = vld [vmem:[%s7618_s7 + $0xa0] sm:$0xff]  ;;  %v5172_v55 = vld [vmem:[%s7618_s7 + $0x8] sm:$0xff] }
 0x790   : > { %v3227_v34 = vsel %vm852_vm0, %v3210_v3, %v3223_v26  ;;  %3378 = vmatpush.bf16.msra.mxu2 %v7314_v0  ;;  %3531 = vmatpush.bf16.msra.mxu3 %v6636_v43  ;;  %v7327_v43 = vld [vmem:[%s7615_s4 + $0x18] sm:$0xff] }
 0x791   : > { %v3235_v62 = vmul.f32 %v3227_v34, %v3203_v5  ;;  %v3251_v38 = vld.sshfl [vmem:[#allocation1 + $0x20] sm:$0xff pattern:$0x75316420]  ;;  %v3252_v18 = vld.sshfl [vmem:[#allocation1 + $0x28] sm:$0xff pattern:$0x75316420]  ;;  %v3194_v53 = vpop.f32.mrf.mxu1 }
 0x792   : > { %3542 = vmatpush.bf16.msrb.mxu0 %v5161_v19  ;;  %v3267_v11 = vpack.c.bf16 %v3251_v38, %v3251_v38  ;;  %v3268_v47 = vpack.c.bf16 %v3252_v18, %v3252_v18  ;;  %v5170_v26 = vld [vmem:[%s7618_s7 + $0x58] sm:$0xff]  ;;  %v7369_v34 = vld [vmem:[%s7615_s4] sm:$0xff]  ;;  %v5175_v19 = vld [vmem:[%s7618_s7 + $0x50] sm:$0xff] }
 0x793   : > { %3246 = vst [vmem:[#allocation1 + $0x30] ss:$2 sm:$0xff] %v3235_v62  ;;  %3555 = vmatpush.bf16.msra.mxu1 %v5162_v28  ;;  %v4777_v62 = vld [vmem:[%s6351_s27 + $0x4] sm:$0x3]  ;;  %v5174_v53 = vld [vmem:[%s7618_s7 + $0xf8] sm:$0xff] }
 0x794   : > { %3331 = vmatmul.bf16.vlgmr.msrb.gmra.mxu2 %v3267_v11  ;;  %3344 = vmatmul.bf16.vlgmr.msrb.gmra.mxu3 %v3268_v47  ;;  %8046 = vst [vmem:[#allocation76_spill] sm:$0xff] %v7369_v34 }
 0x795   : > { %3379 = vmatpush.bf16.msra.mxu2 %v7327_v43  ;;  %3532 = vmatpush.bf16.msra.mxu3 %v6646_v37 }
 0x796   : > { %3543 = vmatpush.bf16.msrb.mxu0 %v5164_v63  ;;  %v5176_v63 = vld [vmem:[%s7618_s7 + $0x90] sm:$0xff] }
 0x797   : > { %3556 = vmatpush.bf16.msra.mxu1 %v5165_v22 }
 0x799   : > { %3380 = vmatpush.bf16.msra.mxu2 %v7341_v50  ;;  %3533 = vmatpush.bf16.msra.mxu3 %v6655_v23  ;;  %v7354_v23 = vld [vmem:[%s7615_s4 + $0x8] sm:$0xff] }
 0x79a   : > { %v3253_v37 = vld.sshfl [vmem:[#allocation1 + $0x30] sm:$0xff pattern:$0x75316420]  ;;  %v3254_v45 = vld.sshfl [vmem:[#allocation1 + $0x38] sm:$0xff pattern:$0x75316420]  ;;  %3544 = vmatpush.bf16.msrb.mxu0 %v5167_v12 }
 0x79b   : > { %3424 = vst [vmem:[#allocation1] ss:$9 sm:$0xff] %v4796_v52  ;;  %3557 = vmatpush.bf16.msra.mxu1 %v5168_v1  ;;  %v3269_v5 = vpack.c.bf16 %v3253_v37, %v3253_v37  ;;  %v3270_v3 = vpack.c.bf16 %v3254_v45, %v3254_v45  ;;  %v4791_v12 = vld [vmem:[%s5384_s17 + $0x30] sm:$0xff] }
 0x79c   : > { %8045 = vst [vmem:[#allocation78_spill] sm:$0xff] %v7354_v23  ;;  %v3458_v50 = vunpack.c.h.bf16 %v4791_v12 }
 0x79d   : > { %3381 = vmatpush.bf16.msra.mxu2 %v7354_v23  ;;  %3357 = vmatmul.bf16.vlgmr.msra.gmra.mxu0 %v3269_v5 }
 0x79e   : > { %3370 = vmatmul.bf16.vlgmr.msrb.gmra.mxu1 %v3270_v3  ;;  %3545 = vmatpush.bf16.msrb.mxu0 %v5170_v26 }
 0x79f   : > { %3558 = vmatpush.bf16.msra.mxu1 %v5171_v36  ;;  %3534 = vmatpush.bf16.msra.mxu3 %v5172_v55  ;;  %v4792_v55 = vld [vmem:[%s5384_s17 + $0x38] sm:$0xff] }
 0x7a1   : > { %3382 = vmatpush.bf16.msra.mxu2 %v7369_v34 }
 0x7a2   : > { %v3429_v38 = vld [vmem:[#allocation1 + $0x24] sm:$0xff]  ;;  %v3430_v18 = vld [vmem:[#allocation1 + $0x2d] sm:$0xff]  ;;  %3546 = vmatpush.bf16.msrb.mxu0 %v5175_v19  ;;  %v3428_v45 = vld [vmem:[#allocation1 + $0x1b] sm:$0xff] }
 0x7a3   : > { %v3425_v11 = vld [vmem:[#allocation1] sm:$0xff]  ;;  %v3445_v47 = vpack.i.b16 %v3429_v38, %v3429_v38  ;;  %v3448_v28 = vpack.i.b16 %v3430_v18, %v3430_v18  ;;  %3559 = vmatpush.bf16.msra.mxu1 %v5176_v63  ;;  %3535 = vmatpush.bf16.msra.mxu3 %v6671_v60  ;;  %v3426_v22 = vld [vmem:[#allocation1 + $0x9] sm:$0xff]  ;;  %v3427_v37 = vld [vmem:[#allocation1 + $0x12] sm:$0xff]  ;;  %v3442_v3 = vpack.i.b16 %v3428_v45, %v3428_v45 }
 0x7a4   : > { %v3433_v52 = vpack.i.b16 %v3425_v11, %v3425_v11  ;;  %3383 = vmatmul.bf16.vlgmr.msra.gmra.mxu2 %v4777_v62  ;;  %v3436_v1 = vpack.i.b16 %v3426_v22, %v3426_v22  ;;  %v3439_v5 = vpack.i.b16 %v3427_v37, %v3427_v37  ;;  %v3431_v26 = vld [vmem:[#allocation1 + $0x36] sm:$0xff]  ;;  %v3432_v36 = vld [vmem:[#allocation1 + $0x3f] sm:$0xff]  ;;  %v5178_v62 = vld [vmem:[%s7618_s7 + $0x48] sm:$0xff]  ;;  %v3457_v37 = vunpack.c.l.bf16 %v4791_v12 }
 0x7a5   : > { %3567 = vmatpush.bf16.msrb.mxu2 %v5174_v53  ;;  %v3447_v38 = vperm.slane %v3445_v47, 0  ;;  %v3450_v18 = vperm.slane %v3448_v28, 0  ;;  %v3451_v19 = vpack.i.b16 %v3431_v26, %v3431_v26  ;;  %v5177_v60 = vld [vmem:[%s7618_s7 + $0xf0] sm:$0xff]  ;;  %v3444_v63 = vperm.slane %v3442_v3, 0  ;;  %v5179_v47 = vld [vmem:[%s7618_s7 + $0x88] sm:$0xff] }
 0x7a6   : > { %v3435_v53 = vperm.slane %v3433_v52, 0  ;;  %3547 = vmatpush.bf16.msrb.mxu0 %v5178_v62  ;;  %v3441_v11 = vperm.slane %v3439_v5, 0  ;;  %v3454_v22 = vpack.i.b16 %v3432_v36, %v3432_v36  ;;  %v3459_v52 = vunpack.c.l.bf16 %v4792_v55  ;;  %v8047_v26 = vld [vmem:[#allocation14_spill] sm:$0xff]  ;;  %v5181_v36 = vld [vmem:[%s7618_s7 + $0x40] sm:$0xff] }
 0x7a7   : > { %3580 = vmatpush.bf16.msrb.mxu3 %v6678_v54  ;;  %v3438_v54 = vperm.slane %v3436_v1, 0  ;;  %v3466_v45 = vunpack.c.l.bf16 %v3450_v18  ;;  %3560 = vmatpush.bf16.msra.mxu1 %v5179_v47  ;;  %v3453_v28 = vperm.slane %v3451_v19, 0  ;;  %v3464_v34 = vunpack.c.l.bf16 %v3444_v63  ;;  %v5180_v3 = vld [vmem:[%s7618_s7 + $0xe8] sm:$0xff] }
 0x7a8   : > { %v3456_v23 = vperm.slane %v3454_v22, 0  ;;  %v3465_v62 = vunpack.c.l.bf16 %v3447_v38  ;;  %v3461_v5 = vunpack.c.l.bf16 %v3435_v53  ;;  %v3463_v19 = vunpack.c.l.bf16 %v3441_v11  ;;  %v5182_v38 = vld [vmem:[%s7618_s7 + $0x80] sm:$0xff]  ;;  %v5183_v53 = vld [vmem:[%s7618_s7 + $0x178] sm:$0xff] }
 0x7a9   : > { %3568 = vmatpush.bf16.msrb.mxu2 %v5177_v60  ;;  %v3462_v60 = vunpack.c.l.bf16 %v3438_v54  ;;  %v3479_v1 = vrot.slane %v3466_v45, 4  ;;  %v3478_v47 = vrot.slane %v3464_v34, 4  ;;  %v3460_v63 = vunpack.c.h.bf16 %v4792_v55  ;;  %v5184_v34 = vld [vmem:[%s7618_s7 + $0x1b8] sm:$0xff] }
 0x7aa   : > { %3548 = vmatpush.bf16.msrb.mxu0 %v5181_v36  ;;  %v3468_v54 = vunpack.c.l.bf16 %v3456_v23  ;;  %v3467_v22 = vunpack.c.l.bf16 %v3453_v28  ;;  %v8048_v23 = vld [vmem:[#allocation17_spill] sm:$0xff] }
 0x7ab   : > { %3581 = vmatpush.bf16.msrb.mxu3 %v8047_v26  ;;  %v3477_v18 = vrot.slane %v3462_v60, 4  ;;  %v3483_v12 = vsel %vm852_vm0, %v3465_v62, %v3479_v1  ;;  %3561 = vmatpush.bf16.msra.mxu1 %v5182_v38  ;;  %v3482_v11 = vsel %vm852_vm0, %v3463_v19, %v3478_v47  ;;  %v5185_v1 = vld [vmem:[%s7618_s7 + $0xe0] sm:$0xff] }
 0x7ac   : > { %v3491_v45 = vmul.f32 %v3483_v12, %v3459_v52  ;;  %v3480_v26 = vrot.slane %v3468_v54, 4  ;;  %v3490_v62 = vmul.f32 %v3482_v11, %v3458_v50  ;;  %v5186_v52 = vld [vmem:[%s7618_s7 + $0x170] sm:$0xff]  ;;  %v5188_v50 = vld [vmem:[%s7618_s7 + $0xd8] sm:$0xff] }
 0x7ad   : > { %3569 = vmatpush.bf16.msrb.mxu2 %v5180_v3  ;;  %v3481_v55 = vsel %vm852_vm0, %v3461_v5, %v3477_v18  ;;  %v5189_v3 = vld [vmem:[%s7618_s7 + $0xd0] sm:$0xff] }
 0x7ae   : > { %3593 = vmatpush.bf16.msra.mxu0 %v5183_v53  ;;  %v3489_v60 = vmul.f32 %v3481_v55, %v3457_v37  ;;  %3501 = vst [vmem:[#allocation1 + $0x20] ss:$2 sm:$0xff] %v3491_v45  ;;  %v3484_v28 = vsel %vm852_vm0, %v3467_v22, %v3480_v26  ;;  %v5187_v37 = vld [vmem:[%s7618_s7 + $0x1b0] sm:$0xff] }
 0x7af   : > { %3606 = vmatpush.bf16.msrb.mxu1 %v5184_v34  ;;  %3582 = vmatpush.bf16.msrb.mxu3 %v8048_v23  ;;  %v3492_v5 = vmul.f32 %v3484_v28, %v3460_v63  ;;  %3499 = vst [vmem:[#allocation1 + $0x10] ss:$2 sm:$0xff] %v3490_v62 }
 0x7b0   : > { %3497 = vst [vmem:[#allocation1] ss:$2 sm:$0xff] %v3489_v60 }
 0x7b1   : > { %3570 = vmatpush.bf16.msrb.mxu2 %v5185_v1  ;;  %3503 = vst [vmem:[#allocation1 + $0x30] ss:$2 sm:$0xff] %v3492_v5 }
 0x7b2   : > { %3594 = vmatpush.bf16.msra.mxu0 %v5186_v52 }
 0x7b3   : > { %3607 = vmatpush.bf16.msrb.mxu1 %v5187_v37  ;;  %3583 = vmatpush.bf16.msrb.mxu3 %v6708_v40 }
 0x7b5   : > { %3571 = vmatpush.bf16.msrb.mxu2 %v5188_v50 }
 0x7b6   : > { %3595 = vmatpush.bf16.msra.mxu0 %v6737_v17  ;;  %v3506_v47 = vld.sshfl [vmem:[#allocation1 + $0x10] sm:$0xff pattern:$0x75316420]  ;;  %v3507_v17 = vld.sshfl [vmem:[#allocation1 + $0x18] sm:$0xff pattern:$0x75316420] }
 0x7b7   : > { %3608 = vmatpush.bf16.msrb.mxu1 %v6743_v21  ;;  %3584 = vmatpush.bf16.msrb.mxu3 %v6721_v27  ;;  %v3504_v36 = vld.sshfl [vmem:[#allocation1] sm:$0xff pattern:$0x75316420]  ;;  %v3505_v40 = vld.sshfl [vmem:[#allocation1 + $0x8] sm:$0xff pattern:$0x75316420]  ;;  %v3522_v54 = vpack.c.bf16 %v3506_v47, %v3506_v47 }
 0x7b8   : > { %v3520_v18 = vpack.c.bf16 %v3504_v36, %v3504_v36  ;;  %v3521_v19 = vpack.c.bf16 %v3505_v40, %v3505_v40  ;;  %v5190_v27 = vld [vmem:[%s7618_s7 + $0xc8] sm:$0xff]  ;;  %v5191_v21 = vld [vmem:[%s7618_s7 + $0xc0] sm:$0xff] }
 0x7b9   : > { %3572 = vmatpush.bf16.msrb.mxu2 %v5189_v3  ;;  %3562 = vmatmul.bf16.vlgmr.msra.gmra.mxu1 %v3522_v54 }
 0x7ba   : > { %3596 = vmatpush.bf16.msra.mxu0 %v6756_v31  ;;  %3536 = vmatmul.bf16.vlgmr.msra.gmra.mxu3 %v3520_v18  ;;  %v3523_v31 = vpack.c.bf16 %v3507_v17, %v3507_v17 }
 0x7bb   : > { %3609 = vmatpush.bf16.msrb.mxu1 %v6762_v24  ;;  %3585 = vmatpush.bf16.msrb.mxu3 %v6730_v39  ;;  %v5192_v39 = vld [vmem:[%s7618_s7 + $0x1f8] sm:$0xff]  ;;  %v3508_v24 = vld.sshfl [vmem:[#allocation1 + $0x20] sm:$0xff pattern:$0x75316420] }
 0x7bc   : > { %3549 = vmatmul.bf16.vlgmr.msrb.gmra.mxu0 %v3521_v19  ;;  %v7505_v19 = vld [vmem:[%s7617_s6] ss:$0 sm:$0xff] }
 0x7bd   : > { %3573 = vmatpush.bf16.msrb.mxu2 %v5190_v27 }
 0x7be   : > { %3597 = vmatpush.bf16.msra.mxu0 %v6775_v61  ;;  %v3509_v61 = vld.sshfl [vmem:[#allocation1 + $0x28] sm:$0xff pattern:$0x75316420] }
 0x7bf   : > { %3610 = vmatpush.bf16.msrb.mxu1 %v6781_v48  ;;  %3586 = vmatpush.bf16.msrb.mxu3 %v6749_v4  ;;  %v5193_v4 = vld [vmem:[%s7618_s7 + $0x1f0] sm:$0xff] }
 0x7c0   : > { %v3510_v48 = vld.sshfl [vmem:[#allocation1 + $0x30] sm:$0xff pattern:$0x75316420] }
 0x7c1   : > { %3574 = vmatpush.bf16.msrb.mxu2 %v5191_v21 }
 0x7c2   : > { %3598 = vmatpush.bf16.msra.mxu0 %v6800_v13  ;;  %v3525_v13 = vpack.c.bf16 %v3509_v61, %v3509_v61 }
 0x7c3   : > { %3611 = vmatpush.bf16.msrb.mxu1 %v6806_v49  ;;  %3587 = vmatpush.bf16.msrb.mxu3 %v6769_v46  ;;  %v5194_v46 = vld [vmem:[%s7618_s7 + $0x1e8] sm:$0xff]  ;;  %v3526_v49 = vpack.c.bf16 %v3510_v48, %v3510_v48 }
 0x7c4   : > { %3575 = vmatmul.bf16.vlgmr.msrb.gmra.mxu2 %v3523_v31 }
 0x7c5   : > { %3619 = vmatpush.bf16.msra.mxu2 %v5192_v39 }
 0x7c6   : > { %3599 = vmatpush.bf16.msra.mxu0 %v6825_v59  ;;  %v8055_v59 = vld [vmem:[#allocation4_spill] sm:$0xff] }
 0x7c7   : > { %3653 = vmatpush.msra.mxu3 %v6788_v33  ;;  %3612 = vmatpush.bf16.msrb.mxu1 %v6831_v57  ;;  %v3524_v33 = vpack.c.bf16 %v3508_v24, %v3508_v24  ;;  %v8056_v57 = vld [vmem:[#allocation6_spill] sm:$0xff] }
 0x7c9   : > { %3620 = vmatpush.bf16.msra.mxu2 %v5193_v4  ;;  %3654 = vmatpush.msra.mxu3 %v6794_v51  ;;  %v5195_v51 = vld [vmem:[%s7618_s7 + $0x1e0] sm:$0xff] }
 0x7ca   : > { %3600 = vmatpush.bf16.msra.mxu0 %v6838_v41  ;;  %3588 = vmatmul.bf16.vlgmr.msrb.gmra.mxu3 %v3524_v33  ;;  %v8057_v41 = vld [vmem:[#allocation21_spill] sm:$0xff] }
 0x7cb   : > { %3655 = vmatpush.msra.mxu3 %v6813_v44  ;;  %3613 = vmatpush.bf16.msrb.mxu1 %v6844_v20  ;;  %v8053_v44 = vld [vmem:[#allocation39_spill] sm:$0xff] }
 0x7cd   : > { %3621 = vmatpush.bf16.msra.mxu2 %v5194_v46  ;;  %3656 = vmatpush.msra.mxu3 %v6819_v35  ;;  %v8054_v35 = vld [vmem:[#allocation43_spill] sm:$0xff] }
 0x7ce   : > { %3673 = vmatpush.bf16.msrb.mxu0 %v5633_v9  ;;  %3614 = vmatmul.bf16.vlgmr.msrb.gmra.mxu1 %v3526_v49  ;;  %v5196_v9 = vld [vmem:[%s7618_s7 + $0x1d8] sm:$0xff] }
 0x7cf   : > { %3601 = vmatmul.bf16.vlgmr.msra.gmra.mxu0 %v3525_v13  ;;  %3699 = vmatpush.bf16.msra.mxu1 %v5705_v42  ;;  %v5199_v42 = vld [vmem:[%s7618_s7 + $0x1c0] sm:$0xff] }
 0x7d0   : > { %3686 = vmatpush.bf16.msrb.mxu3 %v5644_v14  ;;  %v5197_v14 = vld [vmem:[%s7618_s7 + $0x1d0] sm:$0xff] }
 0x7d1   : > { %3622 = vmatpush.bf16.msra.mxu2 %v5195_v51 }
 0x7d2   : > { %3674 = vmatpush.bf16.msrb.mxu0 %v5669_v25  ;;  %v3511_v25 = vld.sshfl [vmem:[#allocation1 + $0x38] sm:$0xff pattern:$0x75316420] }
 0x7d3   : > { %3700 = vmatpush.bf16.msra.mxu1 %v5730_v10  ;;  %v8050_v10 = vld [vmem:[#allocation20_spill] sm:$0xff] }
 0x7d4   : > { %3687 = vmatpush.bf16.msrb.mxu3 %v5680_v29  ;;  %v3527_v29 = vpack.c.bf16 %v3511_v25, %v3511_v25 }
 0x7d5   : > { %3623 = vmatpush.bf16.msra.mxu2 %v5196_v9 }
 0x7d6   : > { %3712 = vmatpush.bf16.msra.mxu0 %v5646_v15  ;;  %v5198_v15 = vld [vmem:[%s7618_s7 + $0x1c8] sm:$0xff] }
 0x7d7   : > { %3738 = vmatpush.bf16.msrb.mxu1 %v7894_v32  ;;  %v8051_v32 = vld [vmem:[#allocation24_spill] sm:$0xff] }
 0x7d9   : > { %3624 = vmatpush.bf16.msra.mxu2 %v5197_v14 }
 0x7da   : > { %3713 = vmatpush.bf16.msra.mxu0 %v5682_v30  ;;  %v8049_v30 = vld [vmem:[#allocation3_spill] sm:$0xff] }
 0x7db   : > { %3739 = vmatpush.bf16.msrb.mxu1 %v7895_v58  ;;  %v8052_v58 = vld [vmem:[#allocation28_spill] sm:$0xff] }
 0x7dd   : > { %3625 = vmatpush.bf16.msra.mxu2 %v5198_v15 }
 0x7e1   : > { %3626 = vmatpush.bf16.msra.mxu2 %v5199_v42 }
 0x7e4   : > { %3627 = vmatmul.bf16.vlgmr.msra.gmra.mxu2 %v3527_v29 }
 0x7e5   : > { %3751 = vmatpush.bf16.msrb.mxu2 %v7880_v6 }
 0x7e9   : > { %3752 = vmatpush.bf16.msrb.mxu2 %v8049_v30 }
 0x7ed   : > { %3872 = vmatpush.bf16.msra.mxu2 %v8050_v10 }
 0x7f1   : > { %3873 = vmatpush.bf16.msra.mxu2 %v8051_v32 }
 0x7f5   : > { %3874 = vmatpush.bf16.msra.mxu2 %v8052_v58  ;;  %v4789_v58 = vld [vmem:[%s6531_s28 + $0x4] sm:$0x3] }
 0x7f9   : > { %3875 = vmatpush.bf16.msra.mxu2 %v8053_v44 }
 0x7fd   : > { %3876 = vmatpush.bf16.msra.mxu2 %v8054_v35 }
 0x801   : > { %3877 = vmatpush.bf16.msra.mxu2 %v8055_v59 }
 0x805   : > { %3878 = vmatpush.bf16.msra.mxu2 %v8056_v57 }
 0x806   : > { %v3280_v6 = vpop.f32.mrf.mxu2  ;;  %v3293_v20 = vpop.f32.mrf.mxu3 }
 0x807   : > { %v3294_v22 = vadd.f32 %v3293_v20, %v3280_v6 }
 0x809   : > { %3879 = vmatpush.bf16.msra.mxu2 %v8057_v41 }
 0x80a   : > { %v3306_v63 = vpop.f32.mrf.mxu0 }
 0x80b   : > { %v3319_v12 = vpop.f32.mrf.mxu1  ;;  %v3307_v23 = vadd.f32 %v3306_v63, %v3294_v22 }
 0x80d   : > { %v3320_v26 = vadd.f32 %v3319_v12, %v3307_v23 }
 0x80e   : > { %v3282_v38 = vpop.f32.mrf.mxu2  ;;  %v3295_v53 = vpop.f32.mrf.mxu3 }
 0x812   : > { %v3308_v45 = vpop.f32.mrf.mxu0 }
 0x813   : > { %v3321_v34 = vpop.f32.mrf.mxu1 }
 0x817   : > { %v3332_v55 = vpop.f32.mrf.mxu2  ;;  %v3345_v11 = vpop.f32.mrf.mxu3 }
 0x818   : > { %v3333_v60 = vadd.f32 %v3332_v55, %v3320_v26 }
 0x81a   : > { %v3358_v62 = vpop.f32.mrf.mxu0  ;;  %v3346_v28 = vadd.f32 %v3345_v11, %v3333_v60 }
 0x81b   : > { %v3371_v1 = vpop.f32.mrf.mxu1 }
 0x81c   : > { %v3359_v37 = vadd.f32 %v3358_v62, %v3346_v28 }
 0x81e   : > { %v3372_v36 = vadd.f32 %v3371_v1, %v3359_v37  ;;  %v8058_v1 = vld [vmem:[#allocation12_spill] sm:$0xff] }
 0x81f   : > { %v3334_v52 = vpop.f32.mrf.mxu2  ;;  %v3347_v5 = vpop.f32.mrf.mxu3 }
 0x822   : > { %v3360_v50 = vpop.f32.mrf.mxu0 }
 0x823   : > { %v3373_v3 = vpop.f32.mrf.mxu1  ;;  %v8059_v50 = vld [vmem:[#allocation5_spill] sm:$0xff] }
 0x824   : > { %v8060_v3 = vld [vmem:[#allocation9_spill] sm:$0xff] }
 0x827   : > { %v3384_v40 = vpop.f32.mrf.mxu2 }
 0x828   : > { %v3385_v18 = vadd.f32 %v3384_v40, %v3372_v36  ;;  %v8062_v36 = vld [vmem:[#allocation25_spill] sm:$0xff]  ;;  %v8063_v40 = vld [vmem:[#allocation7_spill] sm:$0xff] }
 0x82a   : > { %v3388_v47 = vadd.f32 %v7505_v19, %v3385_v18  ;;  %v8064_v18 = vld [vmem:[#allocation13_spill] sm:$0xff] }
 0x82c   : > { %v4788_v54 = vmul.f32 -1.442695, %v3388_v47  ;;  %v8065_v47 = vld [vmem:[#allocation50_spill] sm:$0xff] }
 0x82e   : > { %5010 = vpow2.f32 %v4788_v54  ;;  %v8066_v54 = vld [vmem:[#allocation29_spill] sm:$0xff] }
 0x82f   : > { %v3386_v27 = vpop.f32.mrf.mxu2 }
 0x830   : > { %v8067_v27 = vld [vmem:[#allocation16_spill] sm:$0xff] }
 0x834   : > { %v5011_v17 = vpop.eup %5010 }
 0x835   : > { %v3392_v21 = vadd.f32 1.0, %v5011_v17  ;;  %v8068_v17 = vld [vmem:[#allocation54_spill] sm:$0xff] }
 0x836   : > { %v3563_v31 = vpop.f32.mrf.mxu1 }
 0x837   : > { %5012 = vrcp.f32 %v3392_v21  ;;  %v3404_v13 = vand.u32 2147483648, %v3392_v21  ;;  %v3402_v51 = vand.u32 2147483647, %v3392_v21  ;;  %vm3398_vm15 = vweird.f32 %v3392_v21 }
 0x839   : > { %v3550_v39 = vpop.f32.mrf.mxu0  ;;  %v3405_v25 = vor.u32 1.1754944e-38, %v3404_v13  ;;  %vm3403_vm4 = vcmp.eq.f32.partialorder %v3402_v51, 8.507059e+37  ;;  %v8078_v13 = vld [vmem:[#allocation27_spill] sm:$0xff]  ;;  %v8080_v51 = vld [vmem:[#allocation18_spill] sm:$0xff] }
 0x83d   : > { %v3537_v4 = vpop.f32.mrf.mxu3  ;;  %v5013_v24 = vpop.eup %5012 }
 0x83e   : > { %v3394_v61 = vmul.f32 %v5013_v24, %v3392_v21  ;;  %v3565_v46 = vpop.f32.mrf.mxu1  ;;  %vm3399_vm14 = vweird.f32 %v5013_v24  ;;  %v3551_v41 = vadd.f32 %v3550_v39, %v3537_v4  ;;  %v8069_v21 = vld [vmem:[#allocation31_spill] sm:$0xff] }
 0x83f   : > { %vm3400_vm3 = vmor %vm3398_vm15, %vm3399_vm14  ;;  %v8070_v39 = vld [vmem:[#allocation19_spill] sm:$0xff] }
 0x840   : > { %v3395_v33 = vsub.f32 1.0, %v3394_v61  ;;  %v3564_v20 = vadd.f32 %v3563_v31, %v3551_v41  ;;  %v8071_v31 = vld [vmem:[#allocation58_spill] sm:$0xff]  ;;  %v8072_v4 = vld [vmem:[#allocation11_spill] sm:$0xff]  ;;  %v8095_v41 = vld [vmem:[#allocation53_spill] sm:$0xff] }
 0x841   : > { %v3552_v48 = vpop.f32.mrf.mxu0  ;;  %v8074_v61 = vld [vmem:[#allocation23_spill] sm:$0xff] }
 0x842   : > { %v3396_v49 = vmul.f32 %v5013_v24, %v3395_v33  ;;  %v8075_v48 = vld [vmem:[#allocation62_spill] sm:$0xff]  ;;  %v8076_v46 = vld [vmem:[#allocation15_spill] sm:$0xff]  ;;  %v8077_v33 = vld [vmem:[#allocation33_spill] sm:$0xff] }
 0x844   : > { %v3397_v9 = vadd.f32 %v5013_v24, %v3396_v49  ;;  %v8079_v49 = vld [vmem:[#allocation66_spill] sm:$0xff] }
 0x845   : > { %v3539_v15 = vpop.f32.mrf.mxu3 }
 0x846   : > { %v3401_v42 = vsel %vm3400_vm3, %v5013_v24, %v3397_v9  ;;  %v8073_v24 = vld [vmem:[#allocation32_spill] sm:$0xff]  ;;  %v8081_v9 = vld [vmem:[#allocation34_spill] sm:$0xff]  ;;  %v8083_v15 = vld [vmem:[#allocation69_spill] sm:$0xff] }
 0x847   : > { %v3576_v14 = vpop.f32.mrf.mxu2  ;;  %v3406_v29 = vsel %vm3403_vm4, %v3405_v25, %v3401_v42  ;;  %v8084_v25 = vld [vmem:[#allocation22_spill] sm:$0xff]  ;;  %v8085_v42 = vld [vmem:[#allocation35_spill] sm:$0xff] }
 0x848   : > { %v3408_v10 = vpack.c.bf16 %v3406_v29, %v3406_v29  ;;  %v3577_v12 = vadd.f32 %v3576_v14, %v3564_v20  ;;  %v8082_v14 = vld [vmem:[#allocation37_spill] sm:$0xff]  ;;  %v8086_v29 = vld [vmem:[#allocation36_spill] sm:$0xff] }
 0x849   : > { %v8097_v20 = vld [vmem:[#allocation48_spill] sm:$0xff] }
 0x84a   : > { %v3411_v44 = vsel %vm6534_vm9, %v3408_v10, %v4789_v58  ;;  %v8088_v10 = vld [vmem:[#allocation45_spill] sm:$0xff]  ;;  %v8090_v58 = vld [vmem:[#allocation72_spill] sm:$0xff] }
 0x84b   : > { %v3615_v32 = vpop.f32.mrf.mxu1  ;;  %4790 = vst [vmem:[%s6531_s28 + $0x4] sm:$0x3] %v3411_v44  ;;  %v8091_v44 = vld [vmem:[#allocation38_spill] sm:$0xff] }
 0x84c   : > { %v3602_v30 = vpop.f32.mrf.mxu0 }
 0x84d   : > { %v3589_v59 = vpop.f32.mrf.mxu3 }
 0x84e   : > { %v3590_v38 = vadd.f32 %v3589_v59, %v3577_v12  ;;  %v8093_v59 = vld [vmem:[#allocation30_spill] sm:$0xff]  ;;  %v8099_v12 = vld [vmem:[#allocation44_spill] sm:$0xff] }
 0x84f   : > { %v3578_v35 = vpop.f32.mrf.mxu2 }
 0x850   : > { %v3603_v53 = vadd.f32 %v3602_v30, %v3590_v38  ;;  %v8087_v30 = vld [vmem:[#allocation41_spill] sm:$0xff]  ;;  %v8100_v38 = vld [vmem:[#allocation47_spill] sm:$0xff] }
 0x851   : > { %v8092_v35 = vld [vmem:[#allocation49_spill] sm:$0xff] }
 0x852   : > { %v3616_v22 = vadd.f32 %v3615_v32, %v3603_v53  ;;  %v8089_v32 = vld [vmem:[#allocation26_spill] sm:$0xff]  ;;  %v8101_v53 = vld [vmem:[#allocation52_spill] sm:$0xff] }
 0x853   : > { %v3617_v6 = vpop.f32.mrf.mxu1 }
 0x854   : > { %v3604_v57 = vpop.f32.mrf.mxu0  ;;  %v8096_v6 = vld [vmem:[#allocation40_spill] sm:$0xff] }
 0x855   : > { %v3591_v63 = vpop.f32.mrf.mxu3  ;;  %v8094_v57 = vld [vmem:[#allocation42_spill] sm:$0xff] }
 0x856   : > { %v8098_v63 = vld [vmem:[#allocation57_spill] sm:$0xff] }
 0x867   : > { %v3628_v45 = vpop.f32.mrf.mxu2 }
 0x868   : > { %v3629_v34 = vadd.f32 %v3628_v45, %v3616_v22  ;;  %v8102_v22 = vld [vmem:[#allocation61_spill] sm:$0xff]  ;;  %v8103_v45 = vld [vmem:[#allocation51_spill] sm:$0xff] }
 0x86a   : > { %v3632_v23 = vsel %vm1388_vm1, %v3629_v34, -inf }
 0x86b   : > { %3633 = vmax.xlane.f32.xlu1 %v3632_v23  ;;  %v8105_v23 = vld [vmem:[#allocation65_spill] sm:$0xff] }
 0x86f   : > { %v3630_v55 = vpop.f32.mrf.mxu2 }
 0x870   : > { %v8106_v55 = vld [vmem:[#allocation55_spill] sm:$0xff] }
 0x8de   : > { %v3634_v11 = vpop.xlane.xlu1 %3633 }
 0x8df   : > { %v3635_v26 = vsub.f32 %v3629_v34, %v3634_v11  ;;  %v8104_v34 = vld [vmem:[#allocation56_spill] sm:$0xff] }
 0x8e0   : > { %v8107_v11 = vld [vmem:[#allocation60_spill] sm:$0xff] }
 0x8e1   : > { %v3636_v60 = vmul.f32 1.442695, %v3635_v26  ;;  %v8108_v26 = vld [vmem:[#allocation68_spill] sm:$0xff] }
 0x8e3   : > { %5014 = vpow2.f32 %v3636_v60  ;;  %v8109_v60 = vld [vmem:[#allocation59_spill] sm:$0xff] }
 0x8e9   : > { %v5015_v62 = vpop.eup %5014 }
 0x8ea   : > { %4797 = vmatmul.msk.f32.vlgmr.msra.gmra.mxu3 %vm1395_vm2, %v5015_v62 }
 0x8eb   : > { %3725 = vmatpush.bf16.msra.mxu3 %v7984_v8  ;;  %v8061_v8 = vld [vmem:[#allocation46_spill] sm:$0xff] }
 0x8ef   : > { %3726 = vmatpush.bf16.msra.mxu3 %v8058_v1  ;;  %v8111_v1 = vld [vmem:[#allocation71_spill] sm:$0xff] }
 0x96d   : > { %v3658_v28 = vpop.f32.mrf.mxu3 }
 0x96e   : > { %5016 = vrcp.f32 %v3658_v28  ;;  %v8112_v28 = vld [vmem:[#allocation63_spill] sm:$0xff] }
 0x974   : > { %v5017_v52 = vpop.eup %5016 }
 0x975   : > { %v3662_v5 = vmul.f32 %v5017_v52, %v5015_v62  ;;  %v8110_v62 = vld [vmem:[#allocation64_spill] sm:$0xff]  ;;  %v8113_v52 = vld [vmem:[#allocation67_spill] sm:$0xff] }
 0x977   : > { %v3663_v37 = vpack.c.bf16 %v3662_v5, %v3662_v5  ;;  %v8114_v5 = vld [vmem:[#allocation70_spill] sm:$0xff] }
 0x979   : > { %4798 = vmatmul.msk.bf16.vlgmr.msrb.gmra.mxu0 %vm1395_vm2, %v3663_v37  ;;  %4799 = vmatmul.msk.bf16.vlgmr.msrb.gmra.mxu3 %vm1395_vm2, %v3663_v37 }
 0x97a   : > { %4800 = vmatmul.msk.bf16.vlgmr.msra.gmra.mxu1 %vm1395_vm2, %v3663_v37  ;;  %4804 = vmatmul.msk.bf16.vlgmr.msrb.gmra.mxu2 %vm1395_vm2, %v3663_v37 }
 0x97b   : > { %3764 = vmatpush.bf16.msrb.mxu0 %v8059_v50  ;;  %3846 = vmatpush.bf16.msrb.mxu3 %v8060_v3  ;;  %v8116_v50 = vld [vmem:[#allocation74_spill] sm:$0xff] }
 0x97c   : > { %3859 = vmatpush.bf16.msra.mxu1 %v8061_v8  ;;  %3924 = vmatpush.bf16.msrb.mxu2 %v8062_v36 }
 0x97f   : > { %3765 = vmatpush.bf16.msrb.mxu0 %v8063_v40  ;;  %3847 = vmatpush.bf16.msrb.mxu3 %v8064_v18  ;;  %v4793_v40 = vld [vmem:[%s6163_s22 + $0x30] sm:$0xff] }
 0x980   : > { %3860 = vmatpush.bf16.msra.mxu1 %v8065_v47  ;;  %3925 = vmatpush.bf16.msrb.mxu2 %v8066_v54 }
 0x983   : > { %3848 = vmatpush.bf16.msrb.mxu3 %v8067_v27 }
 0x984   : > { %3861 = vmatpush.bf16.msra.mxu1 %v8068_v17  ;;  %3926 = vmatpush.bf16.msrb.mxu2 %v8069_v21  ;;  %v3775_v21 = vunpack.c.l.bf16 %v4793_v40 }
 0x987   : > { %3849 = vmatpush.bf16.msrb.mxu3 %v8070_v39 }
 0x988   : > { %3862 = vmatpush.bf16.msra.mxu1 %v8071_v31  ;;  %3927 = vmatpush.bf16.msrb.mxu2 %v8072_v4 }
 0x989   : > { %4801 = vmatmul.msk.bf16.vlgmr.msra.gmra.mxu0 %vm1395_vm2, %v3663_v37  ;;  %4802 = vmatmul.msk.bf16.vlgmr.msra.gmra.mxu3 %vm1395_vm2, %v3663_v37 }
 0x98a   : > { %4803 = vmatmul.msk.bf16.vlgmr.msrb.gmra.mxu1 %vm1395_vm2, %v3663_v37  ;;  %3885 = vmatpush.bf16.msra.mxu0 %v8073_v24 }
 0x98b   : > { %3850 = vmatpush.bf16.msrb.mxu3 %v8074_v61 }
 0x98c   : > { %3863 = vmatpush.bf16.msra.mxu1 %v8075_v48  ;;  %3928 = vmatpush.bf16.msrb.mxu2 %v8076_v46 }
 0x98e   : > { %3886 = vmatpush.bf16.msra.mxu0 %v8077_v33 }
 0x98f   : > { %3851 = vmatpush.bf16.msrb.mxu3 %v8078_v13 }
 0x990   : > { %3864 = vmatpush.bf16.msra.mxu1 %v8079_v49  ;;  %3929 = vmatpush.bf16.msrb.mxu2 %v8080_v51  ;;  %v3776_v51 = vunpack.c.h.bf16 %v4793_v40  ;;  %v8118_v40 = vld [vmem:[#allocation78_spill] sm:$0xff] }
 0x992   : > { %3887 = vmatpush.bf16.msra.mxu0 %v8081_v9 }
 0x993   : > { %3852 = vmatpush.bf16.msrb.mxu3 %v8082_v14 }
 0x994   : > { %3865 = vmatpush.bf16.msra.mxu1 %v8083_v15  ;;  %3930 = vmatpush.bf16.msrb.mxu2 %v8084_v25  ;;  %v4794_v15 = vld [vmem:[%s6163_s22 + $0x38] sm:$0xff] }
 0x996   : > { %3888 = vmatpush.bf16.msra.mxu0 %v8085_v42 }
 0x997   : > { %3853 = vmatpush.bf16.msrb.mxu3 %v8086_v29 }
 0x998   : > { %3866 = vmatpush.bf16.msra.mxu1 %v8088_v10  ;;  %3931 = vmatpush.bf16.msrb.mxu2 %v8091_v44 }
 0x999   : > { %4805 = vmatmul.msk.bf16.vlgmr.msrb.gmra.mxu0 %vm1395_vm2, %v3663_v37  ;;  %v8115_v37 = vld [vmem:[#allocation73_spill] sm:$0xff] }
 0x99a   : > { %3889 = vmatpush.bf16.msra.mxu0 %v8090_v58 }
 0x99b   : > { %3898 = vmatpush.bf16.msra.mxu3 %v8087_v30 }
 0x99c   : > { %3911 = vmatpush.bf16.msrb.mxu1 %v8089_v32 }
 0x99e   : > { %3890 = vmatpush.bf16.msra.mxu0 %v8094_v57 }
 0x99f   : > { %3899 = vmatpush.bf16.msra.mxu3 %v8092_v35 }
 0x9a0   : > { %3912 = vmatpush.bf16.msrb.mxu1 %v8093_v59 }
 0x9a2   : > { %3891 = vmatpush.bf16.msra.mxu0 %v8097_v20 }
 0x9a3   : > { %3900 = vmatpush.bf16.msra.mxu3 %v8095_v41  ;;  %v3777_v41 = vunpack.c.l.bf16 %v4794_v15 }
 0x9a4   : > { %3913 = vmatpush.bf16.msrb.mxu1 %v8096_v6 }
 0x9a6   : > { %3892 = vmatpush.bf16.msra.mxu0 %v8100_v38 }
 0x9a7   : > { %3901 = vmatpush.bf16.msra.mxu3 %v8098_v63 }
 0x9a8   : > { %3914 = vmatpush.bf16.msrb.mxu1 %v8099_v12 }
 0x9aa   : > { %3937 = vmatpush.bf16.msrb.mxu0 %v8101_v53 }
 0x9ab   : > { %3902 = vmatpush.bf16.msra.mxu3 %v8102_v22 }
 0x9ac   : > { %3915 = vmatpush.bf16.msrb.mxu1 %v8103_v45 }
 0x9ae   : > { %3938 = vmatpush.bf16.msrb.mxu0 %v8104_v34 }
 0x9af   : > { %3903 = vmatpush.bf16.msra.mxu3 %v8105_v23 }
 0x9b0   : > { %3916 = vmatpush.bf16.msrb.mxu1 %v8106_v55 }
 0x9b2   : > { %3939 = vmatpush.bf16.msrb.mxu0 %v8107_v11 }
 0x9b3   : > { %3904 = vmatpush.bf16.msra.mxu3 %v8108_v26  ;;  %v3778_v26 = vunpack.c.h.bf16 %v4794_v15 }
 0x9b4   : > { %3917 = vmatpush.bf16.msrb.mxu1 %v8109_v60 }
 0x9b6   : > { %3940 = vmatpush.bf16.msrb.mxu0 %v8110_v62 }
 0x9b7   : > { %3905 = vmatpush.bf16.msra.mxu3 %v8111_v1 }
 0x9b8   : > { %3918 = vmatpush.bf16.msrb.mxu1 %v8112_v28 }
 0x9ba   : > { %3941 = vmatpush.bf16.msrb.mxu0 %v8113_v52 }
 0x9be   : > { %3942 = vmatpush.bf16.msrb.mxu0 %v8114_v5 }
 0x9c2   : > { %3943 = vmatpush.bf16.msrb.mxu0 %v8115_v37 }
 0x9c6   : > { %3944 = vmatpush.bf16.msrb.mxu0 %v8116_v50 }
 0x9f6   : > { %v3676_v3 = vpop.f32.mrf.mxu0 }
 0x9f7   : > { %v3702_v8 = vpop.f32.mrf.mxu1 }
 0x9fc   : > { %v3689_v36 = vpop.f32.mrf.mxu3 }
 0x9fd   : > { %v3771_v18 = vpack.c.bf16 %v3689_v36, %v3676_v3  ;;  %v3754_v47 = vpop.f32.mrf.mxu2 }
 0x9fe   : > { %v3678_v54 = vpop.f32.mrf.mxu0 }
 0x9ff   : > { %v3780_v27 = vunpack.c.h.bf16 %v3771_v18  ;;  %v3704_v17 = vpop.f32.mrf.mxu1  ;;  %v3779_v39 = vunpack.c.l.bf16 %v3771_v18  ;;  %v4795_v18 = vld [vmem:[%s6351_s27 + $0x6] sm:$0x3] }
 0xa01   : > { %v3795_v31 = vrot.slane %v3780_v27, 4 }
 0xa03   : > { %v3799_v4 = vsel %vm852_vm0, %v3779_v39, %v3795_v31 }
 0xa04   : > { %v3807_v24 = vmul.f32 %v3799_v4, %v3775_v21  ;;  %v3691_v61 = vpop.f32.mrf.mxu3 }
 0xa05   : > { %v3756_v48 = vpop.f32.mrf.mxu2 }
 0xa06   : > { %3815 = vst [vmem:[#allocation1] ss:$2 sm:$0xff] %v3807_v24  ;;  %v3715_v46 = vpop.f32.mrf.mxu0 }
 0xa07   : > { %v3772_v33 = vpack.c.bf16 %v3715_v46, %v3702_v8  ;;  %v3741_v13 = vpop.f32.mrf.mxu1 }
 0xa09   : > { %v3782_v49 = vunpack.c.h.bf16 %v3772_v33  ;;  %v3781_v9 = vunpack.c.l.bf16 %v3772_v33 }
 0xa0b   : > { %v3796_v14 = vrot.slane %v3782_v49, 4 }
 0xa0c   : > { %v3728_v25 = vpop.f32.mrf.mxu3 }
 0xa0d   : > { %v3800_v42 = vsel %vm852_vm0, %v3781_v9, %v3796_v14  ;;  %v3773_v29 = vpack.c.bf16 %v3741_v13, %v3728_v25  ;;  %v3822_v30 = vld.sshfl [vmem:[#allocation1] sm:$0xff pattern:$0x75316420]  ;;  %v3823_v10 = vld.sshfl [vmem:[#allocation1 + $0x8] sm:$0xff pattern:$0x75316420] }
 0xa0e   : > { %v3808_v32 = vmul.f32 %v3800_v42, %v3776_v51  ;;  %v3717_v58 = vpop.f32.mrf.mxu0  ;;  %v3838_v44 = vpack.c.bf16 %v3822_v30, %v3822_v30  ;;  %v3839_v35 = vpack.c.bf16 %v3823_v10, %v3823_v10 }
 0xa0f   : > { %v3784_v59 = vunpack.c.h.bf16 %v3773_v29  ;;  %v3743_v57 = vpop.f32.mrf.mxu1  ;;  %v3783_v6 = vunpack.c.l.bf16 %v3773_v29 }
 0xa10   : > { %3817 = vst [vmem:[#allocation1 + $0x10] ss:$2 sm:$0xff] %v3808_v32  ;;  %3854 = vmatmul.bf16.vlgmr.msrb.gmra.mxu3 %v3838_v44  ;;  %3867 = vmatmul.bf16.vlgmr.msra.gmra.mxu1 %v3839_v35 }
 0xa11   : > { %v3797_v20 = vrot.slane %v3784_v59, 4  ;;  %3950 = vmatpush.bf16.msrb.mxu3 %v7283_v7 }
 0xa13   : > { %v3801_v63 = vsel %vm852_vm0, %v3783_v6, %v3797_v20 }
 0xa14   : > { %v3809_v12 = vmul.f32 %v3801_v63, %v3777_v41  ;;  %v3730_v38 = vpop.f32.mrf.mxu3 }
 0xa15   : > { %3951 = vmatpush.bf16.msrb.mxu3 %v7293_v2 }
 0xa16   : > { %3819 = vst [vmem:[#allocation1 + $0x20] ss:$2 sm:$0xff] %v3809_v12  ;;  %v3767_v53 = vpop.f32.mrf.mxu0 }
 0xa17   : > { %v3774_v22 = vpack.c.bf16 %v3767_v53, %v3754_v47  ;;  %v3824_v45 = vld.sshfl [vmem:[#allocation1 + $0x10] sm:$0xff pattern:$0x75316420]  ;;  %v3825_v34 = vld.sshfl [vmem:[#allocation1 + $0x18] sm:$0xff pattern:$0x75316420] }
 0xa18   : > { %v3840_v23 = vpack.c.bf16 %v3824_v45, %v3824_v45  ;;  %v3841_v55 = vpack.c.bf16 %v3825_v34, %v3825_v34  ;;  %v4807_v34 = vld [vmem:[%s6531_s28 + $0x6] sm:$0x3] }
 0xa19   : > { %v3786_v11 = vunpack.c.h.bf16 %v3774_v22  ;;  %3952 = vmatpush.bf16.msrb.mxu3 %v7300_v56  ;;  %v3785_v7 = vunpack.c.l.bf16 %v3774_v22  ;;  %v8117_v56 = vld [vmem:[#allocation75_spill] sm:$0xff] }
 0xa1a   : > { %3880 = vmatmul.bf16.vlgmr.msra.gmra.mxu2 %v3840_v23  ;;  %3893 = vmatmul.bf16.vlgmr.msra.gmra.mxu0 %v3841_v55 }
 0xa1b   : > { %v3798_v60 = vrot.slane %v3786_v11, 4 }
 0xa1d   : > { %v3802_v62 = vsel %vm852_vm0, %v3785_v7, %v3798_v60  ;;  %3953 = vmatpush.bf16.msrb.mxu3 %v7314_v0  ;;  %v3826_v2 = vld.sshfl [vmem:[#allocation1 + $0x20] sm:$0xff pattern:$0x75316420]  ;;  %v3827_v1 = vld.sshfl [vmem:[#allocation1 + $0x28] sm:$0xff pattern:$0x75316420] }
 0xa1e   : > { %v3810_v28 = vmul.f32 %v3802_v62, %v3778_v26  ;;  %v3769_v52 = vpop.f32.mrf.mxu0  ;;  %v3842_v5 = vpack.c.bf16 %v3826_v2, %v3826_v2  ;;  %v3843_v37 = vpack.c.bf16 %v3827_v1, %v3827_v1  ;;  %v8119_v0 = vld [vmem:[#allocation76_spill] sm:$0xff] }
 0xa20   : > { %3821 = vst [vmem:[#allocation1 + $0x30] ss:$2 sm:$0xff] %v3810_v28  ;;  %3906 = vmatmul.bf16.vlgmr.msra.gmra.mxu3 %v3842_v5  ;;  %3919 = vmatmul.bf16.vlgmr.msrb.gmra.mxu1 %v3843_v37 }
 0xa21   : > { %3954 = vmatpush.bf16.msrb.mxu3 %v7327_v43 }
 0xa25   : > { %3955 = vmatpush.bf16.msrb.mxu3 %v8117_v56 }
 0xa27   : > { %v3828_v50 = vld.sshfl [vmem:[#allocation1 + $0x30] sm:$0xff pattern:$0x75316420]  ;;  %v3829_v3 = vld.sshfl [vmem:[#allocation1 + $0x38] sm:$0xff pattern:$0x75316420] }
 0xa28   : > { %v3844_v8 = vpack.c.bf16 %v3828_v50, %v3828_v50  ;;  %v3845_v36 = vpack.c.bf16 %v3829_v3, %v3829_v3 }
 0xa29   : > { %3956 = vmatpush.bf16.msrb.mxu3 %v8118_v40 }
 0xa2a   : > { %3932 = vmatmul.bf16.vlgmr.msrb.gmra.mxu2 %v3844_v8  ;;  %3945 = vmatmul.bf16.vlgmr.msrb.gmra.mxu0 %v3845_v36 }
 0xa2d   : > { %3957 = vmatpush.bf16.msrb.mxu3 %v8119_v0 }
 0xa30   : > { %3958 = vmatmul.bf16.vlgmr.msrb.gmra.mxu3 %v4795_v18 }
 0xa8d   : > { %v3868_v47 = vpop.f32.mrf.mxu1 }
 0xa93   : > { %v3855_v54 = vpop.f32.mrf.mxu3 }
 0xa94   : > { %v3869_v4 = vadd.f32 %v3868_v47, %v3855_v54 }
 0xa95   : > { %v3870_v27 = vpop.f32.mrf.mxu1 }
 0xa97   : > { %v3894_v17 = vpop.f32.mrf.mxu0 }
 0xa9b   : > { %v3857_v21 = vpop.f32.mrf.mxu3 }
 0xa9d   : > { %v3881_v43 = vpop.f32.mrf.mxu2  ;;  %v3920_v39 = vpop.f32.mrf.mxu1 }
 0xa9e   : > { %v3882_v24 = vadd.f32 %v3881_v43, %v3869_v4 }
 0xa9f   : > { %v3896_v31 = vpop.f32.mrf.mxu0 }
 0xaa0   : > { %v3895_v33 = vadd.f32 %v3894_v17, %v3882_v24 }
 0xaa3   : > { %v3907_v61 = vpop.f32.mrf.mxu3 }
 0xaa4   : > { %v3908_v49 = vadd.f32 %v3907_v61, %v3895_v33 }
 0xaa5   : > { %v3883_v48 = vpop.f32.mrf.mxu2  ;;  %v3922_v46 = vpop.f32.mrf.mxu1 }
 0xaa6   : > { %v3921_v9 = vadd.f32 %v3920_v39, %v3908_v49 }
 0xaa7   : > { %v3946_v13 = vpop.f32.mrf.mxu0 }
 0xaab   : > { %v3909_v51 = vpop.f32.mrf.mxu3 }
 0xaad   : > { %v3933_v14 = vpop.f32.mrf.mxu2 }
 0xaae   : > { %v3934_v15 = vadd.f32 %v3933_v14, %v3921_v9 }
 0xaaf   : > { %v3948_v25 = vpop.f32.mrf.mxu0 }
 0xab0   : > { %v3947_v42 = vadd.f32 %v3946_v13, %v3934_v15 }
 0xab3   : > { %v3959_v29 = vpop.f32.mrf.mxu3 }
 0xab4   : > { %v3960_v30 = vadd.f32 %v3959_v29, %v3947_v42 }
 0xab5   : > { %v3935_v10 = vpop.f32.mrf.mxu2 }
 0xab6   : > { %v3963_v32 = vadd.f32 %v7505_v19, %v3960_v30 }
 0xab8   : > { %v4806_v58 = vmul.f32 -1.442695, %v3963_v32 }
 0xaba   : > { %5018 = vpow2.f32 %v4806_v58 }
 0xabb   : > { %v3961_v44 = vpop.f32.mrf.mxu3 }
 0xac0   : > { %v5019_v35 = vpop.eup %5018 }
 0xac1   : > { %v3967_v59 = vadd.f32 1.0, %v5019_v35 }
 0xac3   : > { %5020 = vrcp.f32 %v3967_v59  ;;  %v3979_v20 = vand.u32 2147483648, %v3967_v59  ;;  %v3977_v12 = vand.u32 2147483647, %v3967_v59  ;;  %vm3973_vm1 = vweird.f32 %v3967_v59 }
 0xac5   : > { %v3980_v53 = vor.u32 1.1754944e-38, %v3979_v20  ;;  %vm3978_vm5 = vcmp.eq.f32.partialorder %v3977_v12, 8.507059e+37 }
 0xac9   : > { %v5021_v57 = vpop.eup %5020 }
 0xaca   : > { %v3969_v41 = vmul.f32 %v5021_v57, %v3967_v59  ;;  %vm3974_vm0 = vweird.f32 %v5021_v57 }
 0xacb   : > { %vm3975_vm2 = vmor %vm3973_vm1, %vm3974_vm0 }
 0xacc   : > { %v3970_v6 = vsub.f32 1.0, %v3969_v41 }
 0xace   : > { %v3971_v63 = vmul.f32 %v5021_v57, %v3970_v6 }
 0xad0   : > { %v3972_v38 = vadd.f32 %v5021_v57, %v3971_v63 }
 0xad2   : > { %v3976_v19 = vsel %vm3975_vm2, %v5021_v57, %v3972_v38 }
 0xad3   : > { %v3981_v22 = vsel %vm3978_vm5, %v3980_v53, %v3976_v19 }
 0xad4   : > { %v3983_v45 = vpack.c.bf16 %v3981_v22, %v3981_v22 }
 0xad6   : > { %v3986_v23 = vsel %vm6534_vm9, %v3983_v45, %v4807_v34 }
 0xad7   : > { %4808 = vst [vmem:[%s6531_s28 + $0x6] sm:$0x3] %v3986_v23 }
 0xad8 PF: > { %s20_s15 = sadd.s32 1, %s5223_s15   ;;  %s8120_s13 = smov %s5219_s14 }
 0xad9   : > { %p17_p5 = scmp.ge.s32.totalorder %s20_s15, 4   ;;  %s8121_s14 = smov %s8123_s16 }
 0xadb   :  { %19 = sbr.rel (!%p17_p5) target bundleno = 2 (0x2), region = 138 }

</bundles_post_ra>
